<compile_context>
chip_gen: v7x
topology: tpu7x:2x2x1
jax: 0.10.0
libtpu: 0.0.40
codegen_flags: <defaults>
</compile_context>

<pallas_src>
import functools

import jax
import jax.numpy as jnp
from jax.experimental import pallas as pl
from jax.experimental.pallas import tpu as pltpu


def _round_up(x, m):
    return ((x + m - 1) // m) * m


def _cdiv(a, b):
    return -(-a // b)


VMEM_LIMIT = 48 * 1024 * 1024  # explicit scoped-VMEM budget (< v7x 64 MiB physical)


# ---------------- Pallas kernels ----------------

def _edge_block_kernel(*refs, n_convs):
    # Fused (1x1 conv -> folded-BN bias -> LeakyReLU(0.2)) x n_convs, then max
    # over the k neighbours.  refs = x_ref, (w, b)*n_convs, o_ref.
    # x_ref: (1, k, tm, cin) bf16 neighbour-major; o_ref: (1, tm, cout) f32.
    x_ref = refs[0]
    o_ref = refs[-1]
    _, k, tm, cin = x_ref.shape
    y = x_ref[0].reshape(k * tm, cin)
    for c in range(n_convs):
        w_ref = refs[1 + 2 * c]
        b_ref = refs[2 + 2 * c]
        if c > 0:
            y = y.astype(jnp.bfloat16)
        y = jnp.dot(y, w_ref[...], preferred_element_type=jnp.float32)
        y = y + b_ref[...]
        y = jnp.where(y >= 0.0, y, 0.2 * y)
    cout = y.shape[-1]
    # Neighbour-major: splitting the leading (sublane) dim keeps alignment
    # (tm % 8 == 0), so the max is pure VPU work.
    o_ref[0] = jnp.max(y.reshape(k, tm, cout), axis=0)


def _conv6_max_kernel(x_ref, w_ref, b_ref, g_ref, *, n_valid):
    # conv6 (192 -> emb, folded BN) fused with the global max over points.
    # g_ref block is resident across the (last, "arbitrary") N-chunk axis.
    s = pl.program_id(1)
    n = pl.program_id(2)
    n_chunks = pl.num_programs(2)
    tn = x_ref.shape[1]
    y = jnp.dot(x_ref[0], w_ref[...], preferred_element_type=jnp.float32)
    y = y + b_ref[...]
    y = jnp.where(y >= 0.0, y, 0.2 * y)
    row = (s * n_chunks + n) * tn + jax.lax.broadcasted_iota(jnp.int32, (tn, 1), 0)
    y = jnp.where(row < n_valid, y, -jnp.inf)          # mask padded points
    tile_max = jnp.max(y, axis=0, keepdims=True)       # (1, emb)

    @pl.when(n == 0)
    def _():
        g_ref[0] = tile_max

    @pl.when(n > 0)
    def _():
        g_ref[0] = jnp.maximum(g_ref[0], tile_max)


def _conv78_kernel(g7_ref, x_ref, w7_ref, w8_ref, b8_ref, o_ref):
    # conv7 (concat-free: single K=192 dot + precomputed global contribution,
    # which already includes the conv7 bias) fused with conv8.
    y = g7_ref[0] + jnp.dot(x_ref[0], w7_ref[...],
                            preferred_element_type=jnp.float32)    # (tn, c7)
    y = jnp.where(y >= 0.0, y, 0.2 * y)
    y = jnp.dot(y.astype(jnp.bfloat16), w8_ref[...],
                preferred_element_type=jnp.float32)                # (tn, c8)
    y = y + b8_ref[...]
    o_ref[0] = jnp.where(y >= 0.0, y, 0.2 * y)


def _pairwise_dist_kernel(xi_ref, xj_ref, ni_ref, nj_ref, o_ref):
    # Tiled negated squared pairwise distances (f32, channels-last inputs):
    #   o[i, j] = 2 <x_i, x_j> - |x_i|^2 - |x_j|^2    (larger == closer)
    # Squared norms are precomputed and fed in row/column layouts.
    xi = xi_ref[0]                                     # (tni, C)
    xj = xj_ref[0]                                     # (tnj, C)
    g = jax.lax.dot_general(xi, xj, (((1,), (1,)), ((), ())),
                            preferred_element_type=jnp.float32)    # (tni, tnj)
    o_ref[0] = 2.0 * g - nj_ref[0] - ni_ref[0]


# ---------------- kernel wrappers ----------------

def edge_conv_block(feat, conv_params, *, target_rows=8192):
    # feat: (B, k, N, cin) bf16 neighbour-major edge features.
    # conv_params: list of 1 or 2 (w, scale, bias) f32 tuples (scale folded here).
    # Returns (B, N, cout_last) f32 (max over the k neighbours of each point).
    B, k, N, cin = feat.shape
    n_convs = len(conv_params)
    cout = conv_params[-1][0].shape[1]

    tm = max(8, min(_round_up(N, 8), (target_rows // k) // 8 * 8))
    Np = _round_up(N, tm)
    if Np != N:
        feat = jnp.pad(feat, ((0, 0), (0, 0), (0, Np - N), (0, 0)))

    in_specs = [pl.BlockSpec((1, k, tm, cin), lambda b, n: (b, 0, n, 0))]
    args = [feat]
    flops = 0
    c_prev = cin
    for (w, s, b) in conv_params:
        co = w.shape[1]
        wf = (w * s[None, :]).astype(jnp.bfloat16)      # fold BN scale
        in_specs += [
            pl.BlockSpec((w.shape[0], co), lambda b, n: (0, 0)),
            pl.BlockSpec((1, co), lambda b, n: (0, 0)),
        ]
        args += [wf, b.reshape(1, -1)]
        flops += 2 * B * k * Np * c_prev * co
        c_prev = co
    bytes_accessed = (B * k * Np * cin * 2 + B * Np * cout * 4 +
                      sum(int(w.size) * 2 + int(bb.size) * 4
                          for (w, _, bb) in conv_params))

    out = pl.pallas_call(
        functools.partial(_edge_block_kernel, n_convs=n_convs),
        out_shape=jax.ShapeDtypeStruct((B, Np, cout), jnp.float32),
        grid=(B, Np // tm),
        in_specs=in_specs,
        out_specs=pl.BlockSpec((1, tm, cout), lambda b, n: (b, n, 0)),
        compiler_params=pltpu.CompilerParams(
            dimension_semantics=("parallel", "parallel"),
            vmem_limit_bytes=VMEM_LIMIT),
        cost_estimate=pl.CostEstimate(flops=flops, transcendentals=0,
                                      bytes_accessed=bytes_accessed),
    )(*args)
    return out[:, :N]


def conv6_global_max(x123, conv6_params, *, tn=2048, n_split=2):
    # x123: (B, N, 192) bf16.  Returns the per-batch global feature (B, emb) f32.
    # The N reduction is split into n_split parallel chunks (v7x: 2 TCs busy).
    w, scale, bias = conv6_params
    B, N, cin = x123.shape
    emb = w.shape[1]
    tn = min(tn, _round_up(N, 8))
    n_chunks_total = _cdiv(N, tn)
    if n_chunks_total < n_split:
        n_split = 1
    n_chunks = _cdiv(n_chunks_total, n_split)
    Np = tn * n_chunks * n_split
    if Np != N:
        x123 = jnp.pad(x123, ((0, 0), (0, Np - N), (0, 0)))
    wf = (w * scale[None, :]).astype(jnp.bfloat16)      # fold BN scale

    g = pl.pallas_call(
        functools.partial(_conv6_max_kernel, n_valid=N),
        out_shape=jax.ShapeDtypeStruct((B, n_split, emb), jnp.float32),
        grid=(B, n_split, n_chunks),
        in_specs=[
            pl.BlockSpec((1, tn, cin), lambda b, s, n: (b, s * n_chunks + n, 0)),
            pl.BlockSpec((cin, emb), lambda b, s, n: (0, 0)),
            pl.BlockSpec((1, emb), lambda b, s, n: (0, 0)),
        ],
        out_specs=pl.BlockSpec((1, 1, emb), lambda b, s, n: (b, s, 0)),
        compiler_params=pltpu.CompilerParams(
            dimension_semantics=("parallel", "parallel", "arbitrary"),
            vmem_limit_bytes=VMEM_LIMIT),
        cost_estimate=pl.CostEstimate(
            flops=2 * B * Np * cin * emb, transcendentals=0,
            bytes_accessed=B * Np * cin * 2 + cin * emb * 2 + B * n_split * emb * 4),
    )(x123, wf, bias.reshape(1, -1))
    return jnp.max(g, axis=1)                           # combine partial maxes


def conv78_fused(g, x123, conv7_params, conv8_params, *, tn=2048):
    # g: (B, emb) f32 global feature; x123: (B, N, 192) bf16.
    # Returns (B, N, c8) f32 point features (conv7 + conv8, concat-free).
    w7, s7, b7 = conv7_params
    w8, s8, b8 = conv8_params
    B, N, cin = x123.shape
    emb = g.shape[1]
    c7 = w7.shape[1]
    c8 = w8.shape[1]

    # Fold BN scales into the weights; conv7 bias goes into the (tiny,
    # precomputed) global-feature contribution.
    w7g = w7[:emb] * s7[None, :]
    w7x = (w7[emb:emb + cin] * s7[None, :]).astype(jnp.bfloat16)
    g7 = (jnp.dot(g, w7g) + b7[None, :]).reshape(B, 1, c7)          # f32
    w8f = (w8 * s8[None, :]).astype(jnp.bfloat16)

    tn = min(tn, _round_up(N, 8))
    Np = _round_up(N, tn)
    if Np != N:
        x123 = jnp.pad(x123, ((0, 0), (0, Np - N), (0, 0)))

    out = pl.pallas_call(
        _conv78_kernel,
        out_shape=jax.ShapeDtypeStruct((B, Np, c8), jnp.float32),
        grid=(B, Np // tn),
        in_specs=[
            pl.BlockSpec((1, 1, c7), lambda b, n: (b, 0, 0)),        # g7 (+bias7)
            pl.BlockSpec((1, tn, cin), lambda b, n: (b, n, 0)),      # x123 tile
            pl.BlockSpec((cin, c7), lambda b, n: (0, 0)),
            pl.BlockSpec((c7, c8), lambda b, n: (0, 0)),
            pl.BlockSpec((1, c8), lambda b, n: (0, 0)),
        ],
        out_specs=pl.BlockSpec((1, tn, c8), lambda b, n: (b, n, 0)),
        compiler_params=pltpu.CompilerParams(
            dimension_semantics=("parallel", "parallel"),
            vmem_limit_bytes=VMEM_LIMIT),
        cost_estimate=pl.CostEstimate(
            flops=2 * B * Np * (cin * c7 + c7 * c8), transcendentals=0,
            bytes_accessed=(B * Np * cin * 2 + B * Np * c8 * 4 +
                            (cin * c7 + c7 * c8) * 2)),
    )(g7, x123, w7x, w8f, b8.reshape(1, -1))
    return out[:, :N]


def pairwise_distance(x, *, tn=512):
    # x: (B, N, C) f32 channels-last.  Tiled over (N_i, N_j) blocks; the Gram
    # matmul stays f32 so kNN selection matches the reference ordering.
    B, N, C = x.shape
    Np = _round_up(N, 128)
    for cand in (tn, 256, 128):
        if Np % cand == 0:
            tn = cand
            break
    if Np != N:
        x = jnp.pad(x, ((0, 0), (0, Np - N), (0, 0)))

    sq = jnp.sum(x * x, axis=-1)            # (B, Np) precomputed squared norms
    sq_row = sq[:, None, :]                 # (B, 1, Np)  -> broadcast over rows
    sq_col = sq[:, :, None]                 # (B, Np, 1)  -> broadcast over cols

    pd = pl.pallas_call(
        _pairwise_dist_kernel,
        out_shape=jax.ShapeDtypeStruct((B, Np, Np), jnp.float32),
        grid=(B, Np // tn, Np // tn),
        in_specs=[
            pl.BlockSpec((1, tn, C), lambda b, i, j: (b, i, 0)),
            pl.BlockSpec((1, tn, C), lambda b, i, j: (b, j, 0)),
            pl.BlockSpec((1, tn, 1), lambda b, i, j: (b, i, 0)),
            pl.BlockSpec((1, 1, tn), lambda b, i, j: (b, 0, j)),
        ],
        out_specs=pl.BlockSpec((1, tn, tn), lambda b, i, j: (b, i, j)),
        compiler_params=pltpu.CompilerParams(
            dimension_semantics=("parallel", "parallel", "parallel")),
    )(x, x, sq_col, sq_row)
    return pd[:, :N, :N]


# ---------------- DGCNN glue (plain JAX) ----------------

def get_graph_feature(x_nl, k, dim9=False):
    # x_nl: (B, N, C) f32 channels-last.
    # Returns NEIGHBOUR-MAJOR bf16 edge features (B, k, N, 2C) = [neigh - x, x].
    B, N, C = x_nl.shape
    xq = x_nl[:, :, 6:] if dim9 else x_nl
    pd = pairwise_distance(xq)                    # Pallas, tiled, f32
    # TODO(synk): top-k neighbour selection + the dynamic row gather stay in
    # plain JAX; streaming a per-row running top-k inside the distance kernel
    # (avoiding the (B, N, N) HBM round-trip) needs an in-kernel k-way merge
    # which is not implemented here.
    idx = jax.lax.top_k(pd, k)[1]                 # (B, N, k)
    idx_t = jnp.transpose(idx, (0, 2, 1))         # (B, k, N)
    xb = x_nl.astype(jnp.bfloat16)                # gather/concat built in bf16
    neigh = jax.vmap(lambda pts, nbr: pts[nbr])(xb, idx_t)        # (B, k, N, C)
    center = jnp.broadcast_to(xb[:, None, :, :], (B, k, N, C))
    return jnp.concatenate([neigh - center, center], axis=-1)     # (B, k, N, 2C)


def dgcnn_semseg_forward(params, x, k):
    # x: (B, input_channel, N)  -- same as the PyTorch forward input.
    B, C, N = x.shape
    inputs = jnp.transpose(x, (0, 2, 1))          # (B, N, C) == x.permute(0,2,1)

    # Edge block 1: conv1 -> conv2 -> max over k (one fused kernel).
    feat = get_graph_feature(inputs, k, dim9=(C == 9))            # (B, k, N, 2C)
    x1 = edge_conv_block(feat, [params['conv1'], params['conv2']])  # (B, N, 64)

    # Edge block 2: conv3 -> conv4 -> max over k.
    feat = get_graph_feature(x1, k)
    x2 = edge_conv_block(feat, [params['conv3'], params['conv4']])

    # Edge block 3: conv5 -> max over k.
    feat = get_graph_feature(x2, k)
    x3 = edge_conv_block(feat, [params['conv5']])

    # Single (B, N, 192) bf16 concat feeds conv6 and conv7 as K=192 matmuls.
    x123 = jnp.concatenate([x1, x2, x3], axis=-1).astype(jnp.bfloat16)
    g = conv6_global_max(x123, params['conv6'])                   # (B, emb)
    pf = conv78_fused(g, x123, params['conv7'], params['conv8'])  # (B, N, 256)
    point_features = jnp.transpose(pf, (0, 2, 1))                 # (B, 256, N)
    return inputs, point_features


# ---------------- deterministic parameter init ----------------

def _fold_bn(key, cout, eps=1e-5):
    k1, k2, k3, k4 = jax.random.split(key, 4)
    gamma = jax.random.uniform(k1, (cout,), jnp.float32, 0.8, 1.2)
    beta = 0.1 * jax.random.normal(k2, (cout,), jnp.float32)
    mean = 0.1 * jax.random.normal(k3, (cout,), jnp.float32)
    var = jax.random.uniform(k4, (cout,), jnp.float32, 0.5, 1.5)
    scale = gamma * jax.lax.rsqrt(var + eps)
    bias = beta - mean * scale
    return scale, bias


def init_params(key, input_channel=9, emb_dims=1024):
    layer_dims = {
        'conv1': (2 * input_channel, 64),
        'conv2': (64, 64),
        'conv3': (128, 64),
        'conv4': (64, 64),
        'conv5': (128, 64),
        'conv6': (192, emb_dims),
        'conv7': (emb_dims + 192, 512),
        'conv8': (512, 256),
    }
    params = {}
    for name, (cin, cout) in layer_dims.items():
        key, kw, kb = jax.random.split(key, 3)
        w = 0.1 * jax.random.normal(kw, (cin, cout), jnp.float32)
        scale, bias = _fold_bn(kb, cout)
        params[name] = (w, scale, bias)
    return params


if __name__ == "__main__":
    B, C, N, K = 2, 9, 64, 8        # small shapes: batch=2, 9 in-channels, 64 points, k=8
    EMB = 1024

    key = jax.random.PRNGKey(0)
    kp, kx = jax.random.split(key)
    params = init_params(kp, input_channel=C, emb_dims=EMB)
    x = jax.random.normal(kx, (B, C, N), jnp.float32)

    fwd = jax.jit(dgcnn_semseg_forward, static_argnums=(2,))
    inputs, point_features = fwd(params, x, K)
    jax.block_until_ready((inputs, point_features))

    assert inputs.shape == (B, N, C)
    assert point_features.shape == (B, 256, N)
    assert bool(jnp.all(jnp.isfinite(point_features)))
    print("KERNEL_OK")
</pallas_src>

<mosaic_0001>
module attributes {stable_mosaic.version = 11 : i64} {
  func.func @_pairwise_dist_kernel(%arg0: i32, %arg1: i32, %arg2: i32, %arg3: memref<1x128x3xf32, #tpu.memory_space<vmem>>, %arg4: memref<1x128x3xf32, #tpu.memory_space<vmem>>, %arg5: memref<1x128x1xf32, #tpu.memory_space<vmem>>, %arg6: memref<1x1x128xf32, #tpu.memory_space<vmem>>, %arg7: memref<1x128x128xf32, #tpu.memory_space<vmem>>) attributes {dimension_semantics = [#tpu.dimension_semantics<parallel>, #tpu.dimension_semantics<parallel>, #tpu.dimension_semantics<parallel>], iteration_bounds = array<i64: 2, 1, 1>, scalar_prefetch = 0 : i64, scratch_operands = 0 : i64, tpu.core_type = #tpu.core_type<tc>, window_params = [{transform_indices = @transform_0, window_bounds = array<i64: 1, 128, 3>}, {transform_indices = @transform_1, window_bounds = array<i64: 1, 128, 3>}, {transform_indices = @transform_2, window_bounds = array<i64: 1, 128, 1>}, {transform_indices = @transform_3, window_bounds = array<i64: 1, 1, 128>}, {transform_indices = @transform_4, window_bounds = array<i64: 1, 128, 128>}]} {
    %c0 = arith.constant 0 : index
    %c0_0 = arith.constant 0 : index
    %c0_1 = arith.constant 0 : index
    %0 = vector.load %arg3[%c0, %c0_0, %c0_1] : memref<1x128x3xf32, #tpu.memory_space<vmem>>, vector<1x128x3xf32>
    %1 = vector.shape_cast %0 : vector<1x128x3xf32> to vector<128x3xf32>
    %c0_2 = arith.constant 0 : index
    %c0_3 = arith.constant 0 : index
    %c0_4 = arith.constant 0 : index
    %2 = vector.load %arg4[%c0_2, %c0_3, %c0_4] : memref<1x128x3xf32, #tpu.memory_space<vmem>>, vector<1x128x3xf32>
    %3 = vector.shape_cast %2 : vector<1x128x3xf32> to vector<128x3xf32>
    %cst = arith.constant dense<0.000000e+00> : vector<128x128xf32>
    %4 = tpu.matmul %1, %3, %cst {dimension_numbers = #tpu.dot_dimension_numbers<[1], [1], [0], [0], [0, 0, 1, 0], [], []>} : vector<128x3xf32>, vector<128x3xf32>, vector<128x128xf32> -> vector<128x128xf32>
    %cst_5 = arith.constant 2.000000e+00 : f32
    %5 = vector.broadcast %cst_5 : f32 to vector<128x128xf32>
    %6 = arith.mulf %5, %4 : vector<128x128xf32>
    %c0_6 = arith.constant 0 : index
    %c0_7 = arith.constant 0 : index
    %c0_8 = arith.constant 0 : index
    %7 = vector.load %arg6[%c0_6, %c0_7, %c0_8] : memref<1x1x128xf32, #tpu.memory_space<vmem>>, vector<1x1x128xf32>
    %8 = vector.shape_cast %7 : vector<1x1x128xf32> to vector<1x128xf32>
    %9 = vector.broadcast %8 : vector<1x128xf32> to vector<128x128xf32>
    %10 = arith.subf %6, %9 : vector<128x128xf32>
    %c0_9 = arith.constant 0 : index
    %c0_10 = arith.constant 0 : index
    %c0_11 = arith.constant 0 : index
    %11 = vector.load %arg5[%c0_9, %c0_10, %c0_11] : memref<1x128x1xf32, #tpu.memory_space<vmem>>, vector<1x128x1xf32>
    %12 = vector.shape_cast %11 : vector<1x128x1xf32> to vector<128x1xf32>
    %13 = vector.broadcast %12 : vector<128x1xf32> to vector<128x128xf32>
    %14 = arith.subf %10, %13 : vector<128x128xf32>
    %c0_12 = arith.constant 0 : index
    %c0_13 = arith.constant 0 : index
    %c0_14 = arith.constant 0 : index
    %15 = vector.load %arg7[%c0_12, %c0_13, %c0_14] : memref<1x128x128xf32, #tpu.memory_space<vmem>>, vector<1x128x128xf32>
    %16 = vector.shape_cast %15 : vector<1x128x128xf32> to vector<128x128xf32>
    %17 = vector.shape_cast %14 : vector<128x128xf32> to vector<1x128x128xf32>
    tpu.vector_store %arg7[%c0_12, %c0_13, %c0_14], %17 {strides = array<i32>} : memref<1x128x128xf32, #tpu.memory_space<vmem>>, vector<1x128x128xf32>,
    return
  }
  func.func @transform_0(%arg0: i32, %arg1: i32, %arg2: i32) -> (i32, i32, i32) {
    %c0_i32 = arith.constant 0 : i32
    %c0_i32_0 = arith.constant 0 : i32
    return %arg0, %arg1, %c0_i32 : i32, i32, i32
  }
  func.func @transform_1(%arg0: i32, %arg1: i32, %arg2: i32) -> (i32, i32, i32) {
    %c0_i32 = arith.constant 0 : i32
    %c0_i32_0 = arith.constant 0 : i32
    return %arg0, %arg2, %c0_i32 : i32, i32, i32
  }
  func.func @transform_2(%arg0: i32, %arg1: i32, %arg2: i32) -> (i32, i32, i32) {
    %c0_i32 = arith.constant 0 : i32
    %c0_i32_0 = arith.constant 0 : i32
    return %arg0, %arg1, %c0_i32 : i32, i32, i32
  }
  func.func @transform_3(%arg0: i32, %arg1: i32, %arg2: i32) -> (i32, i32, i32) {
    %c0_i32 = arith.constant 0 : i32
    %c0_i32_0 = arith.constant 0 : i32
    return %arg0, %c0_i32, %arg2 : i32, i32, i32
  }
  func.func @transform_4(%arg0: i32, %arg1: i32, %arg2: i32) -> (i32, i32, i32) {
    %c0_i32 = arith.constant 0 : i32
    return %arg0, %arg1, %arg2 : i32, i32, i32
  }
}

module attributes {stable_mosaic.version = 11 : i64} {
  func.func @_edge_block_kernel(%arg0: i32, %arg1: i32, %arg2: memref<1x8x64x18xbf16, #tpu.memory_space<vmem>>, %arg3: memref<18x64xbf16, #tpu.memory_space<vmem>>, %arg4: memref<1x64xf32, #tpu.memory_space<vmem>>, %arg5: memref<64x64xbf16, #tpu.memory_space<vmem>>, %arg6: memref<1x64xf32, #tpu.memory_space<vmem>>, %arg7: memref<1x64x64xf32, #tpu.memory_space<vmem>>) attributes {dimension_semantics = [#tpu.dimension_semantics<parallel>, #tpu.dimension_semantics<parallel>], iteration_bounds = array<i64: 2, 1>, scalar_prefetch = 0 : i64, scratch_operands = 0 : i64, tpu.core_type = #tpu.core_type<tc>, window_params = [{transform_indices = @transform_0, window_bounds = array<i64: 1, 8, 64, 18>}, {pipeline_mode = #tpu.pipeline_mode<synchronous>, transform_indices = @transform_1, window_bounds = array<i64: 18, 64>}, {pipeline_mode = #tpu.pipeline_mode<synchronous>, transform_indices = @transform_2, window_bounds = array<i64: 1, 64>}, {pipeline_mode = #tpu.pipeline_mode<synchronous>, transform_indices = @transform_3, window_bounds = array<i64: 64, 64>}, {pipeline_mode = #tpu.pipeline_mode<synchronous>, transform_indices = @transform_4, window_bounds = array<i64: 1, 64>}, {transform_indices = @transform_5, window_bounds = array<i64: 1, 64, 64>}]} {
    %c0 = arith.constant 0 : index
    %c0_0 = arith.constant 0 : index
    %c0_1 = arith.constant 0 : index
    %c0_2 = arith.constant 0 : index
    %0 = vector.load %arg2[%c0, %c0_0, %c0_1, %c0_2] : memref<1x8x64x18xbf16, #tpu.memory_space<vmem>>, vector<1x8x64x18xbf16>
    %1 = vector.shape_cast %0 : vector<1x8x64x18xbf16> to vector<8x64x18xbf16>
    %2 = vector.shape_cast %1 : vector<8x64x18xbf16> to vector<512x18xbf16>
    %c0_3 = arith.constant 0 : index
    %c0_4 = arith.constant 0 : index
    %3 = vector.load %arg3[%c0_3, %c0_4] : memref<18x64xbf16, #tpu.memory_space<vmem>>, vector<18x64xbf16>
    %cst = arith.constant dense<0.000000e+00> : vector<512x64xf32>
    %4 = tpu.matmul %2, %3, %cst {dimension_numbers = #tpu.dot_dimension_numbers<[1], [0], [0], [1], [0, 0, 1, 1], [], []>} : vector<512x18xbf16>, vector<18x64xbf16>, vector<512x64xf32> -> vector<512x64xf32>
    %c0_5 = arith.constant 0 : index
    %c0_6 = arith.constant 0 : index
    %5 = vector.load %arg4[%c0_5, %c0_6] : memref<1x64xf32, #tpu.memory_space<vmem>>, vector<1x64xf32>
    %6 = vector.broadcast %5 : vector<1x64xf32> to vector<512x64xf32>
    %7 = arith.addf %4, %6 : vector<512x64xf32>
    %cst_7 = arith.constant 0.000000e+00 : f32
    %8 = vector.broadcast %cst_7 : f32 to vector<512x64xf32>
    %9 = arith.cmpf oge, %7, %8 : vector<512x64xf32>
    %cst_8 = arith.constant 2.000000e-01 : f32
    %10 = vector.broadcast %cst_8 : f32 to vector<512x64xf32>
    %11 = arith.mulf %10, %7 : vector<512x64xf32>
    %12 = arith.select %9, %7, %11 : vector<512x64xi1>, vector<512x64xf32>
    %13 = arith.truncf %12 : vector<512x64xf32> to vector<512x64xbf16>
    %c0_9 = arith.constant 0 : index
    %c0_10 = arith.constant 0 : index
    %14 = vector.load %arg5[%c0_9, %c0_10] : memref<64x64xbf16, #tpu.memory_space<vmem>>, vector<64x64xbf16>
    %cst_11 = arith.constant dense<0.000000e+00> : vector<512x64xf32>
    %15 = tpu.matmul %13, %14, %cst_11 {dimension_numbers = #tpu.dot_dimension_numbers<[1], [0], [0], [1], [0, 0, 1, 1], [], []>} : vector<512x64xbf16>, vector<64x64xbf16>, vector<512x64xf32> -> vector<512x64xf32>
    %c0_12 = arith.constant 0 : index
    %c0_13 = arith.constant 0 : index
    %16 = vector.load %arg6[%c0_12, %c0_13] : memref<1x64xf32, #tpu.memory_space<vmem>>, vector<1x64xf32>
    %17 = vector.broadcast %16 : vector<1x64xf32> to vector<512x64xf32>
    %18 = arith.addf %15, %17 : vector<512x64xf32>
    %cst_14 = arith.constant 0.000000e+00 : f32
    %19 = vector.broadcast %cst_14 : f32 to vector<512x64xf32>
    %20 = arith.cmpf oge, %18, %19 : vector<512x64xf32>
    %cst_15 = arith.constant 2.000000e-01 : f32
    %21 = vector.broadcast %cst_15 : f32 to vector<512x64xf32>
    %22 = arith.mulf %21, %18 : vector<512x64xf32>
    %23 = arith.select %20, %18, %22 : vector<512x64xi1>, vector<512x64xf32>
    %24 = vector.shape_cast %23 : vector<512x64xf32> to vector<8x64x64xf32>
    %cst_16 = arith.constant dense<0xFF800000> : vector<64x64xf32>
    %25 = vector.multi_reduction <maximumf>, %24, %cst_16 [0] : vector<8x64x64xf32> to vector<64x64xf32>
    %c0_17 = arith.constant 0 : index
    %c0_18 = arith.constant 0 : index
    %c0_19 = arith.constant 0 : index
    %26 = vector.load %arg7[%c0_17, %c0_18, %c0_19] : memref<1x64x64xf32, #tpu.memory_space<vmem>>, vector<1x64x64xf32>
    %27 = vector.shape_cast %26 : vector<1x64x64xf32> to vector<64x64xf32>
    %28 = vector.shape_cast %25 : vector<64x64xf32> to vector<1x64x64xf32>
    tpu.vector_store %arg7[%c0_17, %c0_18, %c0_19], %28 {strides = array<i32>} : memref<1x64x64xf32, #tpu.memory_space<vmem>>, vector<1x64x64xf32>,
    return
  }
  func.func @transform_0(%arg0: i32, %arg1: i32) -> (i32, i32, i32, i32) {
    %c0_i32 = arith.constant 0 : i32
    %c0_i32_0 = arith.constant 0 : i32
    %c0_i32_1 = arith.constant 0 : i32
    return %arg0, %c0_i32, %arg1, %c0_i32_0 : i32, i32, i32, i32
  }
  func.func @transform_1(%arg0: i32, %arg1: i32) -> (i32, i32) {
    %c0_i32 = arith.constant 0 : i32
    %c0_i32_0 = arith.constant 0 : i32
    %c0_i32_1 = arith.constant 0 : i32
    return %c0_i32, %c0_i32_0 : i32, i32
  }
  func.func @transform_2(%arg0: i32, %arg1: i32) -> (i32, i32) {
    %c0_i32 = arith.constant 0 : i32
    %c0_i32_0 = arith.constant 0 : i32
    %c0_i32_1 = arith.constant 0 : i32
    return %c0_i32, %c0_i32_0 : i32, i32
  }
  func.func @transform_3(%arg0: i32, %arg1: i32) -> (i32, i32) {
    %c0_i32 = arith.constant 0 : i32
    %c0_i32_0 = arith.constant 0 : i32
    %c0_i32_1 = arith.constant 0 : i32
    return %c0_i32, %c0_i32_0 : i32, i32
  }
  func.func @transform_4(%arg0: i32, %arg1: i32) -> (i32, i32) {
    %c0_i32 = arith.constant 0 : i32
    %c0_i32_0 = arith.constant 0 : i32
    %c0_i32_1 = arith.constant 0 : i32
    return %c0_i32, %c0_i32_0 : i32, i32
  }
  func.func @transform_5(%arg0: i32, %arg1: i32) -> (i32, i32, i32) {
    %c0_i32 = arith.constant 0 : i32
    %c0_i32_0 = arith.constant 0 : i32
    return %arg0, %arg1, %c0_i32 : i32, i32, i32
  }
}

module attributes {stable_mosaic.version = 11 : i64} {
  func.func @_pairwise_dist_kernel(%arg0: i32, %arg1: i32, %arg2: i32, %arg3: memref<1x128x64xf32, #tpu.memory_space<vmem>>, %arg4: memref<1x128x64xf32, #tpu.memory_space<vmem>>, %arg5: memref<1x128x1xf32, #tpu.memory_space<vmem>>, %arg6: memref<1x1x128xf32, #tpu.memory_space<vmem>>, %arg7: memref<1x128x128xf32, #tpu.memory_space<vmem>>) attributes {dimension_semantics = [#tpu.dimension_semantics<parallel>, #tpu.dimension_semantics<parallel>, #tpu.dimension_semantics<parallel>], iteration_bounds = array<i64: 2, 1, 1>, scalar_prefetch = 0 : i64, scratch_operands = 0 : i64, tpu.core_type = #tpu.core_type<tc>, window_params = [{transform_indices = @transform_0, window_bounds = array<i64: 1, 128, 64>}, {transform_indices = @transform_1, window_bounds = array<i64: 1, 128, 64>}, {transform_indices = @transform_2, window_bounds = array<i64: 1, 128, 1>}, {transform_indices = @transform_3, window_bounds = array<i64: 1, 1, 128>}, {transform_indices = @transform_4, window_bounds = array<i64: 1, 128, 128>}]} {
    %c0 = arith.constant 0 : index
    %c0_0 = arith.constant 0 : index
    %c0_1 = arith.constant 0 : index
    %0 = vector.load %arg3[%c0, %c0_0, %c0_1] : memref<1x128x64xf32, #tpu.memory_space<vmem>>, vector<1x128x64xf32>
    %1 = vector.shape_cast %0 : vector<1x128x64xf32> to vector<128x64xf32>
    %c0_2 = arith.constant 0 : index
    %c0_3 = arith.constant 0 : index
    %c0_4 = arith.constant 0 : index
    %2 = vector.load %arg4[%c0_2, %c0_3, %c0_4] : memref<1x128x64xf32, #tpu.memory_space<vmem>>, vector<1x128x64xf32>
    %3 = vector.shape_cast %2 : vector<1x128x64xf32> to vector<128x64xf32>
    %cst = arith.constant dense<0.000000e+00> : vector<128x128xf32>
    %4 = tpu.matmul %1, %3, %cst {dimension_numbers = #tpu.dot_dimension_numbers<[1], [1], [0], [0], [0, 0, 1, 0], [], []>} : vector<128x64xf32>, vector<128x64xf32>, vector<128x128xf32> -> vector<128x128xf32>
    %cst_5 = arith.constant 2.000000e+00 : f32
    %5 = vector.broadcast %cst_5 : f32 to vector<128x128xf32>
    %6 = arith.mulf %5, %4 : vector<128x128xf32>
    %c0_6 = arith.constant 0 : index
    %c0_7 = arith.constant 0 : index
    %c0_8 = arith.constant 0 : index
    %7 = vector.load %arg6[%c0_6, %c0_7, %c0_8] : memref<1x1x128xf32, #tpu.memory_space<vmem>>, vector<1x1x128xf32>
    %8 = vector.shape_cast %7 : vector<1x1x128xf32> to vector<1x128xf32>
    %9 = vector.broadcast %8 : vector<1x128xf32> to vector<128x128xf32>
    %10 = arith.subf %6, %9 : vector<128x128xf32>
    %c0_9 = arith.constant 0 : index
    %c0_10 = arith.constant 0 : index
    %c0_11 = arith.constant 0 : index
    %11 = vector.load %arg5[%c0_9, %c0_10, %c0_11] : memref<1x128x1xf32, #tpu.memory_space<vmem>>, vector<1x128x1xf32>
    %12 = vector.shape_cast %11 : vector<1x128x1xf32> to vector<128x1xf32>
    %13 = vector.broadcast %12 : vector<128x1xf32> to vector<128x128xf32>
    %14 = arith.subf %10, %13 : vector<128x128xf32>
    %c0_12 = arith.constant 0 : index
    %c0_13 = arith.constant 0 : index
    %c0_14 = arith.constant 0 : index
    %15 = vector.load %arg7[%c0_12, %c0_13, %c0_14] : memref<1x128x128xf32, #tpu.memory_space<vmem>>, vector<1x128x128xf32>
    %16 = vector.shape_cast %15 : vector<1x128x128xf32> to vector<128x128xf32>
    %17 = vector.shape_cast %14 : vector<128x128xf32> to vector<1x128x128xf32>
    tpu.vector_store %arg7[%c0_12, %c0_13, %c0_14], %17 {strides = array<i32>} : memref<1x128x128xf32, #tpu.memory_space<vmem>>, vector<1x128x128xf32>,
    return
  }
  func.func @transform_0(%arg0: i32, %arg1: i32, %arg2: i32) -> (i32, i32, i32) {
    %c0_i32 = arith.constant 0 : i32
    %c0_i32_0 = arith.constant 0 : i32
    return %arg0, %arg1, %c0_i32 : i32, i32, i32
  }
  func.func @transform_1(%arg0: i32, %arg1: i32, %arg2: i32) -> (i32, i32, i32) {
    %c0_i32 = arith.constant 0 : i32
    %c0_i32_0 = arith.constant 0 : i32
    return %arg0, %arg2, %c0_i32 : i32, i32, i32
  }
  func.func @transform_2(%arg0: i32, %arg1: i32, %arg2: i32) -> (i32, i32, i32) {
    %c0_i32 = arith.constant 0 : i32
    %c0_i32_0 = arith.constant 0 : i32
    return %arg0, %arg1, %c0_i32 : i32, i32, i32
  }
  func.func @transform_3(%arg0: i32, %arg1: i32, %arg2: i32) -> (i32, i32, i32) {
    %c0_i32 = arith.constant 0 : i32
    %c0_i32_0 = arith.constant 0 : i32
    return %arg0, %c0_i32, %arg2 : i32, i32, i32
  }
  func.func @transform_4(%arg0: i32, %arg1: i32, %arg2: i32) -> (i32, i32, i32) {
    %c0_i32 = arith.constant 0 : i32
    return %arg0, %arg1, %arg2 : i32, i32, i32
  }
}

module attributes {stable_mosaic.version = 11 : i64} {
  func.func @_edge_block_kernel(%arg0: i32, %arg1: i32, %arg2: memref<1x8x64x128xbf16, #tpu.memory_space<vmem>>, %arg3: memref<128x64xbf16, #tpu.memory_space<vmem>>, %arg4: memref<1x64xf32, #tpu.memory_space<vmem>>, %arg5: memref<64x64xbf16, #tpu.memory_space<vmem>>, %arg6: memref<1x64xf32, #tpu.memory_space<vmem>>, %arg7: memref<1x64x64xf32, #tpu.memory_space<vmem>>) attributes {dimension_semantics = [#tpu.dimension_semantics<parallel>, #tpu.dimension_semantics<parallel>], iteration_bounds = array<i64: 2, 1>, scalar_prefetch = 0 : i64, scratch_operands = 0 : i64, tpu.core_type = #tpu.core_type<tc>, window_params = [{transform_indices = @transform_0, window_bounds = array<i64: 1, 8, 64, 128>}, {pipeline_mode = #tpu.pipeline_mode<synchronous>, transform_indices = @transform_1, window_bounds = array<i64: 128, 64>}, {pipeline_mode = #tpu.pipeline_mode<synchronous>, transform_indices = @transform_2, window_bounds = array<i64: 1, 64>}, {pipeline_mode = #tpu.pipeline_mode<synchronous>, transform_indices = @transform_3, window_bounds = array<i64: 64, 64>}, {pipeline_mode = #tpu.pipeline_mode<synchronous>, transform_indices = @transform_4, window_bounds = array<i64: 1, 64>}, {transform_indices = @transform_5, window_bounds = array<i64: 1, 64, 64>}]} {
    %c0 = arith.constant 0 : index
    %c0_0 = arith.constant 0 : index
    %c0_1 = arith.constant 0 : index
    %c0_2 = arith.constant 0 : index
    %0 = vector.load %arg2[%c0, %c0_0, %c0_1, %c0_2] : memref<1x8x64x128xbf16, #tpu.memory_space<vmem>>, vector<1x8x64x128xbf16>
    %1 = vector.shape_cast %0 : vector<1x8x64x128xbf16> to vector<8x64x128xbf16>
    %2 = vector.shape_cast %1 : vector<8x64x128xbf16> to vector<512x128xbf16>
    %c0_3 = arith.constant 0 : index
    %c0_4 = arith.constant 0 : index
    %3 = vector.load %arg3[%c0_3, %c0_4] : memref<128x64xbf16, #tpu.memory_space<vmem>>, vector<128x64xbf16>
    %cst = arith.constant dense<0.000000e+00> : vector<512x64xf32>
    %4 = tpu.matmul %2, %3, %cst {dimension_numbers = #tpu.dot_dimension_numbers<[1], [0], [0], [1], [0, 0, 1, 1], [], []>} : vector<512x128xbf16>, vector<128x64xbf16>, vector<512x64xf32> -> vector<512x64xf32>
    %c0_5 = arith.constant 0 : index
    %c0_6 = arith.constant 0 : index
    %5 = vector.load %arg4[%c0_5, %c0_6] : memref<1x64xf32, #tpu.memory_space<vmem>>, vector<1x64xf32>
    %6 = vector.broadcast %5 : vector<1x64xf32> to vector<512x64xf32>
    %7 = arith.addf %4, %6 : vector<512x64xf32>
    %cst_7 = arith.constant 0.000000e+00 : f32
    %8 = vector.broadcast %cst_7 : f32 to vector<512x64xf32>
    %9 = arith.cmpf oge, %7, %8 : vector<512x64xf32>
    %cst_8 = arith.constant 2.000000e-01 : f32
    %10 = vector.broadcast %cst_8 : f32 to vector<512x64xf32>
    %11 = arith.mulf %10, %7 : vector<512x64xf32>
    %12 = arith.select %9, %7, %11 : vector<512x64xi1>, vector<512x64xf32>
    %13 = arith.truncf %12 : vector<512x64xf32> to vector<512x64xbf16>
    %c0_9 = arith.constant 0 : index
    %c0_10 = arith.constant 0 : index
    %14 = vector.load %arg5[%c0_9, %c0_10] : memref<64x64xbf16, #tpu.memory_space<vmem>>, vector<64x64xbf16>
    %cst_11 = arith.constant dense<0.000000e+00> : vector<512x64xf32>
    %15 = tpu.matmul %13, %14, %cst_11 {dimension_numbers = #tpu.dot_dimension_numbers<[1], [0], [0], [1], [0, 0, 1, 1], [], []>} : vector<512x64xbf16>, vector<64x64xbf16>, vector<512x64xf32> -> vector<512x64xf32>
    %c0_12 = arith.constant 0 : index
    %c0_13 = arith.constant 0 : index
    %16 = vector.load %arg6[%c0_12, %c0_13] : memref<1x64xf32, #tpu.memory_space<vmem>>, vector<1x64xf32>
    %17 = vector.broadcast %16 : vector<1x64xf32> to vector<512x64xf32>
    %18 = arith.addf %15, %17 : vector<512x64xf32>
    %cst_14 = arith.constant 0.000000e+00 : f32
    %19 = vector.broadcast %cst_14 : f32 to vector<512x64xf32>
    %20 = arith.cmpf oge, %18, %19 : vector<512x64xf32>
    %cst_15 = arith.constant 2.000000e-01 : f32
    %21 = vector.broadcast %cst_15 : f32 to vector<512x64xf32>
    %22 = arith.mulf %21, %18 : vector<512x64xf32>
    %23 = arith.select %20, %18, %22 : vector<512x64xi1>, vector<512x64xf32>
    %24 = vector.shape_cast %23 : vector<512x64xf32> to vector<8x64x64xf32>
    %cst_16 = arith.constant dense<0xFF800000> : vector<64x64xf32>
    %25 = vector.multi_reduction <maximumf>, %24, %cst_16 [0] : vector<8x64x64xf32> to vector<64x64xf32>
    %c0_17 = arith.constant 0 : index
    %c0_18 = arith.constant 0 : index
    %c0_19 = arith.constant 0 : index
    %26 = vector.load %arg7[%c0_17, %c0_18, %c0_19] : memref<1x64x64xf32, #tpu.memory_space<vmem>>, vector<1x64x64xf32>
    %27 = vector.shape_cast %26 : vector<1x64x64xf32> to vector<64x64xf32>
    %28 = vector.shape_cast %25 : vector<64x64xf32> to vector<1x64x64xf32>
    tpu.vector_store %arg7[%c0_17, %c0_18, %c0_19], %28 {strides = array<i32>} : memref<1x64x64xf32, #tpu.memory_space<vmem>>, vector<1x64x64xf32>,
    return
  }
  func.func @transform_0(%arg0: i32, %arg1: i32) -> (i32, i32, i32, i32) {
    %c0_i32 = arith.constant 0 : i32
    %c0_i32_0 = arith.constant 0 : i32
    %c0_i32_1 = arith.constant 0 : i32
    return %arg0, %c0_i32, %arg1, %c0_i32_0 : i32, i32, i32, i32
  }
  func.func @transform_1(%arg0: i32, %arg1: i32) -> (i32, i32) {
    %c0_i32 = arith.constant 0 : i32
    %c0_i32_0 = arith.constant 0 : i32
    %c0_i32_1 = arith.constant 0 : i32
    return %c0_i32, %c0_i32_0 : i32, i32
  }
  func.func @transform_2(%arg0: i32, %arg1: i32) -> (i32, i32) {
    %c0_i32 = arith.constant 0 : i32
    %c0_i32_0 = arith.constant 0 : i32
    %c0_i32_1 = arith.constant 0 : i32
    return %c0_i32, %c0_i32_0 : i32, i32
  }
  func.func @transform_3(%arg0: i32, %arg1: i32) -> (i32, i32) {
    %c0_i32 = arith.constant 0 : i32
    %c0_i32_0 = arith.constant 0 : i32
    %c0_i32_1 = arith.constant 0 : i32
    return %c0_i32, %c0_i32_0 : i32, i32
  }
  func.func @transform_4(%arg0: i32, %arg1: i32) -> (i32, i32) {
    %c0_i32 = arith.constant 0 : i32
    %c0_i32_0 = arith.constant 0 : i32
    %c0_i32_1 = arith.constant 0 : i32
    return %c0_i32, %c0_i32_0 : i32, i32
  }
  func.func @transform_5(%arg0: i32, %arg1: i32) -> (i32, i32, i32) {
    %c0_i32 = arith.constant 0 : i32
    %c0_i32_0 = arith.constant 0 : i32
    return %arg0, %arg1, %c0_i32 : i32, i32, i32
  }
}

module attributes {stable_mosaic.version = 11 : i64} {
  func.func @_edge_block_kernel(%arg0: i32, %arg1: i32, %arg2: memref<1x8x64x128xbf16, #tpu.memory_space<vmem>>, %arg3: memref<128x64xbf16, #tpu.memory_space<vmem>>, %arg4: memref<1x64xf32, #tpu.memory_space<vmem>>, %arg5: memref<1x64x64xf32, #tpu.memory_space<vmem>>) attributes {dimension_semantics = [#tpu.dimension_semantics<parallel>, #tpu.dimension_semantics<parallel>], iteration_bounds = array<i64: 2, 1>, scalar_prefetch = 0 : i64, scratch_operands = 0 : i64, tpu.core_type = #tpu.core_type<tc>, window_params = [{transform_indices = @transform_0, window_bounds = array<i64: 1, 8, 64, 128>}, {pipeline_mode = #tpu.pipeline_mode<synchronous>, transform_indices = @transform_1, window_bounds = array<i64: 128, 64>}, {pipeline_mode = #tpu.pipeline_mode<synchronous>, transform_indices = @transform_2, window_bounds = array<i64: 1, 64>}, {transform_indices = @transform_3, window_bounds = array<i64: 1, 64, 64>}]} {
    %c0 = arith.constant 0 : index
    %c0_0 = arith.constant 0 : index
    %c0_1 = arith.constant 0 : index
    %c0_2 = arith.constant 0 : index
    %0 = vector.load %arg2[%c0, %c0_0, %c0_1, %c0_2] : memref<1x8x64x128xbf16, #tpu.memory_space<vmem>>, vector<1x8x64x128xbf16>
    %1 = vector.shape_cast %0 : vector<1x8x64x128xbf16> to vector<8x64x128xbf16>
    %2 = vector.shape_cast %1 : vector<8x64x128xbf16> to vector<512x128xbf16>
    %c0_3 = arith.constant 0 : index
    %c0_4 = arith.constant 0 : index
    %3 = vector.load %arg3[%c0_3, %c0_4] : memref<128x64xbf16, #tpu.memory_space<vmem>>, vector<128x64xbf16>
    %cst = arith.constant dense<0.000000e+00> : vector<512x64xf32>
    %4 = tpu.matmul %2, %3, %cst {dimension_numbers = #tpu.dot_dimension_numbers<[1], [0], [0], [1], [0, 0, 1, 1], [], []>} : vector<512x128xbf16>, vector<128x64xbf16>, vector<512x64xf32> -> vector<512x64xf32>
    %c0_5 = arith.constant 0 : index
    %c0_6 = arith.constant 0 : index
    %5 = vector.load %arg4[%c0_5, %c0_6] : memref<1x64xf32, #tpu.memory_space<vmem>>, vector<1x64xf32>
    %6 = vector.broadcast %5 : vector<1x64xf32> to vector<512x64xf32>
    %7 = arith.addf %4, %6 : vector<512x64xf32>
    %cst_7 = arith.constant 0.000000e+00 : f32
    %8 = vector.broadcast %cst_7 : f32 to vector<512x64xf32>
    %9 = arith.cmpf oge, %7, %8 : vector<512x64xf32>
    %cst_8 = arith.constant 2.000000e-01 : f32
    %10 = vector.broadcast %cst_8 : f32 to vector<512x64xf32>
    %11 = arith.mulf %10, %7 : vector<512x64xf32>
    %12 = arith.select %9, %7, %11 : vector<512x64xi1>, vector<512x64xf32>
    %13 = vector.shape_cast %12 : vector<512x64xf32> to vector<8x64x64xf32>
    %cst_9 = arith.constant dense<0xFF800000> : vector<64x64xf32>
    %14 = vector.multi_reduction <maximumf>, %13, %cst_9 [0] : vector<8x64x64xf32> to vector<64x64xf32>
    %c0_10 = arith.constant 0 : index
    %c0_11 = arith.constant 0 : index
    %c0_12 = arith.constant 0 : index
    %15 = vector.load %arg5[%c0_10, %c0_11, %c0_12] : memref<1x64x64xf32, #tpu.memory_space<vmem>>, vector<1x64x64xf32>
    %16 = vector.shape_cast %15 : vector<1x64x64xf32> to vector<64x64xf32>
    %17 = vector.shape_cast %14 : vector<64x64xf32> to vector<1x64x64xf32>
    tpu.vector_store %arg5[%c0_10, %c0_11, %c0_12], %17 {strides = array<i32>} : memref<1x64x64xf32, #tpu.memory_space<vmem>>, vector<1x64x64xf32>,
    return
  }
  func.func @transform_0(%arg0: i32, %arg1: i32) -> (i32, i32, i32, i32) {
    %c0_i32 = arith.constant 0 : i32
    %c0_i32_0 = arith.constant 0 : i32
    %c0_i32_1 = arith.constant 0 : i32
    return %arg0, %c0_i32, %arg1, %c0_i32_0 : i32, i32, i32, i32
  }
  func.func @transform_1(%arg0: i32, %arg1: i32) -> (i32, i32) {
    %c0_i32 = arith.constant 0 : i32
    %c0_i32_0 = arith.constant 0 : i32
    %c0_i32_1 = arith.constant 0 : i32
    return %c0_i32, %c0_i32_0 : i32, i32
  }
  func.func @transform_2(%arg0: i32, %arg1: i32) -> (i32, i32) {
    %c0_i32 = arith.constant 0 : i32
    %c0_i32_0 = arith.constant 0 : i32
    %c0_i32_1 = arith.constant 0 : i32
    return %c0_i32, %c0_i32_0 : i32, i32
  }
  func.func @transform_3(%arg0: i32, %arg1: i32) -> (i32, i32, i32) {
    %c0_i32 = arith.constant 0 : i32
    %c0_i32_0 = arith.constant 0 : i32
    return %arg0, %arg1, %c0_i32 : i32, i32, i32
  }
}

module attributes {stable_mosaic.version = 11 : i64} {
  func.func @_conv6_max_kernel(%arg0: i32, %arg1: i32, %arg2: i32, %arg3: memref<1x64x192xbf16, #tpu.memory_space<vmem>>, %arg4: memref<192x1024xbf16, #tpu.memory_space<vmem>>, %arg5: memref<1x1024xf32, #tpu.memory_space<vmem>>, %arg6: memref<1x1x1024xf32, #tpu.memory_space<vmem>>) attributes {dimension_semantics = [#tpu.dimension_semantics<parallel>, #tpu.dimension_semantics<parallel>, #tpu.dimension_semantics<arbitrary>], iteration_bounds = array<i64: 2, 1, 1>, scalar_prefetch = 0 : i64, scratch_operands = 0 : i64, tpu.core_type = #tpu.core_type<tc>, window_params = [{transform_indices = @transform_0, window_bounds = array<i64: 1, 64, 192>}, {pipeline_mode = #tpu.pipeline_mode<synchronous>, transform_indices = @transform_1, window_bounds = array<i64: 192, 1024>}, {pipeline_mode = #tpu.pipeline_mode<synchronous>, transform_indices = @transform_2, window_bounds = array<i64: 1, 1024>}, {transform_indices = @transform_3, window_bounds = array<i64: 1, 1, 1024>}]} {
    %c0 = arith.constant 0 : index
    %c0_0 = arith.constant 0 : index
    %c0_1 = arith.constant 0 : index
    %0 = vector.load %arg3[%c0, %c0_0, %c0_1] : memref<1x64x192xbf16, #tpu.memory_space<vmem>>, vector<1x64x192xbf16>
    %1 = vector.shape_cast %0 : vector<1x64x192xbf16> to vector<64x192xbf16>
    %c0_2 = arith.constant 0 : index
    %c0_3 = arith.constant 0 : index
    %2 = vector.load %arg4[%c0_2, %c0_3] : memref<192x1024xbf16, #tpu.memory_space<vmem>>, vector<192x1024xbf16>
    %cst = arith.constant dense<0.000000e+00> : vector<64x1024xf32>
    %3 = tpu.matmul %1, %2, %cst {dimension_numbers = #tpu.dot_dimension_numbers<[1], [0], [0], [1], [0, 0, 1, 1], [], []>} : vector<64x192xbf16>, vector<192x1024xbf16>, vector<64x1024xf32> -> vector<64x1024xf32>
    %c0_4 = arith.constant 0 : index
    %c0_5 = arith.constant 0 : index
    %4 = vector.load %arg5[%c0_4, %c0_5] : memref<1x1024xf32, #tpu.memory_space<vmem>>, vector<1x1024xf32>
    %5 = vector.broadcast %4 : vector<1x1024xf32> to vector<64x1024xf32>
    %6 = arith.addf %3, %5 : vector<64x1024xf32>
    %cst_6 = arith.constant 0.000000e+00 : f32
    %7 = vector.broadcast %cst_6 : f32 to vector<64x1024xf32>
    %8 = arith.cmpf oge, %6, %7 : vector<64x1024xf32>
    %cst_7 = arith.constant 2.000000e-01 : f32
    %9 = vector.broadcast %cst_7 : f32 to vector<64x1024xf32>
    %10 = arith.mulf %9, %6 : vector<64x1024xf32>
    %11 = arith.select %8, %6, %10 : vector<64x1024xi1>, vector<64x1024xf32>
    %c1_i32 = arith.constant 1 : i32
    %12 = arith.muli %arg1, %c1_i32 : i32
    %13 = arith.addi %12, %arg2 : i32
    %c64_i32 = arith.constant 64 : i32
    %14 = arith.muli %13, %c64_i32 : i32
    %15 = tpu.iota {dimensions = array<i32: 0>} : vector<64x1xi32>
    %16 = vector.broadcast %14 : i32 to vector<64x1xi32>
    %17 = arith.addi %16, %15 : vector<64x1xi32>
    %c64_i32_8 = arith.constant 64 : i32
    %18 = vector.broadcast %c64_i32_8 : i32 to vector<64x1xi32>
    %19 = arith.cmpi slt, %17, %18 : vector<64x1xi32>
    %cst_9 = arith.constant 0xFF800000 : f32
    %20 = vector.shape_cast %19 : vector<64x1xi1> to vector<64x1xi1>
    %21 = vector.broadcast %20 : vector<64x1xi1> to vector<64x1024xi1>
    %22 = vector.broadcast %cst_9 : f32 to vector<64x1024xf32>
    %23 = arith.select %21, %11, %22 : vector<64x1024xi1>, vector<64x1024xf32>
    %cst_10 = arith.constant dense<0xFF800000> : vector<1024xf32>
    %24 = vector.multi_reduction <maximumf>, %23, %cst_10 [0] : vector<64x1024xf32> to vector<1024xf32>
    %25 = vector.shape_cast %24 : vector<1024xf32> to vector<1x1024xf32>
    %c0_i32 = arith.constant 0 : i32
    %26 = arith.cmpi eq, %arg2, %c0_i32 : i32
    %27 = arith.extui %26 : i1 to i32
    %c0_i32_11 = arith.constant 0 : i32
    %28 = arith.cmpi ne, %27, %c0_i32_11 : i32
    scf.if %28 {
      %c0_14 = arith.constant 0 : index
      %c0_15 = arith.constant 0 : index
      %c0_16 = arith.constant 0 : index
      %32 = vector.load %arg6[%c0_14, %c0_15, %c0_16] : memref<1x1x1024xf32, #tpu.memory_space<vmem>>, vector<1x1x1024xf32>
      %33 = vector.shape_cast %32 : vector<1x1x1024xf32> to vector<1x1024xf32>
      %34 = vector.shape_cast %25 : vector<1x1024xf32> to vector<1x1x1024xf32>
      tpu.vector_store %arg6[%c0_14, %c0_15, %c0_16], %34 {strides = array<i32>} : memref<1x1x1024xf32, #tpu.memory_space<vmem>>, vector<1x1x1024xf32>,
    } else {
    }
    %c0_i32_12 = arith.constant 0 : i32
    %29 = arith.cmpi sgt, %arg2, %c0_i32_12 : i32
    %30 = arith.extui %29 : i1 to i32
    %c0_i32_13 = arith.constant 0 : i32
    %31 = arith.cmpi ne, %30, %c0_i32_13 : i32
    scf.if %31 {
      %c0_14 = arith.constant 0 : index
      %c0_15 = arith.constant 0 : index
      %c0_16 = arith.constant 0 : index
      %32 = vector.load %arg6[%c0_14, %c0_15, %c0_16] : memref<1x1x1024xf32, #tpu.memory_space<vmem>>, vector<1x1x1024xf32>
      %33 = vector.shape_cast %32 : vector<1x1x1024xf32> to vector<1x1024xf32>
      %34 = arith.maximumf %33, %25 : vector<1x1024xf32>
      %c0_17 = arith.constant 0 : index
      %c0_18 = arith.constant 0 : index
      %c0_19 = arith.constant 0 : index
      %35 = vector.load %arg6[%c0_17, %c0_18, %c0_19] : memref<1x1x1024xf32, #tpu.memory_space<vmem>>, vector<1x1x1024xf32>
      %36 = vector.shape_cast %35 : vector<1x1x1024xf32> to vector<1x1024xf32>
      %37 = vector.shape_cast %34 : vector<1x1024xf32> to vector<1x1x1024xf32>
      tpu.vector_store %arg6[%c0_17, %c0_18, %c0_19], %37 {strides = array<i32>} : memref<1x1x1024xf32, #tpu.memory_space<vmem>>, vector<1x1x1024xf32>,
    } else {
    }
    return
  }
  func.func @transform_0(%arg0: i32, %arg1: i32, %arg2: i32) -> (i32, i32, i32) {
    %c1_i32 = arith.constant 1 : i32
    %0 = arith.muli %arg1, %c1_i32 : i32
    %1 = arith.addi %0, %arg2 : i32
    %c0_i32 = arith.constant 0 : i32
    %c0_i32_0 = arith.constant 0 : i32
    return %arg0, %1, %c0_i32 : i32, i32, i32
  }
  func.func @transform_1(%arg0: i32, %arg1: i32, %arg2: i32) -> (i32, i32) {
    %c0_i32 = arith.constant 0 : i32
    %c0_i32_0 = arith.constant 0 : i32
    %c0_i32_1 = arith.constant 0 : i32
    return %c0_i32, %c0_i32_0 : i32, i32
  }
  func.func @transform_2(%arg0: i32, %arg1: i32, %arg2: i32) -> (i32, i32) {
    %c0_i32 = arith.constant 0 : i32
    %c0_i32_0 = arith.constant 0 : i32
    %c0_i32_1 = arith.constant 0 : i32
    return %c0_i32, %c0_i32_0 : i32, i32
  }
  func.func @transform_3(%arg0: i32, %arg1: i32, %arg2: i32) -> (i32, i32, i32) {
    %c0_i32 = arith.constant 0 : i32
    %c0_i32_0 = arith.constant 0 : i32
    return %arg0, %arg1, %c0_i32 : i32, i32, i32
  }
}

module attributes {stable_mosaic.version = 11 : i64} {
  func.func @_conv78_kernel(%arg0: i32, %arg1: i32, %arg2: memref<1x1x512xf32, #tpu.memory_space<vmem>>, %arg3: memref<1x64x192xbf16, #tpu.memory_space<vmem>>, %arg4: memref<192x512xbf16, #tpu.memory_space<vmem>>, %arg5: memref<512x256xbf16, #tpu.memory_space<vmem>>, %arg6: memref<1x256xf32, #tpu.memory_space<vmem>>, %arg7: memref<1x64x256xf32, #tpu.memory_space<vmem>>) attributes {dimension_semantics = [#tpu.dimension_semantics<parallel>, #tpu.dimension_semantics<parallel>], iteration_bounds = array<i64: 2, 1>, scalar_prefetch = 0 : i64, scratch_operands = 0 : i64, tpu.core_type = #tpu.core_type<tc>, window_params = [{transform_indices = @transform_0, window_bounds = array<i64: 1, 1, 512>}, {transform_indices = @transform_1, window_bounds = array<i64: 1, 64, 192>}, {pipeline_mode = #tpu.pipeline_mode<synchronous>, transform_indices = @transform_2, window_bounds = array<i64: 192, 512>}, {pipeline_mode = #tpu.pipeline_mode<synchronous>, transform_indices = @transform_3, window_bounds = array<i64: 512, 256>}, {pipeline_mode = #tpu.pipeline_mode<synchronous>, transform_indices = @transform_4, window_bounds = array<i64: 1, 256>}, {transform_indices = @transform_5, window_bounds = array<i64: 1, 64, 256>}]} {
    %c0 = arith.constant 0 : index
    %c0_0 = arith.constant 0 : index
    %c0_1 = arith.constant 0 : index
    %0 = vector.load %arg2[%c0, %c0_0, %c0_1] : memref<1x1x512xf32, #tpu.memory_space<vmem>>, vector<1x1x512xf32>
    %1 = vector.shape_cast %0 : vector<1x1x512xf32> to vector<1x512xf32>
    %c0_2 = arith.constant 0 : index
    %c0_3 = arith.constant 0 : index
    %c0_4 = arith.constant 0 : index
    %2 = vector.load %arg3[%c0_2, %c0_3, %c0_4] : memref<1x64x192xbf16, #tpu.memory_space<vmem>>, vector<1x64x192xbf16>
    %3 = vector.shape_cast %2 : vector<1x64x192xbf16> to vector<64x192xbf16>
    %c0_5 = arith.constant 0 : index
    %c0_6 = arith.constant 0 : index
    %4 = vector.load %arg4[%c0_5, %c0_6] : memref<192x512xbf16, #tpu.memory_space<vmem>>, vector<192x512xbf16>
    %cst = arith.constant dense<0.000000e+00> : vector<64x512xf32>
    %5 = tpu.matmul %3, %4, %cst {dimension_numbers = #tpu.dot_dimension_numbers<[1], [0], [0], [1], [0, 0, 1, 1], [], []>} : vector<64x192xbf16>, vector<192x512xbf16>, vector<64x512xf32> -> vector<64x512xf32>
    %6 = vector.broadcast %1 : vector<1x512xf32> to vector<64x512xf32>
    %7 = arith.addf %6, %5 : vector<64x512xf32>
    %cst_7 = arith.constant 0.000000e+00 : f32
    %8 = vector.broadcast %cst_7 : f32 to vector<64x512xf32>
    %9 = arith.cmpf oge, %7, %8 : vector<64x512xf32>
    %cst_8 = arith.constant 2.000000e-01 : f32
    %10 = vector.broadcast %cst_8 : f32 to vector<64x512xf32>
    %11 = arith.mulf %10, %7 : vector<64x512xf32>
    %12 = arith.select %9, %7, %11 : vector<64x512xi1>, vector<64x512xf32>
    %13 = arith.truncf %12 : vector<64x512xf32> to vector<64x512xbf16>
    %c0_9 = arith.constant 0 : index
    %c0_10 = arith.constant 0 : index
    %14 = vector.load %arg5[%c0_9, %c0_10] : memref<512x256xbf16, #tpu.memory_space<vmem>>, vector<512x256xbf16>
    %cst_11 = arith.constant dense<0.000000e+00> : vector<64x256xf32>
    %15 = tpu.matmul %13, %14, %cst_11 {dimension_numbers = #tpu.dot_dimension_numbers<[1], [0], [0], [1], [0, 0, 1, 1], [], []>} : vector<64x512xbf16>, vector<512x256xbf16>, vector<64x256xf32> -> vector<64x256xf32>
    %c0_12 = arith.constant 0 : index
    %c0_13 = arith.constant 0 : index
    %16 = vector.load %arg6[%c0_12, %c0_13] : memref<1x256xf32, #tpu.memory_space<vmem>>, vector<1x256xf32>
    %17 = vector.broadcast %16 : vector<1x256xf32> to vector<64x256xf32>
    %18 = arith.addf %15, %17 : vector<64x256xf32>
    %cst_14 = arith.constant 0.000000e+00 : f32
    %19 = vector.broadcast %cst_14 : f32 to vector<64x256xf32>
    %20 = arith.cmpf oge, %18, %19 : vector<64x256xf32>
    %cst_15 = arith.constant 2.000000e-01 : f32
    %21 = vector.broadcast %cst_15 : f32 to vector<64x256xf32>
    %22 = arith.mulf %21, %18 : vector<64x256xf32>
    %23 = arith.select %20, %18, %22 : vector<64x256xi1>, vector<64x256xf32>
    %c0_16 = arith.constant 0 : index
    %c0_17 = arith.constant 0 : index
    %c0_18 = arith.constant 0 : index
    %24 = vector.load %arg7[%c0_16, %c0_17, %c0_18] : memref<1x64x256xf32, #tpu.memory_space<vmem>>, vector<1x64x256xf32>
    %25 = vector.shape_cast %24 : vector<1x64x256xf32> to vector<64x256xf32>
    %26 = vector.shape_cast %23 : vector<64x256xf32> to vector<1x64x256xf32>
    tpu.vector_store %arg7[%c0_16, %c0_17, %c0_18], %26 {strides = array<i32>} : memref<1x64x256xf32, #tpu.memory_space<vmem>>, vector<1x64x256xf32>,
    return
  }
  func.func @transform_0(%arg0: i32, %arg1: i32) -> (i32, i32, i32) {
    %c0_i32 = arith.constant 0 : i32
    %c0_i32_0 = arith.constant 0 : i32
    %c0_i32_1 = arith.constant 0 : i32
    return %arg0, %c0_i32, %c0_i32_0 : i32, i32, i32
  }
  func.func @transform_1(%arg0: i32, %arg1: i32) -> (i32, i32, i32) {
    %c0_i32 = arith.constant 0 : i32
    %c0_i32_0 = arith.constant 0 : i32
    return %arg0, %arg1, %c0_i32 : i32, i32, i32
  }
  func.func @transform_2(%arg0: i32, %arg1: i32) -> (i32, i32) {
    %c0_i32 = arith.constant 0 : i32
    %c0_i32_0 = arith.constant 0 : i32
    %c0_i32_1 = arith.constant 0 : i32
    return %c0_i32, %c0_i32_0 : i32, i32
  }
  func.func @transform_3(%arg0: i32, %arg1: i32) -> (i32, i32) {
    %c0_i32 = arith.constant 0 : i32
    %c0_i32_0 = arith.constant 0 : i32
    %c0_i32_1 = arith.constant 0 : i32
    return %c0_i32, %c0_i32_0 : i32, i32
  }
  func.func @transform_4(%arg0: i32, %arg1: i32) -> (i32, i32) {
    %c0_i32 = arith.constant 0 : i32
    %c0_i32_0 = arith.constant 0 : i32
    %c0_i32_1 = arith.constant 0 : i32
    return %c0_i32, %c0_i32_0 : i32, i32
  }
  func.func @transform_5(%arg0: i32, %arg1: i32) -> (i32, i32, i32) {
    %c0_i32 = arith.constant 0 : i32
    %c0_i32_0 = arith.constant 0 : i32
    return %arg0, %arg1, %c0_i32 : i32, i32, i32
  }
}

</mosaic_0001>

<bundles_post_ra>
// kernel: dgcnn_semseg_forward.8
= control target key start
LH: loop header
LB: loop body
LE: loop exit
PB: predicated region body
PF: predicated region fallthrough
CT: control target
= control target key end

     0   :  { %s1219_s15 = smov 0   ;;  %s1221_s16 = smov 0   ;;  %s1459_s0 = inlined_call_operand.vmem [shape: f32[2,128,3], index: 0, kind: input, shape index: {}, may-alias: {0,1}]   ;;  %s1460_s1 = inlined_call_operand.vmem [shape: f32[2,128,3], index: 1, kind: input, shape index: {}, may-alias: {0,1}]   ;;  %s1461_s2 = inlined_call_operand.vmem [shape: f32[2,128,1], index: 2, kind: input, shape index: {}]   ;;  %s1462_s3 = inlined_call_operand.vmem [shape: f32[2,1,128], index: 3, kind: input, shape index: {}]   ;;  %s1463_s4 = inlined_call_operand.vmem [shape: f32[2,128,128], index: 4, kind: output, shape index: {}]  }
   0x1   :  { %s1223_s17 = smov 0  }
   0x2 LB: > { %s33_s18 = sadd.s32 1, %s1187_s16  ;;  %p942_p0 = scmp.ge.s32.totalorder %s1191_s17, 1  ;;  %s1191_s17 = sphi %s1223_s17, %s14_s17   ;;  %s1187_s16 = sphi %s1221_s16, %s1467_s16   ;;  %s1183_s15 = sphi %s1219_s15, %s1466_s15  }
   0x3   : > { %p35_p1 = scmp.ge.s32.totalorder %s33_s18, 2  ;;  %p239_p2 = scmp.lt.s32.totalorder %s1191_s17, 3 }
   0x5   : > { %s1469_s18 = smov (%p35_p1, %s33_s18), 0  ;;  %p240_p3 = pnand %p942_p0, %p239_p2 }
   0x6   : > { %p301_p4 = scmp.lt.s32.totalorder (!%p240_p3), %s1183_s15, 1  ;;  %v1193_v0 = vmov (!%p240_p3), 0   ;;  %vm381_vm0 = vcmask (!%p240_p3), 23552  }
   0x7   : > { %243 = sbr.rel (%p240_p3) target bundleno = 316 (0x13c), region = 36  ;;  %1168 = vset.pattern.permute.xlu1 (!%p240_p3), %v1193_v0  ;;  %1167 = vset.pattern.permute.xlu0 (!%p240_p3), %v1193_v0  ;;  %vm1250_vm1 = vmpackc.low (!%p240_p3), %vm381_vm0, %vm381_vm0 }
   0xe   : > { %s1471_s15 = smov (!%p301_p4, %s1183_s15), 1 }
   0xf   : > { %s1240_s19 = sshll.u32 %s1471_s15, 7  ;;  %s335_s5 = scalar_lea.vmem %s1462_s3, %s1471_s15 }
  0x10   : > { %s1246_s22 = scalar_lea.vmem %s1460_s1, %s1240_s19  ;;  %s1262_s25 = scalar_lea.vmem %s1459_s0, %s1240_s19 }
  0x11   : > { %v365_v2 = vld [vmem:[%s1246_s22] sm:$0xff]  ;;  %v366_v3 = vld [vmem:[%s1246_s22 + $0x8] sm:$0xff]  ;;  %v367_v4 = vld [vmem:[%s1246_s22 + $0x10] sm:$0xff]  ;;  %s1286_s28 = scalar_lea.vmem %s1461_s2, %s1240_s19  ;;  %s1414_s8 = scalar_lea.vmem %s1463_s4, %s1240_s19 }
  0x12   : > { %v1078_v5 = vpack.c.bf16 %v366_v3, %v365_v2  ;;  %v368_v6 = vld [vmem:[%s1246_s22 + $0x18] sm:$0xff]  ;;  %v349_v8 = vld [vmem:[%s1262_s25] sm:$0xff]  ;;  %v370_v11 = vld [vmem:[%s1246_s22 + $0x28] sm:$0xff] }
  0x13   : > { %v1084_v7 = vpack.c.bf16 %v368_v6, %v367_v4  ;;  %v357_v9 = vld [vmem:[%s1262_s25 + $0x40] sm:$0xff]  ;;  %1054 = vmatprep.mubr.msk.f32.mxu0 %vm381_vm0, %v349_v8  ;;  %v664_v13 = vld [vmem:[%s1286_s28 + $0x10] sm:$0xff]  ;;  %v665_v15 = vld [vmem:[%s1286_s28 + $0x18] sm:$0xff] }
  0x14   : > { %1080 = vmatprep.subr.msk.bf16.mxu0 %vm1250_vm1, %v1078_v5  ;;  %1126 = vmatprep.subr.msk.bf16.mxu1 %vm1250_vm1, %v1078_v5  ;;  %v369_v10 = vld [vmem:[%s1246_s22 + $0x20] sm:$0xff]  ;;  %v371_v16 = vld [vmem:[%s1246_s22 + $0x30] sm:$0xff]  ;;  %v372_v17 = vld [vmem:[%s1246_s22 + $0x38] sm:$0xff] }
  0x15   : > { %1083 = vmatpush3.bf16.xpose.msk.msra.mxu0 %vm1250_vm1, %v1078_v5  ;;  %1134 = vmatpush3.bf16.xpose.msk.msra.mxu1 %vm1250_vm1, %v1078_v5  ;;  %v1090_v12 = vpack.c.bf16 %v370_v11, %v369_v10  ;;  %v662_v14 = vld [vmem:[%s1286_s28] sm:$0xff]  ;;  %v663_v18 = vld [vmem:[%s1286_s28 + $0x8] sm:$0xff]  ;;  %v1096_v20 = vpack.c.bf16 %v372_v17, %v371_v16  ;;  %v669_v22 = vld [vmem:[%s1286_s28 + $0x38] sm:$0xff] }
  0x16   : > { %1086 = vmatprep.subr.msk.bf16.mxu0 %vm1250_vm1, %v1084_v7  ;;  %1127 = vmatprep.subr.msk.bf16.mxu1 %vm1250_vm1, %v1084_v7  ;;  %v667_v19 = vld [vmem:[%s1286_s28 + $0x28] sm:$0xff]  ;;  %v666_v21 = vld [vmem:[%s1286_s28 + $0x20] sm:$0xff]  ;;  %v668_v25 = vld [vmem:[%s1286_s28 + $0x30] sm:$0xff] }
  0x17   : > { %1066 = vmatprep.mubr.msk.f32.mxu1 %vm381_vm0, %v357_v9  ;;  %690 = vperm.xlu1 %1168, %v664_v13   ;;  %v373_v23 = vld [vmem:[%s1246_s22 + $0x40] sm:$0xff]  ;;  %v374_v24 = vld [vmem:[%s1246_s22 + $0x48] sm:$0xff]  ;;  %v673_v29 = vld [vmem:[%s1286_s28 + $0x58] sm:$0xff] }
  0x18   : > { %680 = vperm.xlu0 %1167, %v662_v14   ;;  %v671_v26 = vld [vmem:[%s1286_s28 + $0x48] sm:$0xff]  ;;  %v1102_v27 = vpack.c.bf16 %v374_v24, %v373_v23  ;;  %v670_v28 = vld [vmem:[%s1286_s28 + $0x40] sm:$0xff]  ;;  %v375_v30 = vld [vmem:[%s1246_s22 + $0x50] sm:$0xff] }
  0x19   : > { %v376_v31 = vld [vmem:[%s1246_s22 + $0x58] sm:$0xff]  ;;  %v672_v32 = vld [vmem:[%s1286_s28 + $0x50] sm:$0xff]  ;;  %v675_v33 = vld [vmem:[%s1286_s28 + $0x68] sm:$0xff] }
  0x1a   : > { %v1108_v34 = vpack.c.bf16 %v376_v31, %v375_v30  ;;  %v674_v35 = vld [vmem:[%s1286_s28 + $0x60] sm:$0xff]  ;;  %v677_v36 = vld [vmem:[%s1286_s28 + $0x78] sm:$0xff]  ;;  %v378_v38 = vld [vmem:[%s1246_s22 + $0x68] sm:$0xff] }
  0x1b   : > { %695 = vperm.xlu1 %1168, %v665_v15   ;;  %v377_v37 = vld [vmem:[%s1246_s22 + $0x60] sm:$0xff]  ;;  %v676_v39 = vld [vmem:[%s1286_s28 + $0x70] sm:$0xff]  ;;  %v380_v42 = vld [vmem:[%s1246_s22 + $0x78] sm:$0xff] }
  0x1c   : > { %685 = vperm.xlu0 %1167, %v663_v18   ;;  %v1114_v40 = vpack.c.bf16 %v378_v38, %v377_v37  ;;  %v379_v41 = vld [vmem:[%s1246_s22 + $0x70] sm:$0xff]  ;;  %v350_v44 = vld [vmem:[%s1262_s25 + $0x8] sm:$0xff]  ;;  %v352_v48 = vld [vmem:[%s1262_s25 + $0x18] sm:$0xff] }
  0x1d   : > { %1089 = vmatpush3.bf16.xpose.msk.msra.mxu0 %vm1250_vm1, %v1084_v7  ;;  %1135 = vmatpush3.bf16.xpose.msk.msra.mxu1 %vm1250_vm1, %v1084_v7  ;;  %v1120_v43 = vpack.c.bf16 %v380_v42, %v379_v41  ;;  %v358_v45 = vld [vmem:[%s1262_s25 + $0x48] sm:$0xff]  ;;  %v351_v46 = vld [vmem:[%s1262_s25 + $0x10] sm:$0xff]  ;;  %v360_v49 = vld [vmem:[%s1262_s25 + $0x58] sm:$0xff] }
  0x1e   : > { %1092 = vmatprep.subr.msk.bf16.mxu0 %vm1250_vm1, %v1090_v12  ;;  %1128 = vmatprep.subr.msk.bf16.mxu1 %vm1250_vm1, %v1090_v12  ;;  %v359_v47 = vld [vmem:[%s1262_s25 + $0x50] sm:$0xff]  ;;  %v353_v50 = vld [vmem:[%s1262_s25 + $0x20] sm:$0xff]  ;;  %v354_v52 = vld [vmem:[%s1262_s25 + $0x28] sm:$0xff] }
  0x1f   : > { %705 = vperm.xlu1 %1168, %v667_v19   ;;  %v361_v51 = vld [vmem:[%s1262_s25 + $0x60] sm:$0xff]  ;;  %v362_v53 = vld [vmem:[%s1262_s25 + $0x68] sm:$0xff]  ;;  %v355_v54 = vld [vmem:[%s1262_s25 + $0x30] sm:$0xff] }
  0x20   : > { %700 = vperm.xlu0 %1167, %v666_v21   ;;  %v363_v55 = vld [vmem:[%s1262_s25 + $0x70] sm:$0xff]  ;;  %v356_v56 = vld [vmem:[%s1262_s25 + $0x38] sm:$0xff]  ;;  %v1406_v5 = vld [vmem:[%s335_s5] ss:$0 sm:$0xff] }
  0x21   : > { %v364_v57 = vld [vmem:[%s1262_s25 + $0x78] sm:$0xff] }
  0x23   : > { %715 = vperm.xlu1 %1168, %v669_v22  }
  0x24   : > { %710 = vperm.xlu0 %1167, %v668_v25  }
  0x25   : > { %1095 = vmatpush3.bf16.xpose.msk.msra.mxu0 %vm1250_vm1, %v1090_v12  ;;  %1136 = vmatpush3.bf16.xpose.msk.msra.mxu1 %vm1250_vm1, %v1090_v12 }
  0x26   : > { %1098 = vmatprep.subr.msk.bf16.mxu0 %vm1250_vm1, %v1096_v20  ;;  %1129 = vmatprep.subr.msk.bf16.mxu1 %vm1250_vm1, %v1096_v20 }
  0x27   : > { %725 = vperm.xlu1 %1168, %v671_v26  }
  0x28   : > { %720 = vperm.xlu0 %1167, %v670_v28  }
  0x2b   : > { %735 = vperm.xlu1 %1168, %v673_v29  }
  0x2c   : > { %730 = vperm.xlu0 %1167, %v672_v32  }
  0x2d   : > { %1101 = vmatpush3.bf16.xpose.msk.msra.mxu0 %vm1250_vm1, %v1096_v20  ;;  %1137 = vmatpush3.bf16.xpose.msk.msra.mxu1 %vm1250_vm1, %v1096_v20 }
  0x2e   : > { %1104 = vmatprep.subr.msk.bf16.mxu0 %vm1250_vm1, %v1102_v27  ;;  %1130 = vmatprep.subr.msk.bf16.mxu1 %vm1250_vm1, %v1102_v27 }
  0x2f   : > { %745 = vperm.xlu1 %1168, %v675_v33  }
  0x30   : > { %740 = vperm.xlu0 %1167, %v674_v35  }
  0x33   : > { %755 = vperm.xlu1 %1168, %v677_v36  }
  0x34   : > { %750 = vperm.xlu0 %1167, %v676_v39  }
  0x35   : > { %1107 = vmatpush3.bf16.xpose.msk.msra.mxu0 %vm1250_vm1, %v1102_v27  ;;  %1138 = vmatpush3.bf16.xpose.msk.msra.mxu1 %vm1250_vm1, %v1102_v27 }
  0x36   : > { %1110 = vmatprep.subr.msk.bf16.mxu0 %vm1250_vm1, %v1108_v34  ;;  %1131 = vmatprep.subr.msk.bf16.mxu1 %vm1250_vm1, %v1108_v34 }
  0x3d   : > { %1113 = vmatpush3.bf16.xpose.msk.msra.mxu0 %vm1250_vm1, %v1108_v34  ;;  %1139 = vmatpush3.bf16.xpose.msk.msra.mxu1 %vm1250_vm1, %v1108_v34 }
  0x3e   : > { %1116 = vmatprep.subr.msk.bf16.mxu0 %vm1250_vm1, %v1114_v40  ;;  %1132 = vmatprep.subr.msk.bf16.mxu1 %vm1250_vm1, %v1114_v40 }
  0x45   : > { %1119 = vmatpush3.bf16.xpose.msk.msra.mxu0 %vm1250_vm1, %v1114_v40  ;;  %1140 = vmatpush3.bf16.xpose.msk.msra.mxu1 %vm1250_vm1, %v1114_v40 }
  0x46   : > { %1122 = vmatprep.subr.msk.bf16.mxu0 %vm1250_vm1, %v1120_v43  ;;  %1133 = vmatprep.subr.msk.bf16.mxu1 %vm1250_vm1, %v1120_v43 }
  0x4d   : > { %1125 = vmatpush3.bf16.xpose.msk.msra.mxu0 %vm1250_vm1, %v1120_v43  ;;  %1141 = vmatpush3.bf16.xpose.msk.msra.mxu1 %vm1250_vm1, %v1120_v43 }
  0x54   : > { %1055 = vmatmul.mubr.msk.f32.vlgmr.msra.gmra.mrb[0].mxu0 %vm381_vm0, %v350_v44  ;;  %1067 = vmatmul.mubr.msk.f32.vlgmr.msra.gmra.mrb[0].mxu1 %vm381_vm0, %v358_v45 }
  0x55   : > { %1057 = vmatprep.mubr.msk.f32.mxu0 %vm381_vm0, %v351_v46  ;;  %1069 = vmatprep.mubr.msk.f32.mxu1 %vm381_vm0, %v359_v47 }
  0x58   : > { %1058 = vmatmul.mubr.msk.f32.gmra.mrb[2].mxu0 %vm381_vm0, %v352_v48  ;;  %1070 = vmatmul.mubr.msk.f32.gmra.mrb[2].mxu1 %vm381_vm0, %v360_v49 }
  0x59   : > { %1060 = vmatprep.mubr.msk.f32.mxu0 %vm381_vm0, %v353_v50  ;;  %1072 = vmatprep.mubr.msk.f32.mxu1 %vm381_vm0, %v361_v51 }
  0x5c   : > { %1061 = vmatmul.mubr.msk.f32.gmra.mrb[4].mxu0 %vm381_vm0, %v354_v52  ;;  %1073 = vmatmul.mubr.msk.f32.gmra.mrb[4].mxu1 %vm381_vm0, %v362_v53 }
  0x5d   : > { %1063 = vmatprep.mubr.msk.f32.mxu0 %vm381_vm0, %v355_v54  ;;  %1075 = vmatprep.mubr.msk.f32.mxu1 %vm381_vm0, %v363_v55 }
  0x60   : > { %1064 = vmatmul.mubr.msk.f32.gmra.mrb[6].mxu0 %vm381_vm0, %v356_v56  ;;  %1076 = vmatmul.mubr.msk.f32.gmra.mrb[6].mxu1 %vm381_vm0, %v364_v57 }
  0x96   : > { %v691_v58 = vpop.permute.xlu1 %690 }
  0x97   : > { %v681_v59 = vpop.permute.xlu0 %680 }
  0x9a   : > { %v696_v60 = vpop.permute.xlu1 %695 }
  0x9b   : > { %v686_v61 = vpop.permute.xlu0 %685 }
  0x9e   : > { %v1394_v62 = vpop.permute.xlu1 %705 }
  0x9f   : > { %v1396_v63 = vpop.permute.xlu0 %700 }
  0xa2   : > { %v1398_v0 = vpop.permute.xlu1 %715 }
  0xa3   : > { %v1400_v1 = vpop.permute.xlu0 %710 }
  0xa6   : > { %v726_v2 = vpop.permute.xlu1 %725 }
  0xa7   : > { %v721_v3 = vpop.permute.xlu0 %720 }
  0xaa   : > { %v736_v13 = vpop.permute.xlu1 %735 }
  0xab   : > { %v731_v14 = vpop.permute.xlu0 %730 }
  0xae   : > { %v746_v43 = vpop.permute.xlu1 %745 }
  0xaf   : > { %v741_v48 = vpop.permute.xlu0 %740 }
 0x127   : > { %v1056_v4 = vpop.f32.mrb[0].mxu0  ;;  %v1068_v6 = vpop.f32.mrb[0].mxu1 }
 0x128   : > { %v624_v7 = vmul.f32 2.0, %v1056_v4  ;;  %v632_v8 = vmul.f32 2.0, %v1068_v6  ;;  %v544_v9 = vpop.f32.mrb[1].mxu0  ;;  %v584_v10 = vpop.f32.mrb[1].mxu1 }
 0x129   : > { %v623_v11 = vmul.f32 2.0, %v544_v9  ;;  %v631_v12 = vmul.f32 2.0, %v584_v10  ;;  %v751_v9 = vpop.permute.xlu0 %750 }
 0x12a   : > { %v647_v15 = vsub.f32 %v624_v7, %v1406_v5  ;;  %v655_v16 = vsub.f32 %v632_v8, %v1406_v5  ;;  %v756_v7 = vpop.permute.xlu1 %755 }
 0x12b   : > { %v646_v17 = vsub.f32 %v623_v11, %v1406_v5  ;;  %v654_v18 = vsub.f32 %v631_v12, %v1406_v5  ;;  %v1059_v19 = vpop.f32.mrb[2].mxu0  ;;  %v1071_v20 = vpop.f32.mrb[2].mxu1 }
 0x12c   : > { %v759_v21 = vsub.f32 %v647_v15, %v686_v61  ;;  %v767_v22 = vsub.f32 %v655_v16, %v726_v2  ;;  %v626_v23 = vmul.f32 2.0, %v1059_v19  ;;  %v634_v24 = vmul.f32 2.0, %v1071_v20  ;;  %v554_v25 = vpop.f32.mrb[3].mxu0  ;;  %v594_v26 = vpop.f32.mrb[3].mxu1 }
 0x12d   : > { %v758_v27 = vsub.f32 %v646_v17, %v681_v59  ;;  %v766_v28 = vsub.f32 %v654_v18, %v721_v3  ;;  %v625_v29 = vmul.f32 2.0, %v554_v25  ;;  %v633_v30 = vmul.f32 2.0, %v594_v26 }
 0x12e   : > { %775 = vst [vmem:[%s1414_s8 + $0x8] sm:$0xff] %v759_v21  ;;  %783 = vst [vmem:[%s1414_s8 + $0x48] sm:$0xff] %v767_v22  ;;  %v649_v31 = vsub.f32 %v626_v23, %v1406_v5  ;;  %v657_v32 = vsub.f32 %v634_v24, %v1406_v5 }
 0x12f   : > { %774 = vst [vmem:[%s1414_s8] sm:$0xff] %v758_v27  ;;  %782 = vst [vmem:[%s1414_s8 + $0x40] sm:$0xff] %v766_v28  ;;  %v648_v33 = vsub.f32 %v625_v29, %v1406_v5  ;;  %v656_v34 = vsub.f32 %v633_v30, %v1406_v5  ;;  %v1062_v35 = vpop.f32.mrb[4].mxu0  ;;  %v1074_v36 = vpop.f32.mrb[4].mxu1 }
 0x130   : > { %v761_v37 = vsub.f32 %v649_v31, %v696_v60  ;;  %v769_v38 = vsub.f32 %v657_v32, %v736_v13  ;;  %v628_v39 = vmul.f32 2.0, %v1062_v35  ;;  %v636_v40 = vmul.f32 2.0, %v1074_v36  ;;  %v564_v41 = vpop.f32.mrb[5].mxu0  ;;  %v604_v42 = vpop.f32.mrb[5].mxu1 }
 0x131   : > { %v760_v44 = vsub.f32 %v648_v33, %v691_v58  ;;  %v768_v45 = vsub.f32 %v656_v34, %v731_v14  ;;  %v627_v46 = vmul.f32 2.0, %v564_v41  ;;  %v635_v47 = vmul.f32 2.0, %v604_v42 }
 0x132   : > { %777 = vst [vmem:[%s1414_s8 + $0x18] sm:$0xff] %v761_v37  ;;  %785 = vst [vmem:[%s1414_s8 + $0x58] sm:$0xff] %v769_v38  ;;  %v651_v49 = vsub.f32 %v628_v39, %v1406_v5  ;;  %v659_v50 = vsub.f32 %v636_v40, %v1406_v5 }
 0x133   : > { %776 = vst [vmem:[%s1414_s8 + $0x10] sm:$0xff] %v760_v44  ;;  %784 = vst [vmem:[%s1414_s8 + $0x50] sm:$0xff] %v768_v45  ;;  %v650_v51 = vsub.f32 %v627_v46, %v1406_v5  ;;  %v658_v52 = vsub.f32 %v635_v47, %v1406_v5  ;;  %v1065_v53 = vpop.f32.mrb[6].mxu0  ;;  %v1077_v54 = vpop.f32.mrb[6].mxu1 }
 0x134   : > { %v763_v55 = vsub.f32 %v651_v49, %v1394_v62  ;;  %v771_v56 = vsub.f32 %v659_v50, %v746_v43  ;;  %v630_v57 = vmul.f32 2.0, %v1065_v53  ;;  %v638_v58 = vmul.f32 2.0, %v1077_v54  ;;  %v574_v59 = vpop.f32.mrb[7].mxu0  ;;  %v614_v60 = vpop.f32.mrb[7].mxu1 }
 0x135   : > { %v762_v61 = vsub.f32 %v650_v51, %v1396_v63  ;;  %v770_v2 = vsub.f32 %v658_v52, %v741_v48  ;;  %v629_v3 = vmul.f32 2.0, %v574_v59  ;;  %v637_v4 = vmul.f32 2.0, %v614_v60 }
 0x136   : > { %779 = vst [vmem:[%s1414_s8 + $0x28] sm:$0xff] %v763_v55  ;;  %787 = vst [vmem:[%s1414_s8 + $0x68] sm:$0xff] %v771_v56  ;;  %v653_v6 = vsub.f32 %v630_v57, %v1406_v5  ;;  %v661_v62 = vsub.f32 %v638_v58, %v1406_v5 }
 0x137   : > { %778 = vst [vmem:[%s1414_s8 + $0x20] sm:$0xff] %v762_v61  ;;  %786 = vst [vmem:[%s1414_s8 + $0x60] sm:$0xff] %v770_v2  ;;  %v652_v8 = vsub.f32 %v629_v3, %v1406_v5  ;;  %v660_v63 = vsub.f32 %v637_v4, %v1406_v5 }
 0x138   : > { %v765_v10 = vsub.f32 %v653_v6, %v1398_v0  ;;  %v773_v11 = vsub.f32 %v661_v62, %v756_v7 }
 0x139   : > { %v764_v12 = vsub.f32 %v652_v8, %v1400_v1  ;;  %v772_v13 = vsub.f32 %v660_v63, %v751_v9 }
 0x13a   : > { %781 = vst [vmem:[%s1414_s8 + $0x38] sm:$0xff] %v765_v10  ;;  %789 = vst [vmem:[%s1414_s8 + $0x78] sm:$0xff] %v773_v11 }
 0x13b   : > { %780 = vst [vmem:[%s1414_s8 + $0x30] sm:$0xff] %v764_v12  ;;  %788 = vst [vmem:[%s1414_s8 + $0x70] sm:$0xff] %v772_v13 }
 0x13c PF: > { %s14_s17 = sadd.s32 1, %s1191_s17   ;;  %s1466_s15 = smov %s1187_s16 }
 0x13d   : > { %p11_p5 = scmp.ge.s32.totalorder %s14_s17, 4   ;;  %s1467_s16 = smov %s1469_s18 }
 0x13f   :  { %13 = sbr.rel (!%p11_p5) target bundleno = 2 (0x2), region = 75 }

// kernel: dgcnn_semseg_forward.10
= control target key start
LH: loop header
LB: loop body
LE: loop exit
PB: predicated region body
PF: predicated region fallthrough
CT: control target
= control target key end

     0   :  { %s1219_s15 = smov 0   ;;  %s1221_s16 = smov 0   ;;  %s1459_s0 = inlined_call_operand.vmem [shape: f32[2,128,64], index: 0, kind: input, shape index: {}, may-alias: {0,1}]   ;;  %s1460_s1 = inlined_call_operand.vmem [shape: f32[2,128,64], index: 1, kind: input, shape index: {}, may-alias: {0,1}]   ;;  %s1461_s2 = inlined_call_operand.vmem [shape: f32[2,128,1], index: 2, kind: input, shape index: {}]   ;;  %s1462_s3 = inlined_call_operand.vmem [shape: f32[2,1,128], index: 3, kind: input, shape index: {}]   ;;  %s1463_s4 = inlined_call_operand.vmem [shape: f32[2,128,128], index: 4, kind: output, shape index: {}]  }
   0x1   :  { %s1223_s17 = smov 0  }
   0x2 LB: > { %s33_s18 = sadd.s32 1, %s1187_s16  ;;  %p942_p0 = scmp.ge.s32.totalorder %s1191_s17, 1  ;;  %s1191_s17 = sphi %s1223_s17, %s14_s17   ;;  %s1187_s16 = sphi %s1221_s16, %s1467_s16   ;;  %s1183_s15 = sphi %s1219_s15, %s1466_s15  }
   0x3   : > { %p35_p1 = scmp.ge.s32.totalorder %s33_s18, 2  ;;  %p239_p2 = scmp.lt.s32.totalorder %s1191_s17, 3 }
   0x5   : > { %s1469_s18 = smov (%p35_p1, %s33_s18), 0  ;;  %p240_p3 = pnand %p942_p0, %p239_p2 }
   0x6   : > { %p301_p4 = scmp.lt.s32.totalorder (!%p240_p3), %s1183_s15, 1  ;;  %v1193_v0 = vmov (!%p240_p3), 0   ;;  %vm381_vm0 = vcmask (!%p240_p3), 523264  }
   0x7   : > { %243 = sbr.rel (%p240_p3) target bundleno = 316 (0x13c), region = 36  ;;  %1168 = vset.pattern.permute.xlu1 (!%p240_p3), %v1193_v0  ;;  %1167 = vset.pattern.permute.xlu0 (!%p240_p3), %v1193_v0  ;;  %vm1250_vm1 = vmpackc.low (!%p240_p3), %vm381_vm0, %vm381_vm0 }
   0xe   : > { %s1471_s15 = smov (!%p301_p4, %s1183_s15), 1 }
   0xf   : > { %s1240_s19 = sshll.u32 %s1471_s15, 7  ;;  %s335_s5 = scalar_lea.vmem %s1462_s3, %s1471_s15 }
  0x10   : > { %s1246_s22 = scalar_lea.vmem %s1460_s1, %s1240_s19  ;;  %s1262_s25 = scalar_lea.vmem %s1459_s0, %s1240_s19 }
  0x11   : > { %v365_v2 = vld [vmem:[%s1246_s22] sm:$0xff]  ;;  %v366_v3 = vld [vmem:[%s1246_s22 + $0x8] sm:$0xff]  ;;  %v367_v4 = vld [vmem:[%s1246_s22 + $0x10] sm:$0xff]  ;;  %s1286_s28 = scalar_lea.vmem %s1461_s2, %s1240_s19  ;;  %s1414_s8 = scalar_lea.vmem %s1463_s4, %s1240_s19 }
  0x12   : > { %v1078_v5 = vpack.c.bf16 %v366_v3, %v365_v2  ;;  %v368_v6 = vld [vmem:[%s1246_s22 + $0x18] sm:$0xff]  ;;  %v349_v8 = vld [vmem:[%s1262_s25] sm:$0xff]  ;;  %v370_v11 = vld [vmem:[%s1246_s22 + $0x28] sm:$0xff] }
  0x13   : > { %v1084_v7 = vpack.c.bf16 %v368_v6, %v367_v4  ;;  %v357_v9 = vld [vmem:[%s1262_s25 + $0x40] sm:$0xff]  ;;  %1054 = vmatprep.mubr.msk.f32.mxu0 %vm381_vm0, %v349_v8  ;;  %v664_v13 = vld [vmem:[%s1286_s28 + $0x10] sm:$0xff]  ;;  %v665_v15 = vld [vmem:[%s1286_s28 + $0x18] sm:$0xff] }
  0x14   : > { %1080 = vmatprep.subr.msk.bf16.mxu0 %vm1250_vm1, %v1078_v5  ;;  %1126 = vmatprep.subr.msk.bf16.mxu1 %vm1250_vm1, %v1078_v5  ;;  %v369_v10 = vld [vmem:[%s1246_s22 + $0x20] sm:$0xff]  ;;  %v371_v16 = vld [vmem:[%s1246_s22 + $0x30] sm:$0xff]  ;;  %v372_v17 = vld [vmem:[%s1246_s22 + $0x38] sm:$0xff] }
  0x15   : > { %1083 = vmatpush3.bf16.xpose.msk.msra.mxu0 %vm1250_vm1, %v1078_v5  ;;  %1134 = vmatpush3.bf16.xpose.msk.msra.mxu1 %vm1250_vm1, %v1078_v5  ;;  %v1090_v12 = vpack.c.bf16 %v370_v11, %v369_v10  ;;  %v662_v14 = vld [vmem:[%s1286_s28] sm:$0xff]  ;;  %v663_v18 = vld [vmem:[%s1286_s28 + $0x8] sm:$0xff]  ;;  %v1096_v20 = vpack.c.bf16 %v372_v17, %v371_v16  ;;  %v669_v22 = vld [vmem:[%s1286_s28 + $0x38] sm:$0xff] }
  0x16   : > { %1086 = vmatprep.subr.msk.bf16.mxu0 %vm1250_vm1, %v1084_v7  ;;  %1127 = vmatprep.subr.msk.bf16.mxu1 %vm1250_vm1, %v1084_v7  ;;  %v667_v19 = vld [vmem:[%s1286_s28 + $0x28] sm:$0xff]  ;;  %v666_v21 = vld [vmem:[%s1286_s28 + $0x20] sm:$0xff]  ;;  %v668_v25 = vld [vmem:[%s1286_s28 + $0x30] sm:$0xff] }
  0x17   : > { %1066 = vmatprep.mubr.msk.f32.mxu1 %vm381_vm0, %v357_v9  ;;  %690 = vperm.xlu1 %1168, %v664_v13   ;;  %v373_v23 = vld [vmem:[%s1246_s22 + $0x40] sm:$0xff]  ;;  %v374_v24 = vld [vmem:[%s1246_s22 + $0x48] sm:$0xff]  ;;  %v673_v29 = vld [vmem:[%s1286_s28 + $0x58] sm:$0xff] }
  0x18   : > { %680 = vperm.xlu0 %1167, %v662_v14   ;;  %v671_v26 = vld [vmem:[%s1286_s28 + $0x48] sm:$0xff]  ;;  %v1102_v27 = vpack.c.bf16 %v374_v24, %v373_v23  ;;  %v670_v28 = vld [vmem:[%s1286_s28 + $0x40] sm:$0xff]  ;;  %v375_v30 = vld [vmem:[%s1246_s22 + $0x50] sm:$0xff] }
  0x19   : > { %v376_v31 = vld [vmem:[%s1246_s22 + $0x58] sm:$0xff]  ;;  %v672_v32 = vld [vmem:[%s1286_s28 + $0x50] sm:$0xff]  ;;  %v675_v33 = vld [vmem:[%s1286_s28 + $0x68] sm:$0xff] }
  0x1a   : > { %v1108_v34 = vpack.c.bf16 %v376_v31, %v375_v30  ;;  %v674_v35 = vld [vmem:[%s1286_s28 + $0x60] sm:$0xff]  ;;  %v677_v36 = vld [vmem:[%s1286_s28 + $0x78] sm:$0xff]  ;;  %v378_v38 = vld [vmem:[%s1246_s22 + $0x68] sm:$0xff] }
  0x1b   : > { %695 = vperm.xlu1 %1168, %v665_v15   ;;  %v377_v37 = vld [vmem:[%s1246_s22 + $0x60] sm:$0xff]  ;;  %v676_v39 = vld [vmem:[%s1286_s28 + $0x70] sm:$0xff]  ;;  %v380_v42 = vld [vmem:[%s1246_s22 + $0x78] sm:$0xff] }
  0x1c   : > { %685 = vperm.xlu0 %1167, %v663_v18   ;;  %v1114_v40 = vpack.c.bf16 %v378_v38, %v377_v37  ;;  %v379_v41 = vld [vmem:[%s1246_s22 + $0x70] sm:$0xff]  ;;  %v350_v44 = vld [vmem:[%s1262_s25 + $0x8] sm:$0xff]  ;;  %v352_v48 = vld [vmem:[%s1262_s25 + $0x18] sm:$0xff] }
  0x1d   : > { %1089 = vmatpush3.bf16.xpose.msk.msra.mxu0 %vm1250_vm1, %v1084_v7  ;;  %1135 = vmatpush3.bf16.xpose.msk.msra.mxu1 %vm1250_vm1, %v1084_v7  ;;  %v1120_v43 = vpack.c.bf16 %v380_v42, %v379_v41  ;;  %v358_v45 = vld [vmem:[%s1262_s25 + $0x48] sm:$0xff]  ;;  %v351_v46 = vld [vmem:[%s1262_s25 + $0x10] sm:$0xff]  ;;  %v360_v49 = vld [vmem:[%s1262_s25 + $0x58] sm:$0xff] }
  0x1e   : > { %1092 = vmatprep.subr.msk.bf16.mxu0 %vm1250_vm1, %v1090_v12  ;;  %1128 = vmatprep.subr.msk.bf16.mxu1 %vm1250_vm1, %v1090_v12  ;;  %v359_v47 = vld [vmem:[%s1262_s25 + $0x50] sm:$0xff]  ;;  %v353_v50 = vld [vmem:[%s1262_s25 + $0x20] sm:$0xff]  ;;  %v354_v52 = vld [vmem:[%s1262_s25 + $0x28] sm:$0xff] }
  0x1f   : > { %705 = vperm.xlu1 %1168, %v667_v19   ;;  %v361_v51 = vld [vmem:[%s1262_s25 + $0x60] sm:$0xff]  ;;  %v362_v53 = vld [vmem:[%s1262_s25 + $0x68] sm:$0xff]  ;;  %v355_v54 = vld [vmem:[%s1262_s25 + $0x30] sm:$0xff] }
  0x20   : > { %700 = vperm.xlu0 %1167, %v666_v21   ;;  %v363_v55 = vld [vmem:[%s1262_s25 + $0x70] sm:$0xff]  ;;  %v356_v56 = vld [vmem:[%s1262_s25 + $0x38] sm:$0xff]  ;;  %v1406_v5 = vld [vmem:[%s335_s5] ss:$0 sm:$0xff] }
  0x21   : > { %v364_v57 = vld [vmem:[%s1262_s25 + $0x78] sm:$0xff] }
  0x23   : > { %715 = vperm.xlu1 %1168, %v669_v22  }
  0x24   : > { %710 = vperm.xlu0 %1167, %v668_v25  }
  0x25   : > { %1095 = vmatpush3.bf16.xpose.msk.msra.mxu0 %vm1250_vm1, %v1090_v12  ;;  %1136 = vmatpush3.bf16.xpose.msk.msra.mxu1 %vm1250_vm1, %v1090_v12 }
  0x26   : > { %1098 = vmatprep.subr.msk.bf16.mxu0 %vm1250_vm1, %v1096_v20  ;;  %1129 = vmatprep.subr.msk.bf16.mxu1 %vm1250_vm1, %v1096_v20 }
  0x27   : > { %725 = vperm.xlu1 %1168, %v671_v26  }
  0x28   : > { %720 = vperm.xlu0 %1167, %v670_v28  }
  0x2b   : > { %735 = vperm.xlu1 %1168, %v673_v29  }
  0x2c   : > { %730 = vperm.xlu0 %1167, %v672_v32  }
  0x2d   : > { %1101 = vmatpush3.bf16.xpose.msk.msra.mxu0 %vm1250_vm1, %v1096_v20  ;;  %1137 = vmatpush3.bf16.xpose.msk.msra.mxu1 %vm1250_vm1, %v1096_v20 }
  0x2e   : > { %1104 = vmatprep.subr.msk.bf16.mxu0 %vm1250_vm1, %v1102_v27  ;;  %1130 = vmatprep.subr.msk.bf16.mxu1 %vm1250_vm1, %v1102_v27 }
  0x2f   : > { %745 = vperm.xlu1 %1168, %v675_v33  }
  0x30   : > { %740 = vperm.xlu0 %1167, %v674_v35  }
  0x33   : > { %755 = vperm.xlu1 %1168, %v677_v36  }
  0x34   : > { %750 = vperm.xlu0 %1167, %v676_v39  }
  0x35   : > { %1107 = vmatpush3.bf16.xpose.msk.msra.mxu0 %vm1250_vm1, %v1102_v27  ;;  %1138 = vmatpush3.bf16.xpose.msk.msra.mxu1 %vm1250_vm1, %v1102_v27 }
  0x36   : > { %1110 = vmatprep.subr.msk.bf16.mxu0 %vm1250_vm1, %v1108_v34  ;;  %1131 = vmatprep.subr.msk.bf16.mxu1 %vm1250_vm1, %v1108_v34 }
  0x3d   : > { %1113 = vmatpush3.bf16.xpose.msk.msra.mxu0 %vm1250_vm1, %v1108_v34  ;;  %1139 = vmatpush3.bf16.xpose.msk.msra.mxu1 %vm1250_vm1, %v1108_v34 }
  0x3e   : > { %1116 = vmatprep.subr.msk.bf16.mxu0 %vm1250_vm1, %v1114_v40  ;;  %1132 = vmatprep.subr.msk.bf16.mxu1 %vm1250_vm1, %v1114_v40 }
  0x45   : > { %1119 = vmatpush3.bf16.xpose.msk.msra.mxu0 %vm1250_vm1, %v1114_v40  ;;  %1140 = vmatpush3.bf16.xpose.msk.msra.mxu1 %vm1250_vm1, %v1114_v40 }
  0x46   : > { %1122 = vmatprep.subr.msk.bf16.mxu0 %vm1250_vm1, %v1120_v43  ;;  %1133 = vmatprep.subr.msk.bf16.mxu1 %vm1250_vm1, %v1120_v43 }
  0x4d   : > { %1125 = vmatpush3.bf16.xpose.msk.msra.mxu0 %vm1250_vm1, %v1120_v43  ;;  %1141 = vmatpush3.bf16.xpose.msk.msra.mxu1 %vm1250_vm1, %v1120_v43 }
  0x54   : > { %1055 = vmatmul.mubr.msk.f32.vlgmr.msra.gmra.mrb[0].mxu0 %vm381_vm0, %v350_v44  ;;  %1067 = vmatmul.mubr.msk.f32.vlgmr.msra.gmra.mrb[0].mxu1 %vm381_vm0, %v358_v45 }
  0x55   : > { %1057 = vmatprep.mubr.msk.f32.mxu0 %vm381_vm0, %v351_v46  ;;  %1069 = vmatprep.mubr.msk.f32.mxu1 %vm381_vm0, %v359_v47 }
  0x58   : > { %1058 = vmatmul.mubr.msk.f32.gmra.mrb[2].mxu0 %vm381_vm0, %v352_v48  ;;  %1070 = vmatmul.mubr.msk.f32.gmra.mrb[2].mxu1 %vm381_vm0, %v360_v49 }
  0x59   : > { %1060 = vmatprep.mubr.msk.f32.mxu0 %vm381_vm0, %v353_v50  ;;  %1072 = vmatprep.mubr.msk.f32.mxu1 %vm381_vm0, %v361_v51 }
  0x5c   : > { %1061 = vmatmul.mubr.msk.f32.gmra.mrb[4].mxu0 %vm381_vm0, %v354_v52  ;;  %1073 = vmatmul.mubr.msk.f32.gmra.mrb[4].mxu1 %vm381_vm0, %v362_v53 }
  0x5d   : > { %1063 = vmatprep.mubr.msk.f32.mxu0 %vm381_vm0, %v355_v54  ;;  %1075 = vmatprep.mubr.msk.f32.mxu1 %vm381_vm0, %v363_v55 }
  0x60   : > { %1064 = vmatmul.mubr.msk.f32.gmra.mrb[6].mxu0 %vm381_vm0, %v356_v56  ;;  %1076 = vmatmul.mubr.msk.f32.gmra.mrb[6].mxu1 %vm381_vm0, %v364_v57 }
  0x96   : > { %v691_v58 = vpop.permute.xlu1 %690 }
  0x97   : > { %v681_v59 = vpop.permute.xlu0 %680 }
  0x9a   : > { %v696_v60 = vpop.permute.xlu1 %695 }
  0x9b   : > { %v686_v61 = vpop.permute.xlu0 %685 }
  0x9e   : > { %v1394_v62 = vpop.permute.xlu1 %705 }
  0x9f   : > { %v1396_v63 = vpop.permute.xlu0 %700 }
  0xa2   : > { %v1398_v0 = vpop.permute.xlu1 %715 }
  0xa3   : > { %v1400_v1 = vpop.permute.xlu0 %710 }
  0xa6   : > { %v726_v2 = vpop.permute.xlu1 %725 }
  0xa7   : > { %v721_v3 = vpop.permute.xlu0 %720 }
  0xaa   : > { %v736_v13 = vpop.permute.xlu1 %735 }
  0xab   : > { %v731_v14 = vpop.permute.xlu0 %730 }
  0xae   : > { %v746_v43 = vpop.permute.xlu1 %745 }
  0xaf   : > { %v741_v48 = vpop.permute.xlu0 %740 }
 0x127   : > { %v1056_v4 = vpop.f32.mrb[0].mxu0  ;;  %v1068_v6 = vpop.f32.mrb[0].mxu1 }
 0x128   : > { %v624_v7 = vmul.f32 2.0, %v1056_v4  ;;  %v632_v8 = vmul.f32 2.0, %v1068_v6  ;;  %v544_v9 = vpop.f32.mrb[1].mxu0  ;;  %v584_v10 = vpop.f32.mrb[1].mxu1 }
 0x129   : > { %v623_v11 = vmul.f32 2.0, %v544_v9  ;;  %v631_v12 = vmul.f32 2.0, %v584_v10  ;;  %v751_v9 = vpop.permute.xlu0 %750 }
 0x12a   : > { %v647_v15 = vsub.f32 %v624_v7, %v1406_v5  ;;  %v655_v16 = vsub.f32 %v632_v8, %v1406_v5  ;;  %v756_v7 = vpop.permute.xlu1 %755 }
 0x12b   : > { %v646_v17 = vsub.f32 %v623_v11, %v1406_v5  ;;  %v654_v18 = vsub.f32 %v631_v12, %v1406_v5  ;;  %v1059_v19 = vpop.f32.mrb[2].mxu0  ;;  %v1071_v20 = vpop.f32.mrb[2].mxu1 }
 0x12c   : > { %v759_v21 = vsub.f32 %v647_v15, %v686_v61  ;;  %v767_v22 = vsub.f32 %v655_v16, %v726_v2  ;;  %v626_v23 = vmul.f32 2.0, %v1059_v19  ;;  %v634_v24 = vmul.f32 2.0, %v1071_v20  ;;  %v554_v25 = vpop.f32.mrb[3].mxu0  ;;  %v594_v26 = vpop.f32.mrb[3].mxu1 }
 0x12d   : > { %v758_v27 = vsub.f32 %v646_v17, %v681_v59  ;;  %v766_v28 = vsub.f32 %v654_v18, %v721_v3  ;;  %v625_v29 = vmul.f32 2.0, %v554_v25  ;;  %v633_v30 = vmul.f32 2.0, %v594_v26 }
 0x12e   : > { %775 = vst [vmem:[%s1414_s8 + $0x8] sm:$0xff] %v759_v21  ;;  %783 = vst [vmem:[%s1414_s8 + $0x48] sm:$0xff] %v767_v22  ;;  %v649_v31 = vsub.f32 %v626_v23, %v1406_v5  ;;  %v657_v32 = vsub.f32 %v634_v24, %v1406_v5 }
 0x12f   : > { %774 = vst [vmem:[%s1414_s8] sm:$0xff] %v758_v27  ;;  %782 = vst [vmem:[%s1414_s8 + $0x40] sm:$0xff] %v766_v28  ;;  %v648_v33 = vsub.f32 %v625_v29, %v1406_v5  ;;  %v656_v34 = vsub.f32 %v633_v30, %v1406_v5  ;;  %v1062_v35 = vpop.f32.mrb[4].mxu0  ;;  %v1074_v36 = vpop.f32.mrb[4].mxu1 }
 0x130   : > { %v761_v37 = vsub.f32 %v649_v31, %v696_v60  ;;  %v769_v38 = vsub.f32 %v657_v32, %v736_v13  ;;  %v628_v39 = vmul.f32 2.0, %v1062_v35  ;;  %v636_v40 = vmul.f32 2.0, %v1074_v36  ;;  %v564_v41 = vpop.f32.mrb[5].mxu0  ;;  %v604_v42 = vpop.f32.mrb[5].mxu1 }
 0x131   : > { %v760_v44 = vsub.f32 %v648_v33, %v691_v58  ;;  %v768_v45 = vsub.f32 %v656_v34, %v731_v14  ;;  %v627_v46 = vmul.f32 2.0, %v564_v41  ;;  %v635_v47 = vmul.f32 2.0, %v604_v42 }
 0x132   : > { %777 = vst [vmem:[%s1414_s8 + $0x18] sm:$0xff] %v761_v37  ;;  %785 = vst [vmem:[%s1414_s8 + $0x58] sm:$0xff] %v769_v38  ;;  %v651_v49 = vsub.f32 %v628_v39, %v1406_v5  ;;  %v659_v50 = vsub.f32 %v636_v40, %v1406_v5 }
 0x133   : > { %776 = vst [vmem:[%s1414_s8 + $0x10] sm:$0xff] %v760_v44  ;;  %784 = vst [vmem:[%s1414_s8 + $0x50] sm:$0xff] %v768_v45  ;;  %v650_v51 = vsub.f32 %v627_v46, %v1406_v5  ;;  %v658_v52 = vsub.f32 %v635_v47, %v1406_v5  ;;  %v1065_v53 = vpop.f32.mrb[6].mxu0  ;;  %v1077_v54 = vpop.f32.mrb[6].mxu1 }
 0x134   : > { %v763_v55 = vsub.f32 %v651_v49, %v1394_v62  ;;  %v771_v56 = vsub.f32 %v659_v50, %v746_v43  ;;  %v630_v57 = vmul.f32 2.0, %v1065_v53  ;;  %v638_v58 = vmul.f32 2.0, %v1077_v54  ;;  %v574_v59 = vpop.f32.mrb[7].mxu0  ;;  %v614_v60 = vpop.f32.mrb[7].mxu1 }
 0x135   : > { %v762_v61 = vsub.f32 %v650_v51, %v1396_v63  ;;  %v770_v2 = vsub.f32 %v658_v52, %v741_v48  ;;  %v629_v3 = vmul.f32 2.0, %v574_v59  ;;  %v637_v4 = vmul.f32 2.0, %v614_v60 }
 0x136   : > { %779 = vst [vmem:[%s1414_s8 + $0x28] sm:$0xff] %v763_v55  ;;  %787 = vst [vmem:[%s1414_s8 + $0x68] sm:$0xff] %v771_v56  ;;  %v653_v6 = vsub.f32 %v630_v57, %v1406_v5  ;;  %v661_v62 = vsub.f32 %v638_v58, %v1406_v5 }
 0x137   : > { %778 = vst [vmem:[%s1414_s8 + $0x20] sm:$0xff] %v762_v61  ;;  %786 = vst [vmem:[%s1414_s8 + $0x60] sm:$0xff] %v770_v2  ;;  %v652_v8 = vsub.f32 %v629_v3, %v1406_v5  ;;  %v660_v63 = vsub.f32 %v637_v4, %v1406_v5 }
 0x138   : > { %v765_v10 = vsub.f32 %v653_v6, %v1398_v0  ;;  %v773_v11 = vsub.f32 %v661_v62, %v756_v7 }
 0x139   : > { %v764_v12 = vsub.f32 %v652_v8, %v1400_v1  ;;  %v772_v13 = vsub.f32 %v660_v63, %v751_v9 }
 0x13a   : > { %781 = vst [vmem:[%s1414_s8 + $0x38] sm:$0xff] %v765_v10  ;;  %789 = vst [vmem:[%s1414_s8 + $0x78] sm:$0xff] %v773_v11 }
 0x13b   : > { %780 = vst [vmem:[%s1414_s8 + $0x30] sm:$0xff] %v764_v12  ;;  %788 = vst [vmem:[%s1414_s8 + $0x70] sm:$0xff] %v772_v13 }
 0x13c PF: > { %s14_s17 = sadd.s32 1, %s1191_s17   ;;  %s1466_s15 = smov %s1187_s16 }
 0x13d   : > { %p11_p5 = scmp.ge.s32.totalorder %s14_s17, 4   ;;  %s1467_s16 = smov %s1469_s18 }
 0x13f   :  { %13 = sbr.rel (!%p11_p5) target bundleno = 2 (0x2), region = 75 }

// kernel: dgcnn_semseg_forward.9
= control target key start
LH: loop header
LB: loop body
LE: loop exit
PB: predicated region body
PF: predicated region fallthrough
CT: control target
= control target key end

     0   :  { %s2398_s18 = smov 0   ;;  %s2400_s19 = smov 0   ;;  %s2890_s0 = inlined_call_operand.vmem [shape: bf16[2,8,64,18], index: 0, kind: input, shape index: {}]   ;;  %s2891_s1 = inlined_call_operand.vmem [shape: bf16[18,64], index: 1, kind: input, shape index: {}]   ;;  %s2892_s2 = inlined_call_operand.vmem [shape: f32[1,64], index: 2, kind: input, shape index: {}]   ;;  %s2893_s3 = inlined_call_operand.vmem [shape: bf16[64,64], index: 3, kind: input, shape index: {}]   ;;  %s2894_s4 = inlined_call_operand.vmem [shape: f32[1,64], index: 4, kind: input, shape index: {}]   ;;  %s2895_s5 = inlined_call_operand.vmem [shape: f32[2,64,64], index: 5, kind: output, shape index: {}]  }
   0x1   :  { %s2402_s20 = smov 0  }
   0x2 LB: > { %s27_s21 = sadd.s32 1, %s2362_s19  ;;  %p1958_p0 = scmp.ge.s32.totalorder %s2366_s20, 1  ;;  %s2366_s20 = sphi %s2402_s20, %s15_s20   ;;  %s2362_s19 = sphi %s2400_s19, %s2897_s19   ;;  %s2358_s18 = sphi %s2398_s18, %s2896_s18  }
   0x3   : > { %p29_p1 = scmp.ge.s32.totalorder %s27_s21, 2  ;;  %p208_p2 = scmp.lt.s32.totalorder %s2366_s20, 3 }
   0x5   : > { %s2899_s21 = smov (%p29_p1, %s27_s21), 0  ;;  %p209_p3 = pnand %p1958_p0, %p208_p2 }
   0x6   : > { %v2306_v0 = vld [vmem:[%s2891_s1] sm:$0xff] (!%p209_p3)   ;;  %vm605_vm0 = vcmask (!%p209_p3), 1040384   ;;  %v2307_v1 = vld [vmem:[%s2891_s1 + $0x8] ss:$0 sps:$4 sm:$0x11] (!%p209_p3)   ;;  %p245_p4 = scmp.lt.s32.totalorder (!%p209_p3), %s2358_s18, 1 }
   0x7   : > { %212 = sbr.rel (%p209_p3) target bundleno = 586 (0x24a), region = 40  ;;  %2141 = vmatprep.subr.bf16.mxu0 (!%p209_p3), %v2306_v0  ;;  %v2340_v2 = vld [vmem:[%s2893_s3] sm:$0xff] (!%p209_p3)   ;;  %v607_v3 = vsel (!%p209_p3), %vm605_vm0, %v2307_v1, 0  ;;  %vm508_vm1 = vcmask (!%p209_p3), 146432   ;;  %v2341_v27 = vld [vmem:[%s2893_s3 + $0x8] sm:$0xff] (!%p209_p3)   ;;  %v2342_v30 = vld [vmem:[%s2893_s3 + $0x10] sm:$0xff] (!%p209_p3)  }
   0x8   : > { %2142 = vmatpush3.bf16.msra.mxu0 (!%p209_p3), %v2306_v0  ;;  %2209 = vmatprep.subr.bf16.mxu1 (!%p209_p3), %v2340_v2  ;;  %v2343_v31 = vld [vmem:[%s2893_s3 + $0x18] sm:$0xff] (!%p209_p3)   ;;  %v2509_v39 = vld [vmem:[%s2892_s2] ss:$0 sm:$0xff] (!%p209_p3)  ;;  %vm1161_vm6 = vcmask (!%p209_p3), 523264  }
   0x9   : > { %2281 = vmatprep.subr.msk.bf16.mxu0 (!%p209_p3), %vm605_vm0, %v2307_v1  ;;  %2210 = vmatpush3.bf16.msra.mxu1 (!%p209_p3), %v2340_v2 }
   0xa   : > { %2211 = vmatprep.subr.bf16.mxu1 (!%p209_p3), %v2341_v27 }
   0xc   : > { %2144 = vmatpush3.bf16.msra.mxu0 (!%p209_p3), %v607_v3 }
   0xd   : > { %2212 = vmatpush3.bf16.msra.mxu1 (!%p209_p3), %v2341_v27 }
   0xe   : > { %s2901_s18 = smov (!%p245_p4, %s2358_s18), 1  ;;  %2213 = vmatprep.subr.bf16.mxu1 %v2342_v30 }
   0xf   : > { %s2069_s28 = sshll.u32 %s2901_s18, 8  ;;  %s2070_s17 = sshll.u32 %s2901_s18, 6 }
  0x10   : > { %s2431_s6 = scalar_lea.vmem %s2890_s0, %s2069_s28  ;;  %s2843_s24 = scalar_lea.vmem %s2895_s5, %s2070_s17 }
  0x11   : > { %v2308_v4 = vld [vmem:[%s2431_s6] sm:$0xff]   ;;  %v2309_v5 = vld [vmem:[%s2431_s6 + $0x8] sm:$0xff]   ;;  %v2310_v6 = vld [vmem:[%s2431_s6 + $0x10] sm:$0xff]   ;;  %2214 = vmatpush3.bf16.msra.mxu1 %v2342_v30 }
  0x12   : > { %2145 = vmatprep.mubr.msk.bf16.mxu0 %vm508_vm1, %v2308_v4  ;;  %v2311_v7 = vld [vmem:[%s2431_s6 + $0x18] sm:$0xff]   ;;  %v2312_v8 = vld [vmem:[%s2431_s6 + $0x20] sm:$0xff]   ;;  %v2313_v9 = vld [vmem:[%s2431_s6 + $0x28] sm:$0xff]   ;;  %2215 = vmatprep.subr.bf16.mxu1 %v2343_v31 }
  0x13   : > { %2146 = vmatmul.mubr.msk.bf16.vlgmr.msra.gmra.mrb[0].mxu0 %vm508_vm1, %v2309_v5  ;;  %v2314_v10 = vld [vmem:[%s2431_s6 + $0x30] sm:$0xff]   ;;  %v2315_v11 = vld [vmem:[%s2431_s6 + $0x38] sm:$0xff]   ;;  %v2316_v12 = vld [vmem:[%s2431_s6 + $0x40] sm:$0xff]  }
  0x14   : > { %2149 = vmatprep.mubr.msk.bf16.mxu0 %vm508_vm1, %v2310_v6  ;;  %v2317_v13 = vld [vmem:[%s2431_s6 + $0x48] sm:$0xff]   ;;  %v2318_v14 = vld [vmem:[%s2431_s6 + $0x50] sm:$0xff]   ;;  %v2319_v15 = vld [vmem:[%s2431_s6 + $0x58] sm:$0xff]  }
  0x15   : > { %v2320_v16 = vld [vmem:[%s2431_s6 + $0x60] sm:$0xff]   ;;  %v2321_v17 = vld [vmem:[%s2431_s6 + $0x68] sm:$0xff]   ;;  %v2322_v18 = vld [vmem:[%s2431_s6 + $0x70] sm:$0xff]   ;;  %2216 = vmatpush3.bf16.msra.mxu1 %v2343_v31 }
  0x16   : > { %v2323_v19 = vld [vmem:[%s2431_s6 + $0x78] sm:$0xff]   ;;  %v2324_v20 = vld [vmem:[%s2431_s6 + $0x80] sm:$0xff]   ;;  %v2325_v21 = vld [vmem:[%s2431_s6 + $0x88] sm:$0xff]  }
  0x17   : > { %v2326_v22 = vld [vmem:[%s2431_s6 + $0x90] sm:$0xff]   ;;  %v2327_v23 = vld [vmem:[%s2431_s6 + $0x98] sm:$0xff]   ;;  %v2328_v24 = vld [vmem:[%s2431_s6 + $0xa0] sm:$0xff]  }
  0x18   : > { %v2329_v25 = vld [vmem:[%s2431_s6 + $0xa8] sm:$0xff]   ;;  %v2330_v26 = vld [vmem:[%s2431_s6 + $0xb0] sm:$0xff]   ;;  %v2331_v28 = vld [vmem:[%s2431_s6 + $0xb8] sm:$0xff]  }
  0x19   : > { %v2332_v29 = vld [vmem:[%s2431_s6 + $0xc0] sm:$0xff]   ;;  %v2333_v32 = vld [vmem:[%s2431_s6 + $0xc8] sm:$0xff]   ;;  %v2334_v33 = vld [vmem:[%s2431_s6 + $0xd0] sm:$0xff]  }
  0x1a   : > { %v2335_v34 = vld [vmem:[%s2431_s6 + $0xd8] sm:$0xff]   ;;  %v2336_v35 = vld [vmem:[%s2431_s6 + $0xe0] sm:$0xff]   ;;  %v2337_v36 = vld [vmem:[%s2431_s6 + $0xe8] sm:$0xff]  }
  0x1b   : > { %2150 = vmatmul.mubr.msk.bf16.gmra.mrb[4].mxu0 %vm508_vm1, %v2311_v7  ;;  %v2338_v37 = vld [vmem:[%s2431_s6 + $0xf0] sm:$0xff]   ;;  %v2339_v38 = vld [vmem:[%s2431_s6 + $0xf8] sm:$0xff]  }
  0x1c   : > { %2153 = vmatprep.mubr.msk.bf16.mxu0 %vm508_vm1, %v2312_v8 }
  0x23   : > { %2154 = vmatmul.mubr.msk.bf16.gmra.mrb[8].mxu0 %vm508_vm1, %v2313_v9 }
  0x24   : > { %2157 = vmatprep.mubr.msk.bf16.mxu0 %vm508_vm1, %v2314_v10 }
  0x2b   : > { %2158 = vmatmul.mubr.msk.bf16.gmra.mrb[12].mxu0 %vm508_vm1, %v2315_v11 }
  0x2c   : > { %2161 = vmatprep.mubr.msk.bf16.mxu0 %vm508_vm1, %v2316_v12 }
  0x33   : > { %2162 = vmatmul.mubr.msk.bf16.gmra.mrb[16].mxu0 %vm508_vm1, %v2317_v13 }
  0x34   : > { %2165 = vmatprep.mubr.msk.bf16.mxu0 %vm508_vm1, %v2318_v14 }
  0x3b   : > { %2166 = vmatmul.mubr.msk.bf16.gmra.mrb[20].mxu0 %vm508_vm1, %v2319_v15 }
  0x3c   : > { %2169 = vmatprep.mubr.msk.bf16.mxu0 %vm508_vm1, %v2320_v16 }
  0x43   : > { %2170 = vmatmul.mubr.msk.bf16.gmra.mrb[24].mxu0 %vm508_vm1, %v2321_v17 }
  0x44   : > { %2173 = vmatprep.mubr.msk.bf16.mxu0 %vm508_vm1, %v2322_v18 }
  0x4b   : > { %2174 = vmatmul.mubr.msk.bf16.gmra.mrb[28].mxu0 %vm508_vm1, %v2323_v19 }
  0x4c   : > { %2177 = vmatprep.mubr.msk.bf16.mxu0 %vm508_vm1, %v2324_v20 }
  0x53   : > { %2178 = vmatmul.mubr.msk.bf16.gmra.mrb[32].mxu0 %vm508_vm1, %v2325_v21 }
  0x54   : > { %2181 = vmatprep.mubr.msk.bf16.mxu0 %vm508_vm1, %v2326_v22 }
  0x5b   : > { %2182 = vmatmul.mubr.msk.bf16.gmra.mrb[36].mxu0 %vm508_vm1, %v2327_v23 }
  0x5c   : > { %2185 = vmatprep.mubr.msk.bf16.mxu0 %vm508_vm1, %v2328_v24 }
  0x63   : > { %2186 = vmatmul.mubr.msk.bf16.gmra.mrb[40].mxu0 %vm508_vm1, %v2329_v25 }
  0x64   : > { %2189 = vmatprep.mubr.msk.bf16.mxu0 %vm508_vm1, %v2330_v26 }
  0x6b   : > { %2190 = vmatmul.mubr.msk.bf16.gmra.mrb[44].mxu0 %vm508_vm1, %v2331_v28 }
  0x6c   : > { %2193 = vmatprep.mubr.msk.bf16.mxu0 %vm508_vm1, %v2332_v29 }
  0x73   : > { %2194 = vmatmul.mubr.msk.bf16.gmra.mrb[48].mxu0 %vm508_vm1, %v2333_v32 }
  0x74   : > { %2197 = vmatprep.mubr.msk.bf16.mxu0 %vm508_vm1, %v2334_v33 }
  0x7b   : > { %2198 = vmatmul.mubr.msk.bf16.gmra.mrb[52].mxu0 %vm508_vm1, %v2335_v34 }
  0x7c   : > { %2201 = vmatprep.mubr.msk.bf16.mxu0 %vm508_vm1, %v2336_v35 }
  0x83   : > { %2202 = vmatmul.mubr.msk.bf16.gmra.mrb[56].mxu0 %vm508_vm1, %v2337_v36 }
  0x84   : > { %2205 = vmatprep.mubr.msk.bf16.mxu0 %vm508_vm1, %v2338_v37 }
  0x8b   : > { %2206 = vmatmul.mubr.msk.bf16.gmra.mrb[60].mxu0 %vm508_vm1, %v2339_v38 }
  0xe6   : > { %v2147_v40 = vpop.f32.mrb[0].mxu0 }
  0xe7   : > { %v652_v41 = vadd.f32 %v2147_v40, %v2509_v39  ;;  %v643_v42 = vpop.f32.mrb[1].mxu0 }
  0xe8   : > { %v644_v43 = vadd.f32 %v2509_v39, %v643_v42  ;;  %v2148_v44 = vpop.f32.mrb[2].mxu0 }
  0xe9   : > { %v964_v45 = vmul.f32 0.2, %v652_v41  ;;  %v655_v46 = vadd.f32 %v2148_v44, %v2509_v39  ;;  %v646_v47 = vpop.f32.mrb[3].mxu0  ;;  %vm900_vm2 = vcmp.ge.f32.partialorder %v652_v41, 0.0 }
  0xea   : > { %v962_v48 = vmul.f32 0.2, %v644_v43  ;;  %v647_v49 = vadd.f32 %v2509_v39, %v646_v47  ;;  %vm898_vm4 = vcmp.ge.f32.partialorder %v644_v43, 0.0 }
  0xeb   : > { %vm901_vm3 = vcmp.ge.f32.partialorder %v655_v46, 0.0  ;;  %v965_v50 = vmul.f32 0.2, %v655_v46  ;;  %v1028_v52 = vsel %vm900_vm2, %v652_v41, %v964_v45 }
  0xec   : > { %v963_v51 = vmul.f32 0.2, %v647_v49  ;;  %vm899_vm5 = vcmp.ge.f32.partialorder %v647_v49, 0.0  ;;  %v1026_v56 = vsel %vm898_vm4, %v644_v43, %v962_v48 }
  0xed   : > { %v1029_v53 = vsel %vm901_vm3, %v655_v46, %v965_v50 }
  0xee   : > { %v1091_v54 = vpack.c.bf16 %v1029_v53, %v1028_v52  ;;  %v2151_v55 = vpop.f32.mrb[4].mxu0  ;;  %v1027_v57 = vsel %vm899_vm5, %v647_v49, %v963_v51 }
  0xef   : > { %v668_v58 = vadd.f32 %v2151_v55, %v2509_v39  ;;  %v659_v59 = vpop.f32.mrb[5].mxu0  ;;  %v1090_v60 = vpack.c.bf16 %v1027_v57, %v1026_v56 }
  0xf0   : > { %v660_v61 = vadd.f32 %v2509_v39, %v659_v59  ;;  %v2152_v62 = vpop.f32.mrb[6].mxu0 }
  0xf1   : > { %v968_v63 = vmul.f32 0.2, %v668_v58  ;;  %v671_v0 = vadd.f32 %v2152_v62, %v2509_v39  ;;  %v662_v1 = vpop.f32.mrb[7].mxu0  ;;  %2217 = vmatprep.mubr.msk.bf16.mxu1 %vm1161_vm6, %v1090_v60  ;;  %vm904_vm7 = vcmp.ge.f32.partialorder %v668_v58, 0.0 }
  0xf2   : > { %v966_v2 = vmul.f32 0.2, %v660_v61  ;;  %v663_v3 = vadd.f32 %v2509_v39, %v662_v1  ;;  %2218 = vmatmul.mubr.msk.bf16.vlgmr.msra.gmra.mrb[0].mxu1 %vm1161_vm6, %v1091_v54  ;;  %vm902_vm8 = vcmp.ge.f32.partialorder %v660_v61, 0.0 }
  0xf3   : > { %vm905_vm9 = vcmp.ge.f32.partialorder %v671_v0, 0.0  ;;  %v969_v4 = vmul.f32 0.2, %v671_v0  ;;  %v1032_v6 = vsel %vm904_vm7, %v668_v58, %v968_v63 }
  0xf4   : > { %vm903_vm10 = vcmp.ge.f32.partialorder %v663_v3, 0.0  ;;  %v967_v5 = vmul.f32 0.2, %v663_v3  ;;  %v1030_v8 = vsel %vm902_vm8, %v660_v61, %v966_v2 }
  0xf5   : > { %v1033_v7 = vsel %vm905_vm9, %v671_v0, %v969_v4 }
  0xf6   : > { %v1093_v9 = vpack.c.bf16 %v1033_v7, %v1032_v6  ;;  %v1031_v10 = vsel %vm903_vm10, %v663_v3, %v967_v5  ;;  %v2155_v11 = vpop.f32.mrb[8].mxu0 }
  0xf7   : > { %v1092_v12 = vpack.c.bf16 %v1031_v10, %v1030_v8  ;;  %v684_v13 = vadd.f32 %v2155_v11, %v2509_v39  ;;  %v675_v14 = vpop.f32.mrb[9].mxu0 }
  0xf8   : > { %v676_v15 = vadd.f32 %v2509_v39, %v675_v14  ;;  %v2156_v16 = vpop.f32.mrb[10].mxu0 }
  0xf9   : > { %v972_v17 = vmul.f32 0.2, %v684_v13  ;;  %v687_v18 = vadd.f32 %v2156_v16, %v2509_v39  ;;  %v678_v19 = vpop.f32.mrb[11].mxu0  ;;  %2221 = vmatprep.mubr.msk.bf16.mxu1 %vm1161_vm6, %v1092_v12  ;;  %vm908_vm11 = vcmp.ge.f32.partialorder %v684_v13, 0.0 }
  0xfa   : > { %v970_v20 = vmul.f32 0.2, %v676_v15  ;;  %v679_v21 = vadd.f32 %v2509_v39, %v678_v19  ;;  %2222 = vmatmul.mubr.msk.bf16.gmra.mrb[4].mxu1 %vm1161_vm6, %v1093_v9  ;;  %vm906_vm12 = vcmp.ge.f32.partialorder %v676_v15, 0.0 }
  0xfb   : > { %vm909_vm13 = vcmp.ge.f32.partialorder %v687_v18, 0.0  ;;  %v973_v22 = vmul.f32 0.2, %v687_v18  ;;  %v1036_v24 = vsel %vm908_vm11, %v684_v13, %v972_v17 }
  0xfc   : > { %vm907_vm14 = vcmp.ge.f32.partialorder %v679_v21, 0.0  ;;  %v971_v23 = vmul.f32 0.2, %v679_v21  ;;  %v1034_v26 = vsel %vm906_vm12, %v676_v15, %v970_v20 }
  0xfd   : > { %v1037_v25 = vsel %vm909_vm13, %v687_v18, %v973_v22 }
  0xfe   : > { %v1095_v27 = vpack.c.bf16 %v1037_v25, %v1036_v24  ;;  %v1035_v28 = vsel %vm907_vm14, %v679_v21, %v971_v23  ;;  %v2159_v29 = vpop.f32.mrb[12].mxu0 }
  0xff   : > { %v1094_v30 = vpack.c.bf16 %v1035_v28, %v1034_v26  ;;  %v700_v31 = vadd.f32 %v2159_v29, %v2509_v39  ;;  %v691_v32 = vpop.f32.mrb[13].mxu0 }
 0x100   : > { %v692_v33 = vadd.f32 %v2509_v39, %v691_v32  ;;  %v2160_v34 = vpop.f32.mrb[14].mxu0 }
 0x101   : > { %v976_v35 = vmul.f32 0.2, %v700_v31  ;;  %v703_v36 = vadd.f32 %v2160_v34, %v2509_v39  ;;  %v694_v37 = vpop.f32.mrb[15].mxu0  ;;  %2225 = vmatprep.mubr.msk.bf16.mxu1 %vm1161_vm6, %v1094_v30  ;;  %vm912_vm15 = vcmp.ge.f32.partialorder %v700_v31, 0.0 }
 0x102   : > { %v974_v38 = vmul.f32 0.2, %v692_v33  ;;  %v695_v40 = vadd.f32 %v2509_v39, %v694_v37  ;;  %2226 = vmatmul.mubr.msk.bf16.gmra.mrb[8].mxu1 %vm1161_vm6, %v1095_v27  ;;  %vm910_vm0 = vcmp.ge.f32.partialorder %v692_v33, 0.0 }
 0x103   : > { %vm913_vm1 = vcmp.ge.f32.partialorder %v703_v36, 0.0  ;;  %v977_v41 = vmul.f32 0.2, %v703_v36  ;;  %v1040_v43 = vsel %vm912_vm15, %v700_v31, %v976_v35 }
 0x104   : > { %vm911_vm2 = vcmp.ge.f32.partialorder %v695_v40, 0.0  ;;  %v975_v42 = vmul.f32 0.2, %v695_v40  ;;  %v1038_v45 = vsel %vm910_vm0, %v692_v33, %v974_v38 }
 0x105   : > { %v1041_v44 = vsel %vm913_vm1, %v703_v36, %v977_v41 }
 0x106   : > { %v1097_v46 = vpack.c.bf16 %v1041_v44, %v1040_v43  ;;  %v1039_v47 = vsel %vm911_vm2, %v695_v40, %v975_v42  ;;  %v2163_v48 = vpop.f32.mrb[16].mxu0 }
 0x107   : > { %v1096_v49 = vpack.c.bf16 %v1039_v47, %v1038_v45  ;;  %v716_v50 = vadd.f32 %v2163_v48, %v2509_v39  ;;  %v707_v51 = vpop.f32.mrb[17].mxu0 }
 0x108   : > { %v708_v52 = vadd.f32 %v2509_v39, %v707_v51  ;;  %v2164_v53 = vpop.f32.mrb[18].mxu0 }
 0x109   : > { %v980_v54 = vmul.f32 0.2, %v716_v50  ;;  %v719_v55 = vadd.f32 %v2164_v53, %v2509_v39  ;;  %v710_v56 = vpop.f32.mrb[19].mxu0  ;;  %2229 = vmatprep.mubr.msk.bf16.mxu1 %vm1161_vm6, %v1096_v49  ;;  %vm916_vm3 = vcmp.ge.f32.partialorder %v716_v50, 0.0 }
 0x10a   : > { %v978_v57 = vmul.f32 0.2, %v708_v52  ;;  %v711_v58 = vadd.f32 %v2509_v39, %v710_v56  ;;  %2230 = vmatmul.mubr.msk.bf16.gmra.mrb[12].mxu1 %vm1161_vm6, %v1097_v46  ;;  %vm914_vm4 = vcmp.ge.f32.partialorder %v708_v52, 0.0 }
 0x10b   : > { %vm917_vm5 = vcmp.ge.f32.partialorder %v719_v55, 0.0  ;;  %v981_v59 = vmul.f32 0.2, %v719_v55  ;;  %v1044_v61 = vsel %vm916_vm3, %v716_v50, %v980_v54 }
 0x10c   : > { %vm915_vm7 = vcmp.ge.f32.partialorder %v711_v58, 0.0  ;;  %v979_v60 = vmul.f32 0.2, %v711_v58  ;;  %v1042_v63 = vsel %vm914_vm4, %v708_v52, %v978_v57 }
 0x10d   : > { %v1045_v62 = vsel %vm917_vm5, %v719_v55, %v981_v59 }
 0x10e   : > { %v1099_v0 = vpack.c.bf16 %v1045_v62, %v1044_v61  ;;  %v1043_v1 = vsel %vm915_vm7, %v711_v58, %v979_v60  ;;  %v2167_v2 = vpop.f32.mrb[20].mxu0 }
 0x10f   : > { %v1098_v3 = vpack.c.bf16 %v1043_v1, %v1042_v63  ;;  %v732_v4 = vadd.f32 %v2167_v2, %v2509_v39  ;;  %v723_v5 = vpop.f32.mrb[21].mxu0 }
 0x110   : > { %v724_v6 = vadd.f32 %v2509_v39, %v723_v5  ;;  %v2168_v7 = vpop.f32.mrb[22].mxu0 }
 0x111   : > { %v984_v8 = vmul.f32 0.2, %v732_v4  ;;  %v735_v9 = vadd.f32 %v2168_v7, %v2509_v39  ;;  %v726_v10 = vpop.f32.mrb[23].mxu0  ;;  %2233 = vmatprep.mubr.msk.bf16.mxu1 %vm1161_vm6, %v1098_v3  ;;  %vm920_vm8 = vcmp.ge.f32.partialorder %v732_v4, 0.0 }
 0x112   : > { %v982_v11 = vmul.f32 0.2, %v724_v6  ;;  %v727_v12 = vadd.f32 %v2509_v39, %v726_v10  ;;  %2234 = vmatmul.mubr.msk.bf16.gmra.mrb[16].mxu1 %vm1161_vm6, %v1099_v0  ;;  %vm918_vm9 = vcmp.ge.f32.partialorder %v724_v6, 0.0 }
 0x113   : > { %vm921_vm10 = vcmp.ge.f32.partialorder %v735_v9, 0.0  ;;  %v985_v13 = vmul.f32 0.2, %v735_v9  ;;  %v1048_v15 = vsel %vm920_vm8, %v732_v4, %v984_v8 }
 0x114   : > { %vm919_vm11 = vcmp.ge.f32.partialorder %v727_v12, 0.0  ;;  %v983_v14 = vmul.f32 0.2, %v727_v12  ;;  %v1046_v17 = vsel %vm918_vm9, %v724_v6, %v982_v11 }
 0x115   : > { %v1049_v16 = vsel %vm921_vm10, %v735_v9, %v985_v13 }
 0x116   : > { %v1101_v18 = vpack.c.bf16 %v1049_v16, %v1048_v15  ;;  %v1047_v19 = vsel %vm919_vm11, %v727_v12, %v983_v14  ;;  %v2171_v20 = vpop.f32.mrb[24].mxu0 }
 0x117   : > { %v1100_v21 = vpack.c.bf16 %v1047_v19, %v1046_v17  ;;  %v748_v22 = vadd.f32 %v2171_v20, %v2509_v39  ;;  %v739_v23 = vpop.f32.mrb[25].mxu0 }
 0x118   : > { %v740_v24 = vadd.f32 %v2509_v39, %v739_v23  ;;  %v2172_v25 = vpop.f32.mrb[26].mxu0 }
 0x119   : > { %v988_v26 = vmul.f32 0.2, %v748_v22  ;;  %v751_v27 = vadd.f32 %v2172_v25, %v2509_v39  ;;  %v742_v28 = vpop.f32.mrb[27].mxu0  ;;  %2237 = vmatprep.mubr.msk.bf16.mxu1 %vm1161_vm6, %v1100_v21  ;;  %vm924_vm12 = vcmp.ge.f32.partialorder %v748_v22, 0.0 }
 0x11a   : > { %v986_v29 = vmul.f32 0.2, %v740_v24  ;;  %v743_v30 = vadd.f32 %v2509_v39, %v742_v28  ;;  %2238 = vmatmul.mubr.msk.bf16.gmra.mrb[20].mxu1 %vm1161_vm6, %v1101_v18  ;;  %vm922_vm13 = vcmp.ge.f32.partialorder %v740_v24, 0.0 }
 0x11b   : > { %vm925_vm14 = vcmp.ge.f32.partialorder %v751_v27, 0.0  ;;  %v989_v31 = vmul.f32 0.2, %v751_v27  ;;  %v1052_v33 = vsel %vm924_vm12, %v748_v22, %v988_v26 }
 0x11c   : > { %vm923_vm15 = vcmp.ge.f32.partialorder %v743_v30, 0.0  ;;  %v987_v32 = vmul.f32 0.2, %v743_v30  ;;  %v1050_v35 = vsel %vm922_vm13, %v740_v24, %v986_v29 }
 0x11d   : > { %v1053_v34 = vsel %vm925_vm14, %v751_v27, %v989_v31 }
 0x11e   : > { %v1103_v36 = vpack.c.bf16 %v1053_v34, %v1052_v33  ;;  %v1051_v37 = vsel %vm923_vm15, %v743_v30, %v987_v32  ;;  %v2175_v38 = vpop.f32.mrb[28].mxu0 }
 0x11f   : > { %v1102_v40 = vpack.c.bf16 %v1051_v37, %v1050_v35  ;;  %v764_v41 = vadd.f32 %v2175_v38, %v2509_v39  ;;  %v755_v42 = vpop.f32.mrb[29].mxu0 }
 0x120   : > { %v756_v43 = vadd.f32 %v2509_v39, %v755_v42  ;;  %v2176_v44 = vpop.f32.mrb[30].mxu0 }
 0x121   : > { %v992_v45 = vmul.f32 0.2, %v764_v41  ;;  %v767_v46 = vadd.f32 %v2176_v44, %v2509_v39  ;;  %v758_v47 = vpop.f32.mrb[31].mxu0  ;;  %2241 = vmatprep.mubr.msk.bf16.mxu1 %vm1161_vm6, %v1102_v40  ;;  %vm928_vm0 = vcmp.ge.f32.partialorder %v764_v41, 0.0 }
 0x122   : > { %v990_v48 = vmul.f32 0.2, %v756_v43  ;;  %v759_v49 = vadd.f32 %v2509_v39, %v758_v47  ;;  %2242 = vmatmul.mubr.msk.bf16.gmra.mrb[24].mxu1 %vm1161_vm6, %v1103_v36  ;;  %vm926_vm1 = vcmp.ge.f32.partialorder %v756_v43, 0.0 }
 0x123   : > { %vm929_vm2 = vcmp.ge.f32.partialorder %v767_v46, 0.0  ;;  %v993_v50 = vmul.f32 0.2, %v767_v46  ;;  %v1056_v52 = vsel %vm928_vm0, %v764_v41, %v992_v45 }
 0x124   : > { %vm927_vm3 = vcmp.ge.f32.partialorder %v759_v49, 0.0  ;;  %v991_v51 = vmul.f32 0.2, %v759_v49  ;;  %v1054_v54 = vsel %vm926_vm1, %v756_v43, %v990_v48 }
 0x125   : > { %v1057_v53 = vsel %vm929_vm2, %v767_v46, %v993_v50 }
 0x126   : > { %v1105_v55 = vpack.c.bf16 %v1057_v53, %v1056_v52  ;;  %v1055_v56 = vsel %vm927_vm3, %v759_v49, %v991_v51  ;;  %v2179_v57 = vpop.f32.mrb[32].mxu0 }
 0x127   : > { %v1104_v58 = vpack.c.bf16 %v1055_v56, %v1054_v54  ;;  %v780_v59 = vadd.f32 %v2179_v57, %v2509_v39  ;;  %v771_v60 = vpop.f32.mrb[33].mxu0 }
 0x128   : > { %v772_v61 = vadd.f32 %v2509_v39, %v771_v60  ;;  %v2180_v62 = vpop.f32.mrb[34].mxu0 }
 0x129   : > { %v996_v63 = vmul.f32 0.2, %v780_v59  ;;  %v783_v0 = vadd.f32 %v2180_v62, %v2509_v39  ;;  %v774_v1 = vpop.f32.mrb[35].mxu0  ;;  %2245 = vmatprep.mubr.msk.bf16.mxu1 %vm1161_vm6, %v1104_v58  ;;  %vm932_vm4 = vcmp.ge.f32.partialorder %v780_v59, 0.0 }
 0x12a   : > { %v994_v2 = vmul.f32 0.2, %v772_v61  ;;  %v775_v3 = vadd.f32 %v2509_v39, %v774_v1  ;;  %2246 = vmatmul.mubr.msk.bf16.gmra.mrb[28].mxu1 %vm1161_vm6, %v1105_v55  ;;  %vm930_vm5 = vcmp.ge.f32.partialorder %v772_v61, 0.0 }
 0x12b   : > { %vm933_vm7 = vcmp.ge.f32.partialorder %v783_v0, 0.0  ;;  %v997_v4 = vmul.f32 0.2, %v783_v0  ;;  %v1060_v6 = vsel %vm932_vm4, %v780_v59, %v996_v63 }
 0x12c   : > { %vm931_vm8 = vcmp.ge.f32.partialorder %v775_v3, 0.0  ;;  %v995_v5 = vmul.f32 0.2, %v775_v3  ;;  %v1058_v8 = vsel %vm930_vm5, %v772_v61, %v994_v2 }
 0x12d   : > { %v1061_v7 = vsel %vm933_vm7, %v783_v0, %v997_v4 }
 0x12e   : > { %v1107_v9 = vpack.c.bf16 %v1061_v7, %v1060_v6  ;;  %v1059_v10 = vsel %vm931_vm8, %v775_v3, %v995_v5  ;;  %v2183_v11 = vpop.f32.mrb[36].mxu0 }
 0x12f   : > { %v1106_v12 = vpack.c.bf16 %v1059_v10, %v1058_v8  ;;  %v796_v13 = vadd.f32 %v2183_v11, %v2509_v39  ;;  %v787_v14 = vpop.f32.mrb[37].mxu0 }
 0x130   : > { %v788_v15 = vadd.f32 %v2509_v39, %v787_v14  ;;  %v2184_v16 = vpop.f32.mrb[38].mxu0 }
 0x131   : > { %v1000_v17 = vmul.f32 0.2, %v796_v13  ;;  %v799_v18 = vadd.f32 %v2184_v16, %v2509_v39  ;;  %v790_v19 = vpop.f32.mrb[39].mxu0  ;;  %2249 = vmatprep.mubr.msk.bf16.mxu1 %vm1161_vm6, %v1106_v12  ;;  %vm936_vm9 = vcmp.ge.f32.partialorder %v796_v13, 0.0 }
 0x132   : > { %v998_v20 = vmul.f32 0.2, %v788_v15  ;;  %v791_v21 = vadd.f32 %v2509_v39, %v790_v19  ;;  %2250 = vmatmul.mubr.msk.bf16.gmra.mrb[32].mxu1 %vm1161_vm6, %v1107_v9  ;;  %vm934_vm10 = vcmp.ge.f32.partialorder %v788_v15, 0.0 }
 0x133   : > { %vm937_vm11 = vcmp.ge.f32.partialorder %v799_v18, 0.0  ;;  %v1001_v22 = vmul.f32 0.2, %v799_v18  ;;  %v1064_v24 = vsel %vm936_vm9, %v796_v13, %v1000_v17 }
 0x134   : > { %vm935_vm12 = vcmp.ge.f32.partialorder %v791_v21, 0.0  ;;  %v999_v23 = vmul.f32 0.2, %v791_v21  ;;  %v1062_v26 = vsel %vm934_vm10, %v788_v15, %v998_v20 }
 0x135   : > { %v1065_v25 = vsel %vm937_vm11, %v799_v18, %v1001_v22 }
 0x136   : > { %v1109_v27 = vpack.c.bf16 %v1065_v25, %v1064_v24  ;;  %v1063_v28 = vsel %vm935_vm12, %v791_v21, %v999_v23  ;;  %v2187_v29 = vpop.f32.mrb[40].mxu0 }
 0x137   : > { %v1108_v30 = vpack.c.bf16 %v1063_v28, %v1062_v26  ;;  %v812_v31 = vadd.f32 %v2187_v29, %v2509_v39  ;;  %v803_v32 = vpop.f32.mrb[41].mxu0 }
 0x138   : > { %v804_v33 = vadd.f32 %v2509_v39, %v803_v32  ;;  %v2188_v34 = vpop.f32.mrb[42].mxu0 }
 0x139   : > { %v1004_v35 = vmul.f32 0.2, %v812_v31  ;;  %v815_v36 = vadd.f32 %v2188_v34, %v2509_v39  ;;  %v806_v37 = vpop.f32.mrb[43].mxu0  ;;  %2253 = vmatprep.mubr.msk.bf16.mxu1 %vm1161_vm6, %v1108_v30  ;;  %vm940_vm13 = vcmp.ge.f32.partialorder %v812_v31, 0.0 }
 0x13a   : > { %v1002_v38 = vmul.f32 0.2, %v804_v33  ;;  %v807_v40 = vadd.f32 %v2509_v39, %v806_v37  ;;  %2254 = vmatmul.mubr.msk.bf16.gmra.mrb[36].mxu1 %vm1161_vm6, %v1109_v27  ;;  %vm938_vm14 = vcmp.ge.f32.partialorder %v804_v33, 0.0 }
 0x13b   : > { %vm941_vm15 = vcmp.ge.f32.partialorder %v815_v36, 0.0  ;;  %v1005_v41 = vmul.f32 0.2, %v815_v36  ;;  %v1068_v43 = vsel %vm940_vm13, %v812_v31, %v1004_v35 }
 0x13c   : > { %vm939_vm0 = vcmp.ge.f32.partialorder %v807_v40, 0.0  ;;  %v1003_v42 = vmul.f32 0.2, %v807_v40  ;;  %v1066_v45 = vsel %vm938_vm14, %v804_v33, %v1002_v38 }
 0x13d   : > { %v1069_v44 = vsel %vm941_vm15, %v815_v36, %v1005_v41 }
 0x13e   : > { %v1111_v46 = vpack.c.bf16 %v1069_v44, %v1068_v43  ;;  %v1067_v47 = vsel %vm939_vm0, %v807_v40, %v1003_v42  ;;  %v2191_v48 = vpop.f32.mrb[44].mxu0 }
 0x13f   : > { %v1110_v49 = vpack.c.bf16 %v1067_v47, %v1066_v45  ;;  %v828_v50 = vadd.f32 %v2191_v48, %v2509_v39  ;;  %v819_v51 = vpop.f32.mrb[45].mxu0 }
 0x140   : > { %v820_v52 = vadd.f32 %v2509_v39, %v819_v51  ;;  %v2192_v53 = vpop.f32.mrb[46].mxu0 }
 0x141   : > { %v1008_v54 = vmul.f32 0.2, %v828_v50  ;;  %v831_v55 = vadd.f32 %v2192_v53, %v2509_v39  ;;  %v822_v56 = vpop.f32.mrb[47].mxu0  ;;  %2257 = vmatprep.mubr.msk.bf16.mxu1 %vm1161_vm6, %v1110_v49  ;;  %vm944_vm1 = vcmp.ge.f32.partialorder %v828_v50, 0.0 }
 0x142   : > { %v1006_v57 = vmul.f32 0.2, %v820_v52  ;;  %v823_v58 = vadd.f32 %v2509_v39, %v822_v56  ;;  %2258 = vmatmul.mubr.msk.bf16.gmra.mrb[40].mxu1 %vm1161_vm6, %v1111_v46  ;;  %vm942_vm2 = vcmp.ge.f32.partialorder %v820_v52, 0.0 }
 0x143   : > { %vm945_vm3 = vcmp.ge.f32.partialorder %v831_v55, 0.0  ;;  %v1009_v59 = vmul.f32 0.2, %v831_v55  ;;  %v1072_v61 = vsel %vm944_vm1, %v828_v50, %v1008_v54 }
 0x144   : > { %vm943_vm4 = vcmp.ge.f32.partialorder %v823_v58, 0.0  ;;  %v1007_v60 = vmul.f32 0.2, %v823_v58  ;;  %v1070_v63 = vsel %vm942_vm2, %v820_v52, %v1006_v57 }
 0x145   : > { %v1073_v62 = vsel %vm945_vm3, %v831_v55, %v1009_v59 }
 0x146   : > { %v1113_v0 = vpack.c.bf16 %v1073_v62, %v1072_v61  ;;  %v1071_v1 = vsel %vm943_vm4, %v823_v58, %v1007_v60  ;;  %v2195_v2 = vpop.f32.mrb[48].mxu0 }
 0x147   : > { %v1112_v3 = vpack.c.bf16 %v1071_v1, %v1070_v63  ;;  %v844_v4 = vadd.f32 %v2195_v2, %v2509_v39  ;;  %v835_v5 = vpop.f32.mrb[49].mxu0 }
 0x148   : > { %v836_v6 = vadd.f32 %v2509_v39, %v835_v5  ;;  %v2196_v7 = vpop.f32.mrb[50].mxu0 }
 0x149   : > { %v1012_v8 = vmul.f32 0.2, %v844_v4  ;;  %v847_v9 = vadd.f32 %v2196_v7, %v2509_v39  ;;  %v838_v10 = vpop.f32.mrb[51].mxu0  ;;  %2261 = vmatprep.mubr.msk.bf16.mxu1 %vm1161_vm6, %v1112_v3  ;;  %vm948_vm5 = vcmp.ge.f32.partialorder %v844_v4, 0.0 }
 0x14a   : > { %v1010_v11 = vmul.f32 0.2, %v836_v6  ;;  %v839_v12 = vadd.f32 %v2509_v39, %v838_v10  ;;  %2262 = vmatmul.mubr.msk.bf16.gmra.mrb[44].mxu1 %vm1161_vm6, %v1113_v0  ;;  %vm946_vm7 = vcmp.ge.f32.partialorder %v836_v6, 0.0 }
 0x14b   : > { %vm949_vm8 = vcmp.ge.f32.partialorder %v847_v9, 0.0  ;;  %v1013_v13 = vmul.f32 0.2, %v847_v9  ;;  %v1076_v15 = vsel %vm948_vm5, %v844_v4, %v1012_v8 }
 0x14c   : > { %vm947_vm9 = vcmp.ge.f32.partialorder %v839_v12, 0.0  ;;  %v1011_v14 = vmul.f32 0.2, %v839_v12  ;;  %v1074_v17 = vsel %vm946_vm7, %v836_v6, %v1010_v11 }
 0x14d   : > { %v1077_v16 = vsel %vm949_vm8, %v847_v9, %v1013_v13 }
 0x14e   : > { %v1115_v18 = vpack.c.bf16 %v1077_v16, %v1076_v15  ;;  %v1075_v19 = vsel %vm947_vm9, %v839_v12, %v1011_v14  ;;  %v2199_v20 = vpop.f32.mrb[52].mxu0 }
 0x14f   : > { %v1114_v21 = vpack.c.bf16 %v1075_v19, %v1074_v17  ;;  %v860_v22 = vadd.f32 %v2199_v20, %v2509_v39  ;;  %v851_v23 = vpop.f32.mrb[53].mxu0 }
 0x150   : > { %v852_v24 = vadd.f32 %v2509_v39, %v851_v23  ;;  %v2200_v25 = vpop.f32.mrb[54].mxu0 }
 0x151   : > { %v1016_v26 = vmul.f32 0.2, %v860_v22  ;;  %v863_v27 = vadd.f32 %v2200_v25, %v2509_v39  ;;  %v854_v28 = vpop.f32.mrb[55].mxu0  ;;  %2265 = vmatprep.mubr.msk.bf16.mxu1 %vm1161_vm6, %v1114_v21  ;;  %vm952_vm10 = vcmp.ge.f32.partialorder %v860_v22, 0.0 }
 0x152   : > { %v1014_v29 = vmul.f32 0.2, %v852_v24  ;;  %v855_v30 = vadd.f32 %v2509_v39, %v854_v28  ;;  %2266 = vmatmul.mubr.msk.bf16.gmra.mrb[48].mxu1 %vm1161_vm6, %v1115_v18  ;;  %vm950_vm11 = vcmp.ge.f32.partialorder %v852_v24, 0.0 }
 0x153   : > { %vm953_vm12 = vcmp.ge.f32.partialorder %v863_v27, 0.0  ;;  %v1017_v31 = vmul.f32 0.2, %v863_v27  ;;  %v1080_v33 = vsel %vm952_vm10, %v860_v22, %v1016_v26 }
 0x154   : > { %vm951_vm13 = vcmp.ge.f32.partialorder %v855_v30, 0.0  ;;  %v1015_v32 = vmul.f32 0.2, %v855_v30  ;;  %v1078_v35 = vsel %vm950_vm11, %v852_v24, %v1014_v29 }
 0x155   : > { %v1081_v34 = vsel %vm953_vm12, %v863_v27, %v1017_v31 }
 0x156   : > { %v1117_v36 = vpack.c.bf16 %v1081_v34, %v1080_v33  ;;  %v1079_v37 = vsel %vm951_vm13, %v855_v30, %v1015_v32  ;;  %v2203_v38 = vpop.f32.mrb[56].mxu0 }
 0x157   : > { %v1116_v40 = vpack.c.bf16 %v1079_v37, %v1078_v35  ;;  %v876_v41 = vadd.f32 %v2203_v38, %v2509_v39  ;;  %v867_v42 = vpop.f32.mrb[57].mxu0 }
 0x158   : > { %v868_v43 = vadd.f32 %v2509_v39, %v867_v42  ;;  %v2204_v44 = vpop.f32.mrb[58].mxu0 }
 0x159   : > { %v1020_v45 = vmul.f32 0.2, %v876_v41  ;;  %v879_v46 = vadd.f32 %v2204_v44, %v2509_v39  ;;  %v870_v47 = vpop.f32.mrb[59].mxu0  ;;  %2269 = vmatprep.mubr.msk.bf16.mxu1 %vm1161_vm6, %v1116_v40  ;;  %vm956_vm14 = vcmp.ge.f32.partialorder %v876_v41, 0.0 }
 0x15a   : > { %v1018_v48 = vmul.f32 0.2, %v868_v43  ;;  %v871_v49 = vadd.f32 %v2509_v39, %v870_v47  ;;  %2270 = vmatmul.mubr.msk.bf16.gmra.mrb[52].mxu1 %vm1161_vm6, %v1117_v36  ;;  %vm954_vm15 = vcmp.ge.f32.partialorder %v868_v43, 0.0 }
 0x15b   : > { %vm957_vm0 = vcmp.ge.f32.partialorder %v879_v46, 0.0  ;;  %v1021_v50 = vmul.f32 0.2, %v879_v46  ;;  %v1084_v52 = vsel %vm956_vm14, %v876_v41, %v1020_v45 }
 0x15c   : > { %vm955_vm1 = vcmp.ge.f32.partialorder %v871_v49, 0.0  ;;  %v1019_v51 = vmul.f32 0.2, %v871_v49  ;;  %v1082_v54 = vsel %vm954_vm15, %v868_v43, %v1018_v48 }
 0x15d   : > { %v1085_v53 = vsel %vm957_vm0, %v879_v46, %v1021_v50 }
 0x15e   : > { %v1119_v55 = vpack.c.bf16 %v1085_v53, %v1084_v52  ;;  %v1083_v56 = vsel %vm955_vm1, %v871_v49, %v1019_v51  ;;  %v2207_v57 = vpop.f32.mrb[60].mxu0 }
 0x15f   : > { %v1118_v58 = vpack.c.bf16 %v1083_v56, %v1082_v54  ;;  %v892_v59 = vadd.f32 %v2207_v57, %v2509_v39  ;;  %v883_v60 = vpop.f32.mrb[61].mxu0 }
 0x160   : > { %v884_v61 = vadd.f32 %v2509_v39, %v883_v60  ;;  %v2208_v62 = vpop.f32.mrb[62].mxu0 }
 0x161   : > { %v1024_v63 = vmul.f32 0.2, %v892_v59  ;;  %v895_v0 = vadd.f32 %v2208_v62, %v2509_v39  ;;  %v886_v1 = vpop.f32.mrb[63].mxu0  ;;  %2273 = vmatprep.mubr.msk.bf16.mxu1 %vm1161_vm6, %v1118_v58  ;;  %vm960_vm2 = vcmp.ge.f32.partialorder %v892_v59, 0.0 }
 0x162   : > { %v1022_v2 = vmul.f32 0.2, %v884_v61  ;;  %v887_v3 = vadd.f32 %v2509_v39, %v886_v1  ;;  %2274 = vmatmul.mubr.msk.bf16.gmra.mrb[56].mxu1 %vm1161_vm6, %v1119_v55  ;;  %vm958_vm3 = vcmp.ge.f32.partialorder %v884_v61, 0.0  ;;  %v2610_v39 = vld [vmem:[%s2894_s4] ss:$0 sm:$0xff] }
 0x163   : > { %vm961_vm4 = vcmp.ge.f32.partialorder %v895_v0, 0.0  ;;  %v1025_v4 = vmul.f32 0.2, %v895_v0  ;;  %v1088_v6 = vsel %vm960_vm2, %v892_v59, %v1024_v63 }
 0x164   : > { %vm959_vm5 = vcmp.ge.f32.partialorder %v887_v3, 0.0  ;;  %v1023_v5 = vmul.f32 0.2, %v887_v3  ;;  %v1086_v8 = vsel %vm958_vm3, %v884_v61, %v1022_v2 }
 0x165   : > { %v1089_v7 = vsel %vm961_vm4, %v895_v0, %v1025_v4 }
 0x166   : > { %v1121_v9 = vpack.c.bf16 %v1089_v7, %v1088_v6  ;;  %v1087_v10 = vsel %vm959_vm5, %v887_v3, %v1023_v5 }
 0x167   : > { %v1120_v11 = vpack.c.bf16 %v1087_v10, %v1086_v8 }
 0x169   : > { %2277 = vmatprep.mubr.msk.bf16.mxu1 %vm1161_vm6, %v1120_v11 }
 0x16a   : > { %2278 = vmatmul.mubr.msk.bf16.gmra.mrb[60].mxu1 %vm1161_vm6, %v1121_v9 }
 0x1c5   : > { %v2219_v12 = vpop.f32.mrb[0].mxu1 }
 0x1c6   : > { %v1292_v13 = vpop.f32.mrb[1].mxu1  ;;  %v1301_v16 = vadd.f32 %v2219_v12, %v2610_v39 }
 0x1c7   : > { %v2220_v14 = vpop.f32.mrb[2].mxu1  ;;  %v1293_v17 = vadd.f32 %v2610_v39, %v1292_v13 }
 0x1c8   : > { %v1295_v15 = vpop.f32.mrb[3].mxu1  ;;  %v1304_v18 = vadd.f32 %v2220_v14, %v2610_v39  ;;  %vm1549_vm7 = vcmp.ge.f32.partialorder %v1301_v16, 0.0  ;;  %v1613_v21 = vmul.f32 0.2, %v1301_v16 }
 0x1c9   : > { %v1296_v19 = vadd.f32 %v2610_v39, %v1295_v15  ;;  %v1611_v22 = vmul.f32 0.2, %v1293_v17  ;;  %vm1547_vm8 = vcmp.ge.f32.partialorder %v1293_v17, 0.0 }
 0x1ca   : > { %v1614_v24 = vmul.f32 0.2, %v1304_v18  ;;  %vm1550_vm9 = vcmp.ge.f32.partialorder %v1304_v18, 0.0  ;;  %v1677_v28 = vsel %vm1549_vm7, %v1301_v16, %v1613_v21 }
 0x1cb   : > { %v1612_v25 = vmul.f32 0.2, %v1296_v19  ;;  %vm1548_vm10 = vcmp.ge.f32.partialorder %v1296_v19, 0.0  ;;  %v1675_v29 = vsel %vm1547_vm8, %v1293_v17, %v1611_v22  ;;  %v2619_v34 = vsel %vm1161_vm6, %v1677_v28, -inf }
 0x1cc   : > { %v1678_v31 = vsel %vm1550_vm9, %v1304_v18, %v1614_v24  ;;  %v2622_v35 = vsel %vm1161_vm6, %v1675_v29, -inf }
 0x1cd   : > { %v2223_v20 = vpop.f32.mrb[4].mxu1  ;;  %v1676_v32 = vsel %vm1548_vm10, %v1296_v19, %v1612_v25  ;;  %v2625_v37 = vsel %vm1161_vm6, %v1678_v31, -inf }
 0x1ce   : > { %v1308_v23 = vpop.f32.mrb[5].mxu1  ;;  %v1317_v30 = vadd.f32 %v2223_v20, %v2610_v39  ;;  %v2628_v38 = vsel %vm1161_vm6, %v1676_v32, -inf }
 0x1cf   : > { %v2224_v26 = vpop.f32.mrb[6].mxu1  ;;  %v1309_v33 = vadd.f32 %v2610_v39, %v1308_v23 }
 0x1d0   : > { %v1311_v27 = vpop.f32.mrb[7].mxu1  ;;  %v1617_v40 = vmul.f32 0.2, %v1317_v30  ;;  %vm1553_vm11 = vcmp.ge.f32.partialorder %v1317_v30, 0.0  ;;  %v1320_v43 = vadd.f32 %v2224_v26, %v2610_v39 }
 0x1d1   : > { %vm1551_vm12 = vcmp.ge.f32.partialorder %v1309_v33, 0.0  ;;  %v1615_v46 = vmul.f32 0.2, %v1309_v33  ;;  %v1312_v50 = vadd.f32 %v2610_v39, %v1311_v27 }
 0x1d2   : > { %v1681_v53 = vsel %vm1553_vm11, %v1317_v30, %v1617_v40  ;;  %vm1554_vm1 = vcmp.ge.f32.partialorder %v1320_v43, 0.0  ;;  %v1618_v62 = vmul.f32 0.2, %v1320_v43 }
 0x1d3   : > { %v1616_v3 = vmul.f32 0.2, %v1312_v50  ;;  %v2656_v8 = vsel %vm1161_vm6, %v1681_v53, -inf  ;;  %vm1552_vm2 = vcmp.ge.f32.partialorder %v1312_v50, 0.0  ;;  %v1679_v12 = vsel %vm1551_vm12, %v1309_v33, %v1615_v46 }
 0x1d4   : > { %v1682_v16 = vsel %vm1554_vm1, %v1320_v43, %v1618_v62  ;;  %v2669_v25 = vsel %vm1161_vm6, %v1679_v12, -inf }
 0x1d5   : > { %v2227_v36 = vpop.f32.mrb[8].mxu1  ;;  %v1680_v19 = vsel %vm1552_vm2, %v1312_v50, %v1616_v3  ;;  %v2675_v29 = vsel %vm1161_vm6, %v1682_v16, -inf }
 0x1d6   : > { %v1333_v41 = vadd.f32 %v2227_v36, %v2610_v39  ;;  %v1324_v42 = vpop.f32.mrb[9].mxu1  ;;  %v1814_v36 = vsel %vm1161_vm6, %v1680_v19, -inf }
 0x1d7   : > { %v1325_v44 = vadd.f32 %v2610_v39, %v1324_v42  ;;  %v2228_v45 = vpop.f32.mrb[10].mxu1 }
 0x1d8   : > { %vm1557_vm13 = vcmp.ge.f32.partialorder %v1333_v41, 0.0  ;;  %v1621_v47 = vmul.f32 0.2, %v1333_v41  ;;  %v1336_v48 = vadd.f32 %v2228_v45, %v2610_v39  ;;  %v1327_v49 = vpop.f32.mrb[11].mxu1 }
 0x1d9   : > { %vm1555_vm14 = vcmp.ge.f32.partialorder %v1325_v44, 0.0  ;;  %v1619_v51 = vmul.f32 0.2, %v1325_v44  ;;  %v1328_v52 = vadd.f32 %v2610_v39, %v1327_v49 }
 0x1da   : > { %v1685_v54 = vsel %vm1557_vm13, %v1333_v41, %v1621_v47  ;;  %vm1558_vm15 = vcmp.ge.f32.partialorder %v1336_v48, 0.0  ;;  %v1622_v55 = vmul.f32 0.2, %v1336_v48 }
 0x1db   : > { %v2637_v56 = vsel %vm1161_vm6, %v1685_v54, -inf  ;;  %v1683_v57 = vsel %vm1555_vm14, %v1325_v44, %v1619_v51  ;;  %vm1556_vm0 = vcmp.ge.f32.partialorder %v1328_v52, 0.0  ;;  %v1620_v58 = vmul.f32 0.2, %v1328_v52 }
 0x1dc   : > { %v1771_v59 = vmax.f32 %v2619_v34, %v2637_v56  ;;  %v2642_v60 = vsel %vm1161_vm6, %v1683_v57, -inf  ;;  %v1686_v61 = vsel %vm1558_vm15, %v1336_v48, %v1622_v55 }
 0x1dd   : > { %v1741_v63 = vmax.f32 %v2622_v35, %v2642_v60  ;;  %v2647_v0 = vsel %vm1161_vm6, %v1686_v61, -inf  ;;  %v1684_v1 = vsel %vm1556_vm0, %v1328_v52, %v1620_v58  ;;  %v2231_v2 = vpop.f32.mrb[12].mxu1 }
 0x1de   : > { %v1786_v4 = vmax.f32 %v2625_v37, %v2647_v0  ;;  %v2652_v5 = vsel %vm1161_vm6, %v1684_v1, -inf  ;;  %v1349_v6 = vadd.f32 %v2231_v2, %v2610_v39  ;;  %v1340_v7 = vpop.f32.mrb[13].mxu1 }
 0x1df   : > { %v1756_v9 = vmax.f32 %v2628_v38, %v2652_v5  ;;  %v1341_v10 = vadd.f32 %v2610_v39, %v1340_v7  ;;  %v2232_v11 = vpop.f32.mrb[14].mxu1 }
 0x1e0   : > { %vm1561_vm3 = vcmp.ge.f32.partialorder %v1349_v6, 0.0  ;;  %v1625_v13 = vmul.f32 0.2, %v1349_v6  ;;  %v1352_v14 = vadd.f32 %v2232_v11, %v2610_v39  ;;  %v1343_v15 = vpop.f32.mrb[15].mxu1 }
 0x1e1   : > { %vm1559_vm4 = vcmp.ge.f32.partialorder %v1341_v10, 0.0  ;;  %v1623_v17 = vmul.f32 0.2, %v1341_v10  ;;  %v1344_v18 = vadd.f32 %v2610_v39, %v1343_v15 }
 0x1e2   : > { %v1689_v20 = vsel %vm1561_vm3, %v1349_v6, %v1625_v13  ;;  %vm1562_vm5 = vcmp.ge.f32.partialorder %v1352_v14, 0.0  ;;  %v1626_v21 = vmul.f32 0.2, %v1352_v14 }
 0x1e3   : > { %v2666_v22 = vsel %vm1161_vm6, %v1689_v20, -inf  ;;  %v1687_v23 = vsel %vm1559_vm4, %v1341_v10, %v1623_v17  ;;  %vm1560_vm7 = vcmp.ge.f32.partialorder %v1344_v18, 0.0  ;;  %v1624_v24 = vmul.f32 0.2, %v1344_v18 }
 0x1e4   : > { %v1831_v26 = vmax.f32 %v2656_v8, %v2666_v22  ;;  %v1800_v27 = vsel %vm1161_vm6, %v1687_v23, -inf  ;;  %v1690_v28 = vsel %vm1562_vm5, %v1352_v14, %v1626_v21 }
 0x1e5   : > { %v1801_v30 = vmax.f32 %v2669_v25, %v1800_v27  ;;  %v1845_v31 = vsel %vm1161_vm6, %v1690_v28, -inf  ;;  %v1688_v32 = vsel %vm1560_vm7, %v1344_v18, %v1624_v24  ;;  %v2235_v33 = vpop.f32.mrb[16].mxu1 }
 0x1e6   : > { %v1846_v38 = vmax.f32 %v2675_v29, %v1845_v31  ;;  %v1815_v40 = vsel %vm1161_vm6, %v1688_v32, -inf  ;;  %v1365_v41 = vadd.f32 %v2235_v33, %v2610_v39  ;;  %v1356_v42 = vpop.f32.mrb[17].mxu1 }
 0x1e7   : > { %v1816_v43 = vmax.f32 %v1814_v36, %v1815_v40  ;;  %v1357_v44 = vadd.f32 %v2610_v39, %v1356_v42  ;;  %v2236_v45 = vpop.f32.mrb[18].mxu1 }
 0x1e8   : > { %vm1565_vm8 = vcmp.ge.f32.partialorder %v1365_v41, 0.0  ;;  %v1629_v46 = vmul.f32 0.2, %v1365_v41  ;;  %v1368_v47 = vadd.f32 %v2236_v45, %v2610_v39  ;;  %v1359_v48 = vpop.f32.mrb[19].mxu1 }
 0x1e9   : > { %vm1563_vm9 = vcmp.ge.f32.partialorder %v1357_v44, 0.0  ;;  %v1627_v49 = vmul.f32 0.2, %v1357_v44  ;;  %v1360_v50 = vadd.f32 %v2610_v39, %v1359_v48 }
 0x1ea   : > { %v1693_v51 = vsel %vm1565_vm8, %v1365_v41, %v1629_v46  ;;  %vm1566_vm10 = vcmp.ge.f32.partialorder %v1368_v47, 0.0  ;;  %v1630_v52 = vmul.f32 0.2, %v1368_v47 }
 0x1eb   : > { %v1772_v53 = vsel %vm1161_vm6, %v1693_v51, -inf  ;;  %v1691_v54 = vsel %vm1563_vm9, %v1357_v44, %v1627_v49  ;;  %vm1564_vm11 = vcmp.ge.f32.partialorder %v1360_v50, 0.0  ;;  %v1628_v55 = vmul.f32 0.2, %v1360_v50 }
 0x1ec   : > { %v2690_v57 = vmax.f32 %v1771_v59, %v1772_v53  ;;  %v1742_v58 = vsel %vm1161_vm6, %v1691_v54, -inf  ;;  %v1694_v61 = vsel %vm1566_vm10, %v1368_v47, %v1630_v52 }
 0x1ed   : > { %v2696_v62 = vmax.f32 %v1741_v63, %v1742_v58  ;;  %v1787_v1 = vsel %vm1161_vm6, %v1694_v61, -inf  ;;  %v1692_v2 = vsel %vm1564_vm11, %v1360_v50, %v1628_v55  ;;  %v2239_v3 = vpop.f32.mrb[20].mxu1 }
 0x1ee   : > { %v2702_v5 = vmax.f32 %v1786_v4, %v1787_v1  ;;  %v1757_v34 = vsel %vm1161_vm6, %v1692_v2, -inf  ;;  %v1381_v56 = vadd.f32 %v2239_v3, %v2610_v39  ;;  %v1372_v59 = vpop.f32.mrb[21].mxu1 }
 0x1ef   : > { %v2706_v6 = vmax.f32 %v1756_v9, %v1757_v34  ;;  %v1373_v35 = vadd.f32 %v2610_v39, %v1372_v59  ;;  %v2240_v60 = vpop.f32.mrb[22].mxu1 }
 0x1f0   : > { %vm1569_vm12 = vcmp.ge.f32.partialorder %v1381_v56, 0.0  ;;  %v1633_v63 = vmul.f32 0.2, %v1381_v56  ;;  %v1384_v7 = vadd.f32 %v2240_v60, %v2610_v39  ;;  %v1375_v8 = vpop.f32.mrb[23].mxu1 }
 0x1f1   : > { %vm1567_vm13 = vcmp.ge.f32.partialorder %v1373_v35, 0.0  ;;  %v1631_v10 = vmul.f32 0.2, %v1373_v35  ;;  %v1376_v37 = vadd.f32 %v2610_v39, %v1375_v8 }
 0x1f2   : > { %v1697_v0 = vsel %vm1569_vm12, %v1381_v56, %v1633_v63  ;;  %vm1570_vm14 = vcmp.ge.f32.partialorder %v1384_v7, 0.0  ;;  %v1634_v4 = vmul.f32 0.2, %v1384_v7 }
 0x1f3   : > { %v1832_v11 = vsel %vm1161_vm6, %v1697_v0, -inf  ;;  %v1695_v12 = vsel %vm1567_vm13, %v1373_v35, %v1631_v10  ;;  %vm1568_vm15 = vcmp.ge.f32.partialorder %v1376_v37, 0.0  ;;  %v1632_v9 = vmul.f32 0.2, %v1376_v37 }
 0x1f4   : > { %v2712_v13 = vmax.f32 %v1831_v26, %v1832_v11  ;;  %v1802_v14 = vsel %vm1161_vm6, %v1695_v12, -inf  ;;  %v1698_v15 = vsel %vm1570_vm14, %v1384_v7, %v1634_v4 }
 0x1f5   : > { %v2715_v16 = vmax.f32 %v1801_v30, %v1802_v14  ;;  %v1847_v17 = vsel %vm1161_vm6, %v1698_v15, -inf  ;;  %v1696_v18 = vsel %vm1568_vm15, %v1376_v37, %v1632_v9  ;;  %v2243_v19 = vpop.f32.mrb[24].mxu1 }
 0x1f6   : > { %v2718_v20 = vmax.f32 %v1846_v38, %v1847_v17  ;;  %v1817_v21 = vsel %vm1161_vm6, %v1696_v18, -inf  ;;  %v1397_v22 = vadd.f32 %v2243_v19, %v2610_v39  ;;  %v1388_v23 = vpop.f32.mrb[25].mxu1 }
 0x1f7   : > { %v2722_v24 = vmax.f32 %v1816_v43, %v1817_v21  ;;  %v1389_v25 = vadd.f32 %v2610_v39, %v1388_v23  ;;  %v2244_v26 = vpop.f32.mrb[26].mxu1 }
 0x1f8   : > { %vm1573_vm0 = vcmp.ge.f32.partialorder %v1397_v22, 0.0  ;;  %v1637_v27 = vmul.f32 0.2, %v1397_v22  ;;  %v1400_v28 = vadd.f32 %v2244_v26, %v2610_v39  ;;  %v1391_v29 = vpop.f32.mrb[27].mxu1 }
 0x1f9   : > { %vm1571_vm1 = vcmp.ge.f32.partialorder %v1389_v25, 0.0  ;;  %v1635_v30 = vmul.f32 0.2, %v1389_v25  ;;  %v1392_v31 = vadd.f32 %v2610_v39, %v1391_v29 }
 0x1fa   : > { %v1701_v32 = vsel %vm1573_vm0, %v1397_v22, %v1637_v27  ;;  %vm1574_vm2 = vcmp.ge.f32.partialorder %v1400_v28, 0.0  ;;  %v1638_v33 = vmul.f32 0.2, %v1400_v28 }
 0x1fb   : > { %v1774_v36 = vsel %vm1161_vm6, %v1701_v32, -inf  ;;  %v1699_v38 = vsel %vm1571_vm1, %v1389_v25, %v1635_v30  ;;  %vm1572_vm3 = vcmp.ge.f32.partialorder %v1392_v31, 0.0  ;;  %v1636_v40 = vmul.f32 0.2, %v1392_v31 }
 0x1fc   : > { %v1775_v41 = vmax.f32 %v2690_v57, %v1774_v36  ;;  %v1744_v42 = vsel %vm1161_vm6, %v1699_v38, -inf  ;;  %v1702_v43 = vsel %vm1574_vm2, %v1400_v28, %v1638_v33 }
 0x1fd   : > { %v1745_v44 = vmax.f32 %v2696_v62, %v1744_v42  ;;  %v1789_v45 = vsel %vm1161_vm6, %v1702_v43, -inf  ;;  %v1700_v46 = vsel %vm1572_vm3, %v1392_v31, %v1636_v40  ;;  %v2247_v47 = vpop.f32.mrb[28].mxu1 }
 0x1fe   : > { %v1790_v48 = vmax.f32 %v2702_v5, %v1789_v45  ;;  %v1759_v49 = vsel %vm1161_vm6, %v1700_v46, -inf  ;;  %v1413_v50 = vadd.f32 %v2247_v47, %v2610_v39  ;;  %v1404_v51 = vpop.f32.mrb[29].mxu1 }
 0x1ff   : > { %v1760_v52 = vmax.f32 %v2706_v6, %v1759_v49  ;;  %v1405_v53 = vadd.f32 %v2610_v39, %v1404_v51  ;;  %v2248_v54 = vpop.f32.mrb[30].mxu1 }
 0x200   : > { %vm1577_vm4 = vcmp.ge.f32.partialorder %v1413_v50, 0.0  ;;  %v1641_v55 = vmul.f32 0.2, %v1413_v50  ;;  %v1416_v57 = vadd.f32 %v2248_v54, %v2610_v39  ;;  %v1407_v58 = vpop.f32.mrb[31].mxu1 }
 0x201   : > { %vm1575_vm5 = vcmp.ge.f32.partialorder %v1405_v53, 0.0  ;;  %v1639_v61 = vmul.f32 0.2, %v1405_v53  ;;  %v1408_v62 = vadd.f32 %v2610_v39, %v1407_v58 }
 0x202   : > { %v1705_v1 = vsel %vm1577_vm4, %v1413_v50, %v1641_v55  ;;  %vm1578_vm7 = vcmp.ge.f32.partialorder %v1416_v57, 0.0  ;;  %v1642_v2 = vmul.f32 0.2, %v1416_v57 }
 0x203   : > { %v1834_v3 = vsel %vm1161_vm6, %v1705_v1, -inf  ;;  %v1703_v5 = vsel %vm1575_vm5, %v1405_v53, %v1639_v61  ;;  %vm1576_vm8 = vcmp.ge.f32.partialorder %v1408_v62, 0.0  ;;  %v1640_v34 = vmul.f32 0.2, %v1408_v62 }
 0x204   : > { %v1835_v56 = vmax.f32 %v2712_v13, %v1834_v3  ;;  %v1804_v59 = vsel %vm1161_vm6, %v1703_v5, -inf  ;;  %v1706_v6 = vsel %vm1578_vm7, %v1416_v57, %v1642_v2 }
 0x205   : > { %v1805_v35 = vmax.f32 %v2715_v16, %v1804_v59  ;;  %v1849_v60 = vsel %vm1161_vm6, %v1706_v6, -inf  ;;  %v1704_v63 = vsel %vm1576_vm8, %v1408_v62, %v1640_v34  ;;  %v2251_v7 = vpop.f32.mrb[32].mxu1 }
 0x206   : > { %v1850_v8 = vmax.f32 %v2718_v20, %v1849_v60  ;;  %v1819_v10 = vsel %vm1161_vm6, %v1704_v63, -inf  ;;  %v1429_v37 = vadd.f32 %v2251_v7, %v2610_v39  ;;  %v1420_v0 = vpop.f32.mrb[33].mxu1 }
 0x207   : > { %v1820_v4 = vmax.f32 %v2722_v24, %v1819_v10  ;;  %v1421_v11 = vadd.f32 %v2610_v39, %v1420_v0  ;;  %v2252_v12 = vpop.f32.mrb[34].mxu1 }
 0x208   : > { %vm1581_vm9 = vcmp.ge.f32.partialorder %v1429_v37, 0.0  ;;  %v1645_v9 = vmul.f32 0.2, %v1429_v37  ;;  %v1432_v13 = vadd.f32 %v2252_v12, %v2610_v39  ;;  %v1423_v14 = vpop.f32.mrb[35].mxu1 }
 0x209   : > { %vm1579_vm10 = vcmp.ge.f32.partialorder %v1421_v11, 0.0  ;;  %v1643_v15 = vmul.f32 0.2, %v1421_v11  ;;  %v1424_v16 = vadd.f32 %v2610_v39, %v1423_v14 }
 0x20a   : > { %v1709_v17 = vsel %vm1581_vm9, %v1429_v37, %v1645_v9  ;;  %vm1582_vm11 = vcmp.ge.f32.partialorder %v1432_v13, 0.0  ;;  %v1646_v18 = vmul.f32 0.2, %v1432_v13 }
 0x20b   : > { %v1776_v19 = vsel %vm1161_vm6, %v1709_v17, -inf  ;;  %v1707_v20 = vsel %vm1579_vm10, %v1421_v11, %v1643_v15  ;;  %vm1580_vm12 = vcmp.ge.f32.partialorder %v1424_v16, 0.0  ;;  %v1644_v21 = vmul.f32 0.2, %v1424_v16 }
 0x20c   : > { %v2752_v22 = vmax.f32 %v1775_v41, %v1776_v19  ;;  %v1746_v23 = vsel %vm1161_vm6, %v1707_v20, -inf  ;;  %v1710_v24 = vsel %vm1582_vm11, %v1432_v13, %v1646_v18 }
 0x20d   : > { %v2755_v25 = vmax.f32 %v1745_v44, %v1746_v23  ;;  %v1791_v26 = vsel %vm1161_vm6, %v1710_v24, -inf  ;;  %v1708_v27 = vsel %vm1580_vm12, %v1424_v16, %v1644_v21  ;;  %v2255_v28 = vpop.f32.mrb[36].mxu1 }
 0x20e   : > { %v2758_v29 = vmax.f32 %v1790_v48, %v1791_v26  ;;  %v1761_v30 = vsel %vm1161_vm6, %v1708_v27, -inf  ;;  %v1445_v31 = vadd.f32 %v2255_v28, %v2610_v39  ;;  %v1436_v32 = vpop.f32.mrb[37].mxu1 }
 0x20f   : > { %v2762_v33 = vmax.f32 %v1760_v52, %v1761_v30  ;;  %v1437_v36 = vadd.f32 %v2610_v39, %v1436_v32  ;;  %v2256_v38 = vpop.f32.mrb[38].mxu1 }
 0x210   : > { %vm1585_vm13 = vcmp.ge.f32.partialorder %v1445_v31, 0.0  ;;  %v1649_v40 = vmul.f32 0.2, %v1445_v31  ;;  %v1448_v41 = vadd.f32 %v2256_v38, %v2610_v39  ;;  %v1439_v42 = vpop.f32.mrb[39].mxu1 }
 0x211   : > { %vm1583_vm14 = vcmp.ge.f32.partialorder %v1437_v36, 0.0  ;;  %v1647_v43 = vmul.f32 0.2, %v1437_v36  ;;  %v1440_v44 = vadd.f32 %v2610_v39, %v1439_v42 }
 0x212   : > { %v1713_v45 = vsel %vm1585_vm13, %v1445_v31, %v1649_v40  ;;  %vm1586_vm15 = vcmp.ge.f32.partialorder %v1448_v41, 0.0  ;;  %v1650_v46 = vmul.f32 0.2, %v1448_v41 }
 0x213   : > { %v1836_v47 = vsel %vm1161_vm6, %v1713_v45, -inf  ;;  %v1711_v48 = vsel %vm1583_vm14, %v1437_v36, %v1647_v43  ;;  %vm1584_vm0 = vcmp.ge.f32.partialorder %v1440_v44, 0.0  ;;  %v1648_v49 = vmul.f32 0.2, %v1440_v44 }
 0x214   : > { %v2768_v50 = vmax.f32 %v1835_v56, %v1836_v47  ;;  %v1806_v51 = vsel %vm1161_vm6, %v1711_v48, -inf  ;;  %v1714_v52 = vsel %vm1586_vm15, %v1448_v41, %v1650_v46 }
 0x215   : > { %v2771_v53 = vmax.f32 %v1805_v35, %v1806_v51  ;;  %v1851_v54 = vsel %vm1161_vm6, %v1714_v52, -inf  ;;  %v1712_v55 = vsel %vm1584_vm0, %v1440_v44, %v1648_v49  ;;  %v2259_v57 = vpop.f32.mrb[40].mxu1 }
 0x216   : > { %v2774_v58 = vmax.f32 %v1850_v8, %v1851_v54  ;;  %v1821_v61 = vsel %vm1161_vm6, %v1712_v55, -inf  ;;  %v1461_v62 = vadd.f32 %v2259_v57, %v2610_v39  ;;  %v1452_v1 = vpop.f32.mrb[41].mxu1 }
 0x217   : > { %v2778_v2 = vmax.f32 %v1820_v4, %v1821_v61  ;;  %v1453_v3 = vadd.f32 %v2610_v39, %v1452_v1  ;;  %v2260_v5 = vpop.f32.mrb[42].mxu1 }
 0x218   : > { %vm1589_vm1 = vcmp.ge.f32.partialorder %v1461_v62, 0.0  ;;  %v1653_v34 = vmul.f32 0.2, %v1461_v62  ;;  %v1464_v56 = vadd.f32 %v2260_v5, %v2610_v39  ;;  %v1455_v59 = vpop.f32.mrb[43].mxu1 }
 0x219   : > { %vm1587_vm2 = vcmp.ge.f32.partialorder %v1453_v3, 0.0  ;;  %v1651_v6 = vmul.f32 0.2, %v1453_v3  ;;  %v1456_v35 = vadd.f32 %v2610_v39, %v1455_v59 }
 0x21a   : > { %v1717_v60 = vsel %vm1589_vm1, %v1461_v62, %v1653_v34  ;;  %vm1590_vm3 = vcmp.ge.f32.partialorder %v1464_v56, 0.0  ;;  %v1654_v63 = vmul.f32 0.2, %v1464_v56 }
 0x21b   : > { %v1778_v7 = vsel %vm1161_vm6, %v1717_v60, -inf  ;;  %v1715_v8 = vsel %vm1587_vm2, %v1453_v3, %v1651_v6  ;;  %vm1588_vm4 = vcmp.ge.f32.partialorder %v1456_v35, 0.0  ;;  %v1652_v10 = vmul.f32 0.2, %v1456_v35 }
 0x21c   : > { %v1779_v37 = vmax.f32 %v2752_v22, %v1778_v7  ;;  %v1748_v0 = vsel %vm1161_vm6, %v1715_v8, -inf  ;;  %v1718_v4 = vsel %vm1590_vm3, %v1464_v56, %v1654_v63 }
 0x21d   : > { %v1749_v11 = vmax.f32 %v2755_v25, %v1748_v0  ;;  %v1793_v12 = vsel %vm1161_vm6, %v1718_v4, -inf  ;;  %v1716_v9 = vsel %vm1588_vm4, %v1456_v35, %v1652_v10  ;;  %v2263_v13 = vpop.f32.mrb[44].mxu1 }
 0x21e   : > { %v1794_v14 = vmax.f32 %v2758_v29, %v1793_v12  ;;  %v1763_v15 = vsel %vm1161_vm6, %v1716_v9, -inf  ;;  %v1477_v16 = vadd.f32 %v2263_v13, %v2610_v39  ;;  %v1468_v17 = vpop.f32.mrb[45].mxu1 }
 0x21f   : > { %v1764_v18 = vmax.f32 %v2762_v33, %v1763_v15  ;;  %v1469_v19 = vadd.f32 %v2610_v39, %v1468_v17  ;;  %v2264_v20 = vpop.f32.mrb[46].mxu1 }
 0x220   : > { %vm1593_vm5 = vcmp.ge.f32.partialorder %v1477_v16, 0.0  ;;  %v1657_v21 = vmul.f32 0.2, %v1477_v16  ;;  %v1480_v22 = vadd.f32 %v2264_v20, %v2610_v39  ;;  %v1471_v23 = vpop.f32.mrb[47].mxu1 }
 0x221   : > { %vm1591_vm7 = vcmp.ge.f32.partialorder %v1469_v19, 0.0  ;;  %v1655_v24 = vmul.f32 0.2, %v1469_v19  ;;  %v1472_v25 = vadd.f32 %v2610_v39, %v1471_v23 }
 0x222   : > { %v1721_v26 = vsel %vm1593_vm5, %v1477_v16, %v1657_v21  ;;  %vm1594_vm8 = vcmp.ge.f32.partialorder %v1480_v22, 0.0  ;;  %v1658_v27 = vmul.f32 0.2, %v1480_v22 }
 0x223   : > { %v1838_v28 = vsel %vm1161_vm6, %v1721_v26, -inf  ;;  %v1719_v29 = vsel %vm1591_vm7, %v1469_v19, %v1655_v24  ;;  %vm1592_vm9 = vcmp.ge.f32.partialorder %v1472_v25, 0.0  ;;  %v1656_v30 = vmul.f32 0.2, %v1472_v25 }
 0x224   : > { %v1839_v31 = vmax.f32 %v2768_v50, %v1838_v28  ;;  %v1808_v32 = vsel %vm1161_vm6, %v1719_v29, -inf  ;;  %v1722_v33 = vsel %vm1594_vm8, %v1480_v22, %v1658_v27 }
 0x225   : > { %v1809_v36 = vmax.f32 %v2771_v53, %v1808_v32  ;;  %v1853_v38 = vsel %vm1161_vm6, %v1722_v33, -inf  ;;  %v1720_v40 = vsel %vm1592_vm9, %v1472_v25, %v1656_v30  ;;  %v2267_v41 = vpop.f32.mrb[48].mxu1 }
 0x226   : > { %v1854_v42 = vmax.f32 %v2774_v58, %v1853_v38  ;;  %v1823_v43 = vsel %vm1161_vm6, %v1720_v40, -inf  ;;  %v1493_v44 = vadd.f32 %v2267_v41, %v2610_v39  ;;  %v1484_v45 = vpop.f32.mrb[49].mxu1 }
 0x227   : > { %v1824_v46 = vmax.f32 %v2778_v2, %v1823_v43  ;;  %v1485_v47 = vadd.f32 %v2610_v39, %v1484_v45  ;;  %v2268_v48 = vpop.f32.mrb[50].mxu1 }
 0x228   : > { %vm1597_vm10 = vcmp.ge.f32.partialorder %v1493_v44, 0.0  ;;  %v1661_v49 = vmul.f32 0.2, %v1493_v44  ;;  %v1496_v50 = vadd.f32 %v2268_v48, %v2610_v39  ;;  %v1487_v51 = vpop.f32.mrb[51].mxu1 }
 0x229   : > { %vm1595_vm11 = vcmp.ge.f32.partialorder %v1485_v47, 0.0  ;;  %v1659_v52 = vmul.f32 0.2, %v1485_v47  ;;  %v1488_v53 = vadd.f32 %v2610_v39, %v1487_v51 }
 0x22a   : > { %v1725_v54 = vsel %vm1597_vm10, %v1493_v44, %v1661_v49  ;;  %vm1598_vm12 = vcmp.ge.f32.partialorder %v1496_v50, 0.0  ;;  %v1662_v55 = vmul.f32 0.2, %v1496_v50 }
 0x22b   : > { %v1780_v57 = vsel %vm1161_vm6, %v1725_v54, -inf  ;;  %v1723_v58 = vsel %vm1595_vm11, %v1485_v47, %v1659_v52  ;;  %vm1596_vm13 = vcmp.ge.f32.partialorder %v1488_v53, 0.0  ;;  %v1660_v61 = vmul.f32 0.2, %v1488_v53 }
 0x22c   : > { %v2808_v62 = vmax.f32 %v1779_v37, %v1780_v57  ;;  %v1750_v1 = vsel %vm1161_vm6, %v1723_v58, -inf  ;;  %v1726_v2 = vsel %vm1598_vm12, %v1496_v50, %v1662_v55 }
 0x22d   : > { %v2811_v3 = vmax.f32 %v1749_v11, %v1750_v1  ;;  %v1795_v5 = vsel %vm1161_vm6, %v1726_v2, -inf  ;;  %v1724_v34 = vsel %vm1596_vm13, %v1488_v53, %v1660_v61  ;;  %v2271_v56 = vpop.f32.mrb[52].mxu1 }
 0x22e   : > { %v2814_v59 = vmax.f32 %v1794_v14, %v1795_v5  ;;  %v1765_v6 = vsel %vm1161_vm6, %v1724_v34, -inf  ;;  %v1509_v35 = vadd.f32 %v2271_v56, %v2610_v39  ;;  %v1500_v60 = vpop.f32.mrb[53].mxu1 }
 0x22f   : > { %v2818_v63 = vmax.f32 %v1764_v18, %v1765_v6  ;;  %v1501_v7 = vadd.f32 %v2610_v39, %v1500_v60  ;;  %v2272_v8 = vpop.f32.mrb[54].mxu1 }
 0x230   : > { %vm1601_vm14 = vcmp.ge.f32.partialorder %v1509_v35, 0.0  ;;  %v1665_v10 = vmul.f32 0.2, %v1509_v35  ;;  %v1512_v37 = vadd.f32 %v2272_v8, %v2610_v39  ;;  %v1503_v0 = vpop.f32.mrb[55].mxu1 }
 0x231   : > { %vm1599_vm15 = vcmp.ge.f32.partialorder %v1501_v7, 0.0  ;;  %v1663_v4 = vmul.f32 0.2, %v1501_v7  ;;  %v1504_v11 = vadd.f32 %v2610_v39, %v1503_v0 }
 0x232   : > { %v1729_v12 = vsel %vm1601_vm14, %v1509_v35, %v1665_v10  ;;  %vm1602_vm0 = vcmp.ge.f32.partialorder %v1512_v37, 0.0  ;;  %v1666_v9 = vmul.f32 0.2, %v1512_v37 }
 0x233   : > { %v1840_v13 = vsel %vm1161_vm6, %v1729_v12, -inf  ;;  %v1727_v14 = vsel %vm1599_vm15, %v1501_v7, %v1663_v4  ;;  %vm1600_vm1 = vcmp.ge.f32.partialorder %v1504_v11, 0.0  ;;  %v1664_v15 = vmul.f32 0.2, %v1504_v11 }
 0x234   : > { %v2824_v16 = vmax.f32 %v1839_v31, %v1840_v13  ;;  %v1810_v17 = vsel %vm1161_vm6, %v1727_v14, -inf  ;;  %v1730_v18 = vsel %vm1602_vm0, %v1512_v37, %v1666_v9 }
 0x235   : > { %v2827_v19 = vmax.f32 %v1809_v36, %v1810_v17  ;;  %v1855_v20 = vsel %vm1161_vm6, %v1730_v18, -inf  ;;  %v1728_v21 = vsel %vm1600_vm1, %v1504_v11, %v1664_v15  ;;  %v2275_v22 = vpop.f32.mrb[56].mxu1 }
 0x236   : > { %v2830_v23 = vmax.f32 %v1854_v42, %v1855_v20  ;;  %v1825_v24 = vsel %vm1161_vm6, %v1728_v21, -inf  ;;  %v1525_v25 = vadd.f32 %v2275_v22, %v2610_v39  ;;  %v1516_v26 = vpop.f32.mrb[57].mxu1 }
 0x237   : > { %v2834_v27 = vmax.f32 %v1824_v46, %v1825_v24  ;;  %v1517_v28 = vadd.f32 %v2610_v39, %v1516_v26  ;;  %v2276_v29 = vpop.f32.mrb[58].mxu1 }
 0x238   : > { %vm1605_vm2 = vcmp.ge.f32.partialorder %v1525_v25, 0.0  ;;  %v1669_v30 = vmul.f32 0.2, %v1525_v25  ;;  %v1528_v31 = vadd.f32 %v2276_v29, %v2610_v39  ;;  %v1519_v32 = vpop.f32.mrb[59].mxu1 }
 0x239   : > { %vm1603_vm3 = vcmp.ge.f32.partialorder %v1517_v28, 0.0  ;;  %v1667_v33 = vmul.f32 0.2, %v1517_v28  ;;  %v1520_v36 = vadd.f32 %v2610_v39, %v1519_v32 }
 0x23a   : > { %v1733_v38 = vsel %vm1605_vm2, %v1525_v25, %v1669_v30  ;;  %vm1606_vm4 = vcmp.ge.f32.partialorder %v1528_v31, 0.0  ;;  %v1670_v40 = vmul.f32 0.2, %v1528_v31 }
 0x23b   : > { %v1782_v41 = vsel %vm1161_vm6, %v1733_v38, -inf  ;;  %v1731_v42 = vsel %vm1603_vm3, %v1517_v28, %v1667_v33  ;;  %vm1604_vm5 = vcmp.ge.f32.partialorder %v1520_v36, 0.0  ;;  %v1668_v43 = vmul.f32 0.2, %v1520_v36 }
 0x23c   : > { %v1783_v44 = vmax.f32 %v2808_v62, %v1782_v41  ;;  %v1752_v45 = vsel %vm1161_vm6, %v1731_v42, -inf  ;;  %v1734_v46 = vsel %vm1606_vm4, %v1528_v31, %v1670_v40 }
 0x23d   : > { %v1753_v47 = vmax.f32 %v2811_v3, %v1752_v45  ;;  %v1797_v48 = vsel %vm1161_vm6, %v1734_v46, -inf  ;;  %v1732_v49 = vsel %vm1604_vm5, %v1520_v36, %v1668_v43  ;;  %v2279_v50 = vpop.f32.mrb[60].mxu1 }
 0x23e   : > { %1861 = vst.msk [vmem:[%s2843_s24 + $0x10] sm:$0xff] %vm1161_vm6, %v1783_v44  ;;  %v1798_v51 = vmax.f32 %v2814_v59, %v1797_v48  ;;  %v1767_v52 = vsel %vm1161_vm6, %v1732_v49, -inf  ;;  %v1541_v53 = vadd.f32 %v2279_v50, %v2610_v39  ;;  %v1532_v54 = vpop.f32.mrb[61].mxu1 }
 0x23f   : > { %1859 = vst.msk [vmem:[%s2843_s24] sm:$0xff] %vm1161_vm6, %v1753_v47  ;;  %v1768_v55 = vmax.f32 %v2818_v63, %v1767_v52  ;;  %v1533_v57 = vadd.f32 %v2610_v39, %v1532_v54  ;;  %v2280_v58 = vpop.f32.mrb[62].mxu1 }
 0x240   : > { %1862 = vst.msk [vmem:[%s2843_s24 + $0x18] sm:$0xff] %vm1161_vm6, %v1798_v51  ;;  %vm1609_vm7 = vcmp.ge.f32.partialorder %v1541_v53, 0.0  ;;  %v1673_v61 = vmul.f32 0.2, %v1541_v53  ;;  %v1544_v62 = vadd.f32 %v2280_v58, %v2610_v39  ;;  %v1535_v1 = vpop.f32.mrb[63].mxu1 }
 0x241   : > { %1860 = vst.msk [vmem:[%s2843_s24 + $0x8] sm:$0xff] %vm1161_vm6, %v1768_v55  ;;  %vm1607_vm8 = vcmp.ge.f32.partialorder %v1533_v57, 0.0  ;;  %v1671_v2 = vmul.f32 0.2, %v1533_v57  ;;  %v1536_v3 = vadd.f32 %v2610_v39, %v1535_v1 }
 0x242   : > { %v1737_v5 = vsel %vm1609_vm7, %v1541_v53, %v1673_v61  ;;  %vm1610_vm9 = vcmp.ge.f32.partialorder %v1544_v62, 0.0  ;;  %v1674_v34 = vmul.f32 0.2, %v1544_v62 }
 0x243   : > { %v1842_v56 = vsel %vm1161_vm6, %v1737_v5, -inf  ;;  %v1735_v59 = vsel %vm1607_vm8, %v1533_v57, %v1671_v2  ;;  %vm1608_vm10 = vcmp.ge.f32.partialorder %v1536_v3, 0.0  ;;  %v1672_v6 = vmul.f32 0.2, %v1536_v3 }
 0x244   : > { %v1843_v35 = vmax.f32 %v2824_v16, %v1842_v56  ;;  %v1812_v60 = vsel %vm1161_vm6, %v1735_v59, -inf  ;;  %v1738_v63 = vsel %vm1610_vm9, %v1544_v62, %v1674_v34 }
 0x245   : > { %v1813_v7 = vmax.f32 %v2827_v19, %v1812_v60  ;;  %v1857_v39 = vsel %vm1161_vm6, %v1738_v63, -inf  ;;  %v1736_v8 = vsel %vm1608_vm10, %v1536_v3, %v1672_v6 }
 0x246   : > { %1865 = vst.msk [vmem:[%s2843_s24 + $0x30] sm:$0xff] %vm1161_vm6, %v1843_v35  ;;  %v1858_v10 = vmax.f32 %v2830_v23, %v1857_v39  ;;  %v1827_v37 = vsel %vm1161_vm6, %v1736_v8, -inf }
 0x247   : > { %1863 = vst.msk [vmem:[%s2843_s24 + $0x20] sm:$0xff] %vm1161_vm6, %v1813_v7  ;;  %v1828_v0 = vmax.f32 %v2834_v27, %v1827_v37 }
 0x248   : > { %1866 = vst.msk [vmem:[%s2843_s24 + $0x38] sm:$0xff] %vm1161_vm6, %v1858_v10 }
 0x249   : > { %1864 = vst.msk [vmem:[%s2843_s24 + $0x28] sm:$0xff] %vm1161_vm6, %v1828_v0 }
 0x24a PF: > { %s15_s20 = sadd.s32 1, %s2366_s20   ;;  %s2896_s18 = smov %s2362_s19 }
 0x24b   : > { %p12_p5 = scmp.ge.s32.totalorder %s15_s20, 4   ;;  %s2897_s19 = smov %s2899_s21 }
 0x24d   :  { %14 = sbr.rel (!%p12_p5) target bundleno = 2 (0x2), region = 70 }

// kernel: dgcnn_semseg_forward.11
= control target key start
LH: loop header
LB: loop body
LE: loop exit
PB: predicated region body
PF: predicated region fallthrough
CT: control target
= control target key end

     0   :  { %s2378_s18 = smov 0   ;;  %s2380_s19 = smov 0   ;;  %s2856_s0 = inlined_call_operand.vmem [shape: bf16[2,8,64,128], index: 0, kind: input, shape index: {}]   ;;  %s2857_s1 = inlined_call_operand.vmem [shape: bf16[128,64], index: 1, kind: input, shape index: {}]   ;;  %s2858_s2 = inlined_call_operand.vmem [shape: f32[1,64], index: 2, kind: input, shape index: {}]   ;;  %s2859_s3 = inlined_call_operand.vmem [shape: bf16[64,64], index: 3, kind: input, shape index: {}]   ;;  %s2860_s4 = inlined_call_operand.vmem [shape: f32[1,64], index: 4, kind: input, shape index: {}]   ;;  %s2861_s5 = inlined_call_operand.vmem [shape: f32[2,64,64], index: 5, kind: output, shape index: {}]  }
   0x1   :  { %s2382_s20 = smov 0  }
   0x2 LB: > { %s27_s21 = sadd.s32 1, %s2342_s19  ;;  %p1941_p0 = scmp.ge.s32.totalorder %s2346_s20, 1  ;;  %s2346_s20 = sphi %s2382_s20, %s15_s20   ;;  %s2342_s19 = sphi %s2380_s19, %s2863_s19   ;;  %s2338_s18 = sphi %s2378_s18, %s2862_s18  }
   0x3   : > { %p29_p1 = scmp.ge.s32.totalorder %s27_s21, 2  ;;  %p208_p2 = scmp.lt.s32.totalorder %s2346_s20, 3 }
   0x5   : > { %s2865_s21 = smov (%p29_p1, %s27_s21), 0  ;;  %p209_p3 = pnand %p1941_p0, %p208_p2 }
   0x6   : > { %v2280_v0 = vld [vmem:[%s2857_s1] sm:$0xff] (!%p209_p3)   ;;  %p245_p4 = scmp.lt.s32.totalorder (!%p209_p3), %s2338_s18, 1  ;;  %v2281_v1 = vld [vmem:[%s2857_s1 + $0x8] sm:$0xff] (!%p209_p3)   ;;  %v2282_v2 = vld [vmem:[%s2857_s1 + $0x10] sm:$0xff] (!%p209_p3)   ;;  %vm1144_vm4 = vcmask (!%p209_p3), 523264  }
   0x7   : > { %212 = sbr.rel (%p209_p3) target bundleno = 606 (0x25e), region = 40  ;;  %2104 = vmatprep.subr.bf16.mxu0 (!%p209_p3), %v2280_v0  ;;  %v2283_v3 = vld [vmem:[%s2857_s1 + $0x18] sm:$0xff] (!%p209_p3)   ;;  %v2284_v5 = vld [vmem:[%s2857_s1 + $0x20] sm:$0xff] (!%p209_p3)   ;;  %v2285_v6 = vld [vmem:[%s2857_s1 + $0x28] sm:$0xff] (!%p209_p3)  }
   0x8   : > { %2105 = vmatpush3.bf16.msra.mxu0 (!%p209_p3), %v2280_v0  ;;  %v2286_v7 = vld [vmem:[%s2857_s1 + $0x30] sm:$0xff] (!%p209_p3)   ;;  %v2287_v8 = vld [vmem:[%s2857_s1 + $0x38] sm:$0xff] (!%p209_p3)   ;;  %v2320_v13 = vld [vmem:[%s2859_s3] sm:$0xff] (!%p209_p3)  }
   0x9   : > { %2106 = vmatprep.subr.bf16.mxu0 (!%p209_p3), %v2281_v1  ;;  %2184 = vmatprep.subr.bf16.mxu1 (!%p209_p3), %v2320_v13  ;;  %v2321_v32 = vld [vmem:[%s2859_s3 + $0x8] sm:$0xff] (!%p209_p3)   ;;  %v2322_v35 = vld [vmem:[%s2859_s3 + $0x10] sm:$0xff] (!%p209_p3)   ;;  %v2323_v36 = vld [vmem:[%s2859_s3 + $0x18] sm:$0xff] (!%p209_p3)  }
   0xa   : > { %2185 = vmatpush3.bf16.msra.mxu1 (!%p209_p3), %v2320_v13  ;;  %v2475_v44 = vld [vmem:[%s2858_s2] ss:$0 sm:$0xff] (!%p209_p3) }
   0xb   : > { %2186 = vmatprep.subr.bf16.mxu1 (!%p209_p3), %v2321_v32 }
   0xc   : > { %2107 = vmatpush3.bf16.msra.mxu0 (!%p209_p3), %v2281_v1 }
   0xd   : > { %2108 = vmatprep.subr.bf16.mxu0 (!%p209_p3), %v2282_v2 }
   0xe   : > { %s2867_s18 = smov (!%p245_p4, %s2338_s18), 1  ;;  %2187 = vmatpush3.bf16.msra.mxu1 %v2321_v32 }
   0xf   : > { %s2026_s28 = sshll.u32 %s2867_s18, 8  ;;  %2188 = vmatprep.subr.bf16.mxu1 %v2322_v35  ;;  %s2027_s8 = sshll.u32 %s2867_s18, 6 }
  0x10   : > { %s2411_s6 = scalar_lea.vmem %s2856_s0, %s2026_s28  ;;  %2109 = vmatpush3.bf16.msra.mxu0 %v2282_v2  ;;  %s2809_s11 = scalar_lea.vmem %s2861_s5, %s2027_s8 }
  0x11   : > { %v2288_v4 = vld [vmem:[%s2411_s6] sm:$0xff]   ;;  %2110 = vmatprep.subr.bf16.mxu0 %v2283_v3  ;;  %v2289_v9 = vld [vmem:[%s2411_s6 + $0x8] sm:$0xff]   ;;  %v2290_v10 = vld [vmem:[%s2411_s6 + $0x10] sm:$0xff]  }
  0x12   : > { %2120 = vmatprep.mubr.bf16.mxu0 %v2288_v4  ;;  %v2291_v11 = vld [vmem:[%s2411_s6 + $0x18] sm:$0xff]   ;;  %v2292_v12 = vld [vmem:[%s2411_s6 + $0x20] sm:$0xff]   ;;  %v2293_v14 = vld [vmem:[%s2411_s6 + $0x28] sm:$0xff]   ;;  %2189 = vmatpush3.bf16.msra.mxu1 %v2322_v35 }
  0x13   : > { %v2294_v15 = vld [vmem:[%s2411_s6 + $0x30] sm:$0xff]   ;;  %v2295_v16 = vld [vmem:[%s2411_s6 + $0x38] sm:$0xff]   ;;  %v2296_v17 = vld [vmem:[%s2411_s6 + $0x40] sm:$0xff]   ;;  %2190 = vmatprep.subr.bf16.mxu1 %v2323_v36 }
  0x14   : > { %2111 = vmatpush3.bf16.msra.mxu0 %v2283_v3  ;;  %v2297_v18 = vld [vmem:[%s2411_s6 + $0x48] sm:$0xff]   ;;  %v2298_v19 = vld [vmem:[%s2411_s6 + $0x50] sm:$0xff]   ;;  %v2299_v20 = vld [vmem:[%s2411_s6 + $0x58] sm:$0xff]  }
  0x15   : > { %2112 = vmatprep.subr.bf16.mxu0 %v2284_v5  ;;  %v2300_v21 = vld [vmem:[%s2411_s6 + $0x60] sm:$0xff]   ;;  %v2301_v22 = vld [vmem:[%s2411_s6 + $0x68] sm:$0xff]   ;;  %v2302_v23 = vld [vmem:[%s2411_s6 + $0x70] sm:$0xff]  }
  0x16   : > { %v2303_v24 = vld [vmem:[%s2411_s6 + $0x78] sm:$0xff]   ;;  %v2304_v25 = vld [vmem:[%s2411_s6 + $0x80] sm:$0xff]   ;;  %v2305_v26 = vld [vmem:[%s2411_s6 + $0x88] sm:$0xff]   ;;  %2191 = vmatpush3.bf16.msra.mxu1 %v2323_v36 }
  0x17   : > { %v2306_v27 = vld [vmem:[%s2411_s6 + $0x90] sm:$0xff]   ;;  %v2307_v28 = vld [vmem:[%s2411_s6 + $0x98] sm:$0xff]   ;;  %v2308_v29 = vld [vmem:[%s2411_s6 + $0xa0] sm:$0xff]  }
  0x18   : > { %2113 = vmatpush3.bf16.msra.mxu0 %v2284_v5  ;;  %v2309_v30 = vld [vmem:[%s2411_s6 + $0xa8] sm:$0xff]   ;;  %v2310_v31 = vld [vmem:[%s2411_s6 + $0xb0] sm:$0xff]   ;;  %v2311_v33 = vld [vmem:[%s2411_s6 + $0xb8] sm:$0xff]  }
  0x19   : > { %2114 = vmatprep.subr.bf16.mxu0 %v2285_v6  ;;  %v2312_v34 = vld [vmem:[%s2411_s6 + $0xc0] sm:$0xff]   ;;  %v2313_v37 = vld [vmem:[%s2411_s6 + $0xc8] sm:$0xff]   ;;  %v2314_v38 = vld [vmem:[%s2411_s6 + $0xd0] sm:$0xff]  }
  0x1a   : > { %v2315_v39 = vld [vmem:[%s2411_s6 + $0xd8] sm:$0xff]   ;;  %v2316_v40 = vld [vmem:[%s2411_s6 + $0xe0] sm:$0xff]   ;;  %v2317_v41 = vld [vmem:[%s2411_s6 + $0xe8] sm:$0xff]  }
  0x1b   : > { %v2318_v42 = vld [vmem:[%s2411_s6 + $0xf0] sm:$0xff]   ;;  %v2319_v43 = vld [vmem:[%s2411_s6 + $0xf8] sm:$0xff]  }
  0x1c   : > { %2115 = vmatpush3.bf16.msra.mxu0 %v2285_v6 }
  0x1d   : > { %2116 = vmatprep.subr.bf16.mxu0 %v2286_v7 }
  0x20   : > { %2117 = vmatpush3.bf16.msra.mxu0 %v2286_v7 }
  0x21   : > { %2118 = vmatprep.subr.bf16.mxu0 %v2287_v8 }
  0x24   : > { %2119 = vmatpush3.bf16.msra.mxu0 %v2287_v8 }
  0x27   : > { %2121 = vmatmul.mubr.bf16.vlgmr.msra.gmra.mrb[0].mxu0 %v2289_v9 }
  0x28   : > { %2124 = vmatprep.mubr.bf16.mxu0 %v2290_v10 }
  0x2f   : > { %2125 = vmatmul.mubr.bf16.gmra.mrb[4].mxu0 %v2291_v11 }
  0x30   : > { %2128 = vmatprep.mubr.bf16.mxu0 %v2292_v12 }
  0x37   : > { %2129 = vmatmul.mubr.bf16.gmra.mrb[8].mxu0 %v2293_v14 }
  0x38   : > { %2132 = vmatprep.mubr.bf16.mxu0 %v2294_v15 }
  0x3f   : > { %2133 = vmatmul.mubr.bf16.gmra.mrb[12].mxu0 %v2295_v16 }
  0x40   : > { %2136 = vmatprep.mubr.bf16.mxu0 %v2296_v17 }
  0x47   : > { %2137 = vmatmul.mubr.bf16.gmra.mrb[16].mxu0 %v2297_v18 }
  0x48   : > { %2140 = vmatprep.mubr.bf16.mxu0 %v2298_v19 }
  0x4f   : > { %2141 = vmatmul.mubr.bf16.gmra.mrb[20].mxu0 %v2299_v20 }
  0x50   : > { %2144 = vmatprep.mubr.bf16.mxu0 %v2300_v21 }
  0x57   : > { %2145 = vmatmul.mubr.bf16.gmra.mrb[24].mxu0 %v2301_v22 }
  0x58   : > { %2148 = vmatprep.mubr.bf16.mxu0 %v2302_v23 }
  0x5f   : > { %2149 = vmatmul.mubr.bf16.gmra.mrb[28].mxu0 %v2303_v24 }
  0x60   : > { %2152 = vmatprep.mubr.bf16.mxu0 %v2304_v25 }
  0x67   : > { %2153 = vmatmul.mubr.bf16.gmra.mrb[32].mxu0 %v2305_v26 }
  0x68   : > { %2156 = vmatprep.mubr.bf16.mxu0 %v2306_v27 }
  0x6f   : > { %2157 = vmatmul.mubr.bf16.gmra.mrb[36].mxu0 %v2307_v28 }
  0x70   : > { %2160 = vmatprep.mubr.bf16.mxu0 %v2308_v29 }
  0x77   : > { %2161 = vmatmul.mubr.bf16.gmra.mrb[40].mxu0 %v2309_v30 }
  0x78   : > { %2164 = vmatprep.mubr.bf16.mxu0 %v2310_v31 }
  0x7f   : > { %2165 = vmatmul.mubr.bf16.gmra.mrb[44].mxu0 %v2311_v33 }
  0x80   : > { %2168 = vmatprep.mubr.bf16.mxu0 %v2312_v34 }
  0x87   : > { %2169 = vmatmul.mubr.bf16.gmra.mrb[48].mxu0 %v2313_v37 }
  0x88   : > { %2172 = vmatprep.mubr.bf16.mxu0 %v2314_v38 }
  0x8f   : > { %2173 = vmatmul.mubr.bf16.gmra.mrb[52].mxu0 %v2315_v39 }
  0x90   : > { %2176 = vmatprep.mubr.bf16.mxu0 %v2316_v40 }
  0x97   : > { %2177 = vmatmul.mubr.bf16.gmra.mrb[56].mxu0 %v2317_v41 }
  0x98   : > { %2180 = vmatprep.mubr.bf16.mxu0 %v2318_v42 }
  0x9f   : > { %2181 = vmatmul.mubr.bf16.gmra.mrb[60].mxu0 %v2319_v43 }
  0xfa   : > { %v2122_v45 = vpop.f32.mrb[0].mxu0 }
  0xfb   : > { %v635_v46 = vadd.f32 %v2122_v45, %v2475_v44  ;;  %v626_v47 = vpop.f32.mrb[1].mxu0 }
  0xfc   : > { %v627_v48 = vadd.f32 %v2475_v44, %v626_v47  ;;  %v2123_v49 = vpop.f32.mrb[2].mxu0 }
  0xfd   : > { %v947_v50 = vmul.f32 0.2, %v635_v46  ;;  %v638_v51 = vadd.f32 %v2123_v49, %v2475_v44  ;;  %v629_v52 = vpop.f32.mrb[3].mxu0  ;;  %vm883_vm0 = vcmp.ge.f32.partialorder %v635_v46, 0.0 }
  0xfe   : > { %v945_v53 = vmul.f32 0.2, %v627_v48  ;;  %v630_v54 = vadd.f32 %v2475_v44, %v629_v52  ;;  %vm881_vm2 = vcmp.ge.f32.partialorder %v627_v48, 0.0 }
  0xff   : > { %vm884_vm1 = vcmp.ge.f32.partialorder %v638_v51, 0.0  ;;  %v948_v55 = vmul.f32 0.2, %v638_v51  ;;  %v1011_v57 = vsel %vm883_vm0, %v635_v46, %v947_v50 }
 0x100   : > { %v946_v56 = vmul.f32 0.2, %v630_v54  ;;  %vm882_vm3 = vcmp.ge.f32.partialorder %v630_v54, 0.0  ;;  %v1009_v61 = vsel %vm881_vm2, %v627_v48, %v945_v53 }
 0x101   : > { %v1012_v58 = vsel %vm884_vm1, %v638_v51, %v948_v55 }
 0x102   : > { %v1074_v59 = vpack.c.bf16 %v1012_v58, %v1011_v57  ;;  %v2126_v60 = vpop.f32.mrb[4].mxu0  ;;  %v1010_v62 = vsel %vm882_vm3, %v630_v54, %v946_v56 }
 0x103   : > { %v651_v63 = vadd.f32 %v2126_v60, %v2475_v44  ;;  %v642_v0 = vpop.f32.mrb[5].mxu0  ;;  %v1073_v1 = vpack.c.bf16 %v1010_v62, %v1009_v61 }
 0x104   : > { %v643_v2 = vadd.f32 %v2475_v44, %v642_v0  ;;  %v2127_v3 = vpop.f32.mrb[6].mxu0 }
 0x105   : > { %v951_v4 = vmul.f32 0.2, %v651_v63  ;;  %v654_v5 = vadd.f32 %v2127_v3, %v2475_v44  ;;  %v645_v6 = vpop.f32.mrb[7].mxu0  ;;  %2192 = vmatprep.mubr.msk.bf16.mxu1 %vm1144_vm4, %v1073_v1  ;;  %vm887_vm5 = vcmp.ge.f32.partialorder %v651_v63, 0.0 }
 0x106   : > { %v949_v7 = vmul.f32 0.2, %v643_v2  ;;  %v646_v8 = vadd.f32 %v2475_v44, %v645_v6  ;;  %2193 = vmatmul.mubr.msk.bf16.vlgmr.msra.gmra.mrb[0].mxu1 %vm1144_vm4, %v1074_v59  ;;  %vm885_vm6 = vcmp.ge.f32.partialorder %v643_v2, 0.0 }
 0x107   : > { %vm888_vm7 = vcmp.ge.f32.partialorder %v654_v5, 0.0  ;;  %v952_v9 = vmul.f32 0.2, %v654_v5  ;;  %v1015_v11 = vsel %vm887_vm5, %v651_v63, %v951_v4 }
 0x108   : > { %vm886_vm8 = vcmp.ge.f32.partialorder %v646_v8, 0.0  ;;  %v950_v10 = vmul.f32 0.2, %v646_v8  ;;  %v1013_v13 = vsel %vm885_vm6, %v643_v2, %v949_v7 }
 0x109   : > { %v1016_v12 = vsel %vm888_vm7, %v654_v5, %v952_v9 }
 0x10a   : > { %v1076_v14 = vpack.c.bf16 %v1016_v12, %v1015_v11  ;;  %v1014_v15 = vsel %vm886_vm8, %v646_v8, %v950_v10  ;;  %v2130_v16 = vpop.f32.mrb[8].mxu0 }
 0x10b   : > { %v1075_v17 = vpack.c.bf16 %v1014_v15, %v1013_v13  ;;  %v667_v18 = vadd.f32 %v2130_v16, %v2475_v44  ;;  %v658_v19 = vpop.f32.mrb[9].mxu0 }
 0x10c   : > { %v659_v20 = vadd.f32 %v2475_v44, %v658_v19  ;;  %v2131_v21 = vpop.f32.mrb[10].mxu0 }
 0x10d   : > { %v955_v22 = vmul.f32 0.2, %v667_v18  ;;  %v670_v23 = vadd.f32 %v2131_v21, %v2475_v44  ;;  %v661_v24 = vpop.f32.mrb[11].mxu0  ;;  %2196 = vmatprep.mubr.msk.bf16.mxu1 %vm1144_vm4, %v1075_v17  ;;  %vm891_vm9 = vcmp.ge.f32.partialorder %v667_v18, 0.0 }
 0x10e   : > { %v953_v25 = vmul.f32 0.2, %v659_v20  ;;  %v662_v26 = vadd.f32 %v2475_v44, %v661_v24  ;;  %2197 = vmatmul.mubr.msk.bf16.gmra.mrb[4].mxu1 %vm1144_vm4, %v1076_v14  ;;  %vm889_vm10 = vcmp.ge.f32.partialorder %v659_v20, 0.0 }
 0x10f   : > { %vm892_vm11 = vcmp.ge.f32.partialorder %v670_v23, 0.0  ;;  %v956_v27 = vmul.f32 0.2, %v670_v23  ;;  %v1019_v29 = vsel %vm891_vm9, %v667_v18, %v955_v22 }
 0x110   : > { %vm890_vm12 = vcmp.ge.f32.partialorder %v662_v26, 0.0  ;;  %v954_v28 = vmul.f32 0.2, %v662_v26  ;;  %v1017_v31 = vsel %vm889_vm10, %v659_v20, %v953_v25 }
 0x111   : > { %v1020_v30 = vsel %vm892_vm11, %v670_v23, %v956_v27 }
 0x112   : > { %v1078_v32 = vpack.c.bf16 %v1020_v30, %v1019_v29  ;;  %v1018_v33 = vsel %vm890_vm12, %v662_v26, %v954_v28  ;;  %v2134_v34 = vpop.f32.mrb[12].mxu0 }
 0x113   : > { %v1077_v35 = vpack.c.bf16 %v1018_v33, %v1017_v31  ;;  %v683_v36 = vadd.f32 %v2134_v34, %v2475_v44  ;;  %v674_v37 = vpop.f32.mrb[13].mxu0 }
 0x114   : > { %v675_v38 = vadd.f32 %v2475_v44, %v674_v37  ;;  %v2135_v39 = vpop.f32.mrb[14].mxu0 }
 0x115   : > { %v959_v40 = vmul.f32 0.2, %v683_v36  ;;  %v686_v41 = vadd.f32 %v2135_v39, %v2475_v44  ;;  %v677_v42 = vpop.f32.mrb[15].mxu0  ;;  %2200 = vmatprep.mubr.msk.bf16.mxu1 %vm1144_vm4, %v1077_v35  ;;  %vm895_vm13 = vcmp.ge.f32.partialorder %v683_v36, 0.0 }
 0x116   : > { %v957_v43 = vmul.f32 0.2, %v675_v38  ;;  %v678_v45 = vadd.f32 %v2475_v44, %v677_v42  ;;  %2201 = vmatmul.mubr.msk.bf16.gmra.mrb[8].mxu1 %vm1144_vm4, %v1078_v32  ;;  %vm893_vm14 = vcmp.ge.f32.partialorder %v675_v38, 0.0 }
 0x117   : > { %vm896_vm15 = vcmp.ge.f32.partialorder %v686_v41, 0.0  ;;  %v960_v46 = vmul.f32 0.2, %v686_v41  ;;  %v1023_v48 = vsel %vm895_vm13, %v683_v36, %v959_v40 }
 0x118   : > { %vm894_vm0 = vcmp.ge.f32.partialorder %v678_v45, 0.0  ;;  %v958_v47 = vmul.f32 0.2, %v678_v45  ;;  %v1021_v50 = vsel %vm893_vm14, %v675_v38, %v957_v43 }
 0x119   : > { %v1024_v49 = vsel %vm896_vm15, %v686_v41, %v960_v46 }
 0x11a   : > { %v1080_v51 = vpack.c.bf16 %v1024_v49, %v1023_v48  ;;  %v1022_v52 = vsel %vm894_vm0, %v678_v45, %v958_v47  ;;  %v2138_v53 = vpop.f32.mrb[16].mxu0 }
 0x11b   : > { %v1079_v54 = vpack.c.bf16 %v1022_v52, %v1021_v50  ;;  %v699_v55 = vadd.f32 %v2138_v53, %v2475_v44  ;;  %v690_v56 = vpop.f32.mrb[17].mxu0 }
 0x11c   : > { %v691_v57 = vadd.f32 %v2475_v44, %v690_v56  ;;  %v2139_v58 = vpop.f32.mrb[18].mxu0 }
 0x11d   : > { %v963_v59 = vmul.f32 0.2, %v699_v55  ;;  %v702_v60 = vadd.f32 %v2139_v58, %v2475_v44  ;;  %v693_v61 = vpop.f32.mrb[19].mxu0  ;;  %2204 = vmatprep.mubr.msk.bf16.mxu1 %vm1144_vm4, %v1079_v54  ;;  %vm899_vm1 = vcmp.ge.f32.partialorder %v699_v55, 0.0 }
 0x11e   : > { %v961_v62 = vmul.f32 0.2, %v691_v57  ;;  %v694_v63 = vadd.f32 %v2475_v44, %v693_v61  ;;  %2205 = vmatmul.mubr.msk.bf16.gmra.mrb[12].mxu1 %vm1144_vm4, %v1080_v51  ;;  %vm897_vm2 = vcmp.ge.f32.partialorder %v691_v57, 0.0 }
 0x11f   : > { %vm900_vm3 = vcmp.ge.f32.partialorder %v702_v60, 0.0  ;;  %v964_v0 = vmul.f32 0.2, %v702_v60  ;;  %v1027_v2 = vsel %vm899_vm1, %v699_v55, %v963_v59 }
 0x120   : > { %vm898_vm5 = vcmp.ge.f32.partialorder %v694_v63, 0.0  ;;  %v962_v1 = vmul.f32 0.2, %v694_v63  ;;  %v1025_v4 = vsel %vm897_vm2, %v691_v57, %v961_v62 }
 0x121   : > { %v1028_v3 = vsel %vm900_vm3, %v702_v60, %v964_v0 }
 0x122   : > { %v1082_v5 = vpack.c.bf16 %v1028_v3, %v1027_v2  ;;  %v1026_v6 = vsel %vm898_vm5, %v694_v63, %v962_v1  ;;  %v2142_v7 = vpop.f32.mrb[20].mxu0 }
 0x123   : > { %v1081_v8 = vpack.c.bf16 %v1026_v6, %v1025_v4  ;;  %v715_v9 = vadd.f32 %v2142_v7, %v2475_v44  ;;  %v706_v10 = vpop.f32.mrb[21].mxu0 }
 0x124   : > { %v707_v11 = vadd.f32 %v2475_v44, %v706_v10  ;;  %v2143_v12 = vpop.f32.mrb[22].mxu0 }
 0x125   : > { %v967_v13 = vmul.f32 0.2, %v715_v9  ;;  %v718_v14 = vadd.f32 %v2143_v12, %v2475_v44  ;;  %v709_v15 = vpop.f32.mrb[23].mxu0  ;;  %2208 = vmatprep.mubr.msk.bf16.mxu1 %vm1144_vm4, %v1081_v8  ;;  %vm903_vm6 = vcmp.ge.f32.partialorder %v715_v9, 0.0 }
 0x126   : > { %v965_v16 = vmul.f32 0.2, %v707_v11  ;;  %v710_v17 = vadd.f32 %v2475_v44, %v709_v15  ;;  %2209 = vmatmul.mubr.msk.bf16.gmra.mrb[16].mxu1 %vm1144_vm4, %v1082_v5  ;;  %vm901_vm7 = vcmp.ge.f32.partialorder %v707_v11, 0.0 }
 0x127   : > { %vm904_vm8 = vcmp.ge.f32.partialorder %v718_v14, 0.0  ;;  %v968_v18 = vmul.f32 0.2, %v718_v14  ;;  %v1031_v20 = vsel %vm903_vm6, %v715_v9, %v967_v13 }
 0x128   : > { %vm902_vm9 = vcmp.ge.f32.partialorder %v710_v17, 0.0  ;;  %v966_v19 = vmul.f32 0.2, %v710_v17  ;;  %v1029_v22 = vsel %vm901_vm7, %v707_v11, %v965_v16 }
 0x129   : > { %v1032_v21 = vsel %vm904_vm8, %v718_v14, %v968_v18 }
 0x12a   : > { %v1084_v23 = vpack.c.bf16 %v1032_v21, %v1031_v20  ;;  %v1030_v24 = vsel %vm902_vm9, %v710_v17, %v966_v19  ;;  %v2146_v25 = vpop.f32.mrb[24].mxu0 }
 0x12b   : > { %v1083_v26 = vpack.c.bf16 %v1030_v24, %v1029_v22  ;;  %v731_v27 = vadd.f32 %v2146_v25, %v2475_v44  ;;  %v722_v28 = vpop.f32.mrb[25].mxu0 }
 0x12c   : > { %v723_v29 = vadd.f32 %v2475_v44, %v722_v28  ;;  %v2147_v30 = vpop.f32.mrb[26].mxu0 }
 0x12d   : > { %v971_v31 = vmul.f32 0.2, %v731_v27  ;;  %v734_v32 = vadd.f32 %v2147_v30, %v2475_v44  ;;  %v725_v33 = vpop.f32.mrb[27].mxu0  ;;  %2212 = vmatprep.mubr.msk.bf16.mxu1 %vm1144_vm4, %v1083_v26  ;;  %vm907_vm10 = vcmp.ge.f32.partialorder %v731_v27, 0.0 }
 0x12e   : > { %v969_v34 = vmul.f32 0.2, %v723_v29  ;;  %v726_v35 = vadd.f32 %v2475_v44, %v725_v33  ;;  %2213 = vmatmul.mubr.msk.bf16.gmra.mrb[20].mxu1 %vm1144_vm4, %v1084_v23  ;;  %vm905_vm11 = vcmp.ge.f32.partialorder %v723_v29, 0.0 }
 0x12f   : > { %vm908_vm12 = vcmp.ge.f32.partialorder %v734_v32, 0.0  ;;  %v972_v36 = vmul.f32 0.2, %v734_v32  ;;  %v1035_v38 = vsel %vm907_vm10, %v731_v27, %v971_v31 }
 0x130   : > { %vm906_vm13 = vcmp.ge.f32.partialorder %v726_v35, 0.0  ;;  %v970_v37 = vmul.f32 0.2, %v726_v35  ;;  %v1033_v40 = vsel %vm905_vm11, %v723_v29, %v969_v34 }
 0x131   : > { %v1036_v39 = vsel %vm908_vm12, %v734_v32, %v972_v36 }
 0x132   : > { %v1086_v41 = vpack.c.bf16 %v1036_v39, %v1035_v38  ;;  %v1034_v42 = vsel %vm906_vm13, %v726_v35, %v970_v37  ;;  %v2150_v43 = vpop.f32.mrb[28].mxu0 }
 0x133   : > { %v1085_v45 = vpack.c.bf16 %v1034_v42, %v1033_v40  ;;  %v747_v46 = vadd.f32 %v2150_v43, %v2475_v44  ;;  %v738_v47 = vpop.f32.mrb[29].mxu0 }
 0x134   : > { %v739_v48 = vadd.f32 %v2475_v44, %v738_v47  ;;  %v2151_v49 = vpop.f32.mrb[30].mxu0 }
 0x135   : > { %v975_v50 = vmul.f32 0.2, %v747_v46  ;;  %v750_v51 = vadd.f32 %v2151_v49, %v2475_v44  ;;  %v741_v52 = vpop.f32.mrb[31].mxu0  ;;  %2216 = vmatprep.mubr.msk.bf16.mxu1 %vm1144_vm4, %v1085_v45  ;;  %vm911_vm14 = vcmp.ge.f32.partialorder %v747_v46, 0.0 }
 0x136   : > { %v973_v53 = vmul.f32 0.2, %v739_v48  ;;  %v742_v54 = vadd.f32 %v2475_v44, %v741_v52  ;;  %2217 = vmatmul.mubr.msk.bf16.gmra.mrb[24].mxu1 %vm1144_vm4, %v1086_v41  ;;  %vm909_vm15 = vcmp.ge.f32.partialorder %v739_v48, 0.0 }
 0x137   : > { %vm912_vm0 = vcmp.ge.f32.partialorder %v750_v51, 0.0  ;;  %v976_v55 = vmul.f32 0.2, %v750_v51  ;;  %v1039_v57 = vsel %vm911_vm14, %v747_v46, %v975_v50 }
 0x138   : > { %vm910_vm1 = vcmp.ge.f32.partialorder %v742_v54, 0.0  ;;  %v974_v56 = vmul.f32 0.2, %v742_v54  ;;  %v1037_v59 = vsel %vm909_vm15, %v739_v48, %v973_v53 }
 0x139   : > { %v1040_v58 = vsel %vm912_vm0, %v750_v51, %v976_v55 }
 0x13a   : > { %v1088_v60 = vpack.c.bf16 %v1040_v58, %v1039_v57  ;;  %v1038_v61 = vsel %vm910_vm1, %v742_v54, %v974_v56  ;;  %v2154_v62 = vpop.f32.mrb[32].mxu0 }
 0x13b   : > { %v1087_v63 = vpack.c.bf16 %v1038_v61, %v1037_v59  ;;  %v763_v0 = vadd.f32 %v2154_v62, %v2475_v44  ;;  %v754_v1 = vpop.f32.mrb[33].mxu0 }
 0x13c   : > { %v755_v2 = vadd.f32 %v2475_v44, %v754_v1  ;;  %v2155_v3 = vpop.f32.mrb[34].mxu0 }
 0x13d   : > { %v979_v4 = vmul.f32 0.2, %v763_v0  ;;  %v766_v5 = vadd.f32 %v2155_v3, %v2475_v44  ;;  %v757_v6 = vpop.f32.mrb[35].mxu0  ;;  %2220 = vmatprep.mubr.msk.bf16.mxu1 %vm1144_vm4, %v1087_v63  ;;  %vm915_vm2 = vcmp.ge.f32.partialorder %v763_v0, 0.0 }
 0x13e   : > { %v977_v7 = vmul.f32 0.2, %v755_v2  ;;  %v758_v8 = vadd.f32 %v2475_v44, %v757_v6  ;;  %2221 = vmatmul.mubr.msk.bf16.gmra.mrb[28].mxu1 %vm1144_vm4, %v1088_v60  ;;  %vm913_vm3 = vcmp.ge.f32.partialorder %v755_v2, 0.0 }
 0x13f   : > { %vm916_vm5 = vcmp.ge.f32.partialorder %v766_v5, 0.0  ;;  %v980_v9 = vmul.f32 0.2, %v766_v5  ;;  %v1043_v11 = vsel %vm915_vm2, %v763_v0, %v979_v4 }
 0x140   : > { %vm914_vm6 = vcmp.ge.f32.partialorder %v758_v8, 0.0  ;;  %v978_v10 = vmul.f32 0.2, %v758_v8  ;;  %v1041_v13 = vsel %vm913_vm3, %v755_v2, %v977_v7 }
 0x141   : > { %v1044_v12 = vsel %vm916_vm5, %v766_v5, %v980_v9 }
 0x142   : > { %v1090_v14 = vpack.c.bf16 %v1044_v12, %v1043_v11  ;;  %v1042_v15 = vsel %vm914_vm6, %v758_v8, %v978_v10  ;;  %v2158_v16 = vpop.f32.mrb[36].mxu0 }
 0x143   : > { %v1089_v17 = vpack.c.bf16 %v1042_v15, %v1041_v13  ;;  %v779_v18 = vadd.f32 %v2158_v16, %v2475_v44  ;;  %v770_v19 = vpop.f32.mrb[37].mxu0 }
 0x144   : > { %v771_v20 = vadd.f32 %v2475_v44, %v770_v19  ;;  %v2159_v21 = vpop.f32.mrb[38].mxu0 }
 0x145   : > { %v983_v22 = vmul.f32 0.2, %v779_v18  ;;  %v782_v23 = vadd.f32 %v2159_v21, %v2475_v44  ;;  %v773_v24 = vpop.f32.mrb[39].mxu0  ;;  %2224 = vmatprep.mubr.msk.bf16.mxu1 %vm1144_vm4, %v1089_v17  ;;  %vm919_vm7 = vcmp.ge.f32.partialorder %v779_v18, 0.0 }
 0x146   : > { %v981_v25 = vmul.f32 0.2, %v771_v20  ;;  %v774_v26 = vadd.f32 %v2475_v44, %v773_v24  ;;  %2225 = vmatmul.mubr.msk.bf16.gmra.mrb[32].mxu1 %vm1144_vm4, %v1090_v14  ;;  %vm917_vm8 = vcmp.ge.f32.partialorder %v771_v20, 0.0 }
 0x147   : > { %vm920_vm9 = vcmp.ge.f32.partialorder %v782_v23, 0.0  ;;  %v984_v27 = vmul.f32 0.2, %v782_v23  ;;  %v1047_v29 = vsel %vm919_vm7, %v779_v18, %v983_v22 }
 0x148   : > { %vm918_vm10 = vcmp.ge.f32.partialorder %v774_v26, 0.0  ;;  %v982_v28 = vmul.f32 0.2, %v774_v26  ;;  %v1045_v31 = vsel %vm917_vm8, %v771_v20, %v981_v25 }
 0x149   : > { %v1048_v30 = vsel %vm920_vm9, %v782_v23, %v984_v27 }
 0x14a   : > { %v1092_v32 = vpack.c.bf16 %v1048_v30, %v1047_v29  ;;  %v1046_v33 = vsel %vm918_vm10, %v774_v26, %v982_v28  ;;  %v2162_v34 = vpop.f32.mrb[40].mxu0 }
 0x14b   : > { %v1091_v35 = vpack.c.bf16 %v1046_v33, %v1045_v31  ;;  %v795_v36 = vadd.f32 %v2162_v34, %v2475_v44  ;;  %v786_v37 = vpop.f32.mrb[41].mxu0 }
 0x14c   : > { %v787_v38 = vadd.f32 %v2475_v44, %v786_v37  ;;  %v2163_v39 = vpop.f32.mrb[42].mxu0 }
 0x14d   : > { %v987_v40 = vmul.f32 0.2, %v795_v36  ;;  %v798_v41 = vadd.f32 %v2163_v39, %v2475_v44  ;;  %v789_v42 = vpop.f32.mrb[43].mxu0  ;;  %2228 = vmatprep.mubr.msk.bf16.mxu1 %vm1144_vm4, %v1091_v35  ;;  %vm923_vm11 = vcmp.ge.f32.partialorder %v795_v36, 0.0 }
 0x14e   : > { %v985_v43 = vmul.f32 0.2, %v787_v38  ;;  %v790_v45 = vadd.f32 %v2475_v44, %v789_v42  ;;  %2229 = vmatmul.mubr.msk.bf16.gmra.mrb[36].mxu1 %vm1144_vm4, %v1092_v32  ;;  %vm921_vm12 = vcmp.ge.f32.partialorder %v787_v38, 0.0 }
 0x14f   : > { %vm924_vm13 = vcmp.ge.f32.partialorder %v798_v41, 0.0  ;;  %v988_v46 = vmul.f32 0.2, %v798_v41  ;;  %v1051_v48 = vsel %vm923_vm11, %v795_v36, %v987_v40 }
 0x150   : > { %vm922_vm14 = vcmp.ge.f32.partialorder %v790_v45, 0.0  ;;  %v986_v47 = vmul.f32 0.2, %v790_v45  ;;  %v1049_v50 = vsel %vm921_vm12, %v787_v38, %v985_v43 }
 0x151   : > { %v1052_v49 = vsel %vm924_vm13, %v798_v41, %v988_v46 }
 0x152   : > { %v1094_v51 = vpack.c.bf16 %v1052_v49, %v1051_v48  ;;  %v1050_v52 = vsel %vm922_vm14, %v790_v45, %v986_v47  ;;  %v2166_v53 = vpop.f32.mrb[44].mxu0 }
 0x153   : > { %v1093_v54 = vpack.c.bf16 %v1050_v52, %v1049_v50  ;;  %v811_v55 = vadd.f32 %v2166_v53, %v2475_v44  ;;  %v802_v56 = vpop.f32.mrb[45].mxu0 }
 0x154   : > { %v803_v57 = vadd.f32 %v2475_v44, %v802_v56  ;;  %v2167_v58 = vpop.f32.mrb[46].mxu0 }
 0x155   : > { %v991_v59 = vmul.f32 0.2, %v811_v55  ;;  %v814_v60 = vadd.f32 %v2167_v58, %v2475_v44  ;;  %v805_v61 = vpop.f32.mrb[47].mxu0  ;;  %2232 = vmatprep.mubr.msk.bf16.mxu1 %vm1144_vm4, %v1093_v54  ;;  %vm927_vm15 = vcmp.ge.f32.partialorder %v811_v55, 0.0 }
 0x156   : > { %v989_v62 = vmul.f32 0.2, %v803_v57  ;;  %v806_v63 = vadd.f32 %v2475_v44, %v805_v61  ;;  %2233 = vmatmul.mubr.msk.bf16.gmra.mrb[40].mxu1 %vm1144_vm4, %v1094_v51  ;;  %vm925_vm0 = vcmp.ge.f32.partialorder %v803_v57, 0.0 }
 0x157   : > { %vm928_vm1 = vcmp.ge.f32.partialorder %v814_v60, 0.0  ;;  %v992_v0 = vmul.f32 0.2, %v814_v60  ;;  %v1055_v2 = vsel %vm927_vm15, %v811_v55, %v991_v59 }
 0x158   : > { %vm926_vm2 = vcmp.ge.f32.partialorder %v806_v63, 0.0  ;;  %v990_v1 = vmul.f32 0.2, %v806_v63  ;;  %v1053_v4 = vsel %vm925_vm0, %v803_v57, %v989_v62 }
 0x159   : > { %v1056_v3 = vsel %vm928_vm1, %v814_v60, %v992_v0 }
 0x15a   : > { %v1096_v5 = vpack.c.bf16 %v1056_v3, %v1055_v2  ;;  %v1054_v6 = vsel %vm926_vm2, %v806_v63, %v990_v1  ;;  %v2170_v7 = vpop.f32.mrb[48].mxu0 }
 0x15b   : > { %v1095_v8 = vpack.c.bf16 %v1054_v6, %v1053_v4  ;;  %v827_v9 = vadd.f32 %v2170_v7, %v2475_v44  ;;  %v818_v10 = vpop.f32.mrb[49].mxu0 }
 0x15c   : > { %v819_v11 = vadd.f32 %v2475_v44, %v818_v10  ;;  %v2171_v12 = vpop.f32.mrb[50].mxu0 }
 0x15d   : > { %v995_v13 = vmul.f32 0.2, %v827_v9  ;;  %v830_v14 = vadd.f32 %v2171_v12, %v2475_v44  ;;  %v821_v15 = vpop.f32.mrb[51].mxu0  ;;  %2236 = vmatprep.mubr.msk.bf16.mxu1 %vm1144_vm4, %v1095_v8  ;;  %vm931_vm3 = vcmp.ge.f32.partialorder %v827_v9, 0.0 }
 0x15e   : > { %v993_v16 = vmul.f32 0.2, %v819_v11  ;;  %v822_v17 = vadd.f32 %v2475_v44, %v821_v15  ;;  %2237 = vmatmul.mubr.msk.bf16.gmra.mrb[44].mxu1 %vm1144_vm4, %v1096_v5  ;;  %vm929_vm5 = vcmp.ge.f32.partialorder %v819_v11, 0.0 }
 0x15f   : > { %vm932_vm6 = vcmp.ge.f32.partialorder %v830_v14, 0.0  ;;  %v996_v18 = vmul.f32 0.2, %v830_v14  ;;  %v1059_v20 = vsel %vm931_vm3, %v827_v9, %v995_v13 }
 0x160   : > { %vm930_vm7 = vcmp.ge.f32.partialorder %v822_v17, 0.0  ;;  %v994_v19 = vmul.f32 0.2, %v822_v17  ;;  %v1057_v22 = vsel %vm929_vm5, %v819_v11, %v993_v16 }
 0x161   : > { %v1060_v21 = vsel %vm932_vm6, %v830_v14, %v996_v18 }
 0x162   : > { %v1098_v23 = vpack.c.bf16 %v1060_v21, %v1059_v20  ;;  %v1058_v24 = vsel %vm930_vm7, %v822_v17, %v994_v19  ;;  %v2174_v25 = vpop.f32.mrb[52].mxu0 }
 0x163   : > { %v1097_v26 = vpack.c.bf16 %v1058_v24, %v1057_v22  ;;  %v843_v27 = vadd.f32 %v2174_v25, %v2475_v44  ;;  %v834_v28 = vpop.f32.mrb[53].mxu0 }
 0x164   : > { %v835_v29 = vadd.f32 %v2475_v44, %v834_v28  ;;  %v2175_v30 = vpop.f32.mrb[54].mxu0 }
 0x165   : > { %v999_v31 = vmul.f32 0.2, %v843_v27  ;;  %v846_v32 = vadd.f32 %v2175_v30, %v2475_v44  ;;  %v837_v33 = vpop.f32.mrb[55].mxu0  ;;  %2240 = vmatprep.mubr.msk.bf16.mxu1 %vm1144_vm4, %v1097_v26  ;;  %vm935_vm8 = vcmp.ge.f32.partialorder %v843_v27, 0.0 }
 0x166   : > { %v997_v34 = vmul.f32 0.2, %v835_v29  ;;  %v838_v35 = vadd.f32 %v2475_v44, %v837_v33  ;;  %2241 = vmatmul.mubr.msk.bf16.gmra.mrb[48].mxu1 %vm1144_vm4, %v1098_v23  ;;  %vm933_vm9 = vcmp.ge.f32.partialorder %v835_v29, 0.0 }
 0x167   : > { %vm936_vm10 = vcmp.ge.f32.partialorder %v846_v32, 0.0  ;;  %v1000_v36 = vmul.f32 0.2, %v846_v32  ;;  %v1063_v38 = vsel %vm935_vm8, %v843_v27, %v999_v31 }
 0x168   : > { %vm934_vm11 = vcmp.ge.f32.partialorder %v838_v35, 0.0  ;;  %v998_v37 = vmul.f32 0.2, %v838_v35  ;;  %v1061_v40 = vsel %vm933_vm9, %v835_v29, %v997_v34 }
 0x169   : > { %v1064_v39 = vsel %vm936_vm10, %v846_v32, %v1000_v36 }
 0x16a   : > { %v1100_v41 = vpack.c.bf16 %v1064_v39, %v1063_v38  ;;  %v1062_v42 = vsel %vm934_vm11, %v838_v35, %v998_v37  ;;  %v2178_v43 = vpop.f32.mrb[56].mxu0 }
 0x16b   : > { %v1099_v45 = vpack.c.bf16 %v1062_v42, %v1061_v40  ;;  %v859_v46 = vadd.f32 %v2178_v43, %v2475_v44  ;;  %v850_v47 = vpop.f32.mrb[57].mxu0 }
 0x16c   : > { %v851_v48 = vadd.f32 %v2475_v44, %v850_v47  ;;  %v2179_v49 = vpop.f32.mrb[58].mxu0 }
 0x16d   : > { %v1003_v50 = vmul.f32 0.2, %v859_v46  ;;  %v862_v51 = vadd.f32 %v2179_v49, %v2475_v44  ;;  %v853_v52 = vpop.f32.mrb[59].mxu0  ;;  %2244 = vmatprep.mubr.msk.bf16.mxu1 %vm1144_vm4, %v1099_v45  ;;  %vm939_vm12 = vcmp.ge.f32.partialorder %v859_v46, 0.0 }
 0x16e   : > { %v1001_v53 = vmul.f32 0.2, %v851_v48  ;;  %v854_v54 = vadd.f32 %v2475_v44, %v853_v52  ;;  %2245 = vmatmul.mubr.msk.bf16.gmra.mrb[52].mxu1 %vm1144_vm4, %v1100_v41  ;;  %vm937_vm13 = vcmp.ge.f32.partialorder %v851_v48, 0.0 }
 0x16f   : > { %vm940_vm14 = vcmp.ge.f32.partialorder %v862_v51, 0.0  ;;  %v1004_v55 = vmul.f32 0.2, %v862_v51  ;;  %v1067_v57 = vsel %vm939_vm12, %v859_v46, %v1003_v50 }
 0x170   : > { %vm938_vm15 = vcmp.ge.f32.partialorder %v854_v54, 0.0  ;;  %v1002_v56 = vmul.f32 0.2, %v854_v54  ;;  %v1065_v59 = vsel %vm937_vm13, %v851_v48, %v1001_v53 }
 0x171   : > { %v1068_v58 = vsel %vm940_vm14, %v862_v51, %v1004_v55 }
 0x172   : > { %v1102_v60 = vpack.c.bf16 %v1068_v58, %v1067_v57  ;;  %v1066_v61 = vsel %vm938_vm15, %v854_v54, %v1002_v56  ;;  %v2182_v62 = vpop.f32.mrb[60].mxu0 }
 0x173   : > { %v1101_v63 = vpack.c.bf16 %v1066_v61, %v1065_v59  ;;  %v875_v0 = vadd.f32 %v2182_v62, %v2475_v44  ;;  %v866_v1 = vpop.f32.mrb[61].mxu0 }
 0x174   : > { %v867_v2 = vadd.f32 %v2475_v44, %v866_v1  ;;  %v2183_v3 = vpop.f32.mrb[62].mxu0 }
 0x175   : > { %v1007_v4 = vmul.f32 0.2, %v875_v0  ;;  %v878_v5 = vadd.f32 %v2183_v3, %v2475_v44  ;;  %v869_v6 = vpop.f32.mrb[63].mxu0  ;;  %2248 = vmatprep.mubr.msk.bf16.mxu1 %vm1144_vm4, %v1101_v63  ;;  %vm943_vm0 = vcmp.ge.f32.partialorder %v875_v0, 0.0 }
 0x176   : > { %v1005_v7 = vmul.f32 0.2, %v867_v2  ;;  %v870_v8 = vadd.f32 %v2475_v44, %v869_v6  ;;  %2249 = vmatmul.mubr.msk.bf16.gmra.mrb[56].mxu1 %vm1144_vm4, %v1102_v60  ;;  %vm941_vm1 = vcmp.ge.f32.partialorder %v867_v2, 0.0  ;;  %v2576_v44 = vld [vmem:[%s2860_s4] ss:$0 sm:$0xff] }
 0x177   : > { %vm944_vm2 = vcmp.ge.f32.partialorder %v878_v5, 0.0  ;;  %v1008_v9 = vmul.f32 0.2, %v878_v5  ;;  %v1071_v11 = vsel %vm943_vm0, %v875_v0, %v1007_v4 }
 0x178   : > { %vm942_vm3 = vcmp.ge.f32.partialorder %v870_v8, 0.0  ;;  %v1006_v10 = vmul.f32 0.2, %v870_v8  ;;  %v1069_v13 = vsel %vm941_vm1, %v867_v2, %v1005_v7 }
 0x179   : > { %v1072_v12 = vsel %vm944_vm2, %v878_v5, %v1008_v9 }
 0x17a   : > { %v1104_v14 = vpack.c.bf16 %v1072_v12, %v1071_v11  ;;  %v1070_v15 = vsel %vm942_vm3, %v870_v8, %v1006_v10 }
 0x17b   : > { %v1103_v16 = vpack.c.bf16 %v1070_v15, %v1069_v13 }
 0x17d   : > { %2252 = vmatprep.mubr.msk.bf16.mxu1 %vm1144_vm4, %v1103_v16 }
 0x17e   : > { %2253 = vmatmul.mubr.msk.bf16.gmra.mrb[60].mxu1 %vm1144_vm4, %v1104_v14 }
 0x1d9   : > { %v2194_v17 = vpop.f32.mrb[0].mxu1 }
 0x1da   : > { %v1275_v18 = vpop.f32.mrb[1].mxu1  ;;  %v1284_v21 = vadd.f32 %v2194_v17, %v2576_v44 }
 0x1db   : > { %v2195_v19 = vpop.f32.mrb[2].mxu1  ;;  %v1276_v22 = vadd.f32 %v2576_v44, %v1275_v18 }
 0x1dc   : > { %v1278_v20 = vpop.f32.mrb[3].mxu1  ;;  %v1287_v23 = vadd.f32 %v2195_v19, %v2576_v44  ;;  %vm1532_vm5 = vcmp.ge.f32.partialorder %v1284_v21, 0.0  ;;  %v1596_v26 = vmul.f32 0.2, %v1284_v21 }
 0x1dd   : > { %v1279_v24 = vadd.f32 %v2576_v44, %v1278_v20  ;;  %v1594_v27 = vmul.f32 0.2, %v1276_v22  ;;  %vm1530_vm6 = vcmp.ge.f32.partialorder %v1276_v22, 0.0 }
 0x1de   : > { %v1597_v29 = vmul.f32 0.2, %v1287_v23  ;;  %vm1533_vm7 = vcmp.ge.f32.partialorder %v1287_v23, 0.0  ;;  %v1660_v33 = vsel %vm1532_vm5, %v1284_v21, %v1596_v26 }
 0x1df   : > { %v1595_v30 = vmul.f32 0.2, %v1279_v24  ;;  %vm1531_vm8 = vcmp.ge.f32.partialorder %v1279_v24, 0.0  ;;  %v1658_v34 = vsel %vm1530_vm6, %v1276_v22, %v1594_v27  ;;  %v2585_v39 = vsel %vm1144_vm4, %v1660_v33, -inf }
 0x1e0   : > { %v1661_v36 = vsel %vm1533_vm7, %v1287_v23, %v1597_v29  ;;  %v2588_v40 = vsel %vm1144_vm4, %v1658_v34, -inf }
 0x1e1   : > { %v2198_v25 = vpop.f32.mrb[4].mxu1  ;;  %v1659_v37 = vsel %vm1531_vm8, %v1279_v24, %v1595_v30  ;;  %v2591_v42 = vsel %vm1144_vm4, %v1661_v36, -inf }
 0x1e2   : > { %v1291_v28 = vpop.f32.mrb[5].mxu1  ;;  %v1300_v35 = vadd.f32 %v2198_v25, %v2576_v44  ;;  %v2594_v43 = vsel %vm1144_vm4, %v1659_v37, -inf }
 0x1e3   : > { %v2199_v31 = vpop.f32.mrb[6].mxu1  ;;  %v1292_v38 = vadd.f32 %v2576_v44, %v1291_v28 }
 0x1e4   : > { %v1294_v32 = vpop.f32.mrb[7].mxu1  ;;  %v1600_v45 = vmul.f32 0.2, %v1300_v35  ;;  %vm1536_vm9 = vcmp.ge.f32.partialorder %v1300_v35, 0.0  ;;  %v1303_v48 = vadd.f32 %v2199_v31, %v2576_v44 }
 0x1e5   : > { %vm1534_vm10 = vcmp.ge.f32.partialorder %v1292_v38, 0.0  ;;  %v1598_v51 = vmul.f32 0.2, %v1292_v38  ;;  %v1295_v55 = vadd.f32 %v2576_v44, %v1294_v32 }
 0x1e6   : > { %v1664_v58 = vsel %vm1536_vm9, %v1300_v35, %v1600_v45  ;;  %vm1537_vm15 = vcmp.ge.f32.partialorder %v1303_v48, 0.0  ;;  %v1601_v3 = vmul.f32 0.2, %v1303_v48 }
 0x1e7   : > { %v1599_v8 = vmul.f32 0.2, %v1295_v55  ;;  %v2622_v13 = vsel %vm1144_vm4, %v1664_v58, -inf  ;;  %vm1535_vm0 = vcmp.ge.f32.partialorder %v1295_v55, 0.0  ;;  %v1662_v17 = vsel %vm1534_vm10, %v1292_v38, %v1598_v51 }
 0x1e8   : > { %v1665_v21 = vsel %vm1537_vm15, %v1303_v48, %v1601_v3  ;;  %v2635_v30 = vsel %vm1144_vm4, %v1662_v17, -inf }
 0x1e9   : > { %v2202_v41 = vpop.f32.mrb[8].mxu1  ;;  %v1663_v24 = vsel %vm1535_vm0, %v1295_v55, %v1599_v8  ;;  %v2641_v34 = vsel %vm1144_vm4, %v1665_v21, -inf }
 0x1ea   : > { %v1316_v46 = vadd.f32 %v2202_v41, %v2576_v44  ;;  %v1307_v47 = vpop.f32.mrb[9].mxu1  ;;  %v1797_v41 = vsel %vm1144_vm4, %v1663_v24, -inf }
 0x1eb   : > { %v1308_v49 = vadd.f32 %v2576_v44, %v1307_v47  ;;  %v2203_v50 = vpop.f32.mrb[10].mxu1 }
 0x1ec   : > { %vm1540_vm11 = vcmp.ge.f32.partialorder %v1316_v46, 0.0  ;;  %v1604_v52 = vmul.f32 0.2, %v1316_v46  ;;  %v1319_v53 = vadd.f32 %v2203_v50, %v2576_v44  ;;  %v1310_v54 = vpop.f32.mrb[11].mxu1 }
 0x1ed   : > { %vm1538_vm12 = vcmp.ge.f32.partialorder %v1308_v49, 0.0  ;;  %v1602_v56 = vmul.f32 0.2, %v1308_v49  ;;  %v1311_v57 = vadd.f32 %v2576_v44, %v1310_v54 }
 0x1ee   : > { %v1668_v59 = vsel %vm1540_vm11, %v1316_v46, %v1604_v52  ;;  %vm1541_vm13 = vcmp.ge.f32.partialorder %v1319_v53, 0.0  ;;  %v1605_v60 = vmul.f32 0.2, %v1319_v53 }
 0x1ef   : > { %v2603_v61 = vsel %vm1144_vm4, %v1668_v59, -inf  ;;  %v1666_v62 = vsel %vm1538_vm12, %v1308_v49, %v1602_v56  ;;  %vm1539_vm14 = vcmp.ge.f32.partialorder %v1311_v57, 0.0  ;;  %v1603_v63 = vmul.f32 0.2, %v1311_v57 }
 0x1f0   : > { %v1754_v0 = vmax.f32 %v2585_v39, %v2603_v61  ;;  %v2608_v1 = vsel %vm1144_vm4, %v1666_v62, -inf  ;;  %v1669_v2 = vsel %vm1541_vm13, %v1319_v53, %v1605_v60 }
 0x1f1   : > { %v1724_v4 = vmax.f32 %v2588_v40, %v2608_v1  ;;  %v2613_v5 = vsel %vm1144_vm4, %v1669_v2, -inf  ;;  %v1667_v6 = vsel %vm1539_vm14, %v1311_v57, %v1603_v63  ;;  %v2206_v7 = vpop.f32.mrb[12].mxu1 }
 0x1f2   : > { %v1769_v9 = vmax.f32 %v2591_v42, %v2613_v5  ;;  %v2618_v10 = vsel %vm1144_vm4, %v1667_v6, -inf  ;;  %v1332_v11 = vadd.f32 %v2206_v7, %v2576_v44  ;;  %v1323_v12 = vpop.f32.mrb[13].mxu1 }
 0x1f3   : > { %v1739_v14 = vmax.f32 %v2594_v43, %v2618_v10  ;;  %v1324_v15 = vadd.f32 %v2576_v44, %v1323_v12  ;;  %v2207_v16 = vpop.f32.mrb[14].mxu1 }
 0x1f4   : > { %vm1544_vm1 = vcmp.ge.f32.partialorder %v1332_v11, 0.0  ;;  %v1608_v18 = vmul.f32 0.2, %v1332_v11  ;;  %v1335_v19 = vadd.f32 %v2207_v16, %v2576_v44  ;;  %v1326_v20 = vpop.f32.mrb[15].mxu1 }
 0x1f5   : > { %vm1542_vm2 = vcmp.ge.f32.partialorder %v1324_v15, 0.0  ;;  %v1606_v22 = vmul.f32 0.2, %v1324_v15  ;;  %v1327_v23 = vadd.f32 %v2576_v44, %v1326_v20 }
 0x1f6   : > { %v1672_v25 = vsel %vm1544_vm1, %v1332_v11, %v1608_v18  ;;  %vm1545_vm3 = vcmp.ge.f32.partialorder %v1335_v19, 0.0  ;;  %v1609_v26 = vmul.f32 0.2, %v1335_v19 }
 0x1f7   : > { %v2632_v27 = vsel %vm1144_vm4, %v1672_v25, -inf  ;;  %v1670_v28 = vsel %vm1542_vm2, %v1324_v15, %v1606_v22  ;;  %vm1543_vm5 = vcmp.ge.f32.partialorder %v1327_v23, 0.0  ;;  %v1607_v29 = vmul.f32 0.2, %v1327_v23 }
 0x1f8   : > { %v1814_v31 = vmax.f32 %v2622_v13, %v2632_v27  ;;  %v1783_v32 = vsel %vm1144_vm4, %v1670_v28, -inf  ;;  %v1673_v33 = vsel %vm1545_vm3, %v1335_v19, %v1609_v26 }
 0x1f9   : > { %v1784_v35 = vmax.f32 %v2635_v30, %v1783_v32  ;;  %v1828_v36 = vsel %vm1144_vm4, %v1673_v33, -inf  ;;  %v1671_v37 = vsel %vm1543_vm5, %v1327_v23, %v1607_v29  ;;  %v2210_v38 = vpop.f32.mrb[16].mxu1 }
 0x1fa   : > { %v1829_v43 = vmax.f32 %v2641_v34, %v1828_v36  ;;  %v1798_v45 = vsel %vm1144_vm4, %v1671_v37, -inf  ;;  %v1348_v46 = vadd.f32 %v2210_v38, %v2576_v44  ;;  %v1339_v47 = vpop.f32.mrb[17].mxu1 }
 0x1fb   : > { %v1799_v48 = vmax.f32 %v1797_v41, %v1798_v45  ;;  %v1340_v49 = vadd.f32 %v2576_v44, %v1339_v47  ;;  %v2211_v50 = vpop.f32.mrb[18].mxu1 }
 0x1fc   : > { %vm1548_vm6 = vcmp.ge.f32.partialorder %v1348_v46, 0.0  ;;  %v1612_v51 = vmul.f32 0.2, %v1348_v46  ;;  %v1351_v52 = vadd.f32 %v2211_v50, %v2576_v44  ;;  %v1342_v53 = vpop.f32.mrb[19].mxu1 }
 0x1fd   : > { %vm1546_vm7 = vcmp.ge.f32.partialorder %v1340_v49, 0.0  ;;  %v1610_v54 = vmul.f32 0.2, %v1340_v49  ;;  %v1343_v55 = vadd.f32 %v2576_v44, %v1342_v53 }
 0x1fe   : > { %v1676_v56 = vsel %vm1548_vm6, %v1348_v46, %v1612_v51  ;;  %vm1549_vm8 = vcmp.ge.f32.partialorder %v1351_v52, 0.0  ;;  %v1613_v57 = vmul.f32 0.2, %v1351_v52 }
 0x1ff   : > { %v1755_v58 = vsel %vm1144_vm4, %v1676_v56, -inf  ;;  %v1674_v59 = vsel %vm1546_vm7, %v1340_v49, %v1610_v54  ;;  %vm1547_vm9 = vcmp.ge.f32.partialorder %v1343_v55, 0.0  ;;  %v1611_v60 = vmul.f32 0.2, %v1343_v55 }
 0x200   : > { %v2656_v62 = vmax.f32 %v1754_v0, %v1755_v58  ;;  %v1725_v63 = vsel %vm1144_vm4, %v1674_v59, -inf  ;;  %v1677_v2 = vsel %vm1549_vm8, %v1351_v52, %v1613_v57 }
 0x201   : > { %v2662_v3 = vmax.f32 %v1724_v4, %v1725_v63  ;;  %v1770_v6 = vsel %vm1144_vm4, %v1677_v2, -inf  ;;  %v1675_v7 = vsel %vm1547_vm9, %v1343_v55, %v1611_v60  ;;  %v2214_v8 = vpop.f32.mrb[20].mxu1 }
 0x202   : > { %v2668_v10 = vmax.f32 %v1769_v9, %v1770_v6  ;;  %v1740_v39 = vsel %vm1144_vm4, %v1675_v7, -inf  ;;  %v1364_v61 = vadd.f32 %v2214_v8, %v2576_v44  ;;  %v1355_v0 = vpop.f32.mrb[21].mxu1 }
 0x203   : > { %v2672_v11 = vmax.f32 %v1739_v14, %v1740_v39  ;;  %v1356_v40 = vadd.f32 %v2576_v44, %v1355_v0  ;;  %v2215_v1 = vpop.f32.mrb[22].mxu1 }
 0x204   : > { %vm1552_vm10 = vcmp.ge.f32.partialorder %v1364_v61, 0.0  ;;  %v1616_v4 = vmul.f32 0.2, %v1364_v61  ;;  %v1367_v12 = vadd.f32 %v2215_v1, %v2576_v44  ;;  %v1358_v13 = vpop.f32.mrb[23].mxu1 }
 0x205   : > { %vm1550_vm11 = vcmp.ge.f32.partialorder %v1356_v40, 0.0  ;;  %v1614_v15 = vmul.f32 0.2, %v1356_v40  ;;  %v1359_v42 = vadd.f32 %v2576_v44, %v1358_v13 }
 0x206   : > { %v1680_v5 = vsel %vm1552_vm10, %v1364_v61, %v1616_v4  ;;  %vm1553_vm12 = vcmp.ge.f32.partialorder %v1367_v12, 0.0  ;;  %v1617_v9 = vmul.f32 0.2, %v1367_v12 }
 0x207   : > { %v1815_v16 = vsel %vm1144_vm4, %v1680_v5, -inf  ;;  %v1678_v17 = vsel %vm1550_vm11, %v1356_v40, %v1614_v15  ;;  %vm1551_vm13 = vcmp.ge.f32.partialorder %v1359_v42, 0.0  ;;  %v1615_v14 = vmul.f32 0.2, %v1359_v42 }
 0x208   : > { %v2678_v18 = vmax.f32 %v1814_v31, %v1815_v16  ;;  %v1785_v19 = vsel %vm1144_vm4, %v1678_v17, -inf  ;;  %v1681_v20 = vsel %vm1553_vm12, %v1367_v12, %v1617_v9 }
 0x209   : > { %v2681_v21 = vmax.f32 %v1784_v35, %v1785_v19  ;;  %v1830_v22 = vsel %vm1144_vm4, %v1681_v20, -inf  ;;  %v1679_v23 = vsel %vm1551_vm13, %v1359_v42, %v1615_v14  ;;  %v2218_v24 = vpop.f32.mrb[24].mxu1 }
 0x20a   : > { %v2684_v25 = vmax.f32 %v1829_v43, %v1830_v22  ;;  %v1800_v26 = vsel %vm1144_vm4, %v1679_v23, -inf  ;;  %v1380_v27 = vadd.f32 %v2218_v24, %v2576_v44  ;;  %v1371_v28 = vpop.f32.mrb[25].mxu1 }
 0x20b   : > { %v2688_v29 = vmax.f32 %v1799_v48, %v1800_v26  ;;  %v1372_v30 = vadd.f32 %v2576_v44, %v1371_v28  ;;  %v2219_v31 = vpop.f32.mrb[26].mxu1 }
 0x20c   : > { %vm1556_vm14 = vcmp.ge.f32.partialorder %v1380_v27, 0.0  ;;  %v1620_v32 = vmul.f32 0.2, %v1380_v27  ;;  %v1383_v33 = vadd.f32 %v2219_v31, %v2576_v44  ;;  %v1374_v34 = vpop.f32.mrb[27].mxu1 }
 0x20d   : > { %vm1554_vm15 = vcmp.ge.f32.partialorder %v1372_v30, 0.0  ;;  %v1618_v35 = vmul.f32 0.2, %v1372_v30  ;;  %v1375_v36 = vadd.f32 %v2576_v44, %v1374_v34 }
 0x20e   : > { %v1684_v37 = vsel %vm1556_vm14, %v1380_v27, %v1620_v32  ;;  %vm1557_vm0 = vcmp.ge.f32.partialorder %v1383_v33, 0.0  ;;  %v1621_v38 = vmul.f32 0.2, %v1383_v33 }
 0x20f   : > { %v1757_v41 = vsel %vm1144_vm4, %v1684_v37, -inf  ;;  %v1682_v43 = vsel %vm1554_vm15, %v1372_v30, %v1618_v35  ;;  %vm1555_vm1 = vcmp.ge.f32.partialorder %v1375_v36, 0.0  ;;  %v1619_v45 = vmul.f32 0.2, %v1375_v36 }
 0x210   : > { %v1758_v46 = vmax.f32 %v2656_v62, %v1757_v41  ;;  %v1727_v47 = vsel %vm1144_vm4, %v1682_v43, -inf  ;;  %v1685_v48 = vsel %vm1557_vm0, %v1383_v33, %v1621_v38 }
 0x211   : > { %v1728_v49 = vmax.f32 %v2662_v3, %v1727_v47  ;;  %v1772_v50 = vsel %vm1144_vm4, %v1685_v48, -inf  ;;  %v1683_v51 = vsel %vm1555_vm1, %v1375_v36, %v1619_v45  ;;  %v2222_v52 = vpop.f32.mrb[28].mxu1 }
 0x212   : > { %v1773_v53 = vmax.f32 %v2668_v10, %v1772_v50  ;;  %v1742_v54 = vsel %vm1144_vm4, %v1683_v51, -inf  ;;  %v1396_v55 = vadd.f32 %v2222_v52, %v2576_v44  ;;  %v1387_v56 = vpop.f32.mrb[29].mxu1 }
 0x213   : > { %v1743_v57 = vmax.f32 %v2672_v11, %v1742_v54  ;;  %v1388_v58 = vadd.f32 %v2576_v44, %v1387_v56  ;;  %v2223_v59 = vpop.f32.mrb[30].mxu1 }
 0x214   : > { %vm1560_vm2 = vcmp.ge.f32.partialorder %v1396_v55, 0.0  ;;  %v1624_v60 = vmul.f32 0.2, %v1396_v55  ;;  %v1399_v62 = vadd.f32 %v2223_v59, %v2576_v44  ;;  %v1390_v63 = vpop.f32.mrb[31].mxu1 }
 0x215   : > { %vm1558_vm3 = vcmp.ge.f32.partialorder %v1388_v58, 0.0  ;;  %v1622_v2 = vmul.f32 0.2, %v1388_v58  ;;  %v1391_v3 = vadd.f32 %v2576_v44, %v1390_v63 }
 0x216   : > { %v1688_v6 = vsel %vm1560_vm2, %v1396_v55, %v1624_v60  ;;  %vm1561_vm5 = vcmp.ge.f32.partialorder %v1399_v62, 0.0  ;;  %v1625_v7 = vmul.f32 0.2, %v1399_v62 }
 0x217   : > { %v1817_v8 = vsel %vm1144_vm4, %v1688_v6, -inf  ;;  %v1686_v10 = vsel %vm1558_vm3, %v1388_v58, %v1622_v2  ;;  %vm1559_vm6 = vcmp.ge.f32.partialorder %v1391_v3, 0.0  ;;  %v1623_v39 = vmul.f32 0.2, %v1391_v3 }
 0x218   : > { %v1818_v61 = vmax.f32 %v2678_v18, %v1817_v8  ;;  %v1787_v0 = vsel %vm1144_vm4, %v1686_v10, -inf  ;;  %v1689_v11 = vsel %vm1561_vm5, %v1399_v62, %v1625_v7 }
 0x219   : > { %v1788_v40 = vmax.f32 %v2681_v21, %v1787_v0  ;;  %v1832_v1 = vsel %vm1144_vm4, %v1689_v11, -inf  ;;  %v1687_v4 = vsel %vm1559_vm6, %v1391_v3, %v1623_v39  ;;  %v2226_v12 = vpop.f32.mrb[32].mxu1 }
 0x21a   : > { %v1833_v13 = vmax.f32 %v2684_v25, %v1832_v1  ;;  %v1802_v15 = vsel %vm1144_vm4, %v1687_v4, -inf  ;;  %v1412_v42 = vadd.f32 %v2226_v12, %v2576_v44  ;;  %v1403_v5 = vpop.f32.mrb[33].mxu1 }
 0x21b   : > { %v1803_v9 = vmax.f32 %v2688_v29, %v1802_v15  ;;  %v1404_v16 = vadd.f32 %v2576_v44, %v1403_v5  ;;  %v2227_v17 = vpop.f32.mrb[34].mxu1 }
 0x21c   : > { %vm1564_vm7 = vcmp.ge.f32.partialorder %v1412_v42, 0.0  ;;  %v1628_v14 = vmul.f32 0.2, %v1412_v42  ;;  %v1415_v18 = vadd.f32 %v2227_v17, %v2576_v44  ;;  %v1406_v19 = vpop.f32.mrb[35].mxu1 }
 0x21d   : > { %vm1562_vm8 = vcmp.ge.f32.partialorder %v1404_v16, 0.0  ;;  %v1626_v20 = vmul.f32 0.2, %v1404_v16  ;;  %v1407_v21 = vadd.f32 %v2576_v44, %v1406_v19 }
 0x21e   : > { %v1692_v22 = vsel %vm1564_vm7, %v1412_v42, %v1628_v14  ;;  %vm1565_vm9 = vcmp.ge.f32.partialorder %v1415_v18, 0.0  ;;  %v1629_v23 = vmul.f32 0.2, %v1415_v18 }
 0x21f   : > { %v1759_v24 = vsel %vm1144_vm4, %v1692_v22, -inf  ;;  %v1690_v25 = vsel %vm1562_vm8, %v1404_v16, %v1626_v20  ;;  %vm1563_vm10 = vcmp.ge.f32.partialorder %v1407_v21, 0.0  ;;  %v1627_v26 = vmul.f32 0.2, %v1407_v21 }
 0x220   : > { %v2718_v27 = vmax.f32 %v1758_v46, %v1759_v24  ;;  %v1729_v28 = vsel %vm1144_vm4, %v1690_v25, -inf  ;;  %v1693_v29 = vsel %vm1565_vm9, %v1415_v18, %v1629_v23 }
 0x221   : > { %v2721_v30 = vmax.f32 %v1728_v49, %v1729_v28  ;;  %v1774_v31 = vsel %vm1144_vm4, %v1693_v29, -inf  ;;  %v1691_v32 = vsel %vm1563_vm10, %v1407_v21, %v1627_v26  ;;  %v2230_v33 = vpop.f32.mrb[36].mxu1 }
 0x222   : > { %v2724_v34 = vmax.f32 %v1773_v53, %v1774_v31  ;;  %v1744_v35 = vsel %vm1144_vm4, %v1691_v32, -inf  ;;  %v1428_v36 = vadd.f32 %v2230_v33, %v2576_v44  ;;  %v1419_v37 = vpop.f32.mrb[37].mxu1 }
 0x223   : > { %v2728_v38 = vmax.f32 %v1743_v57, %v1744_v35  ;;  %v1420_v41 = vadd.f32 %v2576_v44, %v1419_v37  ;;  %v2231_v43 = vpop.f32.mrb[38].mxu1 }
 0x224   : > { %vm1568_vm11 = vcmp.ge.f32.partialorder %v1428_v36, 0.0  ;;  %v1632_v45 = vmul.f32 0.2, %v1428_v36  ;;  %v1431_v46 = vadd.f32 %v2231_v43, %v2576_v44  ;;  %v1422_v47 = vpop.f32.mrb[39].mxu1 }
 0x225   : > { %vm1566_vm12 = vcmp.ge.f32.partialorder %v1420_v41, 0.0  ;;  %v1630_v48 = vmul.f32 0.2, %v1420_v41  ;;  %v1423_v49 = vadd.f32 %v2576_v44, %v1422_v47 }
 0x226   : > { %v1696_v50 = vsel %vm1568_vm11, %v1428_v36, %v1632_v45  ;;  %vm1569_vm13 = vcmp.ge.f32.partialorder %v1431_v46, 0.0  ;;  %v1633_v51 = vmul.f32 0.2, %v1431_v46 }
 0x227   : > { %v1819_v52 = vsel %vm1144_vm4, %v1696_v50, -inf  ;;  %v1694_v53 = vsel %vm1566_vm12, %v1420_v41, %v1630_v48  ;;  %vm1567_vm14 = vcmp.ge.f32.partialorder %v1423_v49, 0.0  ;;  %v1631_v54 = vmul.f32 0.2, %v1423_v49 }
 0x228   : > { %v2734_v55 = vmax.f32 %v1818_v61, %v1819_v52  ;;  %v1789_v56 = vsel %vm1144_vm4, %v1694_v53, -inf  ;;  %v1697_v57 = vsel %vm1569_vm13, %v1431_v46, %v1633_v51 }
 0x229   : > { %v2737_v58 = vmax.f32 %v1788_v40, %v1789_v56  ;;  %v1834_v59 = vsel %vm1144_vm4, %v1697_v57, -inf  ;;  %v1695_v60 = vsel %vm1567_vm14, %v1423_v49, %v1631_v54  ;;  %v2234_v62 = vpop.f32.mrb[40].mxu1 }
 0x22a   : > { %v2740_v63 = vmax.f32 %v1833_v13, %v1834_v59  ;;  %v1804_v2 = vsel %vm1144_vm4, %v1695_v60, -inf  ;;  %v1444_v3 = vadd.f32 %v2234_v62, %v2576_v44  ;;  %v1435_v6 = vpop.f32.mrb[41].mxu1 }
 0x22b   : > { %v2744_v7 = vmax.f32 %v1803_v9, %v1804_v2  ;;  %v1436_v8 = vadd.f32 %v2576_v44, %v1435_v6  ;;  %v2235_v10 = vpop.f32.mrb[42].mxu1 }
 0x22c   : > { %vm1572_vm15 = vcmp.ge.f32.partialorder %v1444_v3, 0.0  ;;  %v1636_v39 = vmul.f32 0.2, %v1444_v3  ;;  %v1447_v61 = vadd.f32 %v2235_v10, %v2576_v44  ;;  %v1438_v0 = vpop.f32.mrb[43].mxu1 }
 0x22d   : > { %vm1570_vm0 = vcmp.ge.f32.partialorder %v1436_v8, 0.0  ;;  %v1634_v11 = vmul.f32 0.2, %v1436_v8  ;;  %v1439_v40 = vadd.f32 %v2576_v44, %v1438_v0 }
 0x22e   : > { %v1700_v1 = vsel %vm1572_vm15, %v1444_v3, %v1636_v39  ;;  %vm1573_vm1 = vcmp.ge.f32.partialorder %v1447_v61, 0.0  ;;  %v1637_v4 = vmul.f32 0.2, %v1447_v61 }
 0x22f   : > { %v1761_v12 = vsel %vm1144_vm4, %v1700_v1, -inf  ;;  %v1698_v13 = vsel %vm1570_vm0, %v1436_v8, %v1634_v11  ;;  %vm1571_vm2 = vcmp.ge.f32.partialorder %v1439_v40, 0.0  ;;  %v1635_v15 = vmul.f32 0.2, %v1439_v40 }
 0x230   : > { %v1762_v42 = vmax.f32 %v2718_v27, %v1761_v12  ;;  %v1731_v5 = vsel %vm1144_vm4, %v1698_v13, -inf  ;;  %v1701_v9 = vsel %vm1573_vm1, %v1447_v61, %v1637_v4 }
 0x231   : > { %v1732_v16 = vmax.f32 %v2721_v30, %v1731_v5  ;;  %v1776_v17 = vsel %vm1144_vm4, %v1701_v9, -inf  ;;  %v1699_v14 = vsel %vm1571_vm2, %v1439_v40, %v1635_v15  ;;  %v2238_v18 = vpop.f32.mrb[44].mxu1 }
 0x232   : > { %v1777_v19 = vmax.f32 %v2724_v34, %v1776_v17  ;;  %v1746_v20 = vsel %vm1144_vm4, %v1699_v14, -inf  ;;  %v1460_v21 = vadd.f32 %v2238_v18, %v2576_v44  ;;  %v1451_v22 = vpop.f32.mrb[45].mxu1 }
 0x233   : > { %v1747_v23 = vmax.f32 %v2728_v38, %v1746_v20  ;;  %v1452_v24 = vadd.f32 %v2576_v44, %v1451_v22  ;;  %v2239_v25 = vpop.f32.mrb[46].mxu1 }
 0x234   : > { %vm1576_vm3 = vcmp.ge.f32.partialorder %v1460_v21, 0.0  ;;  %v1640_v26 = vmul.f32 0.2, %v1460_v21  ;;  %v1463_v27 = vadd.f32 %v2239_v25, %v2576_v44  ;;  %v1454_v28 = vpop.f32.mrb[47].mxu1 }
 0x235   : > { %vm1574_vm5 = vcmp.ge.f32.partialorder %v1452_v24, 0.0  ;;  %v1638_v29 = vmul.f32 0.2, %v1452_v24  ;;  %v1455_v30 = vadd.f32 %v2576_v44, %v1454_v28 }
 0x236   : > { %v1704_v31 = vsel %vm1576_vm3, %v1460_v21, %v1640_v26  ;;  %vm1577_vm6 = vcmp.ge.f32.partialorder %v1463_v27, 0.0  ;;  %v1641_v32 = vmul.f32 0.2, %v1463_v27 }
 0x237   : > { %v1821_v33 = vsel %vm1144_vm4, %v1704_v31, -inf  ;;  %v1702_v34 = vsel %vm1574_vm5, %v1452_v24, %v1638_v29  ;;  %vm1575_vm7 = vcmp.ge.f32.partialorder %v1455_v30, 0.0  ;;  %v1639_v35 = vmul.f32 0.2, %v1455_v30 }
 0x238   : > { %v1822_v36 = vmax.f32 %v2734_v55, %v1821_v33  ;;  %v1791_v37 = vsel %vm1144_vm4, %v1702_v34, -inf  ;;  %v1705_v38 = vsel %vm1577_vm6, %v1463_v27, %v1641_v32 }
 0x239   : > { %v1792_v41 = vmax.f32 %v2737_v58, %v1791_v37  ;;  %v1836_v43 = vsel %vm1144_vm4, %v1705_v38, -inf  ;;  %v1703_v45 = vsel %vm1575_vm7, %v1455_v30, %v1639_v35  ;;  %v2242_v46 = vpop.f32.mrb[48].mxu1 }
 0x23a   : > { %v1837_v47 = vmax.f32 %v2740_v63, %v1836_v43  ;;  %v1806_v48 = vsel %vm1144_vm4, %v1703_v45, -inf  ;;  %v1476_v49 = vadd.f32 %v2242_v46, %v2576_v44  ;;  %v1467_v50 = vpop.f32.mrb[49].mxu1 }
 0x23b   : > { %v1807_v51 = vmax.f32 %v2744_v7, %v1806_v48  ;;  %v1468_v52 = vadd.f32 %v2576_v44, %v1467_v50  ;;  %v2243_v53 = vpop.f32.mrb[50].mxu1 }
 0x23c   : > { %vm1580_vm8 = vcmp.ge.f32.partialorder %v1476_v49, 0.0  ;;  %v1644_v54 = vmul.f32 0.2, %v1476_v49  ;;  %v1479_v55 = vadd.f32 %v2243_v53, %v2576_v44  ;;  %v1470_v56 = vpop.f32.mrb[51].mxu1 }
 0x23d   : > { %vm1578_vm9 = vcmp.ge.f32.partialorder %v1468_v52, 0.0  ;;  %v1642_v57 = vmul.f32 0.2, %v1468_v52  ;;  %v1471_v58 = vadd.f32 %v2576_v44, %v1470_v56 }
 0x23e   : > { %v1708_v59 = vsel %vm1580_vm8, %v1476_v49, %v1644_v54  ;;  %vm1581_vm10 = vcmp.ge.f32.partialorder %v1479_v55, 0.0  ;;  %v1645_v60 = vmul.f32 0.2, %v1479_v55 }
 0x23f   : > { %v1763_v62 = vsel %vm1144_vm4, %v1708_v59, -inf  ;;  %v1706_v63 = vsel %vm1578_vm9, %v1468_v52, %v1642_v57  ;;  %vm1579_vm11 = vcmp.ge.f32.partialorder %v1471_v58, 0.0  ;;  %v1643_v2 = vmul.f32 0.2, %v1471_v58 }
 0x240   : > { %v2774_v3 = vmax.f32 %v1762_v42, %v1763_v62  ;;  %v1733_v6 = vsel %vm1144_vm4, %v1706_v63, -inf  ;;  %v1709_v7 = vsel %vm1581_vm10, %v1479_v55, %v1645_v60 }
 0x241   : > { %v2777_v8 = vmax.f32 %v1732_v16, %v1733_v6  ;;  %v1778_v10 = vsel %vm1144_vm4, %v1709_v7, -inf  ;;  %v1707_v39 = vsel %vm1579_vm11, %v1471_v58, %v1643_v2  ;;  %v2246_v61 = vpop.f32.mrb[52].mxu1 }
 0x242   : > { %v2780_v0 = vmax.f32 %v1777_v19, %v1778_v10  ;;  %v1748_v11 = vsel %vm1144_vm4, %v1707_v39, -inf  ;;  %v1492_v40 = vadd.f32 %v2246_v61, %v2576_v44  ;;  %v1483_v1 = vpop.f32.mrb[53].mxu1 }
 0x243   : > { %v2784_v4 = vmax.f32 %v1747_v23, %v1748_v11  ;;  %v1484_v12 = vadd.f32 %v2576_v44, %v1483_v1  ;;  %v2247_v13 = vpop.f32.mrb[54].mxu1 }
 0x244   : > { %vm1584_vm12 = vcmp.ge.f32.partialorder %v1492_v40, 0.0  ;;  %v1648_v15 = vmul.f32 0.2, %v1492_v40  ;;  %v1495_v42 = vadd.f32 %v2247_v13, %v2576_v44  ;;  %v1486_v5 = vpop.f32.mrb[55].mxu1 }
 0x245   : > { %vm1582_vm13 = vcmp.ge.f32.partialorder %v1484_v12, 0.0  ;;  %v1646_v9 = vmul.f32 0.2, %v1484_v12  ;;  %v1487_v16 = vadd.f32 %v2576_v44, %v1486_v5 }
 0x246   : > { %v1712_v17 = vsel %vm1584_vm12, %v1492_v40, %v1648_v15  ;;  %vm1585_vm14 = vcmp.ge.f32.partialorder %v1495_v42, 0.0  ;;  %v1649_v14 = vmul.f32 0.2, %v1495_v42 }
 0x247   : > { %v1823_v18 = vsel %vm1144_vm4, %v1712_v17, -inf  ;;  %v1710_v19 = vsel %vm1582_vm13, %v1484_v12, %v1646_v9  ;;  %vm1583_vm15 = vcmp.ge.f32.partialorder %v1487_v16, 0.0  ;;  %v1647_v20 = vmul.f32 0.2, %v1487_v16 }
 0x248   : > { %v2790_v21 = vmax.f32 %v1822_v36, %v1823_v18  ;;  %v1793_v22 = vsel %vm1144_vm4, %v1710_v19, -inf  ;;  %v1713_v23 = vsel %vm1585_vm14, %v1495_v42, %v1649_v14 }
 0x249   : > { %v2793_v24 = vmax.f32 %v1792_v41, %v1793_v22  ;;  %v1838_v25 = vsel %vm1144_vm4, %v1713_v23, -inf  ;;  %v1711_v26 = vsel %vm1583_vm15, %v1487_v16, %v1647_v20  ;;  %v2250_v27 = vpop.f32.mrb[56].mxu1 }
 0x24a   : > { %v2796_v28 = vmax.f32 %v1837_v47, %v1838_v25  ;;  %v1808_v29 = vsel %vm1144_vm4, %v1711_v26, -inf  ;;  %v1508_v30 = vadd.f32 %v2250_v27, %v2576_v44  ;;  %v1499_v31 = vpop.f32.mrb[57].mxu1 }
 0x24b   : > { %v2800_v32 = vmax.f32 %v1807_v51, %v1808_v29  ;;  %v1500_v33 = vadd.f32 %v2576_v44, %v1499_v31  ;;  %v2251_v34 = vpop.f32.mrb[58].mxu1 }
 0x24c   : > { %vm1588_vm0 = vcmp.ge.f32.partialorder %v1508_v30, 0.0  ;;  %v1652_v35 = vmul.f32 0.2, %v1508_v30  ;;  %v1511_v36 = vadd.f32 %v2251_v34, %v2576_v44  ;;  %v1502_v37 = vpop.f32.mrb[59].mxu1 }
 0x24d   : > { %vm1586_vm1 = vcmp.ge.f32.partialorder %v1500_v33, 0.0  ;;  %v1650_v38 = vmul.f32 0.2, %v1500_v33  ;;  %v1503_v41 = vadd.f32 %v2576_v44, %v1502_v37 }
 0x24e   : > { %v1716_v43 = vsel %vm1588_vm0, %v1508_v30, %v1652_v35  ;;  %vm1589_vm2 = vcmp.ge.f32.partialorder %v1511_v36, 0.0  ;;  %v1653_v45 = vmul.f32 0.2, %v1511_v36 }
 0x24f   : > { %v1765_v46 = vsel %vm1144_vm4, %v1716_v43, -inf  ;;  %v1714_v47 = vsel %vm1586_vm1, %v1500_v33, %v1650_v38  ;;  %vm1587_vm3 = vcmp.ge.f32.partialorder %v1503_v41, 0.0  ;;  %v1651_v48 = vmul.f32 0.2, %v1503_v41 }
 0x250   : > { %v1766_v49 = vmax.f32 %v2774_v3, %v1765_v46  ;;  %v1735_v50 = vsel %vm1144_vm4, %v1714_v47, -inf  ;;  %v1717_v51 = vsel %vm1589_vm2, %v1511_v36, %v1653_v45 }
 0x251   : > { %v1736_v52 = vmax.f32 %v2777_v8, %v1735_v50  ;;  %v1780_v53 = vsel %vm1144_vm4, %v1717_v51, -inf  ;;  %v1715_v54 = vsel %vm1587_vm3, %v1503_v41, %v1651_v48  ;;  %v2254_v55 = vpop.f32.mrb[60].mxu1 }
 0x252   : > { %1844 = vst.msk [vmem:[%s2809_s11 + $0x10] sm:$0xff] %vm1144_vm4, %v1766_v49  ;;  %v1781_v56 = vmax.f32 %v2780_v0, %v1780_v53  ;;  %v1750_v57 = vsel %vm1144_vm4, %v1715_v54, -inf  ;;  %v1524_v58 = vadd.f32 %v2254_v55, %v2576_v44  ;;  %v1515_v59 = vpop.f32.mrb[61].mxu1 }
 0x253   : > { %1842 = vst.msk [vmem:[%s2809_s11] sm:$0xff] %vm1144_vm4, %v1736_v52  ;;  %v1751_v60 = vmax.f32 %v2784_v4, %v1750_v57  ;;  %v1516_v62 = vadd.f32 %v2576_v44, %v1515_v59  ;;  %v2255_v63 = vpop.f32.mrb[62].mxu1 }
 0x254   : > { %1845 = vst.msk [vmem:[%s2809_s11 + $0x18] sm:$0xff] %vm1144_vm4, %v1781_v56  ;;  %vm1592_vm5 = vcmp.ge.f32.partialorder %v1524_v58, 0.0  ;;  %v1656_v2 = vmul.f32 0.2, %v1524_v58  ;;  %v1527_v3 = vadd.f32 %v2255_v63, %v2576_v44  ;;  %v1518_v6 = vpop.f32.mrb[63].mxu1 }
 0x255   : > { %1843 = vst.msk [vmem:[%s2809_s11 + $0x8] sm:$0xff] %vm1144_vm4, %v1751_v60  ;;  %vm1590_vm6 = vcmp.ge.f32.partialorder %v1516_v62, 0.0  ;;  %v1654_v7 = vmul.f32 0.2, %v1516_v62  ;;  %v1519_v8 = vadd.f32 %v2576_v44, %v1518_v6 }
 0x256   : > { %v1720_v10 = vsel %vm1592_vm5, %v1524_v58, %v1656_v2  ;;  %vm1593_vm7 = vcmp.ge.f32.partialorder %v1527_v3, 0.0  ;;  %v1657_v39 = vmul.f32 0.2, %v1527_v3 }
 0x257   : > { %v1825_v61 = vsel %vm1144_vm4, %v1720_v10, -inf  ;;  %v1718_v0 = vsel %vm1590_vm6, %v1516_v62, %v1654_v7  ;;  %vm1591_vm8 = vcmp.ge.f32.partialorder %v1519_v8, 0.0  ;;  %v1655_v11 = vmul.f32 0.2, %v1519_v8 }
 0x258   : > { %v1826_v40 = vmax.f32 %v2790_v21, %v1825_v61  ;;  %v1795_v1 = vsel %vm1144_vm4, %v1718_v0, -inf  ;;  %v1721_v4 = vsel %vm1593_vm7, %v1527_v3, %v1657_v39 }
 0x259   : > { %v1796_v12 = vmax.f32 %v2793_v24, %v1795_v1  ;;  %v1840_v44 = vsel %vm1144_vm4, %v1721_v4, -inf  ;;  %v1719_v13 = vsel %vm1591_vm8, %v1519_v8, %v1655_v11 }
 0x25a   : > { %1848 = vst.msk [vmem:[%s2809_s11 + $0x30] sm:$0xff] %vm1144_vm4, %v1826_v40  ;;  %v1841_v15 = vmax.f32 %v2796_v28, %v1840_v44  ;;  %v1810_v42 = vsel %vm1144_vm4, %v1719_v13, -inf }
 0x25b   : > { %1846 = vst.msk [vmem:[%s2809_s11 + $0x20] sm:$0xff] %vm1144_vm4, %v1796_v12  ;;  %v1811_v5 = vmax.f32 %v2800_v32, %v1810_v42 }
 0x25c   : > { %1849 = vst.msk [vmem:[%s2809_s11 + $0x38] sm:$0xff] %vm1144_vm4, %v1841_v15 }
 0x25d   : > { %1847 = vst.msk [vmem:[%s2809_s11 + $0x28] sm:$0xff] %vm1144_vm4, %v1811_v5 }
 0x25e PF: > { %s15_s20 = sadd.s32 1, %s2346_s20   ;;  %s2862_s18 = smov %s2342_s19 }
 0x25f   : > { %p12_p5 = scmp.ge.s32.totalorder %s15_s20, 4   ;;  %s2863_s19 = smov %s2865_s21 }
 0x261   :  { %14 = sbr.rel (!%p12_p5) target bundleno = 2 (0x2), region = 70 }

// kernel: dgcnn_semseg_forward.13
= control target key start
LH: loop header
LB: loop body
LE: loop exit
PB: predicated region body
PF: predicated region fallthrough
CT: control target
= control target key end

     0   :  { %s1533_s12 = smov 0   ;;  %s1535_s13 = smov 0   ;;  %s2024_s0 = inlined_call_operand.vmem [shape: bf16[2,8,64,128], index: 0, kind: input, shape index: {}]   ;;  %s2025_s1 = inlined_call_operand.vmem [shape: bf16[128,64], index: 1, kind: input, shape index: {}]   ;;  %s2026_s2 = inlined_call_operand.vmem [shape: f32[1,64], index: 2, kind: input, shape index: {}]   ;;  %s2027_s3 = inlined_call_operand.vmem [shape: f32[2,64,64], index: 3, kind: output, shape index: {}]  }
   0x1   :  { %s1537_s14 = smov 0  }
   0x2 LB: > { %s25_s15 = sadd.s32 1, %s1507_s13  ;;  %p1239_p0 = scmp.ge.s32.totalorder %s1511_s14, 1  ;;  %s1511_s14 = sphi %s1537_s14, %s13_s14   ;;  %s1507_s13 = sphi %s1535_s13, %s2038_s13   ;;  %s1503_s12 = sphi %s1533_s12, %s2037_s12  }
   0x3   : > { %p27_p1 = scmp.ge.s32.totalorder %s25_s15, 2  ;;  %p158_p2 = scmp.lt.s32.totalorder %s1511_s14, 3 }
   0x5   : > { %s2040_s15 = smov (%p27_p1, %s25_s15), 0  ;;  %p159_p3 = pnand %p1239_p0, %p158_p2 }
   0x7   : > { %162 = sbr.rel (%p159_p3) target bundleno = 359 (0x167), region = 32 }
   0xe   : > { %v1449_v0 = vld [vmem:[%s2025_s1] sm:$0xff]   ;;  %p191_p4 = scmp.lt.s32.totalorder %s1503_s12, 1  ;;  %v1450_v1 = vld [vmem:[%s2025_s1 + $0x8] sm:$0xff]   ;;  %v1451_v2 = vld [vmem:[%s2025_s1 + $0x10] sm:$0xff]   ;;  %vm1019_vm0 = vcmask 523264  }
   0xf   : > { %1329 = vmatprep.subr.bf16.mxu0 %v1449_v0  ;;  %1409 = vmatprep.subr.bf16.mxu1 %v1449_v0  ;;  %v1452_v3 = vld [vmem:[%s2025_s1 + $0x18] sm:$0xff]   ;;  %v1453_v6 = vld [vmem:[%s2025_s1 + $0x20] sm:$0xff]   ;;  %v1454_v7 = vld [vmem:[%s2025_s1 + $0x28] sm:$0xff]  }
  0x10   : > { %s2042_s12 = smov (!%p191_p4, %s1503_s12), 1  ;;  %1330 = vmatpush3.bf16.msra.mxu0 %v1449_v0  ;;  %1417 = vmatpush3.bf16.msra.mxu1 %v1449_v0  ;;  %v1455_v8 = vld [vmem:[%s2025_s1 + $0x30] sm:$0xff]   ;;  %v1456_v9 = vld [vmem:[%s2025_s1 + $0x38] sm:$0xff]   ;;  %v1618_v40 = vld [vmem:[%s2026_s2] ss:$0 sm:$0xff] }
  0x11   : > { %1331 = vmatprep.subr.bf16.mxu0 %v1450_v1  ;;  %1410 = vmatprep.subr.bf16.mxu1 %v1450_v1  ;;  %s1287_s22 = sshll.u32 %s2042_s12, 8  ;;  %s1288_s11 = sshll.u32 %s2042_s12, 6 }
  0x12   : > { %s1566_s25 = scalar_lea.vmem %s2024_s0, %s1287_s22  ;;  %s1947_s12 = scalar_lea.vmem %s2027_s3, %s1288_s11 }
  0x13   : > { %v1457_v4 = vld [vmem:[%s1566_s25] sm:$0xff]   ;;  %v1458_v10 = vld [vmem:[%s1566_s25 + $0x8] sm:$0xff]   ;;  %v1461_v12 = vld [vmem:[%s1566_s25 + $0x10] sm:$0xff]  }
  0x14   : > { %1332 = vmatpush3.bf16.msra.mxu0 %v1450_v1  ;;  %1418 = vmatpush3.bf16.msra.mxu1 %v1450_v1  ;;  %v1459_v5 = vld [vmem:[%s1566_s25 + $0x80] sm:$0xff]   ;;  %v1460_v11 = vld [vmem:[%s1566_s25 + $0x88] sm:$0xff]   ;;  %v1463_v13 = vld [vmem:[%s1566_s25 + $0x90] sm:$0xff]  }
  0x15   : > { %1333 = vmatprep.subr.bf16.mxu0 %v1451_v2  ;;  %1411 = vmatprep.subr.bf16.mxu1 %v1451_v2  ;;  %v1462_v14 = vld [vmem:[%s1566_s25 + $0x18] sm:$0xff]   ;;  %v1465_v16 = vld [vmem:[%s1566_s25 + $0x20] sm:$0xff]   ;;  %v1466_v18 = vld [vmem:[%s1566_s25 + $0x28] sm:$0xff]  }
  0x16   : > { %1345 = vmatprep.mubr.bf16.mxu0 %v1457_v4  ;;  %1377 = vmatprep.mubr.bf16.mxu1 %v1459_v5  ;;  %v1464_v15 = vld [vmem:[%s1566_s25 + $0x98] sm:$0xff]   ;;  %v1467_v17 = vld [vmem:[%s1566_s25 + $0xa0] sm:$0xff]   ;;  %v1468_v19 = vld [vmem:[%s1566_s25 + $0xa8] sm:$0xff]  }
  0x17   : > { %v1469_v20 = vld [vmem:[%s1566_s25 + $0x30] sm:$0xff]   ;;  %v1470_v22 = vld [vmem:[%s1566_s25 + $0x38] sm:$0xff]   ;;  %v1473_v24 = vld [vmem:[%s1566_s25 + $0x40] sm:$0xff]  }
  0x18   : > { %1334 = vmatpush3.bf16.msra.mxu0 %v1451_v2  ;;  %1419 = vmatpush3.bf16.msra.mxu1 %v1451_v2  ;;  %v1471_v21 = vld [vmem:[%s1566_s25 + $0xb0] sm:$0xff]   ;;  %v1472_v23 = vld [vmem:[%s1566_s25 + $0xb8] sm:$0xff]   ;;  %v1475_v25 = vld [vmem:[%s1566_s25 + $0xc0] sm:$0xff]  }
  0x19   : > { %1335 = vmatprep.subr.bf16.mxu0 %v1452_v3  ;;  %1412 = vmatprep.subr.bf16.mxu1 %v1452_v3  ;;  %v1474_v26 = vld [vmem:[%s1566_s25 + $0x48] sm:$0xff]   ;;  %v1477_v28 = vld [vmem:[%s1566_s25 + $0x50] sm:$0xff]   ;;  %v1478_v30 = vld [vmem:[%s1566_s25 + $0x58] sm:$0xff]  }
  0x1a   : > { %v1476_v27 = vld [vmem:[%s1566_s25 + $0xc8] sm:$0xff]   ;;  %v1479_v29 = vld [vmem:[%s1566_s25 + $0xd0] sm:$0xff]   ;;  %v1480_v31 = vld [vmem:[%s1566_s25 + $0xd8] sm:$0xff]  }
  0x1b   : > { %v1481_v32 = vld [vmem:[%s1566_s25 + $0x60] sm:$0xff]   ;;  %v1482_v34 = vld [vmem:[%s1566_s25 + $0x68] sm:$0xff]   ;;  %v1485_v36 = vld [vmem:[%s1566_s25 + $0x70] sm:$0xff]  }
  0x1c   : > { %1336 = vmatpush3.bf16.msra.mxu0 %v1452_v3  ;;  %1420 = vmatpush3.bf16.msra.mxu1 %v1452_v3  ;;  %v1483_v33 = vld [vmem:[%s1566_s25 + $0xe0] sm:$0xff]   ;;  %v1484_v35 = vld [vmem:[%s1566_s25 + $0xe8] sm:$0xff]   ;;  %v1487_v37 = vld [vmem:[%s1566_s25 + $0xf0] sm:$0xff]  }
  0x1d   : > { %1337 = vmatprep.subr.bf16.mxu0 %v1453_v6  ;;  %1413 = vmatprep.subr.bf16.mxu1 %v1453_v6  ;;  %v1486_v38 = vld [vmem:[%s1566_s25 + $0x78] sm:$0xff]  }
  0x1e   : > { %v1488_v39 = vld [vmem:[%s1566_s25 + $0xf8] sm:$0xff]  }
  0x20   : > { %1338 = vmatpush3.bf16.msra.mxu0 %v1453_v6  ;;  %1421 = vmatpush3.bf16.msra.mxu1 %v1453_v6 }
  0x21   : > { %1339 = vmatprep.subr.bf16.mxu0 %v1454_v7  ;;  %1414 = vmatprep.subr.bf16.mxu1 %v1454_v7 }
  0x24   : > { %1340 = vmatpush3.bf16.msra.mxu0 %v1454_v7  ;;  %1422 = vmatpush3.bf16.msra.mxu1 %v1454_v7 }
  0x25   : > { %1341 = vmatprep.subr.bf16.mxu0 %v1455_v8  ;;  %1415 = vmatprep.subr.bf16.mxu1 %v1455_v8 }
  0x28   : > { %1342 = vmatpush3.bf16.msra.mxu0 %v1455_v8  ;;  %1423 = vmatpush3.bf16.msra.mxu1 %v1455_v8 }
  0x29   : > { %1343 = vmatprep.subr.bf16.mxu0 %v1456_v9  ;;  %1416 = vmatprep.subr.bf16.mxu1 %v1456_v9 }
  0x2c   : > { %1344 = vmatpush3.bf16.msra.mxu0 %v1456_v9  ;;  %1424 = vmatpush3.bf16.msra.mxu1 %v1456_v9 }
  0x2f   : > { %1346 = vmatmul.mubr.bf16.vlgmr.msra.gmra.mrb[0].mxu0 %v1458_v10  ;;  %1378 = vmatmul.mubr.bf16.vlgmr.msra.gmra.mrb[0].mxu1 %v1460_v11 }
  0x30   : > { %1349 = vmatprep.mubr.bf16.mxu0 %v1461_v12  ;;  %1381 = vmatprep.mubr.bf16.mxu1 %v1463_v13 }
  0x37   : > { %1350 = vmatmul.mubr.bf16.gmra.mrb[4].mxu0 %v1462_v14  ;;  %1382 = vmatmul.mubr.bf16.gmra.mrb[4].mxu1 %v1464_v15 }
  0x38   : > { %1353 = vmatprep.mubr.bf16.mxu0 %v1465_v16  ;;  %1385 = vmatprep.mubr.bf16.mxu1 %v1467_v17 }
  0x3f   : > { %1354 = vmatmul.mubr.bf16.gmra.mrb[8].mxu0 %v1466_v18  ;;  %1386 = vmatmul.mubr.bf16.gmra.mrb[8].mxu1 %v1468_v19 }
  0x40   : > { %1357 = vmatprep.mubr.bf16.mxu0 %v1469_v20  ;;  %1389 = vmatprep.mubr.bf16.mxu1 %v1471_v21 }
  0x47   : > { %1358 = vmatmul.mubr.bf16.gmra.mrb[12].mxu0 %v1470_v22  ;;  %1390 = vmatmul.mubr.bf16.gmra.mrb[12].mxu1 %v1472_v23 }
  0x48   : > { %1361 = vmatprep.mubr.bf16.mxu0 %v1473_v24  ;;  %1393 = vmatprep.mubr.bf16.mxu1 %v1475_v25 }
  0x4f   : > { %1362 = vmatmul.mubr.bf16.gmra.mrb[16].mxu0 %v1474_v26  ;;  %1394 = vmatmul.mubr.bf16.gmra.mrb[16].mxu1 %v1476_v27 }
  0x50   : > { %1365 = vmatprep.mubr.bf16.mxu0 %v1477_v28  ;;  %1397 = vmatprep.mubr.bf16.mxu1 %v1479_v29 }
  0x57   : > { %1366 = vmatmul.mubr.bf16.gmra.mrb[20].mxu0 %v1478_v30  ;;  %1398 = vmatmul.mubr.bf16.gmra.mrb[20].mxu1 %v1480_v31 }
  0x58   : > { %1369 = vmatprep.mubr.bf16.mxu0 %v1481_v32  ;;  %1401 = vmatprep.mubr.bf16.mxu1 %v1483_v33 }
  0x5f   : > { %1370 = vmatmul.mubr.bf16.gmra.mrb[24].mxu0 %v1482_v34  ;;  %1402 = vmatmul.mubr.bf16.gmra.mrb[24].mxu1 %v1484_v35 }
  0x60   : > { %1373 = vmatprep.mubr.bf16.mxu0 %v1485_v36  ;;  %1405 = vmatprep.mubr.bf16.mxu1 %v1487_v37 }
  0x67   : > { %1374 = vmatmul.mubr.bf16.gmra.mrb[28].mxu0 %v1486_v38  ;;  %1406 = vmatmul.mubr.bf16.gmra.mrb[28].mxu1 %v1488_v39 }
 0x102   : > { %v1347_v41 = vpop.f32.mrb[0].mxu0  ;;  %v1379_v42 = vpop.f32.mrb[0].mxu1 }
 0x103   : > { %v581_v43 = vadd.f32 %v1347_v41, %v1618_v40  ;;  %v572_v44 = vpop.f32.mrb[1].mxu0  ;;  %v709_v45 = vadd.f32 %v1379_v42, %v1618_v40  ;;  %v700_v46 = vpop.f32.mrb[1].mxu1 }
 0x104   : > { %v573_v47 = vadd.f32 %v1618_v40, %v572_v44  ;;  %v1348_v48 = vpop.f32.mrb[2].mxu0  ;;  %v701_v49 = vadd.f32 %v1618_v40, %v700_v46  ;;  %v1380_v50 = vpop.f32.mrb[2].mxu1 }
 0x105   : > { %vm829_vm1 = vcmp.ge.f32.partialorder %v581_v43, 0.0  ;;  %v893_v51 = vmul.f32 0.2, %v581_v43  ;;  %v584_v52 = vadd.f32 %v1348_v48, %v1618_v40  ;;  %v575_v53 = vpop.f32.mrb[3].mxu0  ;;  %vm861_vm2 = vcmp.ge.f32.partialorder %v709_v45, 0.0  ;;  %v703_v54 = vpop.f32.mrb[3].mxu1 }
 0x106   : > { %vm827_vm3 = vcmp.ge.f32.partialorder %v573_v47, 0.0  ;;  %v891_v55 = vmul.f32 0.2, %v573_v47  ;;  %v576_v56 = vadd.f32 %v1618_v40, %v575_v53  ;;  %v925_v57 = vmul.f32 0.2, %v709_v45 }
 0x107   : > { %v957_v58 = vsel %vm829_vm1, %v581_v43, %v893_v51  ;;  %vm830_vm4 = vcmp.ge.f32.partialorder %v584_v52, 0.0  ;;  %v894_v59 = vmul.f32 0.2, %v584_v52  ;;  %vm859_vm6 = vcmp.ge.f32.partialorder %v701_v49, 0.0 }
 0x108   : > { %v955_v60 = vsel %vm827_vm3, %v573_v47, %v891_v55  ;;  %vm828_vm5 = vcmp.ge.f32.partialorder %v576_v56, 0.0  ;;  %v892_v61 = vmul.f32 0.2, %v576_v56  ;;  %v1627_v62 = vsel %vm1019_vm0, %v957_v58, -inf }
 0x109   : > { %v958_v63 = vsel %vm830_vm4, %v584_v52, %v894_v59  ;;  %v989_v0 = vsel %vm861_vm2, %v709_v45, %v925_v57  ;;  %v923_v1 = vmul.f32 0.2, %v701_v49  ;;  %v1630_v2 = vsel %vm1019_vm0, %v955_v60, -inf }
 0x10a   : > { %v1633_v3 = vsel %vm1019_vm0, %v958_v63, -inf  ;;  %v956_v4 = vsel %vm828_vm5, %v576_v56, %v892_v61  ;;  %v712_v5 = vadd.f32 %v1380_v50, %v1618_v40  ;;  %v1351_v6 = vpop.f32.mrb[4].mxu0  ;;  %v1383_v7 = vpop.f32.mrb[4].mxu1  ;;  %v1640_v9 = vsel %vm1019_vm0, %v989_v0, -inf }
 0x10b   : > { %v1637_v8 = vsel %vm1019_vm0, %v956_v4, -inf  ;;  %v704_v10 = vadd.f32 %v1618_v40, %v703_v54  ;;  %v597_v11 = vadd.f32 %v1351_v6, %v1618_v40  ;;  %v588_v12 = vpop.f32.mrb[5].mxu0  ;;  %v716_v13 = vpop.f32.mrb[5].mxu1  ;;  %v987_v14 = vsel %vm859_vm6, %v701_v49, %v923_v1 }
 0x10c   : > { %vm862_vm7 = vcmp.ge.f32.partialorder %v712_v5, 0.0  ;;  %v926_v15 = vmul.f32 0.2, %v712_v5  ;;  %v589_v16 = vadd.f32 %v1618_v40, %v588_v12  ;;  %v1352_v17 = vpop.f32.mrb[6].mxu0  ;;  %v1384_v18 = vpop.f32.mrb[6].mxu1  ;;  %v1648_v26 = vsel %vm1019_vm0, %v987_v14, -inf }
 0x10d   : > { %vm860_vm8 = vcmp.ge.f32.partialorder %v704_v10, 0.0  ;;  %v924_v19 = vmul.f32 0.2, %v704_v10  ;;  %vm833_vm9 = vcmp.ge.f32.partialorder %v597_v11, 0.0  ;;  %v897_v20 = vmul.f32 0.2, %v597_v11 }
 0x10e   : > { %v990_v21 = vsel %vm862_vm7, %v712_v5, %v926_v15  ;;  %vm831_vm10 = vcmp.ge.f32.partialorder %v589_v16, 0.0  ;;  %v895_v22 = vmul.f32 0.2, %v589_v16  ;;  %v600_v23 = vadd.f32 %v1352_v17, %v1618_v40  ;;  %v591_v24 = vpop.f32.mrb[7].mxu0  ;;  %v719_v25 = vpop.f32.mrb[7].mxu1 }
 0x10f   : > { %v988_v27 = vsel %vm860_vm8, %v704_v10, %v924_v19  ;;  %v961_v28 = vsel %vm833_vm9, %v597_v11, %v897_v20  ;;  %v592_v29 = vadd.f32 %v1618_v40, %v591_v24  ;;  %v1652_v30 = vsel %vm1019_vm0, %v990_v21, -inf }
 0x110   : > { %v1655_v31 = vsel %vm1019_vm0, %v988_v27, -inf  ;;  %v959_v32 = vsel %vm831_vm10, %v589_v16, %v895_v22  ;;  %vm834_vm11 = vcmp.ge.f32.partialorder %v600_v23, 0.0  ;;  %v1658_v33 = vsel %vm1019_vm0, %v961_v28, -inf }
 0x111   : > { %v898_v34 = vmul.f32 0.2, %v600_v23  ;;  %vm832_vm12 = vcmp.ge.f32.partialorder %v592_v29, 0.0  ;;  %v896_v35 = vmul.f32 0.2, %v592_v29  ;;  %v725_v36 = vadd.f32 %v1383_v7, %v1618_v40 }
 0x112   : > { %v717_v37 = vadd.f32 %v1618_v40, %v716_v13  ;;  %v728_v38 = vadd.f32 %v1384_v18, %v1618_v40  ;;  %v720_v39 = vadd.f32 %v1618_v40, %v719_v25  ;;  %v1355_v41 = vpop.f32.mrb[8].mxu0  ;;  %v1387_v42 = vpop.f32.mrb[8].mxu1  ;;  %v1665_v43 = vsel %vm1019_vm0, %v959_v32, -inf }
 0x113   : > { %v962_v44 = vsel %vm834_vm11, %v600_v23, %v898_v34  ;;  %v960_v45 = vsel %vm832_vm12, %v592_v29, %v896_v35  ;;  %v613_v46 = vadd.f32 %v1355_v41, %v1618_v40  ;;  %v604_v47 = vpop.f32.mrb[9].mxu0  ;;  %v732_v48 = vpop.f32.mrb[9].mxu1  ;;  %vm865_vm13 = vcmp.ge.f32.partialorder %v725_v36, 0.0 }
 0x114   : > { %v1669_v49 = vsel %vm1019_vm0, %v962_v44, -inf  ;;  %v929_v50 = vmul.f32 0.2, %v725_v36  ;;  %v1356_v51 = vpop.f32.mrb[10].mxu0  ;;  %v741_v52 = vadd.f32 %v1387_v42, %v1618_v40  ;;  %vm863_vm14 = vcmp.ge.f32.partialorder %v717_v37, 0.0  ;;  %v1388_v58 = vpop.f32.mrb[10].mxu1 }
 0x115   : > { %v927_v53 = vmul.f32 0.2, %v717_v37  ;;  %vm866_vm15 = vcmp.ge.f32.partialorder %v728_v38, 0.0  ;;  %v930_v54 = vmul.f32 0.2, %v728_v38  ;;  %vm864_vm1 = vcmp.ge.f32.partialorder %v720_v39, 0.0 }
 0x116   : > { %v993_v55 = vsel %vm865_vm13, %v725_v36, %v929_v50  ;;  %v928_v56 = vmul.f32 0.2, %v720_v39  ;;  %vm837_vm2 = vcmp.ge.f32.partialorder %v613_v46, 0.0  ;;  %v607_v57 = vpop.f32.mrb[11].mxu0  ;;  %v1673_v59 = vsel %vm1019_vm0, %v960_v45, -inf  ;;  %v735_v0 = vpop.f32.mrb[11].mxu1 }
 0x117   : > { %v991_v60 = vsel %vm863_vm14, %v717_v37, %v927_v53  ;;  %v994_v61 = vsel %vm866_vm15, %v728_v38, %v930_v54  ;;  %v901_v63 = vmul.f32 0.2, %v613_v46  ;;  %v1676_v1 = vsel %vm1019_vm0, %v993_v55, -inf }
 0x118   : > { %v1679_v4 = vsel %vm1019_vm0, %v991_v60, -inf  ;;  %v1682_v5 = vsel %vm1019_vm0, %v994_v61, -inf  ;;  %v605_v6 = vadd.f32 %v1618_v40, %v604_v47  ;;  %v992_v7 = vsel %vm864_vm1, %v720_v39, %v928_v56 }
 0x119   : > { %v965_v10 = vsel %vm837_vm2, %v613_v46, %v901_v63  ;;  %v616_v11 = vadd.f32 %v1356_v51, %v1618_v40  ;;  %v608_v12 = vadd.f32 %v1618_v40, %v607_v57  ;;  %vm869_vm4 = vcmp.ge.f32.partialorder %v741_v52, 0.0 }
 0x11a   : > { %v1688_v13 = vsel %vm1019_vm0, %v965_v10, -inf  ;;  %vm835_vm3 = vcmp.ge.f32.partialorder %v605_v6, 0.0  ;;  %v899_v14 = vmul.f32 0.2, %v605_v6  ;;  %v1359_v15 = vpop.f32.mrb[12].mxu0  ;;  %v1391_v19 = vpop.f32.mrb[12].mxu1  ;;  %v733_v23 = vadd.f32 %v1618_v40, %v732_v48 }
 0x11b   : > { %v1052_v16 = vmax.f32 %v1627_v62, %v1688_v13  ;;  %vm838_vm5 = vcmp.ge.f32.partialorder %v616_v11, 0.0  ;;  %v902_v17 = vmul.f32 0.2, %v616_v11  ;;  %vm836_vm6 = vcmp.ge.f32.partialorder %v608_v12, 0.0  ;;  %v620_v18 = vpop.f32.mrb[13].mxu0  ;;  %v748_v25 = vpop.f32.mrb[13].mxu1 }
 0x11c   : > { %v963_v20 = vsel %vm835_vm3, %v605_v6, %v899_v14  ;;  %v900_v21 = vmul.f32 0.2, %v608_v12  ;;  %v933_v22 = vmul.f32 0.2, %v741_v52  ;;  %v1360_v24 = vpop.f32.mrb[14].mxu0  ;;  %v744_v29 = vadd.f32 %v1388_v58, %v1618_v40  ;;  %v1392_v35 = vpop.f32.mrb[14].mxu1 }
 0x11d   : > { %v1694_v27 = vsel %vm1019_vm0, %v963_v20, -inf  ;;  %v966_v28 = vsel %vm838_vm5, %v616_v11, %v902_v17  ;;  %v736_v32 = vadd.f32 %v1618_v40, %v735_v0  ;;  %v623_v34 = vpop.f32.mrb[15].mxu0  ;;  %v1699_v36 = vsel %vm1019_vm0, %v992_v7, -inf  ;;  %v751_v41 = vpop.f32.mrb[15].mxu1 }
 0x11e   : > { %v1704_v38 = vsel %vm1019_vm0, %v966_v28, -inf  ;;  %v964_v39 = vsel %vm836_vm6, %v608_v12, %v900_v21  ;;  %v997_v45 = vsel %vm869_vm4, %v741_v52, %v933_v22  ;;  %vm867_vm7 = vcmp.ge.f32.partialorder %v733_v23, 0.0 }
 0x11f   : > { %v1710_v44 = vsel %vm1019_vm0, %v964_v39, -inf  ;;  %v931_v47 = vmul.f32 0.2, %v733_v23  ;;  %vm870_vm8 = vcmp.ge.f32.partialorder %v744_v29, 0.0  ;;  %v934_v48 = vmul.f32 0.2, %v744_v29 }
 0x120   : > { %vm868_vm9 = vcmp.ge.f32.partialorder %v736_v32, 0.0  ;;  %v932_v50 = vmul.f32 0.2, %v736_v32  ;;  %v629_v51 = vadd.f32 %v1359_v15, %v1618_v40  ;;  %v621_v53 = vadd.f32 %v1618_v40, %v620_v18 }
 0x121   : > { %v995_v54 = vsel %vm867_vm7, %v733_v23, %v931_v47  ;;  %v998_v55 = vsel %vm870_vm8, %v744_v29, %v934_v48  ;;  %v632_v56 = vadd.f32 %v1360_v24, %v1618_v40  ;;  %v624_v57 = vadd.f32 %v1618_v40, %v623_v34 }
 0x122   : > { %v1363_v52 = vpop.f32.mrb[16].mxu0  ;;  %v1719_v58 = vpop.f32.mrb[16].mxu1  ;;  %v1722_v60 = vsel %vm1019_vm0, %v997_v45, -inf  ;;  %v1725_v61 = vsel %vm1019_vm0, %v995_v54, -inf  ;;  %v1728_v63 = vsel %vm1019_vm0, %v998_v55, -inf  ;;  %vm841_vm10 = vcmp.ge.f32.partialorder %v629_v51, 0.0 }
 0x123   : > { %v636_v0 = vpop.f32.mrb[17].mxu0  ;;  %v1730_v6 = vpop.f32.mrb[17].mxu1  ;;  %v996_v7 = vsel %vm868_vm9, %v736_v32, %v932_v50  ;;  %v905_v10 = vmul.f32 0.2, %v629_v51  ;;  %vm839_vm11 = vcmp.ge.f32.partialorder %v621_v53, 0.0  ;;  %vm842_vm12 = vcmp.ge.f32.partialorder %v632_v56, 0.0 }
 0x124   : > { %v903_v11 = vmul.f32 0.2, %v621_v53  ;;  %v906_v12 = vmul.f32 0.2, %v632_v56  ;;  %vm840_vm13 = vcmp.ge.f32.partialorder %v624_v57, 0.0  ;;  %v757_v18 = vadd.f32 %v1391_v19, %v1618_v40  ;;  %v1364_v21 = vpop.f32.mrb[18].mxu0 }
 0x125   : > { %v904_v14 = vmul.f32 0.2, %v624_v57  ;;  %v969_v15 = vsel %vm841_vm10, %v629_v51, %v905_v10  ;;  %v749_v20 = vadd.f32 %v1618_v40, %v748_v25  ;;  %v1735_v22 = vpop.f32.mrb[18].mxu1  ;;  %v639_v32 = vpop.f32.mrb[19].mxu0  ;;  %v752_v54 = vadd.f32 %v1618_v40, %v751_v41 }
 0x126   : > { %v967_v17 = vsel %vm839_vm11, %v621_v53, %v903_v11  ;;  %v1738_v23 = vsel %vm1019_vm0, %v969_v15, -inf  ;;  %v970_v28 = vsel %vm842_vm12, %v632_v56, %v906_v12  ;;  %v767_v34 = vpop.f32.mrb[19].mxu1  ;;  %vm873_vm14 = vcmp.ge.f32.partialorder %v757_v18, 0.0 }
 0x127   : > { %v1741_v24 = vsel %vm1019_vm0, %v967_v17, -inf  ;;  %v968_v29 = vsel %vm840_vm13, %v624_v57, %v904_v14  ;;  %v1748_v25 = vsel %vm1019_vm0, %v970_v28, -inf  ;;  %v937_v50 = vmul.f32 0.2, %v757_v18 }
 0x128   : > { %v1751_v45 = vsel %vm1019_vm0, %v968_v29, -inf  ;;  %vm871_vm15 = vcmp.ge.f32.partialorder %v749_v20, 0.0  ;;  %v935_v51 = vmul.f32 0.2, %v749_v20  ;;  %v760_v53 = vadd.f32 %v1392_v35, %v1618_v40 }
 0x129   : > { %v1001_v57 = vsel %vm873_vm14, %v757_v18, %v937_v50  ;;  %v645_v10 = vadd.f32 %v1363_v52, %v1618_v40  ;;  %v637_v11 = vadd.f32 %v1618_v40, %v636_v0  ;;  %v648_v12 = vadd.f32 %v1364_v21, %v1618_v40 }
 0x12a   : > { %v1367_v55 = vpop.f32.mrb[20].mxu0  ;;  %v1759_v56 = vpop.f32.mrb[20].mxu1  ;;  %v1767_v17 = vsel %vm1019_vm0, %v996_v7, -inf  ;;  %v999_v28 = vsel %vm871_vm15, %v749_v20, %v935_v51  ;;  %vm874_vm1 = vcmp.ge.f32.partialorder %v760_v53, 0.0  ;;  %v938_v35 = vmul.f32 0.2, %v760_v53 }
 0x12b   : > { %v652_v14 = vpop.f32.mrb[21].mxu0  ;;  %v1764_v15 = vpop.f32.mrb[21].mxu1  ;;  %v1772_v18 = vsel %vm1019_vm0, %v1001_v57, -inf  ;;  %vm872_vm2 = vcmp.ge.f32.partialorder %v752_v54, 0.0  ;;  %v936_v52 = vmul.f32 0.2, %v752_v54  ;;  %v640_v46 = vadd.f32 %v1618_v40, %v639_v32 }
 0x12c   : > { %v1368_v41 = vpop.f32.mrb[22].mxu0  ;;  %v1769_v29 = vpop.f32.mrb[22].mxu1  ;;  %vm845_vm3 = vcmp.ge.f32.partialorder %v645_v10, 0.0  ;;  %v1002_v21 = vsel %vm874_vm1, %v760_v53, %v938_v35  ;;  %v909_v50 = vmul.f32 0.2, %v645_v10  ;;  %vm843_vm4 = vcmp.ge.f32.partialorder %v637_v11, 0.0 }
 0x12d   : > { %v1774_v0 = vpop.f32.mrb[23].mxu0  ;;  %v907_v48 = vmul.f32 0.2, %v637_v11  ;;  %v1776_v7 = vpop.f32.mrb[23].mxu1  ;;  %v1779_v20 = vsel %vm1019_vm0, %v999_v28, -inf  ;;  %v1782_v51 = vsel %vm1019_vm0, %v1002_v21, -inf  ;;  %v1000_v47 = vsel %vm872_vm2, %v752_v54, %v936_v52 }
 0x12e   : > { %vm846_vm5 = vcmp.ge.f32.partialorder %v648_v12, 0.0  ;;  %v910_v57 = vmul.f32 0.2, %v648_v12  ;;  %v973_v19 = vsel %vm845_vm3, %v645_v10, %v909_v50  ;;  %v773_v37 = vadd.f32 %v1719_v58, %v1618_v40 }
 0x12f   : > { %v971_v39 = vsel %vm843_vm4, %v637_v11, %v907_v48  ;;  %v1053_v53 = vsel %vm1019_vm0, %v973_v19, -inf  ;;  %v2028_v54 = vmax.f32 %v1630_v2, %v1694_v27  ;;  %vm844_vm6 = vcmp.ge.f32.partialorder %v640_v46, 0.0 }
 0x130   : > { %v1023_v35 = vsel %vm1019_vm0, %v971_v39, -inf  ;;  %v974_v42 = vsel %vm846_vm5, %v648_v12, %v910_v57  ;;  %v1792_v28 = vmax.f32 %v1052_v16, %v1053_v53  ;;  %v2029_v58 = vmax.f32 %v1633_v3, %v1704_v38 }
 0x131   : > { %v1797_v10 = vmax.f32 %v2028_v54, %v1023_v35  ;;  %v1068_v32 = vsel %vm1019_vm0, %v974_v42, -inf  ;;  %v908_v62 = vmul.f32 0.2, %v640_v46  ;;  %vm877_vm7 = vcmp.ge.f32.partialorder %v773_v37, 0.0 }
 0x132   : > { %v1800_v19 = vpop.f32.mrb[24].mxu0  ;;  %v1802_v39 = vpop.f32.mrb[24].mxu1  ;;  %v1807_v48 = vmax.f32 %v2029_v58, %v1068_v32  ;;  %v941_v13 = vmul.f32 0.2, %v773_v37  ;;  %v765_v2 = vadd.f32 %v1618_v40, %v1730_v6  ;;  %v776_v27 = vadd.f32 %v1735_v22, %v1618_v40 }
 0x133   : > { %v1809_v16 = vpop.f32.mrb[25].mxu0  ;;  %v768_v42 = vadd.f32 %v1618_v40, %v767_v34  ;;  %v661_v11 = vadd.f32 %v1367_v55, %v1618_v40  ;;  %v1819_v3 = vpop.f32.mrb[25].mxu1  ;;  %v1822_v38 = vsel %vm1019_vm0, %v1000_v47, -inf  ;;  %v972_v52 = vsel %vm844_vm6, %v640_v46, %v908_v62 }
 0x134   : > { %v1817_v12 = vpop.f32.mrb[26].mxu0  ;;  %2030 = vst [vmem:[#allocation2_spill] sm:$0xff] %v1822_v38  ;;  %v1005_v21 = vsel %vm877_vm7, %v773_v37, %v941_v13  ;;  %v653_v50 = vadd.f32 %v1618_v40, %v652_v14  ;;  %v1827_v6 = vpop.f32.mrb[26].mxu1  ;;  %v1038_v22 = vsel %vm1019_vm0, %v972_v52, -inf  ;;  %vm875_vm8 = vcmp.ge.f32.partialorder %v765_v2, 0.0 }
 0x135   : > { %v1825_v57 = vpop.f32.mrb[27].mxu0  ;;  %v939_v34 = vmul.f32 0.2, %v765_v2  ;;  %v664_v55 = vadd.f32 %v1368_v41, %v1618_v40  ;;  %v1831_v53 = vpop.f32.mrb[27].mxu1  ;;  %v2031_v47 = vmax.f32 %v1637_v8, %v1710_v44  ;;  %vm878_vm9 = vcmp.ge.f32.partialorder %v776_v27, 0.0 }
 0x136   : > { %v942_v37 = vmul.f32 0.2, %v776_v27  ;;  %vm876_vm10 = vcmp.ge.f32.partialorder %v768_v42, 0.0  ;;  %v940_v14 = vmul.f32 0.2, %v768_v42  ;;  %vm849_vm11 = vcmp.ge.f32.partialorder %v661_v11, 0.0 }
 0x137   : > { %v1836_v35 = vmax.f32 %v2031_v47, %v1038_v22  ;;  %v1003_v46 = vsel %vm875_vm8, %v765_v2, %v939_v34  ;;  %v913_v54 = vmul.f32 0.2, %v661_v11  ;;  %v1839_v32 = vsel %vm1019_vm0, %v1005_v21, -inf }
 0x138   : > { %v1006_v58 = vsel %vm878_vm9, %v776_v27, %v942_v37  ;;  %vm847_vm12 = vcmp.ge.f32.partialorder %v653_v50, 0.0  ;;  %v911_v41 = vmul.f32 0.2, %v653_v50  ;;  %v1842_v62 = vsel %vm1019_vm0, %v1003_v46, -inf }
 0x139   : > { %v1845_v8 = vsel %vm1019_vm0, %v1006_v58, -inf  ;;  %v977_v44 = vsel %vm849_vm11, %v661_v11, %v913_v54  ;;  %vm850_vm13 = vcmp.ge.f32.partialorder %v664_v55, 0.0  ;;  %v1004_v52 = vsel %vm876_vm10, %v768_v42, %v940_v14 }
 0x13a   : > { %v1847_v13 = vpop.f32.mrb[28].mxu0  ;;  %v1849_v2 = vpop.f32.mrb[28].mxu1  ;;  %v1113_v22 = vsel %vm1019_vm0, %v977_v44, -inf  ;;  %v975_v21 = vsel %vm847_vm12, %v653_v50, %v911_v41  ;;  %v914_v34 = vmul.f32 0.2, %v664_v55  ;;  %v2032_v37 = vmax.f32 %v1658_v33, %v1738_v23 }
 0x13b   : > { %v1852_v27 = vpop.f32.mrb[29].mxu0  ;;  %v1854_v47 = vpop.f32.mrb[29].mxu1  ;;  %v1083_v11 = vsel %vm1019_vm0, %v975_v21, -inf  ;;  %v656_v54 = vadd.f32 %v1618_v40, %v1774_v0  ;;  %v789_v42 = vadd.f32 %v1759_v56, %v1618_v40  ;;  %v2033_v58 = vmax.f32 %v1665_v43, %v1741_v24 }
 0x13c   : > { %v1859_v46 = vmax.f32 %v2032_v37, %v1113_v22  ;;  %v1866_v14 = vpop.f32.mrb[30].mxu0  ;;  %v1868_v50 = vpop.f32.mrb[30].mxu1  ;;  %v978_v33 = vsel %vm850_vm13, %v664_v55, %v914_v34  ;;  %v781_v23 = vadd.f32 %v1618_v40, %v1764_v15  ;;  %v792_v0 = vadd.f32 %v1769_v29, %v1618_v40 }
 0x13d   : > { %v1873_v41 = vmax.f32 %v2033_v58, %v1083_v11  ;;  %v1880_v44 = vpop.f32.mrb[31].mxu0  ;;  %v1882_v56 = vpop.f32.mrb[31].mxu1  ;;  %v1128_v22 = vsel %vm1019_vm0, %v978_v33, -inf  ;;  %vm848_vm14 = vcmp.ge.f32.partialorder %v656_v54, 0.0  ;;  %v912_v21 = vmul.f32 0.2, %v656_v54 }
 0x13e   : > { %vm881_vm15 = vcmp.ge.f32.partialorder %v789_v42, 0.0  ;;  %v2034_v43 = vmax.f32 %v1669_v49, %v1748_v25  ;;  %v945_v55 = vmul.f32 0.2, %v789_v42  ;;  %vm879_vm1 = vcmp.ge.f32.partialorder %v781_v23, 0.0 }
 0x13f   : > { %v943_v15 = vmul.f32 0.2, %v781_v23  ;;  %v976_v34 = vsel %vm848_vm14, %v656_v54, %v912_v21  ;;  %vm882_vm2 = vcmp.ge.f32.partialorder %v792_v0, 0.0  ;;  %v946_v29 = vmul.f32 0.2, %v792_v0 }
 0x140   : > { %v1888_v24 = vmax.f32 %v2034_v43, %v1128_v22  ;;  %v784_v37 = vadd.f32 %v1618_v40, %v1776_v7  ;;  %v1098_v11 = vsel %vm1019_vm0, %v976_v34, -inf  ;;  %v1009_v58 = vsel %vm881_vm15, %v789_v42, %v945_v55 }
 0x141   : > { %v1007_v33 = vsel %vm879_vm1, %v781_v23, %v943_v15  ;;  %v677_v38 = vadd.f32 %v1800_v19, %v1618_v40  ;;  %v1896_v49 = vsel %vm1019_vm0, %v1004_v52, -inf  ;;  %v2035_v25 = vmax.f32 %v1673_v59, %v1751_v45 }
 0x142   : > { %v1904_v54 = vsel %vm1019_vm0, %v1009_v58, -inf  ;;  %v1010_v21 = vsel %vm882_vm2, %v792_v0, %v946_v29  ;;  %v1907_v7 = vsel %vm1019_vm0, %v1007_v33, -inf  ;;  %vm880_vm3 = vcmp.ge.f32.partialorder %v784_v37, 0.0 }
 0x143   : > { %v1901_v22 = vmax.f32 %v2035_v25, %v1098_v11  ;;  %v944_v42 = vmul.f32 0.2, %v784_v37  ;;  %vm853_vm4 = vcmp.ge.f32.partialorder %v677_v38, 0.0  ;;  %v917_v23 = vmul.f32 0.2, %v677_v38 }
 0x144   : > { %v669_v19 = vadd.f32 %v1618_v40, %v1809_v16  ;;  %v680_v52 = vadd.f32 %v1817_v12, %v1618_v40  ;;  %v672_v59 = vadd.f32 %v1618_v40, %v1825_v57  ;;  %v1916_v45 = vsel %vm1019_vm0, %v1010_v21, -inf }
 0x145   : > { %v1918_v0 = vsel %vm880_vm3, %v784_v37, %v944_v42  ;;  %v805_v43 = vadd.f32 %v1802_v39, %v1618_v40  ;;  %v797_v55 = vadd.f32 %v1618_v40, %v1819_v3  ;;  %v981_v15 = vsel %vm853_vm4, %v677_v38, %v917_v23 }
 0x146   : > { %vm851_vm5 = vcmp.ge.f32.partialorder %v669_v19, 0.0  ;;  %v915_v16 = vmul.f32 0.2, %v669_v19  ;;  %v808_v12 = vadd.f32 %v1827_v6, %v1618_v40  ;;  %v1055_v34 = vsel %vm1019_vm0, %v981_v15, -inf }
 0x147   : > { %vm854_vm6 = vcmp.ge.f32.partialorder %v680_v52, 0.0  ;;  %v918_v57 = vmul.f32 0.2, %v680_v52  ;;  %vm852_vm7 = vcmp.ge.f32.partialorder %v672_v59, 0.0  ;;  %v1056_v29 = vmax.f32 %v1792_v28, %v1055_v34 }
 0x148   : > { %v979_v37 = vsel %vm851_vm5, %v669_v19, %v915_v16  ;;  %v916_v11 = vmul.f32 0.2, %v672_v59  ;;  %vm885_vm8 = vcmp.ge.f32.partialorder %v805_v43, 0.0  ;;  %v949_v38 = vmul.f32 0.2, %v805_v43 }
 0x149   : > { %v1025_v39 = vsel %vm1019_vm0, %v979_v37, -inf  ;;  %v982_v3 = vsel %vm854_vm6, %v680_v52, %v918_v57  ;;  %vm883_vm9 = vcmp.ge.f32.partialorder %v797_v55, 0.0  ;;  %v1058_v58 = vmax.f32 %v1056_v29, %v1640_v9 }
 0x14a   : > { %v1026_v6 = vmax.f32 %v1797_v10, %v1025_v39  ;;  %v1070_v33 = vsel %vm1019_vm0, %v982_v3, -inf  ;;  %v980_v25 = vsel %vm852_vm7, %v672_v59, %v916_v11  ;;  %v1013_v42 = vsel %vm885_vm8, %v805_v43, %v949_v38 }
 0x14b   : > { %v1071_v21 = vmax.f32 %v1807_v48, %v1070_v33  ;;  %v1040_v28 = vsel %vm1019_vm0, %v980_v25, -inf  ;;  %v947_v23 = vmul.f32 0.2, %v797_v55  ;;  %v1060_v52 = vmax.f32 %v1058_v58, %v1722_v60 }
 0x14c   : > { %v1028_v19 = vmax.f32 %v1026_v6, %v1648_v26  ;;  %v1041_v15 = vmax.f32 %v1836_v35, %v1040_v28  ;;  %v1063_v9 = vsel %vm1019_vm0, %v1013_v42, -inf  ;;  %vm886_vm10 = vcmp.ge.f32.partialorder %v808_v12, 0.0 }
 0x14d   : > { %v1073_v10 = vmax.f32 %v1071_v21, %v1652_v30  ;;  %v1011_v16 = vsel %vm883_vm9, %v797_v55, %v947_v23  ;;  %v950_v59 = vmul.f32 0.2, %v808_v12  ;;  %v1062_v34 = vmax.f32 %v1060_v52, %v1839_v32 }
 0x14e   : > { %v1043_v48 = vmax.f32 %v1041_v15, %v1655_v31  ;;  %v1030_v43 = vmax.f32 %v1028_v19, %v1725_v61  ;;  %v1033_v26 = vsel %vm1019_vm0, %v1011_v16, -inf  ;;  %v800_v35 = vadd.f32 %v1618_v40, %v1831_v53 }
 0x14f   : > { %v1014_v60 = vsel %vm886_vm10, %v808_v12, %v950_v59  ;;  %v1075_v30 = vmax.f32 %v1073_v10, %v1728_v63  ;;  %v693_v31 = vadd.f32 %v1847_v13, %v1618_v40  ;;  %v1064_v32 = vmax.f32 %v1062_v34, %v1063_v9 }
 0x150   : > { %v1032_v61 = vmax.f32 %v1030_v43, %v1842_v62  ;;  %v1078_v55 = vsel %vm1019_vm0, %v1014_v60, -inf  ;;  %v1045_v57 = vmax.f32 %v1043_v48, %v1767_v17  ;;  %vm884_vm11 = vcmp.ge.f32.partialorder %v800_v35, 0.0 }
 0x151   : > { %v1077_v29 = vmax.f32 %v1075_v30, %v1845_v8  ;;  %v948_v12 = vmul.f32 0.2, %v800_v35  ;;  %vm857_vm12 = vcmp.ge.f32.partialorder %v693_v31, 0.0  ;;  %1142 = vst.msk [vmem:[%s1947_s12 + $0x10] sm:$0xff] %vm1019_vm0, %v1064_v32  ;;  %v921_v13 = vmul.f32 0.2, %v693_v31 }
 0x152   : > { %v1034_v63 = vmax.f32 %v1032_v61, %v1033_v26  ;;  %v1047_v53 = vmax.f32 %v1045_v57, %v1896_v49  ;;  %v685_v62 = vadd.f32 %v1618_v40, %v1852_v27  ;;  %v696_v17 = vadd.f32 %v1866_v14, %v1618_v40  ;;  %v2036_v30 = vld [vmem:[#allocation2_spill] sm:$0xff] }
 0x153   : > { %v1079_v37 = vmax.f32 %v1077_v29, %v1078_v55  ;;  %v1012_v11 = vsel %vm884_vm11, %v800_v35, %v948_v12  ;;  %v688_v8 = vadd.f32 %v1618_v40, %v1880_v44  ;;  %v985_v3 = vsel %vm857_vm12, %v693_v31, %v921_v13 }
 0x154   : > { %1140 = vst.msk [vmem:[%s1947_s12] sm:$0xff] %vm1019_vm0, %v1034_v63  ;;  %v1048_v39 = vsel %vm1019_vm0, %v1012_v11, -inf  ;;  %vm855_vm13 = vcmp.ge.f32.partialorder %v685_v62, 0.0  ;;  %v919_v49 = vmul.f32 0.2, %v685_v62  ;;  %v1115_v27 = vsel %vm1019_vm0, %v985_v3, -inf }
 0x155   : > { %1143 = vst.msk [vmem:[%s1947_s12 + $0x18] sm:$0xff] %vm1019_vm0, %v1079_v37  ;;  %v1049_v38 = vmax.f32 %v1047_v53, %v1048_v39  ;;  %vm858_vm14 = vcmp.ge.f32.partialorder %v696_v17, 0.0  ;;  %v922_v58 = vmul.f32 0.2, %v696_v17  ;;  %v1116_v14 = vmax.f32 %v1859_v46, %v1115_v27 }
 0x156   : > { %v983_v6 = vsel %vm855_vm13, %v685_v62, %v919_v49  ;;  %vm856_vm15 = vcmp.ge.f32.partialorder %v688_v8, 0.0  ;;  %v920_v33 = vmul.f32 0.2, %v688_v8  ;;  %v821_v21 = vadd.f32 %v1849_v2, %v1618_v40 }
 0x157   : > { %1141 = vst.msk [vmem:[%s1947_s12 + $0x8] sm:$0xff] %vm1019_vm0, %v1049_v38  ;;  %v1085_v44 = vsel %vm1019_vm0, %v983_v6, -inf  ;;  %v986_v25 = vsel %vm858_vm14, %v696_v17, %v922_v58  ;;  %v813_v28 = vadd.f32 %v1618_v40, %v1854_v47  ;;  %v1118_v42 = vmax.f32 %v1116_v14, %v1676_v1 }
 0x158   : > { %v1086_v23 = vmax.f32 %v1873_v41, %v1085_v44  ;;  %v1130_v46 = vsel %vm1019_vm0, %v986_v25, -inf  ;;  %v984_v19 = vsel %vm856_vm15, %v688_v8, %v920_v33  ;;  %vm889_vm1 = vcmp.ge.f32.partialorder %v821_v21, 0.0 }
 0x159   : > { %v1131_v15 = vmax.f32 %v1888_v24, %v1130_v46  ;;  %v1100_v52 = vsel %vm1019_vm0, %v984_v19, -inf  ;;  %v953_v9 = vmul.f32 0.2, %v821_v21  ;;  %v1120_v16 = vmax.f32 %v1118_v42, %v1772_v18 }
 0x15a   : > { %v1088_v10 = vmax.f32 %v1086_v23, %v1679_v4  ;;  %v1101_v2 = vmax.f32 %v1901_v22, %v1100_v52  ;;  %vm887_vm2 = vcmp.ge.f32.partialorder %v813_v28, 0.0  ;;  %v951_v41 = vmul.f32 0.2, %v813_v28 }
 0x15b   : > { %v1133_v1 = vmax.f32 %v1131_v15, %v1682_v5  ;;  %v1017_v47 = vsel %vm889_vm1, %v821_v21, %v953_v9  ;;  %v824_v59 = vadd.f32 %v1868_v50, %v1618_v40  ;;  %v1122_v48 = vmax.f32 %v1120_v16, %v1904_v54 }
 0x15c   : > { %v1103_v24 = vmax.f32 %v1101_v2, %v1699_v36  ;;  %v1123_v34 = vsel %vm1019_vm0, %v1017_v47, -inf  ;;  %v1090_v4 = vmax.f32 %v1088_v10, %v1779_v20  ;;  %v1015_v22 = vsel %vm887_vm2, %v813_v28, %v951_v41 }
 0x15d   : > { %vm890_vm3 = vcmp.ge.f32.partialorder %v824_v59, 0.0  ;;  %v954_v18 = vmul.f32 0.2, %v824_v59  ;;  %v1135_v43 = vmax.f32 %v1133_v1, %v1782_v51  ;;  %v1106_v5 = vsel %vm1019_vm0, %v1918_v0, -inf }
 0x15e   : > { %v1124_v26 = vmax.f32 %v1122_v48, %v1123_v34  ;;  %v1092_v36 = vmax.f32 %v1090_v4, %v1907_v7  ;;  %v816_v50 = vadd.f32 %v1618_v40, %v1882_v56  ;;  %v1093_v54 = vsel %vm1019_vm0, %v1015_v22, -inf }
 0x15f   : > { %v1018_v20 = vsel %vm890_vm3, %v824_v59, %v954_v18  ;;  %v1137_v60 = vmax.f32 %v1135_v43, %v1916_v45  ;;  %v1105_v35 = vmax.f32 %v1103_v24, %v2036_v30 }
 0x160   : > { %1146 = vst.msk [vmem:[%s1947_s12 + $0x30] sm:$0xff] %vm1019_vm0, %v1124_v26  ;;  %v1094_v51 = vmax.f32 %v1092_v36, %v1093_v54  ;;  %v1138_v0 = vsel %vm1019_vm0, %v1018_v20, -inf  ;;  %vm888_vm4 = vcmp.ge.f32.partialorder %v816_v50, 0.0  ;;  %v952_v31 = vmul.f32 0.2, %v816_v50 }
 0x161   : > { %v1139_v32 = vmax.f32 %v1137_v60, %v1138_v0  ;;  %v1107_v7 = vmax.f32 %v1105_v35, %v1106_v5 }
 0x162   : > { %1144 = vst.msk [vmem:[%s1947_s12 + $0x20] sm:$0xff] %vm1019_vm0, %v1094_v51  ;;  %v1016_v40 = vsel %vm888_vm4, %v816_v50, %v952_v31 }
 0x163   : > { %1147 = vst.msk [vmem:[%s1947_s12 + $0x38] sm:$0xff] %vm1019_vm0, %v1139_v32  ;;  %v1108_v56 = vsel %vm1019_vm0, %v1016_v40, -inf }
 0x164   : > { %v1109_v61 = vmax.f32 %v1107_v7, %v1108_v56 }
 0x166   : > { %1145 = vst.msk [vmem:[%s1947_s12 + $0x28] sm:$0xff] %vm1019_vm0, %v1109_v61 }
 0x167 PF: > { %s13_s14 = sadd.s32 1, %s1511_s14   ;;  %s2037_s12 = smov %s1507_s13 }
 0x168   : > { %p10_p5 = scmp.ge.s32.totalorder %s13_s14, 4   ;;  %s2038_s13 = smov %s2040_s15 }
 0x16a   :  { %12 = sbr.rel (!%p10_p5) target bundleno = 2 (0x2), region = 62 }

// kernel: dgcnn_semseg_forward.14
= control target key start
LH: loop header
LB: loop body
LE: loop exit
PB: predicated region body
PF: predicated region fallthrough
CT: control target
= control target key end

     0   :  { %s2026_s12 = smov 0   ;;  %s2028_s13 = smov 0   ;;  %s2558_s0 = inlined_call_operand.vmem [shape: bf16[2,64,192], index: 0, kind: input, shape index: {}]   ;;  %s2559_s1 = inlined_call_operand.vmem [shape: bf16[192,1024], index: 1, kind: input, shape index: {}]   ;;  %s2560_s2 = inlined_call_operand.vmem [shape: f32[1,1024], index: 2, kind: input, shape index: {}]   ;;  %s2561_s3 = inlined_call_operand.vmem [shape: f32[2,1,1024], index: 3, kind: output, shape index: {}]  }
   0x1   :  { %s2030_s14 = smov 0  }
   0x2 LB: > { %s32_s15 = sadd.s32 1, %s1999_s13  ;;  %p1817_p0 = scmp.ge.s32.totalorder %s2003_s14, 1  ;;  %s2003_s14 = sphi %s2030_s14, %s13_s14   ;;  %s1999_s13 = sphi %s2028_s13, %s2563_s13   ;;  %s1995_s12 = sphi %s2026_s12, %s2562_s12  }
   0x3   : > { %p34_p1 = scmp.ge.s32.totalorder %s32_s15, 2  ;;  %p170_p2 = scmp.lt.s32.totalorder %s2003_s14, 3 }
   0x5   : > { %s2565_s15 = smov (%p34_p1, %s32_s15), 0  ;;  %p171_p3 = pnand %p1817_p0, %p170_p2 }
   0x6   : > { %v233_v0 = vld [vmem:[%s2559_s1] sm:$0xff] (!%p171_p3)  ;;  %v234_v2 = vld [vmem:[%s2559_s1 + $0x8] sm:$0xff] (!%p171_p3)  ;;  %p205_p4 = scmp.lt.s32.totalorder (!%p171_p3), %s1995_s12, 1  ;;  %vm887_vm0 = vcmask (!%p171_p3), 523264  }
   0x7   : > { %174 = sbr.rel (%p171_p3) target bundleno = 388 (0x184), region = 32  ;;  %v237_v1 = vld [vmem:[%s2559_s1 + $0x20] sm:$0xff] (!%p171_p3)  ;;  %v238_v4 = vld [vmem:[%s2559_s1 + $0x28] sm:$0xff] (!%p171_p3) }
   0x8   : > { %v1830_v3 = vcombine.high (!%p171_p3), %v233_v0, %v237_v1  ;;  %v1829_v5 = vcombine.low (!%p171_p3), %v233_v0, %v237_v1  ;;  %v241_v6 = vld [vmem:[%s2559_s1 + $0x40] sm:$0xff] (!%p171_p3)  ;;  %v1832_v8 = vcombine.high (!%p171_p3), %v234_v2, %v238_v4  ;;  %v1831_v9 = vcombine.low (!%p171_p3), %v234_v2, %v238_v4  ;;  %v242_v11 = vld [vmem:[%s2559_s1 + $0x48] sm:$0xff] (!%p171_p3) }
   0x9   : > { %v245_v7 = vld [vmem:[%s2559_s1 + $0x60] sm:$0xff] (!%p171_p3)  ;;  %v246_v12 = vld [vmem:[%s2559_s1 + $0x68] sm:$0xff] (!%p171_p3) }
   0xa   : > { %v1838_v10 = vcombine.high (!%p171_p3), %v241_v6, %v245_v7  ;;  %v249_v13 = vld [vmem:[%s2559_s1 + $0x80] sm:$0xff] (!%p171_p3)  ;;  %900 = vmatprep.subr.bf16.mxu0 (!%p171_p3), %v1830_v3  ;;  %v1840_v14 = vcombine.high (!%p171_p3), %v242_v11, %v246_v12  ;;  %v250_v16 = vld [vmem:[%s2559_s1 + $0x88] sm:$0xff] (!%p171_p3)  ;;  %973 = vmatprep.subr.bf16.mxu1 (!%p171_p3), %v1832_v8  ;;  %v1837_v18 = vcombine.low (!%p171_p3), %v241_v6, %v245_v7 }
   0xb   : > { %v253_v15 = vld [vmem:[%s2559_s1 + $0xa0] sm:$0xff] (!%p171_p3)  ;;  %v254_v17 = vld [vmem:[%s2559_s1 + $0xa8] sm:$0xff] (!%p171_p3)  ;;  %901 = vmatpush1.bf16.msra.mxu0 (!%p171_p3), %v1829_v5  ;;  %974 = vmatpush1.bf16.msra.mxu1 (!%p171_p3), %v1831_v9  ;;  %v1839_v19 = vcombine.low (!%p171_p3), %v242_v11, %v246_v12 }
   0xc   : > { %902 = vmatprep.subr.bf16.mxu0 (!%p171_p3), %v1838_v10  ;;  %v1846_v20 = vcombine.high (!%p171_p3), %v249_v13, %v253_v15  ;;  %975 = vmatprep.subr.bf16.mxu1 (!%p171_p3), %v1840_v14  ;;  %v1848_v21 = vcombine.high (!%p171_p3), %v250_v16, %v254_v17  ;;  %v257_v22 = vld [vmem:[%s2559_s1 + $0xc0] sm:$0xff] (!%p171_p3)  ;;  %v258_v24 = vld [vmem:[%s2559_s1 + $0xc8] sm:$0xff] (!%p171_p3)  ;;  %v1845_v26 = vcombine.low (!%p171_p3), %v249_v13, %v253_v15 }
   0xd   : > { %v261_v23 = vld [vmem:[%s2559_s1 + $0xe0] sm:$0xff] (!%p171_p3)  ;;  %v262_v25 = vld [vmem:[%s2559_s1 + $0xe8] sm:$0xff] (!%p171_p3)  ;;  %v1847_v27 = vcombine.low (!%p171_p3), %v250_v16, %v254_v17 }
   0xe   : > { %s2567_s12 = smov (!%p205_p4, %s1995_s12), 1  ;;  %v1854_v28 = vcombine.high %v257_v22, %v261_v23  ;;  %v1856_v29 = vcombine.high %v258_v24, %v262_v25  ;;  %v265_v30 = vld [vmem:[%s2559_s1 + $0x100] sm:$0xff]  ;;  %v266_v32 = vld [vmem:[%s2559_s1 + $0x108] sm:$0xff]  ;;  %v1853_v34 = vcombine.low %v257_v22, %v261_v23  ;;  %v1855_v35 = vcombine.low %v258_v24, %v262_v25 }
   0xf   : > { %903 = vmatpush1.bf16.msra.mxu0 %v1837_v18  ;;  %976 = vmatpush1.bf16.msra.mxu1 %v1839_v19  ;;  %v269_v31 = vld [vmem:[%s2559_s1 + $0x120] sm:$0xff]  ;;  %s1943_s29 = sshll.u32 %s2567_s12, 6  ;;  %v270_v33 = vld [vmem:[%s2559_s1 + $0x128] sm:$0xff]  ;;  %s1820_s7 = sshll.u32 %s2567_s12, 3 }
  0x10   : > { %904 = vmatprep.subr.bf16.mxu0 %v1846_v20  ;;  %977 = vmatprep.subr.bf16.mxu1 %v1848_v21  ;;  %v1862_v36 = vcombine.high %v265_v30, %v269_v31  ;;  %s2116_s9 = scalar_lea.vmem %s2558_s0, %s1943_s29  ;;  %v1864_v37 = vcombine.high %v266_v32, %v270_v33  ;;  %v273_v38 = vld [vmem:[%s2559_s1 + $0x140] sm:$0xff]  ;;  %v274_v40 = vld [vmem:[%s2559_s1 + $0x148] sm:$0xff]  ;;  %v1861_v42 = vcombine.low %v265_v30, %v269_v31  ;;  %v235_v31 = vld [vmem:[%s2559_s1 + $0x10] sm:$0xff]  ;;  %s223_s11 = scalar_lea.vmem %s2561_s3, %s1820_s7 }
  0x11   : > { %v277_v39 = vld [vmem:[%s2559_s1 + $0x160] sm:$0xff]  ;;  %v278_v41 = vld [vmem:[%s2559_s1 + $0x168] sm:$0xff]  ;;  %v1863_v44 = vcombine.low %v266_v32, %v270_v33  ;;  %v239_v32 = vld [vmem:[%s2559_s1 + $0x30] sm:$0xff] }
  0x12   : > { %v2131_v43 = vld [vmem:[%s2116_s9 + $0x4] ss:$8 sps:$4 sm:$0xff]   ;;  %v1870_v45 = vcombine.high %v273_v38, %v277_v39  ;;  %v1872_v46 = vcombine.high %v274_v40, %v278_v41  ;;  %v1869_v51 = vcombine.low %v273_v38, %v277_v39  ;;  %v1871_v52 = vcombine.low %v274_v40, %v278_v41  ;;  %v236_v33 = vld [vmem:[%s2559_s1 + $0x18] sm:$0xff]  ;;  %v243_v39 = vld [vmem:[%s2559_s1 + $0x50] sm:$0xff] }
  0x13   : > { %905 = vmatpush1.bf16.msra.mxu0 %v1845_v26  ;;  %978 = vmatpush1.bf16.msra.mxu1 %v1847_v27  ;;  %v281_v47 = vld [vmem:[%s2559_s1 + $0x180] sm:$0xff]  ;;  %v282_v49 = vld [vmem:[%s2559_s1 + $0x188] sm:$0xff]  ;;  %v247_v40 = vld [vmem:[%s2559_s1 + $0x70] sm:$0xff] }
  0x14   : > { %906 = vmatprep.subr.bf16.mxu0 %v1854_v28  ;;  %979 = vmatprep.subr.bf16.mxu1 %v1856_v29  ;;  %v285_v48 = vld [vmem:[%s2559_s1 + $0x1a0] sm:$0xff]  ;;  %v286_v50 = vld [vmem:[%s2559_s1 + $0x1a8] sm:$0xff] }
  0x15   : > { %1925 = vmatprep.mubr.msk.bf16.mxu0 %vm887_vm0, %v2131_v43  ;;  %1929 = vmatprep.mubr.msk.bf16.mxu1 %vm887_vm0, %v2131_v43  ;;  %v1878_v53 = vcombine.high %v281_v47, %v285_v48  ;;  %v1880_v54 = vcombine.high %v282_v49, %v286_v50  ;;  %v289_v55 = vld [vmem:[%s2559_s1 + $0x1c0] sm:$0xff]  ;;  %v290_v57 = vld [vmem:[%s2559_s1 + $0x1c8] sm:$0xff]  ;;  %v1877_v59 = vcombine.low %v281_v47, %v285_v48 }
  0x16   : > { %v293_v56 = vld [vmem:[%s2559_s1 + $0x1e0] sm:$0xff]  ;;  %v294_v58 = vld [vmem:[%s2559_s1 + $0x1e8] sm:$0xff]  ;;  %v1879_v60 = vcombine.low %v282_v49, %v286_v50  ;;  %v1842_v47 = vcombine.high %v243_v39, %v247_v40  ;;  %v2237_v49 = vld [vmem:[%s2116_s9 + $0x14] ss:$8 sps:$4 sm:$0xff]  }
  0x17   : > { %907 = vmatpush1.bf16.msra.mxu0 %v1853_v34  ;;  %980 = vmatpush1.bf16.msra.mxu1 %v1855_v35  ;;  %v1886_v61 = vcombine.high %v289_v55, %v293_v56  ;;  %v1888_v62 = vcombine.high %v290_v57, %v294_v58  ;;  %v297_v63 = vld [vmem:[%s2559_s1 + $0x200] sm:$0xff]  ;;  %v298_v1 = vld [vmem:[%s2559_s1 + $0x208] sm:$0xff]  ;;  %v1885_v3 = vcombine.low %v289_v55, %v293_v56  ;;  %v240_v34 = vld [vmem:[%s2559_s1 + $0x38] sm:$0xff] }
  0x18   : > { %908 = vmatprep.subr.bf16.mxu0 %v1862_v36  ;;  %981 = vmatprep.subr.bf16.mxu1 %v1864_v37  ;;  %v301_v0 = vld [vmem:[%s2559_s1 + $0x220] sm:$0xff]  ;;  %v302_v2 = vld [vmem:[%s2559_s1 + $0x228] sm:$0xff]  ;;  %v1887_v4 = vcombine.low %v290_v57, %v294_v58  ;;  %v1834_v37 = vcombine.high %v235_v31, %v239_v32  ;;  %v1836_v38 = vcombine.high %v236_v33, %v240_v34  ;;  %v251_v50 = vld [vmem:[%s2559_s1 + $0x90] sm:$0xff] }
  0x19   : > { %v1894_v5 = vcombine.high %v297_v63, %v301_v0  ;;  %v1896_v6 = vcombine.high %v298_v1, %v302_v2  ;;  %v305_v7 = vld [vmem:[%s2559_s1 + $0x240] sm:$0xff]  ;;  %v306_v9 = vld [vmem:[%s2559_s1 + $0x248] sm:$0xff]  ;;  %v1893_v11 = vcombine.low %v297_v63, %v301_v0  ;;  %v1895_v12 = vcombine.low %v298_v1, %v302_v2  ;;  %v259_v58 = vld [vmem:[%s2559_s1 + $0xd0] sm:$0xff] }
  0x1a   : > { %v309_v8 = vld [vmem:[%s2559_s1 + $0x260] sm:$0xff]  ;;  %v310_v10 = vld [vmem:[%s2559_s1 + $0x268] sm:$0xff] }
  0x1b   : > { %909 = vmatpush1.bf16.msra.mxu0 %v1861_v42  ;;  %982 = vmatpush1.bf16.msra.mxu1 %v1863_v44  ;;  %v1902_v13 = vcombine.high %v305_v7, %v309_v8  ;;  %v1904_v14 = vcombine.high %v306_v9, %v310_v10  ;;  %v313_v15 = vld [vmem:[%s2559_s1 + $0x280] sm:$0xff]  ;;  %v314_v17 = vld [vmem:[%s2559_s1 + $0x288] sm:$0xff]  ;;  %v1901_v19 = vcombine.low %v305_v7, %v309_v8  ;;  %v244_v42 = vld [vmem:[%s2559_s1 + $0x58] sm:$0xff] }
  0x1c   : > { %910 = vmatprep.subr.bf16.mxu0 %v1870_v45  ;;  %983 = vmatprep.subr.bf16.mxu1 %v1872_v46  ;;  %v317_v16 = vld [vmem:[%s2559_s1 + $0x2a0] sm:$0xff]  ;;  %v318_v18 = vld [vmem:[%s2559_s1 + $0x2a8] sm:$0xff]  ;;  %v1903_v20 = vcombine.low %v306_v9, %v310_v10  ;;  %v248_v44 = vld [vmem:[%s2559_s1 + $0x78] sm:$0xff]  ;;  %v1833_v45 = vcombine.low %v235_v31, %v239_v32  ;;  %v1835_v46 = vcombine.low %v236_v33, %v240_v34 }
  0x1d   : > { %v1910_v21 = vcombine.high %v313_v15, %v317_v16  ;;  %v1912_v22 = vcombine.high %v314_v17, %v318_v18  ;;  %v321_v23 = vld [vmem:[%s2559_s1 + $0x2c0] sm:$0xff]  ;;  %v322_v25 = vld [vmem:[%s2559_s1 + $0x2c8] sm:$0xff]  ;;  %v1909_v27 = vcombine.low %v313_v15, %v317_v16  ;;  %v1911_v28 = vcombine.low %v314_v17, %v318_v18  ;;  %v272_v7 = vld [vmem:[%s2559_s1 + $0x138] sm:$0xff] }
  0x1e   : > { %v325_v24 = vld [vmem:[%s2559_s1 + $0x2e0] sm:$0xff]  ;;  %v326_v26 = vld [vmem:[%s2559_s1 + $0x2e8] sm:$0xff]  ;;  %v1844_v48 = vcombine.high %v244_v42, %v248_v44  ;;  %v1843_v55 = vcombine.low %v244_v42, %v248_v44  ;;  %v276_v15 = vld [vmem:[%s2559_s1 + $0x158] sm:$0xff] }
  0x1f   : > { %911 = vmatpush1.bf16.msra.mxu0 %v1869_v51  ;;  %984 = vmatpush1.bf16.msra.mxu1 %v1871_v52  ;;  %v1918_v29 = vcombine.high %v321_v23, %v325_v24  ;;  %v1920_v30 = vcombine.high %v322_v25, %v326_v26  ;;  %v1917_v35 = vcombine.low %v321_v23, %v325_v24  ;;  %v2228_v41 = vld [vmem:[%s2116_s9] ss:$8 sps:$4 sm:$0xff]   ;;  %v255_v51 = vld [vmem:[%s2559_s1 + $0xb0] sm:$0xff]  ;;  %v252_v52 = vld [vmem:[%s2559_s1 + $0x98] sm:$0xff] }
  0x20   : > { %912 = vmatprep.subr.bf16.mxu0 %v1878_v53  ;;  %985 = vmatprep.subr.bf16.mxu1 %v1880_v54  ;;  %v1919_v36 = vcombine.low %v322_v25, %v326_v26  ;;  %v256_v53 = vld [vmem:[%s2559_s1 + $0xb8] sm:$0xff]  ;;  %v1841_v54 = vcombine.low %v243_v39, %v247_v40  ;;  %v1850_v56 = vcombine.high %v251_v50, %v255_v51  ;;  %v287_v23 = vld [vmem:[%s2559_s1 + $0x1b0] sm:$0xff] }
  0x21   : > { %v1852_v57 = vcombine.high %v252_v52, %v256_v53  ;;  %v1849_v63 = vcombine.low %v251_v50, %v255_v51  ;;  %v1851_v0 = vcombine.low %v252_v52, %v256_v53  ;;  %v280_v16 = vld [vmem:[%s2559_s1 + $0x178] sm:$0xff]  ;;  %v295_v31 = vld [vmem:[%s2559_s1 + $0x1f0] sm:$0xff] }
  0x22   : > { %v284_v24 = vld [vmem:[%s2559_s1 + $0x198] sm:$0xff]  ;;  %v299_v39 = vld [vmem:[%s2559_s1 + $0x210] sm:$0xff] }
  0x23   : > { %913 = vmatpush1.bf16.msra.mxu0 %v1877_v59  ;;  %986 = vmatpush1.bf16.msra.mxu1 %v1879_v60  ;;  %v263_v59 = vld [vmem:[%s2559_s1 + $0xf0] sm:$0xff]  ;;  %v288_v25 = vld [vmem:[%s2559_s1 + $0x1b8] sm:$0xff] }
  0x24   : > { %914 = vmatprep.subr.bf16.mxu0 %v1886_v61  ;;  %987 = vmatprep.subr.bf16.mxu1 %v1888_v62  ;;  %v2264_v60 = vld [vmem:[%s2116_s9 + $0x10] ss:$8 sps:$4 sm:$0xff]   ;;  %v1858_v1 = vcombine.high %v259_v58, %v263_v59  ;;  %v1857_v8 = vcombine.low %v259_v58, %v263_v59 }
  0x25   : > { %v260_v61 = vld [vmem:[%s2559_s1 + $0xd8] sm:$0xff]  ;;  %v303_v40 = vld [vmem:[%s2559_s1 + $0x230] sm:$0xff] }
  0x26   : > { %v264_v62 = vld [vmem:[%s2559_s1 + $0xf8] sm:$0xff]  ;;  %v307_v50 = vld [vmem:[%s2559_s1 + $0x250] sm:$0xff] }
  0x27   : > { %915 = vmatpush1.bf16.msra.mxu0 %v1885_v3  ;;  %988 = vmatpush1.bf16.msra.mxu1 %v1887_v4  ;;  %v1860_v2 = vcombine.high %v260_v61, %v264_v62  ;;  %v2273_v3 = vld [vmem:[%s2116_s9 + $0x24] ss:$8 sps:$4 sm:$0xff]   ;;  %v267_v4 = vld [vmem:[%s2559_s1 + $0x110] sm:$0xff]  ;;  %v1859_v9 = vcombine.low %v260_v61, %v264_v62  ;;  %v292_v33 = vld [vmem:[%s2559_s1 + $0x1d8] sm:$0xff] }
  0x28   : > { %916 = vmatprep.subr.bf16.mxu0 %v1894_v5  ;;  %989 = vmatprep.subr.bf16.mxu1 %v1896_v6  ;;  %v271_v5 = vld [vmem:[%s2559_s1 + $0x130] sm:$0xff]  ;;  %v268_v6 = vld [vmem:[%s2559_s1 + $0x118] sm:$0xff] }
  0x29   : > { %v1866_v10 = vcombine.high %v267_v4, %v271_v5  ;;  %v1865_v17 = vcombine.low %v267_v4, %v271_v5  ;;  %v1867_v18 = vcombine.low %v268_v6, %v272_v7  ;;  %v2336_v32 = vld [vmem:[%s2116_s9 + $0x30] ss:$8 sps:$4 sm:$0xff]  }
  0x2a   : > { %v296_v34 = vld [vmem:[%s2559_s1 + $0x1f8] sm:$0xff]  ;;  %v311_v51 = vld [vmem:[%s2559_s1 + $0x270] sm:$0xff] }
  0x2b   : > { %917 = vmatpush1.bf16.msra.mxu0 %v1893_v11  ;;  %990 = vmatpush1.bf16.msra.mxu1 %v1895_v12  ;;  %v1868_v11 = vcombine.high %v268_v6, %v272_v7  ;;  %v275_v12 = vld [vmem:[%s2559_s1 + $0x150] sm:$0xff]  ;;  %v300_v42 = vld [vmem:[%s2559_s1 + $0x218] sm:$0xff]  ;;  %v1905_v62 = vcombine.low %v307_v50, %v311_v51 }
  0x2c   : > { %918 = vmatprep.subr.bf16.mxu0 %v1902_v13  ;;  %991 = vmatprep.subr.bf16.mxu1 %v1904_v14  ;;  %v279_v13 = vld [vmem:[%s2559_s1 + $0x170] sm:$0xff]  ;;  %v2300_v14 = vld [vmem:[%s2116_s9 + $0x20] ss:$8 sps:$4 sm:$0xff]   ;;  %v304_v44 = vld [vmem:[%s2559_s1 + $0x238] sm:$0xff] }
  0x2d   : > { %v1873_v26 = vcombine.low %v275_v12, %v279_v13  ;;  %v308_v52 = vld [vmem:[%s2559_s1 + $0x258] sm:$0xff]  ;;  %v315_v58 = vld [vmem:[%s2559_s1 + $0x290] sm:$0xff] }
  0x2e   : > { %v312_v53 = vld [vmem:[%s2559_s1 + $0x278] sm:$0xff]  ;;  %v319_v59 = vld [vmem:[%s2559_s1 + $0x2b0] sm:$0xff] }
  0x2f   : > { %919 = vmatpush1.bf16.msra.mxu0 %v1901_v19  ;;  %992 = vmatpush1.bf16.msra.mxu1 %v1903_v20  ;;  %v1874_v19 = vcombine.high %v275_v12, %v279_v13  ;;  %v1876_v20 = vcombine.high %v276_v15, %v280_v16  ;;  %v320_v61 = vld [vmem:[%s2559_s1 + $0x2b8] sm:$0xff]  ;;  %v327_v4 = vld [vmem:[%s2559_s1 + $0x2f0] sm:$0xff]  ;;  %v1913_v7 = vcombine.low %v315_v58, %v319_v59 }
  0x30   : > { %920 = vmatprep.subr.bf16.mxu0 %v1910_v21  ;;  %993 = vmatprep.subr.bf16.mxu1 %v1912_v22  ;;  %v2309_v21 = vld [vmem:[%s2116_s9 + $0x34] ss:$8 sps:$4 sm:$0xff]  }
  0x31   : > { %v283_v22 = vld [vmem:[%s2559_s1 + $0x190] sm:$0xff]  ;;  %v324_v5 = vld [vmem:[%s2559_s1 + $0x2d8] sm:$0xff] }
  0x32   : > { %v328_v6 = vld [vmem:[%s2559_s1 + $0x2f8] sm:$0xff] }
  0x33   : > { %921 = vmatpush1.bf16.msra.mxu0 %v1909_v27  ;;  %994 = vmatpush1.bf16.msra.mxu1 %v1911_v28  ;;  %v1875_v27 = vcombine.low %v276_v15, %v280_v16  ;;  %v1882_v28 = vcombine.high %v283_v22, %v287_v23  ;;  %v1923_v12 = vcombine.low %v324_v5, %v328_v6 }
  0x34   : > { %922 = vmatprep.subr.bf16.mxu0 %v1918_v29  ;;  %995 = vmatprep.subr.bf16.mxu1 %v1920_v30  ;;  %v1884_v29 = vcombine.high %v284_v24, %v288_v25  ;;  %v291_v30 = vld [vmem:[%s2559_s1 + $0x1d0] sm:$0xff] }
  0x37   : > { %923 = vmatpush1.bf16.msra.mxu0 %v1917_v35  ;;  %996 = vmatpush1.bf16.msra.mxu1 %v1919_v36  ;;  %v1881_v35 = vcombine.low %v283_v22, %v287_v23  ;;  %v1883_v36 = vcombine.low %v284_v24, %v288_v25 }
  0x38   : > { %1046 = vmatprep.subr.bf16.mxu0 %v1834_v37  ;;  %1119 = vmatprep.subr.bf16.mxu1 %v1836_v38  ;;  %v1890_v37 = vcombine.high %v291_v30, %v295_v31  ;;  %v1892_v38 = vcombine.high %v292_v33, %v296_v34 }
  0x3a   : > { %933 = vmatmul.mubr.bf16.vlgmr.msra.gmra.mrb[0].mxu0 %v2228_v41  ;;  %1006 = vmatmul.mubr.bf16.vlgmr.msra.gmra.mrb[0].mxu1 %v2228_v41 }
  0x3b   : > { %1047 = vmatpush1.bf16.msra.mxu0 %v1833_v45  ;;  %1120 = vmatpush1.bf16.msra.mxu1 %v1835_v46  ;;  %v1889_v45 = vcombine.low %v291_v30, %v295_v31  ;;  %v1891_v46 = vcombine.low %v292_v33, %v296_v34 }
  0x3c   : > { %1048 = vmatprep.subr.bf16.mxu0 %v1842_v47  ;;  %1121 = vmatprep.subr.bf16.mxu1 %v1844_v48  ;;  %v1898_v47 = vcombine.high %v299_v39, %v303_v40  ;;  %v1900_v48 = vcombine.high %v300_v42, %v304_v44 }
  0x3d   : > { %1926 = vmatprep.mubr.msk.bf16.mxu0 %vm887_vm0, %v2237_v49  ;;  %1930 = vmatprep.mubr.msk.bf16.mxu1 %vm887_vm0, %v2237_v49 }
  0x3f   : > { %1049 = vmatpush1.bf16.msra.mxu0 %v1841_v54  ;;  %1122 = vmatpush1.bf16.msra.mxu1 %v1843_v55  ;;  %v1897_v54 = vcombine.low %v299_v39, %v303_v40  ;;  %v1899_v55 = vcombine.low %v300_v42, %v304_v44 }
  0x40   : > { %1050 = vmatprep.subr.bf16.mxu0 %v1850_v56  ;;  %1123 = vmatprep.subr.bf16.mxu1 %v1852_v57  ;;  %v1906_v56 = vcombine.high %v307_v50, %v311_v51  ;;  %v1908_v57 = vcombine.high %v308_v52, %v312_v53 }
  0x42   : > { %943 = vmatmul.mubr.bf16.gmra.mrb[4].mxu0 %v2264_v60  ;;  %1016 = vmatmul.mubr.bf16.gmra.mrb[4].mxu1 %v2264_v60 }
  0x43   : > { %1051 = vmatpush1.bf16.msra.mxu0 %v1849_v63  ;;  %1124 = vmatpush1.bf16.msra.mxu1 %v1851_v0  ;;  %v1907_v63 = vcombine.low %v308_v52, %v312_v53  ;;  %v1914_v0 = vcombine.high %v315_v58, %v319_v59 }
  0x44   : > { %1052 = vmatprep.subr.bf16.mxu0 %v1858_v1  ;;  %1125 = vmatprep.subr.bf16.mxu1 %v1860_v2  ;;  %v323_v2 = vld [vmem:[%s2559_s1 + $0x2d0] sm:$0xff] }
  0x45   : > { %1927 = vmatprep.mubr.msk.bf16.mxu0 %vm887_vm0, %v2273_v3  ;;  %1931 = vmatprep.mubr.msk.bf16.mxu1 %vm887_vm0, %v2273_v3 }
  0x47   : > { %1053 = vmatpush1.bf16.msra.mxu0 %v1857_v8  ;;  %1126 = vmatpush1.bf16.msra.mxu1 %v1859_v9  ;;  %v1922_v9 = vcombine.high %v323_v2, %v327_v4 }
  0x48   : > { %1054 = vmatprep.subr.bf16.mxu0 %v1866_v10  ;;  %1127 = vmatprep.subr.bf16.mxu1 %v1868_v11  ;;  %v1924_v10 = vcombine.high %v324_v5, %v328_v6  ;;  %v1921_v11 = vcombine.low %v323_v2, %v327_v4 }
  0x4a   : > { %953 = vmatmul.mubr.bf16.gmra.mrb[8].mxu0 %v2300_v14  ;;  %1026 = vmatmul.mubr.bf16.gmra.mrb[8].mxu1 %v2300_v14 }
  0x4b   : > { %1055 = vmatpush1.bf16.msra.mxu0 %v1865_v17  ;;  %1128 = vmatpush1.bf16.msra.mxu1 %v1867_v18 }
  0x4c   : > { %1056 = vmatprep.subr.bf16.mxu0 %v1874_v19  ;;  %1129 = vmatprep.subr.bf16.mxu1 %v1876_v20 }
  0x4d   : > { %1928 = vmatprep.mubr.msk.bf16.mxu0 %vm887_vm0, %v2309_v21  ;;  %1932 = vmatprep.mubr.msk.bf16.mxu1 %vm887_vm0, %v2309_v21 }
  0x4f   : > { %1057 = vmatpush1.bf16.msra.mxu0 %v1873_v26  ;;  %1130 = vmatpush1.bf16.msra.mxu1 %v1875_v27 }
  0x50   : > { %1058 = vmatprep.subr.bf16.mxu0 %v1882_v28  ;;  %1131 = vmatprep.subr.bf16.mxu1 %v1884_v29 }
  0x52   : > { %963 = vmatmul.mubr.bf16.gmra.mrb[12].mxu0 %v2336_v32  ;;  %1036 = vmatmul.mubr.bf16.gmra.mrb[12].mxu1 %v2336_v32 }
  0x53   : > { %1059 = vmatpush1.bf16.msra.mxu0 %v1881_v35  ;;  %1132 = vmatpush1.bf16.msra.mxu1 %v1883_v36 }
  0x54   : > { %1060 = vmatprep.subr.bf16.mxu0 %v1890_v37  ;;  %1133 = vmatprep.subr.bf16.mxu1 %v1892_v38 }
  0x55   : > { %1933 = vmatprep.mubr.msk.bf16.mxu0 %vm887_vm0, %v2131_v43  ;;  %1937 = vmatprep.mubr.msk.bf16.mxu1 %vm887_vm0, %v2131_v43  ;;  %v316_v43 = vld [vmem:[%s2559_s1 + $0x298] sm:$0xff] }
  0x56   : > { %v1916_v1 = vcombine.high %v316_v43, %v320_v61  ;;  %v1915_v8 = vcombine.low %v316_v43, %v320_v61 }
  0x57   : > { %1061 = vmatpush1.bf16.msra.mxu0 %v1889_v45  ;;  %1134 = vmatpush1.bf16.msra.mxu1 %v1891_v46 }
  0x58   : > { %1062 = vmatprep.subr.bf16.mxu0 %v1898_v47  ;;  %1135 = vmatprep.subr.bf16.mxu1 %v1900_v48 }
  0x5b   : > { %1063 = vmatpush1.bf16.msra.mxu0 %v1897_v54  ;;  %1136 = vmatpush1.bf16.msra.mxu1 %v1899_v55 }
  0x5c   : > { %1064 = vmatprep.subr.bf16.mxu0 %v1906_v56  ;;  %1137 = vmatprep.subr.bf16.mxu1 %v1908_v57 }
  0x5f   : > { %1065 = vmatpush1.bf16.msra.mxu0 %v1905_v62  ;;  %1138 = vmatpush1.bf16.msra.mxu1 %v1907_v63 }
  0x60   : > { %1066 = vmatprep.subr.bf16.mxu0 %v1914_v0  ;;  %1139 = vmatprep.subr.bf16.mxu1 %v1916_v1 }
  0x63   : > { %1067 = vmatpush1.bf16.msra.mxu0 %v1913_v7  ;;  %1140 = vmatpush1.bf16.msra.mxu1 %v1915_v8 }
  0x64   : > { %1068 = vmatprep.subr.bf16.mxu0 %v1922_v9  ;;  %1141 = vmatprep.subr.bf16.mxu1 %v1924_v10 }
  0x67   : > { %1069 = vmatpush1.bf16.msra.mxu0 %v1921_v11  ;;  %1142 = vmatpush1.bf16.msra.mxu1 %v1923_v12 }
  0x6a   : > { %1079 = vmatmul.mubr.bf16.vlgmr.msra.gmra.mrb[16].mxu0 %v2228_v41  ;;  %1152 = vmatmul.mubr.bf16.vlgmr.msra.gmra.mrb[16].mxu1 %v2228_v41  ;;  %v331_v41 = vlaneseq }
  0x6b   : > { %1934 = vmatprep.mubr.msk.bf16.mxu0 %vm887_vm0, %v2237_v49  ;;  %1938 = vmatprep.mubr.msk.bf16.mxu1 %vm887_vm0, %v2237_v49 }
  0x6c   : > { %v2418_v49 = vshrl.u32 %v331_v41, 7 }
  0x6e   : > { %v341_v13 = vsub.s32 2, %v2418_v49  ;;  %v345_v15 = vsub.s32 3, %v2418_v49 }
  0x72   : > { %1089 = vmatmul.mubr.bf16.gmra.mrb[20].mxu0 %v2264_v60  ;;  %1162 = vmatmul.mubr.bf16.gmra.mrb[20].mxu1 %v2264_v60  ;;  %v333_v60 = vsub.s32 0, %v2418_v49 }
  0x73   : > { %1935 = vmatprep.mubr.msk.bf16.mxu0 %vm887_vm0, %v2273_v3  ;;  %1939 = vmatprep.mubr.msk.bf16.mxu1 %vm887_vm0, %v2273_v3  ;;  %v2424_v3 = vld [vmem:[%s2560_s2] sm:$0xff] }
  0x74   : > { %v2430_v16 = vrot.slane %v2424_v3, %v333_v60  ;;  %v2433_v17 = vrot.slane %v2424_v3, %v341_v13  ;;  %v2439_v19 = vrot.slane %v2424_v3, %v345_v15 }
  0x7a   : > { %1099 = vmatmul.mubr.bf16.gmra.mrb[24].mxu0 %v2300_v14  ;;  %1172 = vmatmul.mubr.bf16.gmra.mrb[24].mxu1 %v2300_v14  ;;  %v337_v14 = vsub.s32 1, %v2418_v49 }
  0x7b   : > { %1936 = vmatprep.mubr.msk.bf16.mxu0 %vm887_vm0, %v2309_v21  ;;  %1940 = vmatprep.mubr.msk.bf16.mxu1 %vm887_vm0, %v2309_v21 }
  0x7c   : > { %v2436_v18 = vrot.slane %v2424_v3, %v337_v14 }
  0x82   : > { %1109 = vmatmul.mubr.bf16.gmra.mrb[28].mxu0 %v2336_v32  ;;  %1182 = vmatmul.mubr.bf16.gmra.mrb[28].mxu1 %v2336_v32 }
 0x10d   : > { %v934_v20 = vpop.f32.mrb[0].mxu0  ;;  %v1007_v22 = vpop.f32.mrb[0].mxu1 }
 0x10e   : > { %v935_v21 = vadd.f32 %v934_v20, %v2430_v16  ;;  %v936_v23 = vpop.f32.mrb[1].mxu0  ;;  %v1008_v24 = vadd.f32 %v1007_v22, %v2433_v17  ;;  %v1009_v26 = vpop.f32.mrb[1].mxu1 }
 0x10f   : > { %v937_v25 = vadd.f32 %v936_v23, %v2436_v18  ;;  %v938_v27 = vpop.f32.mrb[2].mxu0  ;;  %v1010_v29 = vadd.f32 %v1009_v26, %v2439_v19  ;;  %v1011_v31 = vpop.f32.mrb[2].mxu1 }
 0x110   : > { %vm1192_vm1 = vcmp.ge.f32.partialorder %v935_v21, 0.0  ;;  %v1256_v28 = vmul.f32 0.2, %v935_v21  ;;  %v939_v30 = vadd.f32 %v938_v27, %v2430_v16  ;;  %v940_v32 = vpop.f32.mrb[3].mxu0  ;;  %vm1194_vm2 = vcmp.ge.f32.partialorder %v1008_v24, 0.0  ;;  %v1013_v36 = vpop.f32.mrb[3].mxu1 }
 0x111   : > { %v1258_v33 = vmul.f32 0.2, %v1008_v24  ;;  %vm1193_vm3 = vcmp.ge.f32.partialorder %v937_v25, 0.0  ;;  %v1257_v34 = vmul.f32 0.2, %v937_v25  ;;  %vm1195_vm4 = vcmp.ge.f32.partialorder %v1010_v29, 0.0 }
 0x112   : > { %v1259_v35 = vmul.f32 0.2, %v1010_v29  ;;  %vm1200_vm5 = vcmp.ge.f32.partialorder %v939_v30, 0.0  ;;  %v1320_v37 = vsel %vm1192_vm1, %v935_v21, %v1256_v28  ;;  %v1264_v38 = vmul.f32 0.2, %v939_v30 }
 0x113   : > { %v1012_v39 = vadd.f32 %v1011_v31, %v2433_v17  ;;  %v1322_v40 = vsel %vm1194_vm2, %v1008_v24, %v1258_v33  ;;  %v1321_v42 = vsel %vm1193_vm3, %v937_v25, %v1257_v34  ;;  %v941_v44 = vadd.f32 %v940_v32, %v2436_v18 }
 0x114   : > { %v1014_v45 = vadd.f32 %v1013_v36, %v2439_v19  ;;  %v1323_v46 = vsel %vm1195_vm4, %v1010_v29, %v1259_v35  ;;  %v1328_v47 = vsel %vm1200_vm5, %v939_v30, %v1264_v38 }
 0x115   : > { %vm1202_vm6 = vcmp.ge.f32.partialorder %v1012_v39, 0.0  ;;  %v1266_v48 = vmul.f32 0.2, %v1012_v39  ;;  %v944_v50 = vpop.f32.mrb[4].mxu0  ;;  %v1492_v51 = vmax.f32 %v1320_v37, %v1328_v47  ;;  %vm1201_vm7 = vcmp.ge.f32.partialorder %v941_v44, 0.0  ;;  %v1017_v53 = vpop.f32.mrb[4].mxu1 }
 0x116   : > { %v1265_v52 = vmul.f32 0.2, %v941_v44  ;;  %vm1203_vm8 = vcmp.ge.f32.partialorder %v1014_v45, 0.0  ;;  %v946_v54 = vpop.f32.mrb[5].mxu0  ;;  %v1267_v56 = vmul.f32 0.2, %v1014_v45  ;;  %v945_v57 = vadd.f32 %v944_v50, %v2430_v16 }
 0x117   : > { %v1330_v55 = vsel %vm1202_vm6, %v1012_v39, %v1266_v48  ;;  %v1018_v58 = vadd.f32 %v1017_v53, %v2433_v17  ;;  %v1019_v59 = vpop.f32.mrb[5].mxu1  ;;  %v948_v43 = vpop.f32.mrb[6].mxu0  ;;  %v947_v63 = vadd.f32 %v946_v54, %v2436_v18 }
 0x118   : > { %v1518_v61 = vmax.f32 %v1322_v40, %v1330_v55  ;;  %v1329_v62 = vsel %vm1201_vm7, %v941_v44, %v1265_v52  ;;  %v1020_v0 = vadd.f32 %v1019_v59, %v2439_v19  ;;  %v1021_v1 = vpop.f32.mrb[6].mxu1  ;;  %v950_v2 = vpop.f32.mrb[7].mxu0  ;;  %v1331_v5 = vsel %vm1203_vm8, %v1014_v45, %v1267_v56 }
 0x119   : > { %v1505_v4 = vmax.f32 %v1321_v42, %v1329_v62  ;;  %vm1208_vm9 = vcmp.ge.f32.partialorder %v945_v57, 0.0  ;;  %v1272_v6 = vmul.f32 0.2, %v945_v57  ;;  %v1023_v7 = vpop.f32.mrb[7].mxu1  ;;  %v1531_v8 = vmax.f32 %v1323_v46, %v1331_v5 }
 0x11a   : > { %vm1210_vm10 = vcmp.ge.f32.partialorder %v1018_v58, 0.0  ;;  %v1274_v9 = vmul.f32 0.2, %v1018_v58  ;;  %vm1209_vm11 = vcmp.ge.f32.partialorder %v947_v63, 0.0  ;;  %v1273_v11 = vmul.f32 0.2, %v947_v63 }
 0x11b   : > { %v1336_v10 = vsel %vm1208_vm9, %v945_v57, %v1272_v6  ;;  %vm1211_vm12 = vcmp.ge.f32.partialorder %v1020_v0, 0.0  ;;  %v1275_v12 = vmul.f32 0.2, %v1020_v0  ;;  %v949_v13 = vadd.f32 %v948_v43, %v2430_v16 }
 0x11c   : > { %v1493_v41 = vmax.f32 %v1492_v51, %v1336_v10  ;;  %v1338_v60 = vsel %vm1210_vm10, %v1018_v58, %v1274_v9  ;;  %v1022_v14 = vadd.f32 %v1021_v1, %v2433_v17  ;;  %v1337_v20 = vsel %vm1209_vm11, %v947_v63, %v1273_v11 }
 0x11d   : > { %v1519_v15 = vmax.f32 %v1518_v61, %v1338_v60  ;;  %v1339_v21 = vsel %vm1211_vm12, %v1020_v0, %v1275_v12  ;;  %v951_v22 = vadd.f32 %v950_v2, %v2436_v18  ;;  %v954_v23 = vpop.f32.mrb[8].mxu0  ;;  %v1506_v24 = vmax.f32 %v1505_v4, %v1337_v20  ;;  %v1027_v27 = vpop.f32.mrb[8].mxu1 }
 0x11e   : > { %v2457_v25 = vmax.f32 %v1531_v8, %v1339_v21  ;;  %vm1216_vm13 = vcmp.ge.f32.partialorder %v949_v13, 0.0  ;;  %v1280_v26 = vmul.f32 0.2, %v949_v13  ;;  %v956_v28 = vpop.f32.mrb[9].mxu0  ;;  %vm1218_vm14 = vcmp.ge.f32.partialorder %v1022_v14, 0.0  ;;  %v1029_v35 = vpop.f32.mrb[9].mxu1 }
 0x11f   : > { %v1282_v29 = vmul.f32 0.2, %v1022_v14  ;;  %vm1217_vm15 = vcmp.ge.f32.partialorder %v951_v22, 0.0  ;;  %v1281_v30 = vmul.f32 0.2, %v951_v22  ;;  %v1024_v32 = vadd.f32 %v1023_v7, %v2439_v19  ;;  %v958_v36 = vpop.f32.mrb[10].mxu0 }
 0x120   : > { %v1344_v31 = vsel %vm1216_vm13, %v949_v13, %v1280_v26  ;;  %v955_v33 = vadd.f32 %v954_v23, %v2430_v16  ;;  %v1028_v34 = vadd.f32 %v1027_v27, %v2433_v17  ;;  %v957_v40 = vadd.f32 %v956_v28, %v2436_v18  ;;  %v1031_v42 = vpop.f32.mrb[10].mxu1  ;;  %v960_v44 = vpop.f32.mrb[11].mxu0 }
 0x121   : > { %v1494_v37 = vmax.f32 %v1493_v41, %v1344_v31  ;;  %v1346_v38 = vsel %vm1218_vm14, %v1022_v14, %v1282_v29  ;;  %v1345_v39 = vsel %vm1217_vm15, %v951_v22, %v1281_v30  ;;  %vm1219_vm0 = vcmp.ge.f32.partialorder %v1024_v32, 0.0  ;;  %v1033_v48 = vpop.f32.mrb[11].mxu1 }
 0x122   : > { %v1520_v45 = vmax.f32 %v1519_v15, %v1346_v38  ;;  %v1507_v46 = vmax.f32 %v1506_v24, %v1345_v39  ;;  %v1283_v47 = vmul.f32 0.2, %v1024_v32  ;;  %vm1224_vm1 = vcmp.ge.f32.partialorder %v955_v33, 0.0 }
 0x123   : > { %v1288_v50 = vmul.f32 0.2, %v955_v33  ;;  %vm1226_vm2 = vcmp.ge.f32.partialorder %v1028_v34, 0.0  ;;  %v1290_v51 = vmul.f32 0.2, %v1028_v34  ;;  %vm1225_vm3 = vcmp.ge.f32.partialorder %v957_v40, 0.0 }
 0x124   : > { %v1347_v52 = vsel %vm1219_vm0, %v1024_v32, %v1283_v47  ;;  %v1289_v53 = vmul.f32 0.2, %v957_v40  ;;  %v1030_v54 = vadd.f32 %v1029_v35, %v2439_v19  ;;  %v959_v58 = vadd.f32 %v958_v36, %v2430_v16 }
 0x125   : > { %v1533_v55 = vmax.f32 %v2457_v25, %v1347_v52  ;;  %v1352_v56 = vsel %vm1224_vm1, %v955_v33, %v1288_v50  ;;  %v1354_v57 = vsel %vm1226_vm2, %v1028_v34, %v1290_v51  ;;  %v964_v59 = vpop.f32.mrb[12].mxu0  ;;  %v1037_v63 = vpop.f32.mrb[12].mxu1  ;;  %v1032_v6 = vadd.f32 %v1031_v42, %v2433_v17 }
 0x126   : > { %v1495_v43 = vmax.f32 %v1494_v37, %v1352_v56  ;;  %v1521_v61 = vmax.f32 %v1520_v45, %v1354_v57  ;;  %v1353_v62 = vsel %vm1225_vm3, %v957_v40, %v1289_v53  ;;  %vm1227_vm4 = vcmp.ge.f32.partialorder %v1030_v54, 0.0  ;;  %v966_v0 = vpop.f32.mrb[13].mxu0  ;;  %v1039_v5 = vpop.f32.mrb[13].mxu1 }
 0x127   : > { %v1508_v1 = vmax.f32 %v1507_v46, %v1353_v62  ;;  %v1291_v2 = vmul.f32 0.2, %v1030_v54  ;;  %vm1232_vm5 = vcmp.ge.f32.partialorder %v959_v58, 0.0  ;;  %v1296_v4 = vmul.f32 0.2, %v959_v58  ;;  %v968_v10 = vpop.f32.mrb[14].mxu0 }
 0x128   : > { %v961_v7 = vadd.f32 %v960_v44, %v2436_v18  ;;  %v1034_v8 = vadd.f32 %v1033_v48, %v2439_v19  ;;  %v965_v9 = vadd.f32 %v964_v59, %v2430_v16  ;;  %v1041_v11 = vpop.f32.mrb[14].mxu1  ;;  %v1038_v60 = vadd.f32 %v1037_v63, %v2433_v17  ;;  %v970_v14 = vpop.f32.mrb[15].mxu0 }
 0x129   : > { %v1355_v12 = vsel %vm1227_vm4, %v1030_v54, %v1291_v2  ;;  %v1360_v41 = vsel %vm1232_vm5, %v959_v58, %v1296_v4  ;;  %v967_v13 = vadd.f32 %v966_v0, %v2436_v18  ;;  %v1043_v15 = vpop.f32.mrb[15].mxu1  ;;  %vm1234_vm6 = vcmp.ge.f32.partialorder %v1032_v6, 0.0 }
 0x12a   : > { %v1534_v20 = vmax.f32 %v1533_v55, %v1355_v12  ;;  %v1496_v21 = vmax.f32 %v1495_v43, %v1360_v41  ;;  %v1298_v22 = vmul.f32 0.2, %v1032_v6  ;;  %vm1233_vm7 = vcmp.ge.f32.partialorder %v961_v7, 0.0 }
 0x12b   : > { %v1297_v23 = vmul.f32 0.2, %v961_v7  ;;  %vm1235_vm8 = vcmp.ge.f32.partialorder %v1034_v8, 0.0  ;;  %v1299_v24 = vmul.f32 0.2, %v1034_v8  ;;  %vm1240_vm9 = vcmp.ge.f32.partialorder %v965_v9, 0.0 }
 0x12c   : > { %v1362_v25 = vsel %vm1234_vm6, %v1032_v6, %v1298_v22  ;;  %v1304_v26 = vmul.f32 0.2, %v965_v9  ;;  %vm1242_vm10 = vcmp.ge.f32.partialorder %v1038_v60, 0.0  ;;  %v1306_v30 = vmul.f32 0.2, %v1038_v60 }
 0x12d   : > { %v1522_v27 = vmax.f32 %v1521_v61, %v1362_v25  ;;  %v1361_v28 = vsel %vm1233_vm7, %v961_v7, %v1297_v23  ;;  %v1363_v29 = vsel %vm1235_vm8, %v1034_v8, %v1299_v24  ;;  %vm1241_vm11 = vcmp.ge.f32.partialorder %v967_v13, 0.0 }
 0x12e   : > { %v1509_v31 = vmax.f32 %v1508_v1, %v1361_v28  ;;  %v1535_v32 = vmax.f32 %v1534_v20, %v1363_v29  ;;  %v1368_v33 = vsel %vm1240_vm9, %v965_v9, %v1304_v26  ;;  %v1370_v35 = vsel %vm1242_vm10, %v1038_v60, %v1306_v30 }
 0x12f   : > { %v1497_v34 = vmax.f32 %v1496_v21, %v1368_v33  ;;  %v1305_v36 = vmul.f32 0.2, %v967_v13  ;;  %v1040_v37 = vadd.f32 %v1039_v5, %v2439_v19  ;;  %v1523_v38 = vmax.f32 %v1522_v27, %v1370_v35 }
 0x130   : > { %v969_v39 = vadd.f32 %v968_v10, %v2430_v16  ;;  %v1042_v40 = vadd.f32 %v1041_v11, %v2433_v17  ;;  %v971_v42 = vadd.f32 %v970_v14, %v2436_v18  ;;  %v1044_v46 = vadd.f32 %v1043_v15, %v2439_v19 }
 0x131   : > { %v1369_v44 = vsel %vm1241_vm11, %v967_v13, %v1305_v36  ;;  %vm1243_vm12 = vcmp.ge.f32.partialorder %v1040_v37, 0.0  ;;  %v1307_v45 = vmul.f32 0.2, %v1040_v37  ;;  %v349_v19 = vsub.s32 4, %v2418_v49 }
 0x132   : > { %v1510_v47 = vmax.f32 %v1509_v31, %v1369_v44  ;;  %vm1248_vm13 = vcmp.ge.f32.partialorder %v969_v39, 0.0  ;;  %v1312_v48 = vmul.f32 0.2, %v969_v39  ;;  %vm1250_vm14 = vcmp.ge.f32.partialorder %v1042_v40, 0.0 }
 0x133   : > { %v1371_v50 = vsel %vm1243_vm12, %v1040_v37, %v1307_v45  ;;  %v1314_v51 = vmul.f32 0.2, %v1042_v40  ;;  %vm1249_vm15 = vcmp.ge.f32.partialorder %v971_v42, 0.0  ;;  %v1313_v52 = vmul.f32 0.2, %v971_v42 }
 0x134   : > { %v1536_v53 = vmax.f32 %v1535_v32, %v1371_v50  ;;  %v1376_v54 = vsel %vm1248_vm13, %v969_v39, %v1312_v48  ;;  %vm1251_vm0 = vcmp.ge.f32.partialorder %v1044_v46, 0.0  ;;  %v1315_v16 = vmul.f32 0.2, %v1044_v46 }
 0x135   : > { %v1498_v17 = vmax.f32 %v1497_v34, %v1376_v54  ;;  %v1378_v55 = vsel %vm1250_vm14, %v1042_v40, %v1314_v51  ;;  %v1377_v18 = vsel %vm1249_vm15, %v971_v42, %v1313_v52  ;;  %v357_v61 = vsub.s32 6, %v2418_v49 }
 0x136   : > { %v1524_v56 = vmax.f32 %v1523_v38, %v1378_v55  ;;  %v1511_v57 = vmax.f32 %v1510_v47, %v1377_v18  ;;  %v1379_v58 = vsel %vm1251_vm0, %v1044_v46, %v1315_v16  ;;  %v353_v62 = vsub.s32 5, %v2418_v49 }
 0x137   : > { %v1499_v59 = vrot.slane %v1498_v17, 4  ;;  %v1537_v43 = vmax.f32 %v1536_v53, %v1379_v58  ;;  %v2005_v2 = vmov 1966171168   ;;  %v2481_v8 = vrot.slane %v2424_v3, %v349_v19 }
 0x138   : > { %v1525_v63 = vrot.slane %v1524_v56, 4  ;;  %v1512_v0 = vrot.slane %v1511_v57, 4  ;;  %v1613_v4 = vunpack.c.l.s4 %v2005_v2  ;;  %v361_v9 = vsub.s32 7, %v2418_v49 }
 0x139   : > { %v1500_v1 = vmax.f32 %v1498_v17, %v1499_v59  ;;  %v1538_v5 = vrot.slane %v1537_v43, 4  ;;  %v2485_v12 = vrot.slane %v2424_v3, %v357_v61  ;;  %v2488_v41 = vrot.slane %v2424_v3, %v353_v62 }
 0x13a   : > { %v1526_v6 = vmax.f32 %v1524_v56, %v1525_v63  ;;  %v1513_v7 = vmax.f32 %v1511_v57, %v1512_v0  ;;  %v1614_v15 = vunpack.c.0.s8 %v1613_v4  ;;  %v2492_v27 = vrot.slane %v2424_v3, %v361_v9 }
 0x13b   : > { %v1501_v10 = vrot.slane %v1500_v1, 2  ;;  %v1539_v11 = vmax.f32 %v1537_v43, %v1538_v5 }
 0x13c   : > { %v1527_v60 = vrot.slane %v1526_v6, 2  ;;  %v1514_v13 = vrot.slane %v1513_v7, 2  ;;  %v2497_v39 = vsub.s32 %v1614_v15, %v2418_v49 }
 0x13d   : > { %v1502_v14 = vmax.f32 %v1500_v1, %v1501_v10  ;;  %v1540_v20 = vrot.slane %v1539_v11, 2  ;;  %v1080_v21 = vpop.f32.mrb[16].mxu0  ;;  %v1153_v25 = vpop.f32.mrb[16].mxu1 }
 0x13e   : > { %v1528_v22 = vmax.f32 %v1526_v6, %v1527_v60  ;;  %v1515_v23 = vmax.f32 %v1513_v7, %v1514_v13  ;;  %v1081_v24 = vadd.f32 %v1080_v21, %v2481_v8  ;;  %v1082_v26 = vpop.f32.mrb[17].mxu0  ;;  %v1154_v30 = vadd.f32 %v1153_v25, %v2485_v12  ;;  %v1155_v32 = vpop.f32.mrb[17].mxu1 }
 0x13f   : > { %v1503_v28 = vrot.slane %v1502_v14, 1  ;;  %v1541_v29 = vmax.f32 %v1539_v11, %v1540_v20  ;;  %v1083_v31 = vadd.f32 %v1082_v26, %v2488_v41  ;;  %v1084_v33 = vpop.f32.mrb[18].mxu0  ;;  %v1157_v37 = vpop.f32.mrb[18].mxu1  ;;  %v1156_v51 = vadd.f32 %v1155_v32, %v2492_v27 }
 0x140   : > { %v1529_v34 = vrot.slane %v1528_v22, 1  ;;  %v1516_v35 = vrot.slane %v1515_v23, 1  ;;  %vm1196_vm1 = vcmp.ge.f32.partialorder %v1081_v24, 0.0  ;;  %v1260_v36 = vmul.f32 0.2, %v1081_v24  ;;  %v1086_v42 = vpop.f32.mrb[19].mxu0 }
 0x141   : > { %v1504_v38 = vmax.f32 %v1502_v14, %v1503_v28  ;;  %v1542_v40 = vrot.slane %v1541_v29, 1  ;;  %v1262_v3 = vmul.f32 0.2, %v1154_v30  ;;  %v1159_v44 = vpop.f32.mrb[19].mxu1  ;;  %vm1198_vm2 = vcmp.ge.f32.partialorder %v1154_v30, 0.0 }
 0x142   : > { %v1530_v45 = vmax.f32 %v1528_v22, %v1529_v34  ;;  %v1517_v46 = vmax.f32 %v1515_v23, %v1516_v35  ;;  %vm1197_vm3 = vcmp.ge.f32.partialorder %v1083_v31, 0.0  ;;  %v1324_v48 = vsel %vm1196_vm1, %v1081_v24, %v1260_v36 }
 0x143   : > { %v1543_v47 = vmax.f32 %v1541_v29, %v1542_v40  ;;  %v1261_v50 = vmul.f32 0.2, %v1083_v31  ;;  %v1085_v53 = vadd.f32 %v1084_v33, %v2481_v8  ;;  %v1158_v54 = vadd.f32 %v1157_v37, %v2485_v12 }
 0x144   : > { %v1608_v52 = vcombine.low %v1504_v38, %v1517_v46  ;;  %v1087_v49 = vadd.f32 %v1086_v42, %v2488_v41  ;;  %v1326_v17 = vsel %vm1198_vm2, %v1154_v30, %v1262_v3  ;;  %v1263_v18 = vmul.f32 0.2, %v1156_v51 }
 0x145   : > { %v1609_v16 = vcombine.low %v1530_v45, %v1543_v47  ;;  %v1325_v55 = vsel %vm1197_vm3, %v1083_v31, %v1261_v50  ;;  %v1090_v56 = vpop.f32.mrb[20].mxu0  ;;  %vm1204_vm4 = vcmp.ge.f32.partialorder %v1085_v53, 0.0  ;;  %v1268_v58 = vmul.f32 0.2, %v1085_v53  ;;  %v1163_v19 = vpop.f32.mrb[20].mxu1 }
 0x146   : > { %v2504_v57 = vrot.slane %v1608_v52, %v2497_v39  ;;  %vm1206_vm5 = vcmp.ge.f32.partialorder %v1158_v54, 0.0  ;;  %v1092_v59 = vpop.f32.mrb[21].mxu0  ;;  %vm1199_vm6 = vcmp.ge.f32.partialorder %v1156_v51, 0.0  ;;  %v1270_v61 = vmul.f32 0.2, %v1158_v54  ;;  %v1165_v62 = vpop.f32.mrb[21].mxu1 }
 0x147   : > { %v2507_v43 = vrot.slane %v1609_v16, %v2497_v39  ;;  %vm1205_vm7 = vcmp.ge.f32.partialorder %v1087_v49, 0.0  ;;  %v1094_v63 = vpop.f32.mrb[22].mxu0  ;;  %v1332_v0 = vsel %vm1204_vm4, %v1085_v53, %v1268_v58  ;;  %v1269_v1 = vmul.f32 0.2, %v1087_v49  ;;  %v1167_v5 = vpop.f32.mrb[22].mxu1 }
 0x148   : > { %v1160_v2 = vadd.f32 %v1159_v44, %v2492_v27  ;;  %v1091_v4 = vadd.f32 %v1090_v56, %v2481_v8  ;;  %v1096_v6 = vpop.f32.mrb[23].mxu0  ;;  %v1544_v9 = vmax.f32 %v1324_v48, %v1332_v0  ;;  %v1334_v10 = vsel %vm1206_vm5, %v1158_v54, %v1270_v61  ;;  %v1169_v60 = vpop.f32.mrb[23].mxu1 }
 0x149   : > { %v1640_v7 = vcombine.low %v2504_v57, %v2507_v43  ;;  %v1164_v11 = vadd.f32 %v1163_v19, %v2485_v12  ;;  %v1570_v13 = vmax.f32 %v1326_v17, %v1334_v10  ;;  %v1333_v14 = vsel %vm1205_vm7, %v1087_v49, %v1269_v1 }
 0x14a   : > { %vm1207_vm8 = vcmp.ge.f32.partialorder %v1160_v2, 0.0  ;;  %v1271_v15 = vmul.f32 0.2, %v1160_v2  ;;  %v1327_v20 = vsel %vm1199_vm6, %v1156_v51, %v1263_v18  ;;  %v1557_v21 = vmax.f32 %v1325_v55, %v1333_v14 }
 0x14b   : > { %vm1212_vm9 = vcmp.ge.f32.partialorder %v1091_v4, 0.0  ;;  %v1276_v22 = vmul.f32 0.2, %v1091_v4  ;;  %vm1214_vm10 = vcmp.ge.f32.partialorder %v1164_v11, 0.0  ;;  %v1278_v24 = vmul.f32 0.2, %v1164_v11 }
 0x14c   : > { %v1335_v23 = vsel %vm1207_vm8, %v1160_v2, %v1271_v15  ;;  %v1093_v25 = vadd.f32 %v1092_v59, %v2488_v41  ;;  %v1166_v29 = vadd.f32 %v1165_v62, %v2492_v27  ;;  %v1095_v30 = vadd.f32 %v1094_v63, %v2481_v8 }
 0x14d   : > { %v1583_v26 = vmax.f32 %v1327_v20, %v1335_v23  ;;  %v1340_v28 = vsel %vm1212_vm9, %v1091_v4, %v1276_v22  ;;  %v1100_v31 = vpop.f32.mrb[24].mxu0  ;;  %v1342_v33 = vsel %vm1214_vm10, %v1164_v11, %v1278_v24  ;;  %v1173_v35 = vpop.f32.mrb[24].mxu1  ;;  %v1168_v45 = vadd.f32 %v1167_v5, %v2485_v12 }
 0x14e   : > { %v1545_v32 = vmax.f32 %v1544_v9, %v1340_v28  ;;  %vm1213_vm11 = vcmp.ge.f32.partialorder %v1093_v25, 0.0  ;;  %v1277_v34 = vmul.f32 0.2, %v1093_v25  ;;  %v1102_v36 = vpop.f32.mrb[25].mxu0  ;;  %v1571_v37 = vmax.f32 %v1570_v13, %v1342_v33  ;;  %v1175_v40 = vpop.f32.mrb[25].mxu1 }
 0x14f   : > { %vm1215_vm12 = vcmp.ge.f32.partialorder %v1166_v29, 0.0  ;;  %v1279_v38 = vmul.f32 0.2, %v1166_v29  ;;  %vm1220_vm13 = vcmp.ge.f32.partialorder %v1095_v30, 0.0  ;;  %v1104_v3 = vpop.f32.mrb[26].mxu0  ;;  %v1097_v46 = vadd.f32 %v1096_v6, %v2488_v41  ;;  %v1177_v47 = vpop.f32.mrb[26].mxu1 }
 0x150   : > { %v1341_v42 = vsel %vm1213_vm11, %v1093_v25, %v1277_v34  ;;  %v1284_v44 = vmul.f32 0.2, %v1095_v30  ;;  %v1106_v48 = vpop.f32.mrb[27].mxu0  ;;  %v1170_v52 = vadd.f32 %v1169_v60, %v2492_v27  ;;  %v1101_v53 = vadd.f32 %v1100_v31, %v2481_v8  ;;  %v1179_v54 = vpop.f32.mrb[27].mxu1 }
 0x151   : > { %v1558_v50 = vmax.f32 %v1557_v21, %v1341_v42  ;;  %v1343_v51 = vsel %vm1215_vm12, %v1166_v29, %v1279_v38  ;;  %vm1222_vm14 = vcmp.ge.f32.partialorder %v1168_v45, 0.0  ;;  %v1286_v17 = vmul.f32 0.2, %v1168_v45 }
 0x152   : > { %v1584_v49 = vmax.f32 %v1583_v26, %v1343_v51  ;;  %v1348_v16 = vsel %vm1220_vm13, %v1095_v30, %v1284_v44  ;;  %vm1221_vm15 = vcmp.ge.f32.partialorder %v1097_v46, 0.0  ;;  %v1285_v18 = vmul.f32 0.2, %v1097_v46 }
 0x153   : > { %v1546_v55 = vmax.f32 %v1545_v32, %v1348_v16  ;;  %vm1223_vm0 = vcmp.ge.f32.partialorder %v1170_v52, 0.0  ;;  %v1350_v56 = vsel %vm1222_vm14, %v1168_v45, %v1286_v17  ;;  %v1287_v58 = vmul.f32 0.2, %v1170_v52 }
 0x154   : > { %vm1228_vm1 = vcmp.ge.f32.partialorder %v1101_v53, 0.0  ;;  %v1292_v19 = vmul.f32 0.2, %v1101_v53  ;;  %v1572_v59 = vmax.f32 %v1571_v37, %v1350_v56  ;;  %v1349_v61 = vsel %vm1221_vm15, %v1097_v46, %v1285_v18 }
 0x155   : > { %v1174_v62 = vadd.f32 %v1173_v35, %v2485_v12  ;;  %v1103_v63 = vadd.f32 %v1102_v36, %v2488_v41  ;;  %v1110_v0 = vpop.f32.mrb[28].mxu0  ;;  %v1559_v1 = vmax.f32 %v1558_v50, %v1349_v61  ;;  %v1351_v2 = vsel %vm1223_vm0, %v1170_v52, %v1287_v58  ;;  %v1183_v6 = vpop.f32.mrb[28].mxu1 }
 0x156   : > { %v1356_v4 = vsel %vm1228_vm1, %v1101_v53, %v1292_v19  ;;  %v1176_v5 = vadd.f32 %v1175_v40, %v2492_v27  ;;  %v1112_v9 = vpop.f32.mrb[29].mxu0  ;;  %v1585_v10 = vmax.f32 %v1584_v49, %v1351_v2  ;;  %v1185_v13 = vpop.f32.mrb[29].mxu1  ;;  %v1105_v22 = vadd.f32 %v1104_v3, %v2481_v8 }
 0x157   : > { %v1547_v11 = vmax.f32 %v1546_v55, %v1356_v4  ;;  %vm1230_vm2 = vcmp.ge.f32.partialorder %v1174_v62, 0.0  ;;  %v1294_v60 = vmul.f32 0.2, %v1174_v62  ;;  %v1114_v14 = vpop.f32.mrb[30].mxu0  ;;  %vm1229_vm3 = vcmp.ge.f32.partialorder %v1103_v63, 0.0  ;;  %v1187_v25 = vpop.f32.mrb[30].mxu1 }
 0x158   : > { %v1293_v15 = vmul.f32 0.2, %v1103_v63  ;;  %vm1231_vm4 = vcmp.ge.f32.partialorder %v1176_v5, 0.0  ;;  %v1295_v20 = vmul.f32 0.2, %v1176_v5  ;;  %v1178_v23 = vadd.f32 %v1177_v47, %v2485_v12  ;;  %v1116_v26 = vpop.f32.mrb[31].mxu0 }
 0x159   : > { %v1358_v21 = vsel %vm1230_vm2, %v1174_v62, %v1294_v60  ;;  %v1107_v24 = vadd.f32 %v1106_v48, %v2488_v41  ;;  %v1180_v31 = vadd.f32 %v1179_v54, %v2492_v27  ;;  %v1189_v32 = vpop.f32.mrb[31].mxu1  ;;  %vm1236_vm5 = vcmp.ge.f32.partialorder %v1105_v22, 0.0 }
 0x15a   : > { %v1573_v28 = vmax.f32 %v1572_v59, %v1358_v21  ;;  %v1357_v29 = vsel %vm1229_vm3, %v1103_v63, %v1293_v15  ;;  %v1359_v30 = vsel %vm1231_vm4, %v1176_v5, %v1295_v20  ;;  %v1300_v35 = vmul.f32 0.2, %v1105_v22 }
 0x15b   : > { %v1560_v33 = vmax.f32 %v1559_v1, %v1357_v29  ;;  %v1586_v34 = vmax.f32 %v1585_v10, %v1359_v30  ;;  %vm1238_vm6 = vcmp.ge.f32.partialorder %v1178_v23, 0.0  ;;  %v1302_v36 = vmul.f32 0.2, %v1178_v23 }
 0x15c   : > { %vm1237_vm7 = vcmp.ge.f32.partialorder %v1107_v24, 0.0  ;;  %v1301_v37 = vmul.f32 0.2, %v1107_v24  ;;  %v1364_v38 = vsel %vm1236_vm5, %v1105_v22, %v1300_v35  ;;  %vm1239_vm8 = vcmp.ge.f32.partialorder %v1180_v31, 0.0 }
 0x15d   : > { %v1303_v40 = vmul.f32 0.2, %v1180_v31  ;;  %v1111_v3 = vadd.f32 %v1110_v0, %v2481_v8  ;;  %v1548_v42 = vmax.f32 %v1547_v11, %v1364_v38  ;;  %v1366_v44 = vsel %vm1238_vm6, %v1178_v23, %v1302_v36 }
 0x15e   : > { %v1365_v45 = vsel %vm1237_vm7, %v1107_v24, %v1301_v37  ;;  %v1184_v46 = vadd.f32 %v1183_v6, %v2485_v12  ;;  %v1574_v47 = vmax.f32 %v1573_v28, %v1366_v44  ;;  %v1113_v54 = vadd.f32 %v1112_v9, %v2488_v41 }
 0x15f   : > { %v1561_v48 = vmax.f32 %v1560_v33, %v1365_v45  ;;  %v1367_v50 = vsel %vm1239_vm8, %v1180_v31, %v1303_v40  ;;  %vm1244_vm9 = vcmp.ge.f32.partialorder %v1111_v3, 0.0  ;;  %v1308_v52 = vmul.f32 0.2, %v1111_v3 }
 0x160   : > { %v1587_v51 = vmax.f32 %v1586_v34, %v1367_v50  ;;  %vm1246_vm10 = vcmp.ge.f32.partialorder %v1184_v46, 0.0  ;;  %v1310_v53 = vmul.f32 0.2, %v1184_v46  ;;  %v1186_v49 = vadd.f32 %v1185_v13, %v2492_v27 }
 0x161   : > { %v1115_v16 = vadd.f32 %v1114_v14, %v2481_v8  ;;  %v1188_v17 = vadd.f32 %v1187_v25, %v2485_v12  ;;  %v1372_v55 = vsel %vm1244_vm9, %v1111_v3, %v1308_v52  ;;  %v1117_v56 = vadd.f32 %v1116_v26, %v2488_v41 }
 0x162   : > { %v1374_v18 = vsel %vm1246_vm10, %v1184_v46, %v1310_v53  ;;  %v1190_v58 = vadd.f32 %v1189_v32, %v2492_v27  ;;  %v1549_v19 = vmax.f32 %v1548_v42, %v1372_v55  ;;  %vm1245_vm11 = vcmp.ge.f32.partialorder %v1113_v54, 0.0 }
 0x163   : > { %v1575_v59 = vmax.f32 %v1574_v47, %v1374_v18  ;;  %v1309_v61 = vmul.f32 0.2, %v1113_v54  ;;  %vm1247_vm12 = vcmp.ge.f32.partialorder %v1186_v49, 0.0  ;;  %v1311_v62 = vmul.f32 0.2, %v1186_v49 }
 0x164   : > { %vm1252_vm13 = vcmp.ge.f32.partialorder %v1115_v16, 0.0  ;;  %v1316_v63 = vmul.f32 0.2, %v1115_v16  ;;  %vm1254_vm14 = vcmp.ge.f32.partialorder %v1188_v17, 0.0  ;;  %v1318_v1 = vmul.f32 0.2, %v1188_v17 }
 0x165   : > { %v1373_v0 = vsel %vm1245_vm11, %v1113_v54, %v1309_v61  ;;  %vm1253_vm15 = vcmp.ge.f32.partialorder %v1117_v56, 0.0  ;;  %v1375_v12 = vsel %vm1247_vm12, %v1186_v49, %v1311_v62  ;;  %v1317_v4 = vmul.f32 0.2, %v1117_v56 }
 0x166   : > { %v1562_v8 = vmax.f32 %v1561_v48, %v1373_v0  ;;  %v1380_v2 = vsel %vm1252_vm13, %v1115_v16, %v1316_v63  ;;  %v1588_v5 = vmax.f32 %v1587_v51, %v1375_v12  ;;  %v1382_v6 = vsel %vm1254_vm14, %v1188_v17, %v1318_v1 }
 0x167   : > { %v1550_v41 = vmax.f32 %v1549_v19, %v1380_v2  ;;  %vm1255_vm0 = vcmp.ge.f32.partialorder %v1190_v58, 0.0  ;;  %v1576_v27 = vmax.f32 %v1575_v59, %v1382_v6  ;;  %v1381_v9 = vsel %vm1253_vm15, %v1117_v56, %v1317_v4 }
 0x168   : > { %v1319_v10 = vmul.f32 0.2, %v1190_v58  ;;  %v1563_v60 = vmax.f32 %v1562_v8, %v1381_v9  ;;  %v1648_v51 = vrot.slane %v1640_v7, %v2497_v39 }
 0x169   : > { %v1551_v11 = vrot.slane %v1550_v41, 4  ;;  %v1577_v13 = vrot.slane %v1576_v27, 4 }
 0x16a   : > { %v1383_v14 = vsel %vm1255_vm0, %v1190_v58, %v1319_v10  ;;  %v1564_v20 = vrot.slane %v1563_v60, 4 }
 0x16b   : > { %v1552_v15 = vmax.f32 %v1550_v41, %v1551_v11  ;;  %v1589_v21 = vmax.f32 %v1588_v5, %v1383_v14  ;;  %v1578_v22 = vmax.f32 %v1576_v27, %v1577_v13 }
 0x16c   : > { %v1565_v24 = vmax.f32 %v1563_v60, %v1564_v20 }
 0x16d   : > { %v1553_v23 = vrot.slane %v1552_v15, 2  ;;  %v1590_v25 = vrot.slane %v1589_v21, 4  ;;  %v1579_v26 = vrot.slane %v1578_v22, 2 }
 0x16e   : > { %v1566_v29 = vrot.slane %v1565_v24, 2 }
 0x16f   : > { %v1554_v28 = vmax.f32 %v1552_v15, %v1553_v23  ;;  %v1591_v30 = vmax.f32 %v1589_v21, %v1590_v25  ;;  %v1580_v31 = vmax.f32 %v1578_v22, %v1579_v26 }
 0x170   : > { %v1567_v33 = vmax.f32 %v1565_v24, %v1566_v29 }
 0x171   : > { %v1555_v32 = vrot.slane %v1554_v28, 1  ;;  %v1592_v34 = vrot.slane %v1591_v30, 2  ;;  %v1581_v35 = vrot.slane %v1580_v31, 1 }
 0x172   : > { %v1568_v37 = vrot.slane %v1567_v33, 1 }
 0x173   : > { %v1556_v36 = vmax.f32 %v1554_v28, %v1555_v32  ;;  %v1593_v38 = vmax.f32 %v1591_v30, %v1592_v34  ;;  %v1582_v40 = vmax.f32 %v1580_v31, %v1581_v35 }
 0x174   : > { %v1569_v3 = vmax.f32 %v1567_v33, %v1568_v37 }
 0x175   : > { %v1594_v42 = vrot.slane %v1593_v38, 1 }
 0x176   : > { %v1610_v44 = vcombine.low %v1556_v36, %v1569_v3 }
 0x177   : > { %v1595_v45 = vmax.f32 %v1593_v38, %v1594_v42 }
 0x178   : > { %v1632_v46 = vrot.slane %v1610_v44, %v2497_v39 }
 0x179   : > { %v1611_v47 = vcombine.low %v1582_v40, %v1595_v45 }
 0x17b   : > { %v1639_v48 = vrot.slane %v1611_v47, %v2497_v39 }
 0x17d   : > { %v1641_v50 = vcombine.low %v1632_v46, %v1639_v48 }
 0x17f   : > { %v1655_v52 = vrot.slane %v1641_v50, %v2497_v39 }
 0x181   : > { %v1656_v53 = vcombine.low %v1648_v51, %v1655_v52 }
 0x183   : > { %1658 = vst [vmem:[%s223_s11] sm:$0xff] %v1656_v53 }
 0x184 PF: > { %s13_s14 = sadd.s32 1, %s2003_s14   ;;  %s2562_s12 = smov %s1999_s13 }
 0x185   : > { %p10_p5 = scmp.ge.s32.totalorder %s13_s14, 4   ;;  %s2563_s13 = smov %s2565_s15 }
 0x187   :  { %12 = sbr.rel (!%p10_p5) target bundleno = 2 (0x2), region = 70 }

// kernel: dgcnn_semseg_forward.15
= control target key start
LH: loop header
LB: loop body
LE: loop exit
PB: predicated region body
PF: predicated region fallthrough
CT: control target
= control target key end

     0   :  { %10 = vsyncpa [#allocation3], 0  ;;  %s2780_s0 = inlined_call_operand.vmem [shape: f32[2,1,512], index: 0, kind: input, shape index: {}]   ;;  %s2781_s1 = inlined_call_operand.vmem [shape: bf16[2,64,192], index: 1, kind: input, shape index: {}]   ;;  %s2782_s2 = inlined_call_operand.vmem [shape: bf16[192,512], index: 2, kind: input, shape index: {}]   ;;  %s2783_s3 = inlined_call_operand.vmem [shape: bf16[512,256], index: 3, kind: input, shape index: {}]   ;;  %s2784_s4 = inlined_call_operand.vmem [shape: f32[1,256], index: 4, kind: input, shape index: {}]   ;;  %s2785_s5 = inlined_call_operand.hbm [shape: f32[2,64,256], index: 5, kind: output, shape index: {}]  }
   0x1   :  { %12 = vsyncpa [#allocation3 + $0x1], 0  ;;  %s2175_s18 = smov 0   ;;  %s2177_s19 = smov 0  }
   0x2   :  { %s2179_s20 = smov 0   ;;  %s2181_s21 = smov 0  }
   0x3   :  { %s2183_s22 = smov 0   ;;  %s2185_s23 = smov 0  }
   0x4 LB: > { %s1649_s24 = sadd.s32 4294967295, %s2140_s23   ;;  %s1650_s25 = sadd.s32 4294967294, %s2140_s23   ;;  %s2140_s23 = sphi %s2185_s23, %s18_s23   ;;  %s2136_s22 = sphi %s2183_s22, %s2792_s22   ;;  %s2132_s21 = sphi %s2181_s21, %s2791_s21   ;;  %s2128_s20 = sphi %s2179_s20, %s2790_s20   ;;  %s2124_s19 = sphi %s2177_s19, %s2789_s19   ;;  %s2120_s18 = sphi %s2175_s18, %s2788_s18  }
   0x5   : > { %s30_s26 = sadd.s32 1, %s2136_s22  ;;  %s156_s27 = sadd.s32 1, %s2128_s20 }
   0x6   : > { %p32_p0 = scmp.ge.s32.totalorder %s30_s26, 2  ;;  %p166_p1 = scmp.ne.s32.totalorder %s2128_s20, %s2124_s19 }
   0x7   : > { %p167_p2 = scmp.eq.s32.totalorder %s1649_s24, 1  ;;  %p172_p3 = scmp.ne.s32.totalorder %s2124_s19, %s2120_s18 }
   0x8   : > { %s2794_s26 = smov (%p32_p0, %s30_s26), 0  ;;  %p173_p5 = scmp.eq.s32.totalorder %s1650_s25, 1 }
   0x9   : > { %p2215_p4 = por %p167_p2, %p166_p1  ;;  %s151_s29 = ssub.s32 %s2136_s22, %s2794_s26 }
   0xa   : > { %p1653_p6 = scmp.ge.s32.totalorder %s2140_s23, 1  ;;  %p154_p7 = scmp.eq.s32.totalorder %s151_s29, 0 }
   0xb   : > { %p2222_p8 = por %p173_p5, %p172_p3  ;;  %p221_p9 = scmp.lt.s32.totalorder %s2140_s23, 3 }
   0xc   : > { %s2228_s6 = scalar_select %p154_p7, %s2128_s20, %s156_s27  }
   0xd   : > { %p222_p10 = pnand %p1653_p6, %p221_p9 }
   0xe   : > { %v1882_v0 = vld [vmem:[%s2782_s2 + $0x4] ss:$16 sps:$4 sm:$0xff] (!%p222_p10)   ;;  %v1884_v1 = vld [vmem:[%s2782_s2 + $0xc] ss:$16 sps:$4 sm:$0xff] (!%p222_p10)   ;;  %v1886_v2 = vld [vmem:[%s2782_s2] ss:$16 sps:$4 sm:$0xff] (!%p222_p10)  }
   0xf   : > { %225 = sbr.rel (%p222_p10) target bundleno = 555 (0x22b), region = 40  ;;  %621 = vmatprep.subr.bf16.mxu0 (!%p222_p10), %v1882_v0  ;;  %v1887_v3 = vld [vmem:[%s2782_s2 + $0x8] ss:$16 sps:$4 sm:$0xff] (!%p222_p10)   ;;  %694 = vmatprep.subr.bf16.mxu1 (!%p222_p10), %v1884_v1  ;;  %v1888_v4 = vld [vmem:[%s2782_s2 + $0x24] ss:$16 sps:$4 sm:$0xff] (!%p222_p10)   ;;  %p258_p11 = scmp.lt.s32.totalorder (!%p222_p10), %s2132_s21, 1 }
  0x10   : > { %622 = vmatpush1.bf16.msra.mxu0 (!%p222_p10), %v1886_v2  ;;  %695 = vmatpush1.bf16.msra.mxu1 (!%p222_p10), %v1887_v3  ;;  %v1890_v5 = vld [vmem:[%s2782_s2 + $0x2c] ss:$16 sps:$4 sm:$0xff] (!%p222_p10)   ;;  %v1892_v6 = vld [vmem:[%s2782_s2 + $0x20] ss:$16 sps:$4 sm:$0xff] (!%p222_p10)   ;;  %v1893_v7 = vld [vmem:[%s2782_s2 + $0x28] ss:$16 sps:$4 sm:$0xff] (!%p222_p10)  }
  0x11   : > { %623 = vmatprep.subr.bf16.mxu0 (!%p222_p10), %v1888_v4  ;;  %696 = vmatprep.subr.bf16.mxu1 (!%p222_p10), %v1890_v5  ;;  %v1894_v8 = vld [vmem:[%s2782_s2 + $0x44] ss:$16 sps:$4 sm:$0xff] (!%p222_p10)   ;;  %v1896_v9 = vld [vmem:[%s2782_s2 + $0x4c] ss:$16 sps:$4 sm:$0xff] (!%p222_p10)   ;;  %v1898_v10 = vld [vmem:[%s2782_s2 + $0x40] ss:$16 sps:$4 sm:$0xff] (!%p222_p10)  }
  0x12   : > { %v1899_v11 = vld [vmem:[%s2782_s2 + $0x48] ss:$16 sps:$4 sm:$0xff] (!%p222_p10)   ;;  %v1900_v12 = vld [vmem:[%s2782_s2 + $0x64] ss:$16 sps:$4 sm:$0xff] (!%p222_p10)   ;;  %v1902_v13 = vld [vmem:[%s2782_s2 + $0x6c] ss:$16 sps:$4 sm:$0xff] (!%p222_p10)  }
  0x13   : > { %v1904_v14 = vld [vmem:[%s2782_s2 + $0x60] ss:$16 sps:$4 sm:$0xff] (!%p222_p10)   ;;  %v1905_v15 = vld [vmem:[%s2782_s2 + $0x68] ss:$16 sps:$4 sm:$0xff] (!%p222_p10)   ;;  %v1906_v16 = vld [vmem:[%s2782_s2 + $0x84] ss:$16 sps:$4 sm:$0xff] (!%p222_p10)  }
  0x14   : > { %624 = vmatpush1.bf16.msra.mxu0 (!%p222_p10), %v1892_v6  ;;  %697 = vmatpush1.bf16.msra.mxu1 (!%p222_p10), %v1893_v7  ;;  %v1908_v17 = vld [vmem:[%s2782_s2 + $0x8c] ss:$16 sps:$4 sm:$0xff] (!%p222_p10)   ;;  %v1910_v18 = vld [vmem:[%s2782_s2 + $0x80] ss:$16 sps:$4 sm:$0xff] (!%p222_p10)   ;;  %v1911_v19 = vld [vmem:[%s2782_s2 + $0x88] ss:$16 sps:$4 sm:$0xff] (!%p222_p10)  }
  0x15   : > { %625 = vmatprep.subr.bf16.mxu0 (!%p222_p10), %v1894_v8  ;;  %698 = vmatprep.subr.bf16.mxu1 (!%p222_p10), %v1896_v9  ;;  %v1912_v20 = vld [vmem:[%s2782_s2 + $0xa4] ss:$16 sps:$4 sm:$0xff] (!%p222_p10)   ;;  %v1914_v21 = vld [vmem:[%s2782_s2 + $0xac] ss:$16 sps:$4 sm:$0xff] (!%p222_p10)   ;;  %v1916_v22 = vld [vmem:[%s2782_s2 + $0xa0] ss:$16 sps:$4 sm:$0xff] (!%p222_p10)  }
  0x16   : > { %v1917_v23 = vld [vmem:[%s2782_s2 + $0xa8] ss:$16 sps:$4 sm:$0xff]   ;;  %v1918_v24 = vld [vmem:[%s2782_s2 + $0xc4] ss:$16 sps:$4 sm:$0xff]   ;;  %v1920_v25 = vld [vmem:[%s2782_s2 + $0xcc] ss:$16 sps:$4 sm:$0xff]  }
  0x17   : > { %v1922_v26 = vld [vmem:[%s2782_s2 + $0xc0] ss:$16 sps:$4 sm:$0xff]   ;;  %v1923_v27 = vld [vmem:[%s2782_s2 + $0xc8] ss:$16 sps:$4 sm:$0xff]   ;;  %s2316_s24 = scalar_select %p258_p11, %s2132_s21, 1  ;;  %vm608_vm0 = vcmask 523264  }
  0x18   : > { %626 = vmatpush1.bf16.msra.mxu0 %v1898_v10  ;;  %699 = vmatpush1.bf16.msra.mxu1 %v1899_v11  ;;  %v1924_v28 = vld [vmem:[%s2782_s2 + $0xe4] ss:$16 sps:$4 sm:$0xff]   ;;  %v1926_v29 = vld [vmem:[%s2782_s2 + $0xec] ss:$16 sps:$4 sm:$0xff]   ;;  %v1928_v30 = vld [vmem:[%s2782_s2 + $0xe0] ss:$16 sps:$4 sm:$0xff]  }
  0x19   : > { %627 = vmatprep.subr.bf16.mxu0 %v1900_v12  ;;  %700 = vmatprep.subr.bf16.mxu1 %v1902_v13  ;;  %s1791_s10 = sshll.u32 %s2316_s24, 6  ;;  %v1929_v31 = vld [vmem:[%s2782_s2 + $0xe8] ss:$16 sps:$4 sm:$0xff]   ;;  %v1930_v32 = vld [vmem:[%s2782_s2 + $0x104] ss:$16 sps:$4 sm:$0xff]   ;;  %s1655_s13 = sshll.u32 %s2316_s24, 2 }
  0x1a   : > { %v1932_v33 = vld [vmem:[%s2782_s2 + $0x10c] ss:$16 sps:$4 sm:$0xff]   ;;  %s2340_s27 = scalar_lea.vmem %s2781_s1, %s1791_s10  ;;  %v1934_v34 = vld [vmem:[%s2782_s2 + $0x100] ss:$16 sps:$4 sm:$0xff]   ;;  %v1935_v35 = vld [vmem:[%s2782_s2 + $0x108] ss:$16 sps:$4 sm:$0xff]   ;;  %s261_s16 = scalar_lea.vmem %s2780_s0, %s1655_s13 }
  0x1b   : > { %v1936_v36 = vld [vmem:[%s2782_s2 + $0x124] ss:$16 sps:$4 sm:$0xff]   ;;  %v1938_v37 = vld [vmem:[%s2782_s2 + $0x12c] ss:$16 sps:$4 sm:$0xff]   ;;  %v1940_v39 = vld [vmem:[%s2782_s2 + $0x120] ss:$16 sps:$4 sm:$0xff]  }
  0x1c   : > { %628 = vmatpush1.bf16.msra.mxu0 %v1904_v14  ;;  %701 = vmatpush1.bf16.msra.mxu1 %v1905_v15  ;;  %v1956_v38 = vld [vmem:[%s2340_s27 + $0x4] ss:$8 sps:$4 sm:$0xff]   ;;  %v1941_v40 = vld [vmem:[%s2782_s2 + $0x128] ss:$16 sps:$4 sm:$0xff]   ;;  %v1946_v43 = vld [vmem:[%s2782_s2 + $0x140] ss:$16 sps:$4 sm:$0xff]  }
  0x1d   : > { %629 = vmatprep.subr.bf16.mxu0 %v1906_v16  ;;  %702 = vmatprep.subr.bf16.mxu1 %v1908_v17  ;;  %v1942_v41 = vld [vmem:[%s2782_s2 + $0x144] ss:$16 sps:$4 sm:$0xff]   ;;  %v1944_v42 = vld [vmem:[%s2782_s2 + $0x14c] ss:$16 sps:$4 sm:$0xff]   ;;  %v1947_v44 = vld [vmem:[%s2782_s2 + $0x148] ss:$16 sps:$4 sm:$0xff]  }
  0x1e   : > { %1714 = vmatprep.mubr.msk.bf16.mxu0 %vm608_vm0, %v1956_v38  ;;  %1718 = vmatprep.mubr.msk.bf16.mxu1 %vm608_vm0, %v1956_v38  ;;  %v1948_v45 = vld [vmem:[%s2782_s2 + $0x164] ss:$16 sps:$4 sm:$0xff]   ;;  %v1950_v46 = vld [vmem:[%s2782_s2 + $0x16c] ss:$16 sps:$4 sm:$0xff]   ;;  %v1952_v47 = vld [vmem:[%s2782_s2 + $0x160] ss:$16 sps:$4 sm:$0xff]  }
  0x1f   : > { %v1953_v48 = vld [vmem:[%s2782_s2 + $0x168] ss:$16 sps:$4 sm:$0xff]   ;;  %v1968_v49 = vld [vmem:[%s2783_s3 + $0x4] ss:$8 sps:$4 sm:$0xff]   ;;  %v1957_v52 = vld [vmem:[%s2340_s27 + $0x14] ss:$8 sps:$4 sm:$0xff]  }
  0x20   : > { %630 = vmatpush1.bf16.msra.mxu0 %v1910_v18  ;;  %703 = vmatpush1.bf16.msra.mxu1 %v1911_v19  ;;  %v1971_v50 = vld [vmem:[%s2783_s3 + $0x104] ss:$8 sps:$4 sm:$0xff]   ;;  %v1954_v51 = vld [vmem:[%s2340_s27] ss:$8 sps:$4 sm:$0xff]   ;;  %v1974_v55 = vld [vmem:[%s2783_s3 + $0x14] ss:$8 sps:$4 sm:$0xff]  }
  0x21   : > { %631 = vmatprep.subr.bf16.mxu0 %v1912_v20  ;;  %704 = vmatprep.subr.bf16.mxu1 %v1914_v21  ;;  %v1966_v53 = vld [vmem:[%s2783_s3] ss:$8 sps:$4 sm:$0xff]   ;;  %v1977_v56 = vld [vmem:[%s2783_s3 + $0x114] ss:$8 sps:$4 sm:$0xff]   ;;  %v1972_v57 = vld [vmem:[%s2783_s3 + $0x10] ss:$8 sps:$4 sm:$0xff]  }
  0x22   : > { %v1969_v54 = vld [vmem:[%s2783_s3 + $0x100] ss:$8 sps:$4 sm:$0xff]   ;;  %v1975_v58 = vld [vmem:[%s2783_s3 + $0x110] ss:$8 sps:$4 sm:$0xff]   ;;  %v1980_v59 = vld [vmem:[%s2783_s3 + $0x24] ss:$8 sps:$4 sm:$0xff]  }
  0x23   : > { %v1983_v60 = vld [vmem:[%s2783_s3 + $0x124] ss:$8 sps:$4 sm:$0xff]   ;;  %v1959_v61 = vld [vmem:[%s2340_s27 + $0x10] ss:$8 sps:$4 sm:$0xff]   ;;  %v1978_v63 = vld [vmem:[%s2783_s3 + $0x20] ss:$8 sps:$4 sm:$0xff]  }
  0x24   : > { %632 = vmatpush1.bf16.msra.mxu0 %v1916_v22  ;;  %705 = vmatpush1.bf16.msra.mxu1 %v1917_v23  ;;  %v1960_v62 = vld [vmem:[%s2340_s27 + $0x24] ss:$8 sps:$4 sm:$0xff]   ;;  %v1981_v0 = vld [vmem:[%s2783_s3 + $0x120] ss:$8 sps:$4 sm:$0xff]   ;;  %v1986_v1 = vld [vmem:[%s2783_s3 + $0x34] ss:$8 sps:$4 sm:$0xff]  }
  0x25   : > { %633 = vmatprep.subr.bf16.mxu0 %v1918_v24  ;;  %706 = vmatprep.subr.bf16.mxu1 %v1920_v25  ;;  %v1989_v2 = vld [vmem:[%s2783_s3 + $0x134] ss:$8 sps:$4 sm:$0xff]   ;;  %v1984_v3 = vld [vmem:[%s2783_s3 + $0x30] ss:$8 sps:$4 sm:$0xff]   ;;  %v1992_v5 = vld [vmem:[%s2783_s3 + $0x44] ss:$8 sps:$4 sm:$0xff]  }
  0x26   : > { %v1987_v4 = vld [vmem:[%s2783_s3 + $0x130] ss:$8 sps:$4 sm:$0xff]   ;;  %v1995_v6 = vld [vmem:[%s2783_s3 + $0x144] ss:$8 sps:$4 sm:$0xff]   ;;  %v1962_v7 = vld [vmem:[%s2340_s27 + $0x20] ss:$8 sps:$4 sm:$0xff]  }
  0x27   : > { %v1963_v8 = vld [vmem:[%s2340_s27 + $0x34] ss:$8 sps:$4 sm:$0xff]   ;;  %v1990_v9 = vld [vmem:[%s2783_s3 + $0x40] ss:$8 sps:$4 sm:$0xff]   ;;  %v1996_v13 = vld [vmem:[%s2783_s3 + $0x50] ss:$8 sps:$4 sm:$0xff]  }
  0x28   : > { %634 = vmatpush1.bf16.msra.mxu0 %v1922_v26  ;;  %707 = vmatpush1.bf16.msra.mxu1 %v1923_v27  ;;  %v1993_v10 = vld [vmem:[%s2783_s3 + $0x140] ss:$8 sps:$4 sm:$0xff]   ;;  %v1998_v11 = vld [vmem:[%s2783_s3 + $0x54] ss:$8 sps:$4 sm:$0xff]   ;;  %v1965_v14 = vld [vmem:[%s2340_s27 + $0x30] ss:$8 sps:$4 sm:$0xff]  }
  0x29   : > { %635 = vmatprep.subr.bf16.mxu0 %v1924_v28  ;;  %708 = vmatprep.subr.bf16.mxu1 %v1926_v29  ;;  %v2001_v12 = vld [vmem:[%s2783_s3 + $0x154] ss:$8 sps:$4 sm:$0xff]   ;;  %v1999_v15 = vld [vmem:[%s2783_s3 + $0x150] ss:$8 sps:$4 sm:$0xff]   ;;  %v2004_v16 = vld [vmem:[%s2783_s3 + $0x64] ss:$8 sps:$4 sm:$0xff]  }
  0x2a   : > { %v2007_v17 = vld [vmem:[%s2783_s3 + $0x164] ss:$8 sps:$4 sm:$0xff]   ;;  %v2002_v18 = vld [vmem:[%s2783_s3 + $0x60] ss:$8 sps:$4 sm:$0xff]   ;;  %v2010_v20 = vld [vmem:[%s2783_s3 + $0x74] ss:$8 sps:$4 sm:$0xff]  }
  0x2b   : > { %v2005_v19 = vld [vmem:[%s2783_s3 + $0x160] ss:$8 sps:$4 sm:$0xff]   ;;  %v2013_v21 = vld [vmem:[%s2783_s3 + $0x174] ss:$8 sps:$4 sm:$0xff]   ;;  %v2008_v22 = vld [vmem:[%s2783_s3 + $0x70] ss:$8 sps:$4 sm:$0xff]  }
  0x2c   : > { %636 = vmatpush1.bf16.msra.mxu0 %v1928_v30  ;;  %709 = vmatpush1.bf16.msra.mxu1 %v1929_v31  ;;  %v2011_v23 = vld [vmem:[%s2783_s3 + $0x170] ss:$8 sps:$4 sm:$0xff]   ;;  %v2016_v24 = vld [vmem:[%s2783_s3 + $0x84] ss:$8 sps:$4 sm:$0xff]   ;;  %v2014_v26 = vld [vmem:[%s2783_s3 + $0x80] ss:$8 sps:$4 sm:$0xff]  }
  0x2d   : > { %637 = vmatprep.subr.bf16.mxu0 %v1930_v32  ;;  %710 = vmatprep.subr.bf16.mxu1 %v1932_v33  ;;  %v2019_v25 = vld [vmem:[%s2783_s3 + $0x184] ss:$8 sps:$4 sm:$0xff]   ;;  %v2017_v27 = vld [vmem:[%s2783_s3 + $0x180] ss:$8 sps:$4 sm:$0xff]   ;;  %v2022_v28 = vld [vmem:[%s2783_s3 + $0x94] ss:$8 sps:$4 sm:$0xff]  }
  0x2e   : > { %v2025_v29 = vld [vmem:[%s2783_s3 + $0x194] ss:$8 sps:$4 sm:$0xff]   ;;  %v2020_v30 = vld [vmem:[%s2783_s3 + $0x90] ss:$8 sps:$4 sm:$0xff]   ;;  %v2028_v32 = vld [vmem:[%s2783_s3 + $0xa4] ss:$8 sps:$4 sm:$0xff]  }
  0x2f   : > { %v2023_v31 = vld [vmem:[%s2783_s3 + $0x190] ss:$8 sps:$4 sm:$0xff]   ;;  %v2031_v33 = vld [vmem:[%s2783_s3 + $0x1a4] ss:$8 sps:$4 sm:$0xff]   ;;  %s255_s25 = sand.u32 1, %s2124_s19   ;;  %s1792_s8 = sshll.u32 %s2132_s21, 11 }
  0x30   : > { %638 = vmatpush1.bf16.msra.mxu0 %v1934_v34  ;;  %711 = vmatpush1.bf16.msra.mxu1 %v1935_v35  ;;  %v2026_v34 = vld [vmem:[%s2783_s3 + $0xa0] ss:$8 sps:$4 sm:$0xff]   ;;  %v2032_v38 = vld [vmem:[%s2783_s3 + $0xb0] ss:$8 sps:$4 sm:$0xff]   ;;  %s1654_s29 = sshll.u32 %s255_s25, 7  ;;  %s2725_s12 = scalar_lea.hbm %s2785_s5, %s1792_s8 }
  0x31   : > { %639 = vmatprep.subr.bf16.mxu0 %v1936_v36  ;;  %712 = vmatprep.subr.bf16.mxu1 %v1938_v37  ;;  %v2029_v35 = vld [vmem:[%s2783_s3 + $0x1a0] ss:$8 sps:$4 sm:$0xff]   ;;  %v2034_v36 = vld [vmem:[%s2783_s3 + $0xb4] ss:$8 sps:$4 sm:$0xff]   ;;  %s2693_s7 = scalar_lea.vmem [#allocation2], %s1654_s29  ;;  %s2734_s21 = scalar_lea.sflag [#allocation3], %s255_s25 }
  0x32   : > { %v2037_v37 = vld [vmem:[%s2783_s3 + $0x1b4] ss:$8 sps:$4 sm:$0xff]   ;;  %s1555_s9 = sshll.u32 %s2693_s7, 4  ;;  %s2142_s13 = smov [#allocation2]   ;;  %s2727_s9 = int_to_ptr.vmem [resolvable:$true] %s1555_s9 }
  0x33   : > { %s2062_s10 = scalar_lea.vmem %s2727_s9, 2048  ;;  %s2066_s14 = sshll.u32 %s2142_s13, 4  ;;  %s2067_s14 = int_to_ptr.vmem [resolvable:$false] %s2066_s14 }
  0x34   : > { %640 = vmatpush1.bf16.msra.mxu0 %v1940_v39  ;;  %713 = vmatpush1.bf16.msra.mxu1 %v1941_v40  ;;  %v2035_v39 = vld [vmem:[%s2783_s3 + $0x1b0] ss:$8 sps:$4 sm:$0xff]   ;;  %v2040_v40 = vld [vmem:[%s2783_s3 + $0xc4] ss:$8 sps:$4 sm:$0xff]   ;;  %p2063_p12 = scmp.ne.s32.totalorder %s2727_s9, %s2062_s10  ;;  %s2068_s15 = scalar_lea.vmem %s2067_s14, 4096 }
  0x35   : > { %641 = vmatprep.subr.bf16.mxu0 %v1942_v41  ;;  %714 = vmatprep.subr.bf16.mxu1 %v1944_v42  ;;  %v2043_v41 = vld [vmem:[%s2783_s3 + $0x1c4] ss:$8 sps:$4 sm:$0xff]   ;;  %v2038_v42 = vld [vmem:[%s2783_s3 + $0xc0] ss:$8 sps:$4 sm:$0xff]   ;;  %p2069_p1 = scmp.lt.s32.totalorder %s2727_s9, %s2067_s14  ;;  %p2070_p2 = scmp.lt.s32.totalorder %s2068_s15, %s2062_s10 }
  0x36   : > { %p2064_p13 = pnand %p2063_p12, %p2215_p4 }
  0x37   : > { %p2071_p3 = por %p2070_p2, %p2069_p1 }
  0x38   : > { %642 = vmatpush1.bf16.msra.mxu0 %v1946_v43  ;;  %715 = vmatpush1.bf16.msra.mxu1 %v1947_v44  ;;  %v2041_v43 = vld [vmem:[%s2783_s3 + $0x1c0] ss:$8 sps:$4 sm:$0xff]   ;;  %v2046_v44 = vld [vmem:[%s2783_s3 + $0xd4] ss:$8 sps:$4 sm:$0xff]   ;;  %p2065_p0 = pneg %p2064_p13 }
  0x39   : > { %643 = vmatprep.subr.bf16.mxu0 %v1948_v45  ;;  %716 = vmatprep.subr.bf16.mxu1 %v1950_v46  ;;  %v2049_v45 = vld [vmem:[%s2783_s3 + $0x1d4] ss:$8 sps:$4 sm:$0xff]   ;;  %v2044_v46 = vld [vmem:[%s2783_s3 + $0xd0] ss:$8 sps:$4 sm:$0xff]  }
  0x3a   : > { %p2072_p5 = pnand %p2071_p3, %p2065_p0 }
  0x3c   : > { %644 = vmatpush1.bf16.msra.mxu0 %v1952_v47  ;;  %717 = vmatpush1.bf16.msra.mxu1 %v1953_v48  ;;  %v2047_v47 = vld [vmem:[%s2783_s3 + $0x1d0] ss:$8 sps:$4 sm:$0xff]   ;;  %v2052_v48 = vld [vmem:[%s2783_s3 + $0xe4] ss:$8 sps:$4 sm:$0xff]  }
  0x3d   : > { %1328 = vmatprep.subr.bf16.mxu1 %v1968_v49  ;;  %1401 = vmatprep.subr.bf16.mxu0 %v1971_v50  ;;  %v2055_v49 = vld [vmem:[%s2783_s3 + $0x1e4] ss:$8 sps:$4 sm:$0xff]   ;;  %v2050_v50 = vld [vmem:[%s2783_s3 + $0xe0] ss:$8 sps:$4 sm:$0xff]  }
  0x3f   : > { %654 = vmatmul.mubr.bf16.vlgmr.msra.gmra.mrb[0].mxu0 %v1954_v51  ;;  %727 = vmatmul.mubr.bf16.vlgmr.msra.gmra.mrb[0].mxu1 %v1954_v51  ;;  %v2053_v51 = vld [vmem:[%s2783_s3 + $0x1e0] ss:$8 sps:$4 sm:$0xff]  }
  0x40   : > { %1715 = vmatprep.mubr.msk.bf16.mxu0 %vm608_vm0, %v1957_v52  ;;  %1719 = vmatprep.mubr.msk.bf16.mxu1 %vm608_vm0, %v1957_v52  ;;  %v2058_v52 = vld [vmem:[%s2783_s3 + $0xf4] ss:$8 sps:$4 sm:$0xff]  }
  0x41   : > { %1329 = vmatpush1.bf16.msra.mxu1 %v1966_v53  ;;  %1402 = vmatpush1.bf16.msra.mxu0 %v1969_v54  ;;  %v2061_v53 = vld [vmem:[%s2783_s3 + $0x1f4] ss:$8 sps:$4 sm:$0xff]   ;;  %v2056_v54 = vld [vmem:[%s2783_s3 + $0xf0] ss:$8 sps:$4 sm:$0xff]  }
  0x42   : > { %1330 = vmatprep.subr.bf16.mxu1 %v1974_v55  ;;  %1403 = vmatprep.subr.bf16.mxu0 %v1977_v56  ;;  %v2059_v55 = vld [vmem:[%s2783_s3 + $0x1f0] ss:$8 sps:$4 sm:$0xff]   ;;  %v768_v56 = vlaneseq }
  0x45   : > { %1331 = vmatpush1.bf16.msra.mxu1 %v1972_v57  ;;  %1404 = vmatpush1.bf16.msra.mxu0 %v1975_v58  ;;  %v2593_v57 = vshrl.u32 %v768_v56, 7 }
  0x46   : > { %1332 = vmatprep.subr.bf16.mxu1 %v1980_v59  ;;  %1405 = vmatprep.subr.bf16.mxu0 %v1983_v60  ;;  %v275_v60 = vld [vmem:[%s261_s16] sm:$0xf] }
  0x47   : > { %664 = vmatmul.mubr.bf16.gmra.mrb[4].mxu0 %v1959_v61  ;;  %737 = vmatmul.mubr.bf16.gmra.mrb[4].mxu1 %v1959_v61  ;;  %v770_v58 = vsub.s32 0, %v2593_v57  ;;  %v778_v59 = vsub.s32 2, %v2593_v57  ;;  %v774_v61 = vsub.s32 1, %v2593_v57 }
  0x48   : > { %1716 = vmatprep.mubr.msk.bf16.mxu0 %vm608_vm0, %v1960_v62  ;;  %1720 = vmatprep.mubr.msk.bf16.mxu1 %vm608_vm0, %v1960_v62  ;;  %v782_v62 = vsub.s32 3, %v2593_v57 }
  0x49   : > { %1333 = vmatpush1.bf16.msra.mxu1 %v1978_v63  ;;  %1406 = vmatpush1.bf16.msra.mxu0 %v1981_v0  ;;  %v2604_v63 = vrot.slane %v275_v60, %v770_v58  ;;  %v2606_v0 = vrot.slane %v275_v60, %v778_v59 }
  0x4a   : > { %1334 = vmatprep.subr.bf16.mxu1 %v1986_v1  ;;  %1407 = vmatprep.subr.bf16.mxu0 %v1989_v2  ;;  %v2610_v1 = vrot.slane %v275_v60, %v774_v61  ;;  %v2612_v2 = vrot.slane %v275_v60, %v782_v62 }
  0x4d   : > { %1335 = vmatpush1.bf16.msra.mxu1 %v1984_v3  ;;  %1408 = vmatpush1.bf16.msra.mxu0 %v1987_v4 }
  0x4e   : > { %1336 = vmatprep.subr.bf16.mxu1 %v1992_v5  ;;  %1409 = vmatprep.subr.bf16.mxu0 %v1995_v6 }
  0x4f   : > { %674 = vmatmul.mubr.bf16.gmra.mrb[8].mxu0 %v1962_v7  ;;  %747 = vmatmul.mubr.bf16.gmra.mrb[8].mxu1 %v1962_v7 }
  0x50   : > { %1717 = vmatprep.mubr.msk.bf16.mxu0 %vm608_vm0, %v1963_v8  ;;  %1721 = vmatprep.mubr.msk.bf16.mxu1 %vm608_vm0, %v1963_v8 }
  0x51   : > { %1337 = vmatpush1.bf16.msra.mxu1 %v1990_v9  ;;  %1410 = vmatpush1.bf16.msra.mxu0 %v1993_v10 }
  0x52   : > { %1338 = vmatprep.subr.bf16.mxu1 %v1998_v11  ;;  %1411 = vmatprep.subr.bf16.mxu0 %v2001_v12 }
  0x55   : > { %1339 = vmatpush1.bf16.msra.mxu1 %v1996_v13  ;;  %1412 = vmatpush1.bf16.msra.mxu0 %v1999_v15 }
  0x56   : > { %1340 = vmatprep.subr.bf16.mxu1 %v2004_v16  ;;  %1413 = vmatprep.subr.bf16.mxu0 %v2007_v17 }
  0x57   : > { %684 = vmatmul.mubr.bf16.gmra.mrb[12].mxu0 %v1965_v14  ;;  %757 = vmatmul.mubr.bf16.gmra.mrb[12].mxu1 %v1965_v14 }
  0x59   : > { %1341 = vmatpush1.bf16.msra.mxu1 %v2002_v18  ;;  %1414 = vmatpush1.bf16.msra.mxu0 %v2005_v19 }
  0x5a   : > { %1342 = vmatprep.subr.bf16.mxu1 %v2010_v20  ;;  %1415 = vmatprep.subr.bf16.mxu0 %v2013_v21 }
  0x5d   : > { %1343 = vmatpush1.bf16.msra.mxu1 %v2008_v22  ;;  %1416 = vmatpush1.bf16.msra.mxu0 %v2011_v23 }
  0x5e   : > { %1344 = vmatprep.subr.bf16.mxu1 %v2016_v24  ;;  %1417 = vmatprep.subr.bf16.mxu0 %v2019_v25 }
  0x61   : > { %1345 = vmatpush1.bf16.msra.mxu1 %v2014_v26  ;;  %1418 = vmatpush1.bf16.msra.mxu0 %v2017_v27 }
  0x62   : > { %1346 = vmatprep.subr.bf16.mxu1 %v2022_v28  ;;  %1419 = vmatprep.subr.bf16.mxu0 %v2025_v29 }
  0x65   : > { %1347 = vmatpush1.bf16.msra.mxu1 %v2020_v30  ;;  %1420 = vmatpush1.bf16.msra.mxu0 %v2023_v31 }
  0x66   : > { %1348 = vmatprep.subr.bf16.mxu1 %v2028_v32  ;;  %1421 = vmatprep.subr.bf16.mxu0 %v2031_v33 }
  0x69   : > { %1349 = vmatpush1.bf16.msra.mxu1 %v2026_v34  ;;  %1422 = vmatpush1.bf16.msra.mxu0 %v2029_v35 }
  0x6a   : > { %1350 = vmatprep.subr.bf16.mxu1 %v2034_v36  ;;  %1423 = vmatprep.subr.bf16.mxu0 %v2037_v37 }
  0x6d   : > { %1351 = vmatpush1.bf16.msra.mxu1 %v2032_v38  ;;  %1424 = vmatpush1.bf16.msra.mxu0 %v2035_v39 }
  0x6e   : > { %1352 = vmatprep.subr.bf16.mxu1 %v2040_v40  ;;  %1425 = vmatprep.subr.bf16.mxu0 %v2043_v41 }
  0x71   : > { %1353 = vmatpush1.bf16.msra.mxu1 %v2038_v42  ;;  %1426 = vmatpush1.bf16.msra.mxu0 %v2041_v43 }
  0x72   : > { %1354 = vmatprep.subr.bf16.mxu1 %v2046_v44  ;;  %1427 = vmatprep.subr.bf16.mxu0 %v2049_v45 }
  0x75   : > { %1355 = vmatpush1.bf16.msra.mxu1 %v2044_v46  ;;  %1428 = vmatpush1.bf16.msra.mxu0 %v2047_v47 }
  0x76   : > { %1356 = vmatprep.subr.bf16.mxu1 %v2052_v48  ;;  %1429 = vmatprep.subr.bf16.mxu0 %v2055_v49 }
  0x79   : > { %1357 = vmatpush1.bf16.msra.mxu1 %v2050_v50  ;;  %1430 = vmatpush1.bf16.msra.mxu0 %v2053_v51 }
  0x7a   : > { %1358 = vmatprep.subr.bf16.mxu1 %v2058_v52  ;;  %1431 = vmatprep.subr.bf16.mxu0 %v2061_v53 }
  0x7d   : > { %1359 = vmatpush1.bf16.msra.mxu1 %v2056_v54  ;;  %1432 = vmatpush1.bf16.msra.mxu0 %v2059_v55 }
 0x112   : > { %v655_v3 = vpop.f32.mrb[0].mxu0  ;;  %v728_v4 = vpop.f32.mrb[0].mxu1 }
 0x113   : > { %v788_v5 = vadd.f32 %v2604_v63, %v655_v3  ;;  %v790_v6 = vadd.f32 %v2606_v0, %v728_v4  ;;  %v657_v7 = vpop.f32.mrb[1].mxu0  ;;  %v730_v8 = vpop.f32.mrb[1].mxu1 }
 0x114   : > { %v789_v9 = vadd.f32 %v2610_v1, %v657_v7  ;;  %v791_v10 = vadd.f32 %v2612_v2, %v730_v8  ;;  %v659_v11 = vpop.f32.mrb[2].mxu0  ;;  %v732_v12 = vpop.f32.mrb[2].mxu1 }
 0x115   : > { %vm820_vm1 = vcmp.ge.f32.partialorder %v788_v5, 0.0  ;;  %v852_v13 = vmul.f32 0.2, %v788_v5  ;;  %vm822_vm2 = vcmp.ge.f32.partialorder %v790_v6, 0.0  ;;  %v854_v14 = vmul.f32 0.2, %v790_v6 }
 0x116   : > { %vm821_vm3 = vcmp.ge.f32.partialorder %v789_v9, 0.0  ;;  %v853_v15 = vmul.f32 0.2, %v789_v9  ;;  %vm823_vm4 = vcmp.ge.f32.partialorder %v791_v10, 0.0  ;;  %v855_v16 = vmul.f32 0.2, %v791_v10 }
 0x117   : > { %v792_v17 = vadd.f32 %v2604_v63, %v659_v11  ;;  %v794_v18 = vadd.f32 %v2606_v0, %v732_v12  ;;  %v661_v19 = vpop.f32.mrb[3].mxu0  ;;  %v734_v20 = vpop.f32.mrb[3].mxu1  ;;  %v884_v21 = vsel %vm820_vm1, %v788_v5, %v852_v13  ;;  %v886_v22 = vsel %vm822_vm2, %v790_v6, %v854_v14 }
 0x118   : > { %v793_v23 = vadd.f32 %v2610_v1, %v661_v19  ;;  %v795_v24 = vadd.f32 %v2612_v2, %v734_v20  ;;  %v885_v33 = vsel %vm821_vm3, %v789_v9, %v853_v15  ;;  %v887_v34 = vsel %vm823_vm4, %v791_v10, %v855_v16 }
 0x119   : > { %vm824_vm5 = vcmp.ge.f32.partialorder %v792_v17, 0.0  ;;  %v856_v25 = vmul.f32 0.2, %v792_v17  ;;  %vm826_vm6 = vcmp.ge.f32.partialorder %v794_v18, 0.0  ;;  %v858_v26 = vmul.f32 0.2, %v794_v18 }
 0x11a   : > { %vm825_vm7 = vcmp.ge.f32.partialorder %v793_v23, 0.0  ;;  %v857_v27 = vmul.f32 0.2, %v793_v23  ;;  %vm827_vm8 = vcmp.ge.f32.partialorder %v795_v24, 0.0  ;;  %v859_v28 = vmul.f32 0.2, %v795_v24 }
 0x11b   : > { %v888_v29 = vsel %vm824_vm5, %v792_v17, %v856_v25  ;;  %v890_v30 = vsel %vm826_vm6, %v794_v18, %v858_v26  ;;  %v665_v31 = vpop.f32.mrb[4].mxu0  ;;  %v738_v32 = vpop.f32.mrb[4].mxu1 }
 0x11c   : > { %v916_v35 = vpack.c.bf16 %v888_v29, %v884_v21  ;;  %v918_v36 = vpack.c.bf16 %v890_v30, %v886_v22  ;;  %v796_v37 = vadd.f32 %v2604_v63, %v665_v31  ;;  %v798_v38 = vadd.f32 %v2606_v0, %v738_v32  ;;  %v667_v39 = vpop.f32.mrb[5].mxu0  ;;  %v740_v40 = vpop.f32.mrb[5].mxu1 }
 0x11d   : > { %v797_v41 = vadd.f32 %v2610_v1, %v667_v39  ;;  %v799_v42 = vadd.f32 %v2612_v2, %v740_v40  ;;  %v669_v43 = vpop.f32.mrb[6].mxu0  ;;  %v742_v44 = vpop.f32.mrb[6].mxu1  ;;  %v889_v45 = vsel %vm825_vm7, %v793_v23, %v857_v27  ;;  %v891_v46 = vsel %vm827_vm8, %v795_v24, %v859_v28 }
 0x11e   : > { %vm828_vm9 = vcmp.ge.f32.partialorder %v796_v37, 0.0  ;;  %v860_v47 = vmul.f32 0.2, %v796_v37  ;;  %vm830_vm10 = vcmp.ge.f32.partialorder %v798_v38, 0.0  ;;  %v862_v48 = vmul.f32 0.2, %v798_v38 }
 0x11f   : > { %vm829_vm11 = vcmp.ge.f32.partialorder %v797_v41, 0.0  ;;  %v861_v49 = vmul.f32 0.2, %v797_v41  ;;  %vm831_vm12 = vcmp.ge.f32.partialorder %v799_v42, 0.0  ;;  %v863_v50 = vmul.f32 0.2, %v799_v42 }
 0x120   : > { %v800_v51 = vadd.f32 %v2604_v63, %v669_v43  ;;  %v802_v52 = vadd.f32 %v2606_v0, %v742_v44  ;;  %v671_v53 = vpop.f32.mrb[7].mxu0  ;;  %v744_v54 = vpop.f32.mrb[7].mxu1  ;;  %v917_v55 = vpack.c.bf16 %v889_v45, %v885_v33  ;;  %v919_v56 = vpack.c.bf16 %v891_v46, %v887_v34 }
 0x121   : > { %v801_v59 = vadd.f32 %v2610_v1, %v671_v53  ;;  %v803_v60 = vadd.f32 %v2612_v2, %v744_v54  ;;  %v893_v62 = vsel %vm829_vm11, %v797_v41, %v861_v49  ;;  %v895_v3 = vsel %vm831_vm12, %v799_v42, %v863_v50 }
 0x122   : > { %vm832_vm13 = vcmp.ge.f32.partialorder %v800_v51, 0.0  ;;  %v864_v4 = vmul.f32 0.2, %v800_v51  ;;  %vm834_vm14 = vcmp.ge.f32.partialorder %v802_v52, 0.0  ;;  %v866_v5 = vmul.f32 0.2, %v802_v52  ;;  %1360 = vmatprep.mubr.bf16.mxu1 %v917_v55  ;;  %1433 = vmatprep.mubr.bf16.mxu0 %v919_v56 }
 0x123   : > { %vm833_vm15 = vcmp.ge.f32.partialorder %v801_v59, 0.0  ;;  %v865_v6 = vmul.f32 0.2, %v801_v59  ;;  %vm835_vm0 = vcmp.ge.f32.partialorder %v803_v60, 0.0  ;;  %v867_v7 = vmul.f32 0.2, %v803_v60  ;;  %1361 = vmatmul.mubr.bf16.vlgmr.msra.gmra.mrb[16].mxu1 %v916_v35  ;;  %1434 = vmatmul.mubr.bf16.vlgmr.msra.gmra.mrb[16].mxu0 %v918_v36 }
 0x124   : > { %v675_v8 = vpop.f32.mrb[8].mxu0  ;;  %v748_v9 = vpop.f32.mrb[8].mxu1  ;;  %v892_v10 = vsel %vm828_vm9, %v796_v37, %v860_v47  ;;  %v896_v11 = vsel %vm832_vm13, %v800_v51, %v864_v4  ;;  %v894_v12 = vsel %vm830_vm10, %v798_v38, %v862_v48  ;;  %v898_v13 = vsel %vm834_vm14, %v802_v52, %v866_v5 }
 0x125   : > { %v804_v14 = vadd.f32 %v2604_v63, %v675_v8  ;;  %v2638_v15 = vadd.f32 %v2606_v0, %v748_v9  ;;  %v677_v16 = vpop.f32.mrb[9].mxu0  ;;  %v750_v17 = vpop.f32.mrb[9].mxu1  ;;  %v897_v18 = vsel %vm833_vm15, %v801_v59, %v865_v6  ;;  %v899_v19 = vsel %vm835_vm0, %v803_v60, %v867_v7 }
 0x126   : > { %v805_v20 = vadd.f32 %v2610_v1, %v677_v16  ;;  %v807_v21 = vadd.f32 %v2612_v2, %v750_v17  ;;  %v679_v22 = vpop.f32.mrb[10].mxu0  ;;  %v752_v23 = vpop.f32.mrb[10].mxu1  ;;  %v921_v24 = vpack.c.bf16 %v897_v18, %v893_v62  ;;  %v923_v25 = vpack.c.bf16 %v899_v19, %v895_v3 }
 0x127   : > { %vm836_vm1 = vcmp.ge.f32.partialorder %v804_v14, 0.0  ;;  %v868_v26 = vmul.f32 0.2, %v804_v14  ;;  %vm838_vm2 = vcmp.ge.f32.partialorder %v2638_v15, 0.0  ;;  %v870_v27 = vmul.f32 0.2, %v2638_v15 }
 0x128   : > { %vm837_vm3 = vcmp.ge.f32.partialorder %v805_v20, 0.0  ;;  %v869_v28 = vmul.f32 0.2, %v805_v20  ;;  %vm839_vm4 = vcmp.ge.f32.partialorder %v807_v21, 0.0  ;;  %v871_v29 = vmul.f32 0.2, %v807_v21  ;;  %1370 = vmatprep.mubr.bf16.mxu1 %v921_v24  ;;  %1443 = vmatprep.mubr.bf16.mxu0 %v923_v25 }
 0x129   : > { %v808_v30 = vadd.f32 %v2604_v63, %v679_v22  ;;  %v2647_v31 = vadd.f32 %v2606_v0, %v752_v23  ;;  %v681_v32 = vpop.f32.mrb[11].mxu0  ;;  %v754_v33 = vpop.f32.mrb[11].mxu1  ;;  %v920_v34 = vpack.c.bf16 %v896_v11, %v892_v10  ;;  %v922_v35 = vpack.c.bf16 %v898_v13, %v894_v12 }
 0x12a   : > { %v809_v36 = vadd.f32 %v2610_v1, %v681_v32  ;;  %v811_v37 = vadd.f32 %v2612_v2, %v754_v33  ;;  %v685_v38 = vpop.f32.mrb[12].mxu0  ;;  %v758_v39 = vpop.f32.mrb[12].mxu1  ;;  %v901_v40 = vsel %vm837_vm3, %v805_v20, %v869_v28  ;;  %v903_v41 = vsel %vm839_vm4, %v807_v21, %v871_v29  ;;  %v996_v29 = vld [vmem:[%s2784_s4] sm:$0x3] }
 0x12b   : > { %vm840_vm5 = vcmp.ge.f32.partialorder %v808_v30, 0.0  ;;  %v872_v42 = vmul.f32 0.2, %v808_v30  ;;  %vm842_vm6 = vcmp.ge.f32.partialorder %v2647_v31, 0.0  ;;  %v874_v43 = vmul.f32 0.2, %v2647_v31  ;;  %1371 = vmatmul.mubr.bf16.gmra.mrb[20].mxu1 %v920_v34  ;;  %1444 = vmatmul.mubr.bf16.gmra.mrb[20].mxu0 %v922_v35 }
 0x12c   : > { %vm841_vm7 = vcmp.ge.f32.partialorder %v809_v36, 0.0  ;;  %v873_v44 = vmul.f32 0.2, %v809_v36  ;;  %vm843_vm8 = vcmp.ge.f32.partialorder %v811_v37, 0.0  ;;  %v875_v45 = vmul.f32 0.2, %v811_v37 }
 0x12d   : > { %v812_v46 = vadd.f32 %v2604_v63, %v685_v38  ;;  %v814_v47 = vadd.f32 %v2606_v0, %v758_v39  ;;  %v687_v48 = vpop.f32.mrb[13].mxu0  ;;  %v760_v49 = vpop.f32.mrb[13].mxu1  ;;  %v900_v50 = vsel %vm836_vm1, %v804_v14, %v868_v26  ;;  %v904_v51 = vsel %vm840_vm5, %v808_v30, %v872_v42 }
 0x12e   : > { %v813_v52 = vadd.f32 %v2610_v1, %v687_v48  ;;  %v815_v53 = vadd.f32 %v2612_v2, %v760_v49  ;;  %v689_v54 = vpop.f32.mrb[14].mxu0  ;;  %v762_v55 = vpop.f32.mrb[14].mxu1  ;;  %v905_v56 = vsel %vm841_vm7, %v809_v36, %v873_v44  ;;  %v907_v59 = vsel %vm843_vm8, %v811_v37, %v875_v45 }
 0x12f   : > { %vm844_vm9 = vcmp.ge.f32.partialorder %v812_v46, 0.0  ;;  %v876_v60 = vmul.f32 0.2, %v812_v46  ;;  %vm846_vm10 = vcmp.ge.f32.partialorder %v814_v47, 0.0  ;;  %v878_v62 = vmul.f32 0.2, %v814_v47 }
 0x130   : > { %vm845_vm11 = vcmp.ge.f32.partialorder %v813_v52, 0.0  ;;  %v877_v3 = vmul.f32 0.2, %v813_v52  ;;  %vm847_vm12 = vcmp.ge.f32.partialorder %v815_v53, 0.0  ;;  %v879_v4 = vmul.f32 0.2, %v815_v53 }
 0x131   : > { %v816_v5 = vadd.f32 %v2604_v63, %v689_v54  ;;  %v818_v6 = vadd.f32 %v2606_v0, %v762_v55  ;;  %v691_v7 = vpop.f32.mrb[15].mxu0  ;;  %v764_v8 = vpop.f32.mrb[15].mxu1  ;;  %v925_v9 = vpack.c.bf16 %v905_v56, %v901_v40  ;;  %v927_v10 = vpack.c.bf16 %v907_v59, %v903_v41 }
 0x132   : > { %v817_v11 = vadd.f32 %v2610_v1, %v691_v7  ;;  %v819_v12 = vadd.f32 %v2612_v2, %v764_v8  ;;  %v924_v13 = vpack.c.bf16 %v904_v51, %v900_v50  ;;  %v902_v14 = vsel %vm838_vm2, %v2638_v15, %v870_v27 }
 0x133   : > { %vm848_vm13 = vcmp.ge.f32.partialorder %v816_v5, 0.0  ;;  %v880_v16 = vmul.f32 0.2, %v816_v5  ;;  %vm850_vm14 = vcmp.ge.f32.partialorder %v818_v6, 0.0  ;;  %v882_v17 = vmul.f32 0.2, %v818_v6  ;;  %1380 = vmatprep.mubr.bf16.mxu1 %v925_v9  ;;  %1453 = vmatprep.mubr.bf16.mxu0 %v927_v10 }
 0x134   : > { %vm849_vm15 = vcmp.ge.f32.partialorder %v817_v11, 0.0  ;;  %v881_v63 = vmul.f32 0.2, %v817_v11  ;;  %vm851_vm0 = vcmp.ge.f32.partialorder %v819_v12, 0.0  ;;  %v883_v0 = vmul.f32 0.2, %v819_v12  ;;  %1381 = vmatmul.mubr.bf16.gmra.mrb[24].mxu1 %v924_v13 }
 0x135   : > { %v906_v1 = vsel %vm842_vm6, %v2647_v31, %v874_v43  ;;  %v909_v2 = vsel %vm845_vm11, %v813_v52, %v877_v3  ;;  %v911_v18 = vsel %vm847_vm12, %v815_v53, %v879_v4  ;;  %v908_v15 = vsel %vm844_vm9, %v812_v46, %v876_v60 }
 0x136   : > { %v926_v19 = vpack.c.bf16 %v906_v1, %v902_v14  ;;  %v913_v20 = vsel %vm849_vm15, %v817_v11, %v881_v63  ;;  %v915_v21 = vsel %vm851_vm0, %v819_v12, %v883_v0  ;;  %v912_v22 = vsel %vm848_vm13, %v816_v5, %v880_v16 }
 0x137   : > { %v929_v23 = vpack.c.bf16 %v913_v20, %v909_v2  ;;  %v931_v24 = vpack.c.bf16 %v915_v21, %v911_v18  ;;  %v928_v25 = vpack.c.bf16 %v912_v22, %v908_v15  ;;  %v910_v26 = vsel %vm846_vm10, %v814_v47, %v878_v62 }
 0x138   : > { %1454 = vmatmul.mubr.bf16.gmra.mrb[24].mxu0 %v926_v19  ;;  %v914_v27 = vsel %vm850_vm14, %v818_v6, %v882_v17  ;;  %v2680_v30 = vrot.slane %v996_v29, %v770_v58  ;;  %v2684_v31 = vrot.slane %v996_v29, %v774_v61 }
 0x139   : > { %1390 = vmatprep.mubr.bf16.mxu1 %v929_v23  ;;  %1463 = vmatprep.mubr.bf16.mxu0 %v931_v24  ;;  %v930_v28 = vpack.c.bf16 %v914_v27, %v910_v26 }
 0x13c   : > { %1391 = vmatmul.mubr.bf16.gmra.mrb[28].mxu1 %v928_v25 }
 0x140   : > { %1464 = vmatmul.mubr.bf16.gmra.mrb[28].mxu0 %v930_v28 }
 0x1f6   : > { %v1362_v32 = vpop.f32.mrb[16].mxu1  ;;  %v1435_v33 = vpop.f32.mrb[16].mxu0 }
 0x1f7   : > { %v1363_v34 = vadd.f32 %v1362_v32, %v2680_v30  ;;  %v1364_v35 = vpop.f32.mrb[17].mxu1  ;;  %v1437_v36 = vpop.f32.mrb[17].mxu0 }
 0x1f8   : > { %v1365_v37 = vadd.f32 %v1364_v35, %v2684_v31  ;;  %v1366_v38 = vpop.f32.mrb[18].mxu1  ;;  %v1439_v39 = vpop.f32.mrb[18].mxu0 }
 0x1f9   : > { %v1436_v40 = vadd.f32 %v1435_v33, %v1363_v34  ;;  %v1367_v58 = vadd.f32 %v1366_v38, %v2680_v30  ;;  %v1368_v41 = vpop.f32.mrb[19].mxu1  ;;  %v1441_v57 = vpop.f32.mrb[19].mxu0 }
 0x1fa   : > { %v1438_v61 = vadd.f32 %v1437_v36, %v1365_v37  ;;  %v1369_v42 = vadd.f32 %v1368_v41, %v2684_v31 }
 0x1fb   : > { %vm1474_vm1 = vcmp.ge.f32.partialorder %v1436_v40, 0.0  ;;  %v1490_v43 = vmul.f32 0.2, %v1436_v40  ;;  %v1440_v44 = vadd.f32 %v1439_v39, %v1367_v58 }
 0x1fc   : > { %vm1475_vm2 = vcmp.ge.f32.partialorder %v1438_v61, 0.0  ;;  %v1491_v45 = vmul.f32 0.2, %v1438_v61  ;;  %v1442_v46 = vadd.f32 %v1441_v57, %v1369_v42 }
 0x1fd   : > { %v1506_v47 = vsel %vm1474_vm1, %v1436_v40, %v1490_v43  ;;  %vm1476_vm3 = vcmp.ge.f32.partialorder %v1440_v44, 0.0  ;;  %v1492_v48 = vmul.f32 0.2, %v1440_v44 }
 0x1fe   : > { %1522 = vst [vmem:[%s2693_s7] sm:$0xff] %v1506_v47  ;;  %v1507_v49 = vsel %vm1475_vm2, %v1438_v61, %v1491_v45  ;;  %vm1477_vm4 = vcmp.ge.f32.partialorder %v1442_v46, 0.0  ;;  %v1493_v50 = vmul.f32 0.2, %v1442_v46  ;;  %v1372_v51 = vpop.f32.mrb[20].mxu1  ;;  %v1445_v52 = vpop.f32.mrb[20].mxu0 }
 0x1ff   : > { %1523 = vst [vmem:[%s2693_s7 + $0x8] sm:$0xff] %v1507_v49  ;;  %v1508_v53 = vsel %vm1476_vm3, %v1440_v44, %v1492_v48  ;;  %v1373_v54 = vadd.f32 %v1372_v51, %v2680_v30  ;;  %v1374_v55 = vpop.f32.mrb[21].mxu1  ;;  %v1447_v56 = vpop.f32.mrb[21].mxu0 }
 0x200   : > { %1524 = vst [vmem:[%s2693_s7 + $0x10] sm:$0xff] %v1508_v53  ;;  %v1509_v59 = vsel %vm1477_vm4, %v1442_v46, %v1493_v50  ;;  %v1375_v60 = vadd.f32 %v1374_v55, %v2684_v31  ;;  %v1376_v62 = vpop.f32.mrb[22].mxu1  ;;  %v1449_v3 = vpop.f32.mrb[22].mxu0 }
 0x201   : > { %1525 = vst [vmem:[%s2693_s7 + $0x18] sm:$0xff] %v1509_v59  ;;  %v1446_v4 = vadd.f32 %v1445_v52, %v1373_v54  ;;  %v1377_v5 = vadd.f32 %v1376_v62, %v2680_v30  ;;  %v1378_v6 = vpop.f32.mrb[23].mxu1  ;;  %v1451_v7 = vpop.f32.mrb[23].mxu0 }
 0x202   : > { %v1448_v8 = vadd.f32 %v1447_v56, %v1375_v60  ;;  %v1379_v9 = vadd.f32 %v1378_v6, %v2684_v31 }
 0x203   : > { %vm1478_vm5 = vcmp.ge.f32.partialorder %v1446_v4, 0.0  ;;  %v1494_v10 = vmul.f32 0.2, %v1446_v4  ;;  %v1450_v11 = vadd.f32 %v1449_v3, %v1377_v5 }
 0x204   : > { %vm1479_vm6 = vcmp.ge.f32.partialorder %v1448_v8, 0.0  ;;  %v1495_v12 = vmul.f32 0.2, %v1448_v8  ;;  %v1452_v13 = vadd.f32 %v1451_v7, %v1379_v9 }
 0x205   : > { %v1510_v14 = vsel %vm1478_vm5, %v1446_v4, %v1494_v10  ;;  %vm1480_vm7 = vcmp.ge.f32.partialorder %v1450_v11, 0.0  ;;  %v1496_v16 = vmul.f32 0.2, %v1450_v11 }
 0x206   : > { %1526 = vst [vmem:[%s2693_s7 + $0x20] sm:$0xff] %v1510_v14  ;;  %v1511_v17 = vsel %vm1479_vm6, %v1448_v8, %v1495_v12  ;;  %vm1481_vm8 = vcmp.ge.f32.partialorder %v1452_v13, 0.0  ;;  %v1497_v63 = vmul.f32 0.2, %v1452_v13 }
 0x207   : > { %1527 = vst [vmem:[%s2693_s7 + $0x28] sm:$0xff] %v1511_v17  ;;  %v1512_v0 = vsel %vm1480_vm7, %v1450_v11, %v1496_v16  ;;  %v1382_v1 = vpop.f32.mrb[24].mxu1 }
 0x208   : > { %1528 = vst [vmem:[%s2693_s7 + $0x30] sm:$0xff] %v1512_v0  ;;  %v1513_v2 = vsel %vm1481_vm8, %v1452_v13, %v1497_v63  ;;  %v1383_v18 = vadd.f32 %v1382_v1, %v2680_v30  ;;  %v1384_v15 = vpop.f32.mrb[25].mxu1 }
 0x209   : > { %1529 = vst [vmem:[%s2693_s7 + $0x38] sm:$0xff] %v1513_v2  ;;  %v1385_v19 = vadd.f32 %v1384_v15, %v2684_v31  ;;  %v1386_v20 = vpop.f32.mrb[26].mxu1 }
 0x20a   : > { %v1387_v21 = vadd.f32 %v1386_v20, %v2680_v30  ;;  %v1388_v22 = vpop.f32.mrb[27].mxu1 }
 0x20b   : > { %v1455_v23 = vpop.f32.mrb[24].mxu0  ;;  %v1389_v24 = vadd.f32 %v1388_v22, %v2684_v31 }
 0x20c   : > { %v1456_v25 = vadd.f32 %v1455_v23, %v1383_v18  ;;  %v1457_v26 = vpop.f32.mrb[25].mxu0 }
 0x20d   : > { %v1458_v27 = vadd.f32 %v1457_v26, %v1385_v19  ;;  %v1459_v28 = vpop.f32.mrb[26].mxu0 }
 0x20e   : > { %vm1482_vm9 = vcmp.ge.f32.partialorder %v1456_v25, 0.0  ;;  %v1498_v29 = vmul.f32 0.2, %v1456_v25  ;;  %v1460_v32 = vadd.f32 %v1459_v28, %v1387_v21  ;;  %v1461_v33 = vpop.f32.mrb[27].mxu0 }
 0x20f   : > { %vm1483_vm10 = vcmp.ge.f32.partialorder %v1458_v27, 0.0  ;;  %v1499_v34 = vmul.f32 0.2, %v1458_v27  ;;  %v1462_v35 = vadd.f32 %v1461_v33, %v1389_v24  ;;  %v1392_v36 = vpop.f32.mrb[28].mxu1 }
 0x210   : > { %v1514_v37 = vsel %vm1482_vm9, %v1456_v25, %v1498_v29  ;;  %vm1484_vm11 = vcmp.ge.f32.partialorder %v1460_v32, 0.0  ;;  %v1500_v38 = vmul.f32 0.2, %v1460_v32  ;;  %v1393_v39 = vadd.f32 %v1392_v36, %v2680_v30  ;;  %v1394_v40 = vpop.f32.mrb[29].mxu1 }
 0x211   : > { %1530 = vst [vmem:[%s2693_s7 + $0x40] sm:$0xff] %v1514_v37  ;;  %v1515_v58 = vsel %vm1483_vm10, %v1458_v27, %v1499_v34  ;;  %vm1485_vm12 = vcmp.ge.f32.partialorder %v1462_v35, 0.0  ;;  %v1501_v41 = vmul.f32 0.2, %v1462_v35  ;;  %v1395_v57 = vadd.f32 %v1394_v40, %v2684_v31  ;;  %v1396_v61 = vpop.f32.mrb[30].mxu1 }
 0x212   : > { %1531 = vst [vmem:[%s2693_s7 + $0x48] sm:$0xff] %v1515_v58  ;;  %v1516_v42 = vsel %vm1484_vm11, %v1460_v32, %v1500_v38  ;;  %v1397_v43 = vadd.f32 %v1396_v61, %v2680_v30  ;;  %v1398_v44 = vpop.f32.mrb[31].mxu1 }
 0x213   : > { %1532 = vst [vmem:[%s2693_s7 + $0x50] sm:$0xff] %v1516_v42  ;;  %v1517_v45 = vsel %vm1485_vm12, %v1462_v35, %v1501_v41  ;;  %v1465_v46 = vpop.f32.mrb[28].mxu0  ;;  %v1399_v47 = vadd.f32 %v1398_v44, %v2684_v31 }
 0x214   : > { %1533 = vst [vmem:[%s2693_s7 + $0x58] sm:$0xff] %v1517_v45  ;;  %v1466_v48 = vadd.f32 %v1465_v46, %v1393_v39  ;;  %v1467_v49 = vpop.f32.mrb[29].mxu0 }
 0x215   : > { %v1468_v50 = vadd.f32 %v1467_v49, %v1395_v57  ;;  %v1469_v51 = vpop.f32.mrb[30].mxu0 }
 0x216   : > { %vm1486_vm13 = vcmp.ge.f32.partialorder %v1466_v48, 0.0  ;;  %v1502_v52 = vmul.f32 0.2, %v1466_v48  ;;  %v1470_v53 = vadd.f32 %v1469_v51, %v1397_v43  ;;  %v1471_v54 = vpop.f32.mrb[31].mxu0 }
 0x217   : > { %vm1487_vm14 = vcmp.ge.f32.partialorder %v1468_v50, 0.0  ;;  %v1503_v30 = vmul.f32 0.2, %v1468_v50  ;;  %v1472_v55 = vadd.f32 %v1471_v54, %v1399_v47 }
 0x218   : > { %v1518_v31 = vsel %vm1486_vm13, %v1466_v48, %v1502_v52  ;;  %vm1488_vm15 = vcmp.ge.f32.partialorder %v1470_v53, 0.0  ;;  %v1504_v56 = vmul.f32 0.2, %v1470_v53 }
 0x219   : > { %1534 = vst [vmem:[%s2693_s7 + $0x60] sm:$0xff] %v1518_v31  ;;  %v1519_v59 = vsel %vm1487_vm14, %v1468_v50, %v1503_v30  ;;  %vm1489_vm0 = vcmp.ge.f32.partialorder %v1472_v55, 0.0  ;;  %v1505_v60 = vmul.f32 0.2, %v1472_v55 }
 0x21a   : > { %1535 = vst [vmem:[%s2693_s7 + $0x68] sm:$0xff] %v1519_v59  ;;  %v1520_v62 = vsel %vm1488_vm15, %v1470_v53, %v1504_v56 }
 0x21b   : > { %1536 = vst [vmem:[%s2693_s7 + $0x70] sm:$0xff] %v1520_v62  ;;  %v1521_v3 = vsel %vm1489_vm0, %v1472_v55, %v1505_v60 }
 0x21c   : > { %1537 = vst [vmem:[%s2693_s7 + $0x78] sm:$0xff] %v1521_v3 }
 0x21d   : > { %2075 = shalt.err (!%p2072_p5)
}
 0x21e   : > { %s2076_s16 = scalar_lea.hbm %s2725_s12, 2048  ;;  %s2080_s25 = scalar_lea.hbm %s2785_s5, 4096 }
 0x21f   : > { %p2077_p6 = scmp.ne.s32.totalorder %s2725_s12, %s2076_s16  ;;  %p2081_p10 = scmp.lt.u32.totalorder %s2725_s12, %s2785_s5 }
 0x220   : > { %p2082_p11 = scmp.lt.u32.totalorder %s2080_s25, %s2076_s16  ;;  %p2084_p13 = scmp.lt.u32.totalorder %s2076_s16, %s2725_s12 }
 0x221   : > { %p2078_p7 = pnand %p2077_p6, %p2215_p4 }
 0x222   : > { %p2083_p12 = por %p2082_p11, %p2081_p10 }
 0x223   : > { %p2079_p9 = pneg %p2078_p7 }
 0x224   : > { %p2085_p0 = por %p2084_p13, %p2083_p12 }
 0x226   : > { %p2086_p1 = pnand %p2085_p0, %p2079_p9 }
 0x228   : > { %2089 = shalt.err (!%p2086_p1)
}
 0x229   : > { %s2143_s8 = smov 256   ;;  %s2144_s27 = smov 16  }
 0x22a   : > { %1825 = dma.vmem_to_hbm [thread:$0]  (%p2215_p4), %s2727_s9, 2048, %s2725_s12, %s2734_s21, %s2143_s8, %s2143_s8, %s2144_s27  }
 0x22b PF: > { %p1831_p2 = scmp.ge.s32.totalorder %s2140_s23, 2  ;;  %s1570_s11 = sand.u32 1, %s2120_s18  }
 0x22c   : > { %s1571_s10 = scalar_lea.sflag [#allocation3], %s1570_s11 }
 0x22d   : > { %p1828_p3 = pnand %p1831_p2, %p2222_p8 }
 0x22f   : > { %2115 = dma.done.wait (!%p1828_p3), %s1571_s10, 2048  }
 0x230   : > { %2117 = vsyncadd (!%p1828_p3), %s1571_s10, 4294965248  ;;  %s18_s23 = sadd.s32 1, %s2140_s23   ;;  %s2788_s18 = smov %s2124_s19 }
 0x231   : > { %p15_p5 = scmp.ge.s32.totalorder %s18_s23, 4   ;;  %s2789_s19 = smov %s2128_s20 }
 0x232   : > { %s2790_s20 = smov %s2228_s6  ;;  %s2791_s21 = smov %s2136_s22 }
 0x233   : > { %s2792_s22 = smov %s2794_s26  ;;  %17 = sbr.rel (!%p15_p5) target bundleno = 4 (0x4), region = 78 }
 0x23a   :  { %1576 = vsyncpa [#allocation3], 1 }
 0x23b   :  { %1578 = vsyncpa [#allocation3 + $0x1], 1 }

</bundles_post_ra>
